<compile_context>
chip_gen: v5e
topology: v5e:2x2
jax: 0.10.0
libtpu: 0.0.40
codegen_flags: <defaults>
</compile_context>

<pallas_src>
import functools

import jax
import jax.numpy as jnp
from jax.experimental import pallas as pl
from jax.experimental.pallas import tpu as pltpu


def _round_up(x, m):
    return (x + m - 1) // m * m


def _slab_dims(H, W):
    """Leading offset L (sublane-aligned) and total slab rows T."""
    Wp = W + 2
    M = H * Wp
    L = _round_up(W + 3, 8)                 # room for top pad row + (1,0) pad pixel
    T = _round_up(L + M + W + 3, 8)         # room for the (kh=2,kw=2) tap overreach
    return L, M, T


def _basic_block_kernel(x_ref, w1_ref, s1_ref, b1_ref, w2_ref, s2_ref, b2_ref,
                        *out_and_scratch, H, W, Cp, L, T, block_n, with_preact):
    """Processes `block_n` images per grid step.

    x_ref   : (block_n, T, Cp) bf16   input slabs (flat padded frame, pads are zero)
    w*_ref  : (9, Cp, Cp)      bf16   conv weights, w[kh*3+kw][cin, cout]
    s*/b*   : (1, Cp)          f32    folded BN scale / bias
    outputs : out slab (block_n, T, Cp) bf16 (+ preact slab if with_preact)
    scratch : mid slab (T, Cp) bf16   conv1 output / conv2 input
    """
    if with_preact:
        out_ref, pre_ref, mid_ref = out_and_scratch
    else:
        out_ref, mid_ref = out_and_scratch
        pre_ref = None

    Wp = W + 2
    M = H * Wp
    tail = T - L - M

    # Validity mask for the flat layout: row m of the M-row block is a real output
    # pixel iff (m % Wp) < W; the other two columns are the interleaved pad columns.
    col = jax.lax.broadcasted_iota(jnp.int32, (M, Cp), 0) % Wp
    valid = col < W

    zeros_head = jnp.zeros((L, Cp), dtype=mid_ref.dtype)
    zeros_tail = jnp.zeros((tail, Cp), dtype=mid_ref.dtype)

    # Scratch slab borders are constant zeros -> write once per grid step.
    mid_ref[pl.ds(0, L), :] = zeros_head
    mid_ref[pl.ds(L + M, tail), :] = zeros_tail

    s1 = s1_ref[...]
    b1 = b1_ref[...]
    s2 = s2_ref[...]
    b2 = b2_ref[...]

    for b in range(block_n):
        # ---- conv1 (3x3, pad=1): 9 accumulating MXU dots on contiguous row slices ----
        acc1 = None
        for kh in range(3):
            for kw in range(3):
                start = L + (kh - 1) * Wp + (kw - 1)
                tap = x_ref[b, pl.ds(start, M), :]                 # (M, Cp) bf16
                d = jnp.dot(tap, w1_ref[kh * 3 + kw],
                            preferred_element_type=jnp.float32)
                acc1 = d if acc1 is None else acc1 + d

        y = jnp.maximum(acc1 * s1 + b1, 0.0)                      # folded BN1 + ReLU
        y = jnp.where(valid, y, 0.0)                              # zero the pad columns
        mid_ref[pl.ds(L, M), :] = y.astype(mid_ref.dtype)         # sublane-aligned store

        # ---- conv2 (3x3, pad=1) + folded BN2 + residual + ReLU ----
        acc2 = None
        for kh in range(3):
            for kw in range(3):
                start = L + (kh - 1) * Wp + (kw - 1)
                tap = mid_ref[pl.ds(start, M), :]
                d = jnp.dot(tap, w2_ref[kh * 3 + kw],
                            preferred_element_type=jnp.float32)
                acc2 = d if acc2 is None else acc2 + d

        residual = x_ref[b, pl.ds(L, M), :].astype(jnp.float32)   # contiguous slice
        pre = acc2 * s2 + b2 + residual
        pre = jnp.where(valid, pre, 0.0)
        out = jnp.maximum(pre, 0.0)

        out_ref[b, pl.ds(0, L), :] = zeros_head
        out_ref[b, pl.ds(L, M), :] = out.astype(out_ref.dtype)
        out_ref[b, pl.ds(L + M, tail), :] = zeros_tail
        if with_preact:
            pre_ref[b, pl.ds(0, L), :] = zeros_head
            pre_ref[b, pl.ds(L, M), :] = pre.astype(pre_ref.dtype)
            pre_ref[b, pl.ds(L + M, tail), :] = zeros_tail


# ----------------------------------------------------------------------------
# Layout conversion (done ONCE at network entry/exit, not per block)
# ----------------------------------------------------------------------------

def pack_nchw_to_slab(x_nchw, Cp, H, W):
    """NCHW f32 -> (N, T, Cp) bf16 slab (channel-padded, spatially padded, flattened)."""
    N, C = x_nchw.shape[0], x_nchw.shape[1]
    L, _, T = _slab_dims(H, W)
    x = jnp.transpose(x_nchw, (0, 2, 3, 1)).astype(jnp.float32)
    x = jnp.pad(x, ((0, 0), (1, 1), (1, 1), (0, Cp - C)))         # (N, H+2, W+2, Cp)
    P = (H + 2) * (W + 2)
    x = x.reshape(N, P, Cp)
    lead = L - (W + 2) - 1
    tail = T - lead - P
    x = jnp.pad(x, ((0, 0), (lead, tail), (0, 0)))
    return x.astype(jnp.bfloat16)


def unpack_slab_to_nchw(slab, C, H, W):
    """(N, T, Cp) slab -> NCHW f32 (interior pixels, real channels only)."""
    L, _, _ = _slab_dims(H, W)
    N = slab.shape[0]
    P = (H + 2) * (W + 2)
    lead = L - (W + 2) - 1
    x = slab[:, lead:lead + P, :].reshape(N, H + 2, W + 2, -1)
    x = x[:, 1:H + 1, 1:W + 1, :C]
    return jnp.transpose(x, (0, 3, 1, 2)).astype(jnp.float32)


# ----------------------------------------------------------------------------
# Block forward
# ----------------------------------------------------------------------------

def basic_block_forward_slab(x_slab, params, *, H, W, Cp, is_last=False, block_n=1):
    """BasicBlock forward on the chainable slab format: (N, T, Cp) bf16 in/out."""
    eps = 1e-5
    N, T, _ = x_slab.shape
    planes = params["conv1_w"].shape[0]
    assert params["conv1_w"].shape[1] == planes, "identity shortcut: inplanes == planes"
    assert N % block_n == 0
    L, _, T_expect = _slab_dims(H, W)
    assert T == T_expect

    def prep_w(w_oihw):
        cout, cin = w_oihw.shape[0], w_oihw.shape[1]
        w = jnp.transpose(w_oihw, (2, 3, 1, 0)).astype(jnp.float32)      # (3,3,ci,co)
        w = jnp.pad(w, ((0, 0), (0, 0), (0, Cp - cin), (0, Cp - cout)))
        return w.reshape(9, Cp, Cp).astype(jnp.bfloat16)

    def fold_bn(g, b, m, v):
        s = (g / jnp.sqrt(v + eps)).astype(jnp.float32)
        bb = (b - m * s).astype(jnp.float32)
        s = jnp.pad(s, (0, Cp - planes), constant_values=1.0)   # padded ch: acc=0 -> 0
        bb = jnp.pad(bb, (0, Cp - planes))
        return s.reshape(1, Cp), bb.reshape(1, Cp)

    w1 = prep_w(params["conv1_w"])
    w2 = prep_w(params["conv2_w"])
    s1, b1 = fold_bn(params["bn1_gamma"], params["bn1_beta"],
                     params["bn1_mean"], params["bn1_var"])
    s2, b2 = fold_bn(params["bn2_gamma"], params["bn2_beta"],
                     params["bn2_mean"], params["bn2_var"])

    kernel = functools.partial(_basic_block_kernel, H=H, W=W, Cp=Cp, L=L, T=T,
                               block_n=block_n, with_preact=is_last)

    slab_sds = jax.ShapeDtypeStruct((N, T, Cp), jnp.bfloat16)
    slab_spec = pl.BlockSpec((block_n, T, Cp), lambda n: (n, 0, 0))
    if is_last:
        out_shape = (slab_sds, slab_sds)
        out_specs = (slab_spec, pl.BlockSpec((block_n, T, Cp), lambda n: (n, 0, 0)))
    else:
        out_shape = slab_sds
        out_specs = slab_spec

    return pl.pallas_call(
        kernel,
        out_shape=out_shape,
        grid_spec=pltpu.PrefetchScalarGridSpec(
            num_scalar_prefetch=0,
            grid=(N // block_n,),
            in_specs=[
                pl.BlockSpec((block_n, T, Cp), lambda n: (n, 0, 0)),
                pl.BlockSpec((9, Cp, Cp), lambda n: (0, 0, 0)),
                pl.BlockSpec((1, Cp), lambda n: (0, 0)),
                pl.BlockSpec((1, Cp), lambda n: (0, 0)),
                pl.BlockSpec((9, Cp, Cp), lambda n: (0, 0, 0)),
                pl.BlockSpec((1, Cp), lambda n: (0, 0)),
                pl.BlockSpec((1, Cp), lambda n: (0, 0)),
            ],
            out_specs=out_specs,
            scratch_shapes=[pltpu.VMEM((T, Cp), jnp.bfloat16)],
        ),
        compiler_params=pltpu.CompilerParams(
            dimension_semantics=("parallel",),
            vmem_limit_bytes=32 * 1024 * 1024,
        ),
    )(x_slab, w1, s1, b1, w2, s2, b2)


def basic_block_forward(x_nchw, params, *, is_last=False, block_n=1):
    """Convenience wrapper: NCHW in / NCHW out (layout conversion at the boundary)."""
    N, C, H, W = x_nchw.shape
    planes = params["conv1_w"].shape[0]
    assert planes == C
    Cp = _round_up(max(C, planes), 128)

    x_slab = pack_nchw_to_slab(x_nchw, Cp, H, W)
    result = basic_block_forward_slab(x_slab, params, H=H, W=W, Cp=Cp,
                                      is_last=is_last, block_n=block_n)
    if is_last:
        out_slab, pre_slab = result
        return (unpack_slab_to_nchw(out_slab, planes, H, W),
                unpack_slab_to_nchw(pre_slab, planes, H, W))
    return unpack_slab_to_nchw(result, planes, H, W)


# ----------------------------------------------------------------------------
# Pure-JAX f32 reference (same semantics as the PyTorch module, eval mode)
# ----------------------------------------------------------------------------

def _reference_forward(x_nchw, params, *, is_last=False, eps=1e-5):
    x = jnp.transpose(x_nchw, (0, 2, 3, 1))

    def conv3x3(inp, w_oihw):
        w = jnp.transpose(w_oihw, (2, 3, 1, 0))  # HWIO
        return jax.lax.conv_general_dilated(
            inp, w, window_strides=(1, 1), padding=((1, 1), (1, 1)),
            dimension_numbers=("NHWC", "HWIO", "NHWC"))

    def bn(inp, g, b, m, v):
        return (inp - m) / jnp.sqrt(v + eps) * g + b

    out = conv3x3(x, params["conv1_w"])
    out = bn(out, params["bn1_gamma"], params["bn1_beta"], params["bn1_mean"], params["bn1_var"])
    out = jnp.maximum(out, 0.0)
    out = conv3x3(out, params["conv2_w"])
    out = bn(out, params["bn2_gamma"], params["bn2_beta"], params["bn2_mean"], params["bn2_var"])
    preact = out + x
    out = jnp.maximum(preact, 0.0)
    out = jnp.transpose(out, (0, 3, 1, 2))
    preact = jnp.transpose(preact, (0, 3, 1, 2))
    return (out, preact) if is_last else out


if __name__ == "__main__":
    key = jax.random.PRNGKey(0)
    N, C, H, W = 2, 4, 16, 16
    planes = 4  # inplanes == planes, stride=1, downsample=None

    k_x, k_w1, k_w2, k_m1, k_m2 = jax.random.split(key, 5)
    x = jax.random.normal(k_x, (N, C, H, W), dtype=jnp.float32)

    params = {
        "conv1_w": 0.1 * jax.random.normal(k_w1, (planes, C, 3, 3), dtype=jnp.float32),
        "conv2_w": 0.1 * jax.random.normal(k_w2, (planes, planes, 3, 3), dtype=jnp.float32),
        "bn1_gamma": jnp.ones((planes,), jnp.float32),
        "bn1_beta": jnp.zeros((planes,), jnp.float32),
        "bn1_mean": 0.05 * jax.random.normal(k_m1, (planes,), dtype=jnp.float32),
        "bn1_var": jnp.ones((planes,), jnp.float32),
        "bn2_gamma": jnp.ones((planes,), jnp.float32),
        "bn2_beta": jnp.zeros((planes,), jnp.float32),
        "bn2_mean": 0.05 * jax.random.normal(k_m2, (planes,), dtype=jnp.float32),
        "bn2_var": jnp.ones((planes,), jnp.float32),
    }

    # bf16 activations/weights/outputs with f32 accumulation vs. f32 reference.
    TOL = dict(atol=5e-2, rtol=5e-2)

    # Common path (is_last=False): one output, no preact writeback; grid over N.
    out = jax.block_until_ready(basic_block_forward(x, params, is_last=False, block_n=1))
    ref_out = _reference_forward(x, params, is_last=False)
    assert jnp.allclose(out, ref_out, **TOL)

    # is_last=True path: also returns preact; exercise batch blocking (block_n=2).
    out2, pre2 = basic_block_forward(x, params, is_last=True, block_n=2)
    out2 = jax.block_until_ready(out2)
    pre2 = jax.block_until_ready(pre2)
    ref_out2, ref_pre2 = _reference_forward(x, params, is_last=True)
    assert jnp.allclose(out2, ref_out2, **TOL)
    assert jnp.allclose(pre2, ref_pre2, **TOL)

    print("KERNEL_OK")
</pallas_src>

<mosaic_0001>
module attributes {stable_mosaic.version = 11 : i64} {
  func.func @_basic_block_kernel(%arg0: i32, %arg1: memref<1x336x128xbf16, #tpu.memory_space<vmem>>, %arg2: memref<9x128x128xbf16, #tpu.memory_space<vmem>>, %arg3: memref<1x128xf32, #tpu.memory_space<vmem>>, %arg4: memref<1x128xf32, #tpu.memory_space<vmem>>, %arg5: memref<9x128x128xbf16, #tpu.memory_space<vmem>>, %arg6: memref<1x128xf32, #tpu.memory_space<vmem>>, %arg7: memref<1x128xf32, #tpu.memory_space<vmem>>, %arg8: memref<1x336x128xbf16, #tpu.memory_space<vmem>>, %arg9: memref<336x128xbf16, #tpu.memory_space<vmem>>) attributes {dimension_semantics = [#tpu.dimension_semantics<parallel>], iteration_bounds = array<i64: 2>, scalar_prefetch = 0 : i64, scratch_operands = 1 : i64, tpu.core_type = #tpu.core_type<tc>, window_params = [{transform_indices = @transform_0, window_bounds = array<i64: 1, 336, 128>}, {pipeline_mode = #tpu.pipeline_mode<synchronous>, transform_indices = @transform_1, window_bounds = array<i64: 9, 128, 128>}, {pipeline_mode = #tpu.pipeline_mode<synchronous>, transform_indices = @transform_2, window_bounds = array<i64: 1, 128>}, {pipeline_mode = #tpu.pipeline_mode<synchronous>, transform_indices = @transform_3, window_bounds = array<i64: 1, 128>}, {pipeline_mode = #tpu.pipeline_mode<synchronous>, transform_indices = @transform_4, window_bounds = array<i64: 9, 128, 128>}, {pipeline_mode = #tpu.pipeline_mode<synchronous>, transform_indices = @transform_5, window_bounds = array<i64: 1, 128>}, {pipeline_mode = #tpu.pipeline_mode<synchronous>, transform_indices = @transform_6, window_bounds = array<i64: 1, 128>}, {transform_indices = @transform_7, window_bounds = array<i64: 1, 336, 128>}]} {
    %0 = tpu.iota {dimensions = array<i32: 0>} : vector<288x128xi32>
    %c18_i32 = arith.constant 18 : i32
    %c0_i32 = arith.constant 0 : i32
    %1 = arith.cmpi eq, %c18_i32, %c0_i32 : i32
    %c1_i32 = arith.constant 1 : i32
    %2 = arith.select %1, %c1_i32, %c18_i32 : i32
    %3 = vector.broadcast %2 : i32 to vector<288x128xi32>
    %4 = arith.remsi %0, %3 : vector<288x128xi32>
    %c0_i32_0 = arith.constant 0 : i32
    %5 = vector.broadcast %c0_i32_0 : i32 to vector<288x128xi32>
    %6 = arith.cmpi ne, %4, %5 : vector<288x128xi32>
    %c0_i32_1 = arith.constant 0 : i32
    %7 = vector.broadcast %c0_i32_1 : i32 to vector<288x128xi32>
    %8 = arith.cmpi slt, %4, %7 : vector<288x128xi32>
    %c0_i32_2 = arith.constant 0 : i32
    %9 = arith.cmpi slt, %2, %c0_i32_2 : i32
    %10 = vector.broadcast %9 : i1 to vector<288x128xi1>
    %11 = vector.broadcast %10 : vector<288x128xi1> to vector<288x128xi1>
    %12 = arith.xori %8, %11 : vector<288x128xi1>
    %13 = arith.andi %12, %6 : vector<288x128xi1>
    %14 = vector.broadcast %2 : i32 to vector<288x128xi32>
    %15 = arith.addi %4, %14 : vector<288x128xi32>
    %16 = arith.select %13, %15, %4 : vector<288x128xi1>, vector<288x128xi32>
    %c16_i32 = arith.constant 16 : i32
    %17 = vector.broadcast %c16_i32 : i32 to vector<288x128xi32>
    %18 = arith.cmpi slt, %16, %17 : vector<288x128xi32>
    %cst = arith.constant 0.000000e+00 : bf16
    %19 = vector.broadcast %cst : bf16 to vector<24x128xbf16>
    %cst_3 = arith.constant 0.000000e+00 : bf16
    %20 = vector.broadcast %cst_3 : bf16 to vector<24x128xbf16>
    %c0 = arith.constant 0 : index
    %c0_4 = arith.constant 0 : index
    %21 = vector.load %arg9[%c0, %c0_4] : memref<336x128xbf16, #tpu.memory_space<vmem>>, vector<24x128xbf16>
    tpu.vector_store %arg9[%c0, %c0_4], %19 {strides = array<i32>} : memref<336x128xbf16, #tpu.memory_space<vmem>>, vector<24x128xbf16>,
    %c312 = arith.constant 312 : index
    %c0_5 = arith.constant 0 : index
    %22 = vector.load %arg9[%c312, %c0_5] : memref<336x128xbf16, #tpu.memory_space<vmem>>, vector<24x128xbf16>
    tpu.vector_store %arg9[%c312, %c0_5], %20 {strides = array<i32>} : memref<336x128xbf16, #tpu.memory_space<vmem>>, vector<24x128xbf16>,
    %c0_6 = arith.constant 0 : index
    %c0_7 = arith.constant 0 : index
    %23 = vector.load %arg3[%c0_6, %c0_7] : memref<1x128xf32, #tpu.memory_space<vmem>>, vector<1x128xf32>
    %c0_8 = arith.constant 0 : index
    %c0_9 = arith.constant 0 : index
    %24 = vector.load %arg4[%c0_8, %c0_9] : memref<1x128xf32, #tpu.memory_space<vmem>>, vector<1x128xf32>
    %c0_10 = arith.constant 0 : index
    %c0_11 = arith.constant 0 : index
    %25 = vector.load %arg6[%c0_10, %c0_11] : memref<1x128xf32, #tpu.memory_space<vmem>>, vector<1x128xf32>
    %c0_12 = arith.constant 0 : index
    %c0_13 = arith.constant 0 : index
    %26 = vector.load %arg7[%c0_12, %c0_13] : memref<1x128xf32, #tpu.memory_space<vmem>>, vector<1x128xf32>
    %c0_14 = arith.constant 0 : index
    %c5 = arith.constant 5 : index
    %c0_15 = arith.constant 0 : index
    %27 = vector.load %arg1[%c0_14, %c5, %c0_15] : memref<1x336x128xbf16, #tpu.memory_space<vmem>>, vector<1x288x128xbf16>
    %28 = vector.shape_cast %27 : vector<1x288x128xbf16> to vector<288x128xbf16>
    %c0_16 = arith.constant 0 : index
    %c0_17 = arith.constant 0 : index
    %c0_18 = arith.constant 0 : index
    %29 = vector.load %arg2[%c0_16, %c0_17, %c0_18] : memref<9x128x128xbf16, #tpu.memory_space<vmem>>, vector<1x128x128xbf16>
    %30 = vector.shape_cast %29 : vector<1x128x128xbf16> to vector<128x128xbf16>
    %cst_19 = arith.constant dense<0.000000e+00> : vector<288x128xf32>
    %31 = tpu.matmul %28, %30, %cst_19 {dimension_numbers = #tpu.dot_dimension_numbers<[1], [0], [0], [1], [0, 0, 1, 1], [], []>} : vector<288x128xbf16>, vector<128x128xbf16>, vector<288x128xf32> -> vector<288x128xf32>
    %c0_20 = arith.constant 0 : index
    %c6 = arith.constant 6 : index
    %c0_21 = arith.constant 0 : index
    %32 = vector.load %arg1[%c0_20, %c6, %c0_21] : memref<1x336x128xbf16, #tpu.memory_space<vmem>>, vector<1x288x128xbf16>
    %33 = vector.shape_cast %32 : vector<1x288x128xbf16> to vector<288x128xbf16>
    %c1 = arith.constant 1 : index
    %c0_22 = arith.constant 0 : index
    %c0_23 = arith.constant 0 : index
    %34 = vector.load %arg2[%c1, %c0_22, %c0_23] : memref<9x128x128xbf16, #tpu.memory_space<vmem>>, vector<1x128x128xbf16>
    %35 = vector.shape_cast %34 : vector<1x128x128xbf16> to vector<128x128xbf16>
    %cst_24 = arith.constant dense<0.000000e+00> : vector<288x128xf32>
    %36 = tpu.matmul %33, %35, %cst_24 {dimension_numbers = #tpu.dot_dimension_numbers<[1], [0], [0], [1], [0, 0, 1, 1], [], []>} : vector<288x128xbf16>, vector<128x128xbf16>, vector<288x128xf32> -> vector<288x128xf32>
    %37 = arith.addf %31, %36 : vector<288x128xf32>
    %c0_25 = arith.constant 0 : index
    %c7 = arith.constant 7 : index
    %c0_26 = arith.constant 0 : index
    %38 = vector.load %arg1[%c0_25, %c7, %c0_26] : memref<1x336x128xbf16, #tpu.memory_space<vmem>>, vector<1x288x128xbf16>
    %39 = vector.shape_cast %38 : vector<1x288x128xbf16> to vector<288x128xbf16>
    %c2 = arith.constant 2 : index
    %c0_27 = arith.constant 0 : index
    %c0_28 = arith.constant 0 : index
    %40 = vector.load %arg2[%c2, %c0_27, %c0_28] : memref<9x128x128xbf16, #tpu.memory_space<vmem>>, vector<1x128x128xbf16>
    %41 = vector.shape_cast %40 : vector<1x128x128xbf16> to vector<128x128xbf16>
    %cst_29 = arith.constant dense<0.000000e+00> : vector<288x128xf32>
    %42 = tpu.matmul %39, %41, %cst_29 {dimension_numbers = #tpu.dot_dimension_numbers<[1], [0], [0], [1], [0, 0, 1, 1], [], []>} : vector<288x128xbf16>, vector<128x128xbf16>, vector<288x128xf32> -> vector<288x128xf32>
    %43 = arith.addf %37, %42 : vector<288x128xf32>
    %c0_30 = arith.constant 0 : index
    %c23 = arith.constant 23 : index
    %c0_31 = arith.constant 0 : index
    %44 = vector.load %arg1[%c0_30, %c23, %c0_31] : memref<1x336x128xbf16, #tpu.memory_space<vmem>>, vector<1x288x128xbf16>
    %45 = vector.shape_cast %44 : vector<1x288x128xbf16> to vector<288x128xbf16>
    %c3 = arith.constant 3 : index
    %c0_32 = arith.constant 0 : index
    %c0_33 = arith.constant 0 : index
    %46 = vector.load %arg2[%c3, %c0_32, %c0_33] : memref<9x128x128xbf16, #tpu.memory_space<vmem>>, vector<1x128x128xbf16>
    %47 = vector.shape_cast %46 : vector<1x128x128xbf16> to vector<128x128xbf16>
    %cst_34 = arith.constant dense<0.000000e+00> : vector<288x128xf32>
    %48 = tpu.matmul %45, %47, %cst_34 {dimension_numbers = #tpu.dot_dimension_numbers<[1], [0], [0], [1], [0, 0, 1, 1], [], []>} : vector<288x128xbf16>, vector<128x128xbf16>, vector<288x128xf32> -> vector<288x128xf32>
    %49 = arith.addf %43, %48 : vector<288x128xf32>
    %c0_35 = arith.constant 0 : index
    %c24 = arith.constant 24 : index
    %c0_36 = arith.constant 0 : index
    %50 = vector.load %arg1[%c0_35, %c24, %c0_36] : memref<1x336x128xbf16, #tpu.memory_space<vmem>>, vector<1x288x128xbf16>
    %51 = vector.shape_cast %50 : vector<1x288x128xbf16> to vector<288x128xbf16>
    %c4 = arith.constant 4 : index
    %c0_37 = arith.constant 0 : index
    %c0_38 = arith.constant 0 : index
    %52 = vector.load %arg2[%c4, %c0_37, %c0_38] : memref<9x128x128xbf16, #tpu.memory_space<vmem>>, vector<1x128x128xbf16>
    %53 = vector.shape_cast %52 : vector<1x128x128xbf16> to vector<128x128xbf16>
    %cst_39 = arith.constant dense<0.000000e+00> : vector<288x128xf32>
    %54 = tpu.matmul %51, %53, %cst_39 {dimension_numbers = #tpu.dot_dimension_numbers<[1], [0], [0], [1], [0, 0, 1, 1], [], []>} : vector<288x128xbf16>, vector<128x128xbf16>, vector<288x128xf32> -> vector<288x128xf32>
    %55 = arith.addf %49, %54 : vector<288x128xf32>
    %c0_40 = arith.constant 0 : index
    %c25 = arith.constant 25 : index
    %c0_41 = arith.constant 0 : index
    %56 = vector.load %arg1[%c0_40, %c25, %c0_41] : memref<1x336x128xbf16, #tpu.memory_space<vmem>>, vector<1x288x128xbf16>
    %57 = vector.shape_cast %56 : vector<1x288x128xbf16> to vector<288x128xbf16>
    %c5_42 = arith.constant 5 : index
    %c0_43 = arith.constant 0 : index
    %c0_44 = arith.constant 0 : index
    %58 = vector.load %arg2[%c5_42, %c0_43, %c0_44] : memref<9x128x128xbf16, #tpu.memory_space<vmem>>, vector<1x128x128xbf16>
    %59 = vector.shape_cast %58 : vector<1x128x128xbf16> to vector<128x128xbf16>
    %cst_45 = arith.constant dense<0.000000e+00> : vector<288x128xf32>
    %60 = tpu.matmul %57, %59, %cst_45 {dimension_numbers = #tpu.dot_dimension_numbers<[1], [0], [0], [1], [0, 0, 1, 1], [], []>} : vector<288x128xbf16>, vector<128x128xbf16>, vector<288x128xf32> -> vector<288x128xf32>
    %61 = arith.addf %55, %60 : vector<288x128xf32>
    %c0_46 = arith.constant 0 : index
    %c41 = arith.constant 41 : index
    %c0_47 = arith.constant 0 : index
    %62 = vector.load %arg1[%c0_46, %c41, %c0_47] : memref<1x336x128xbf16, #tpu.memory_space<vmem>>, vector<1x288x128xbf16>
    %63 = vector.shape_cast %62 : vector<1x288x128xbf16> to vector<288x128xbf16>
    %c6_48 = arith.constant 6 : index
    %c0_49 = arith.constant 0 : index
    %c0_50 = arith.constant 0 : index
    %64 = vector.load %arg2[%c6_48, %c0_49, %c0_50] : memref<9x128x128xbf16, #tpu.memory_space<vmem>>, vector<1x128x128xbf16>
    %65 = vector.shape_cast %64 : vector<1x128x128xbf16> to vector<128x128xbf16>
    %cst_51 = arith.constant dense<0.000000e+00> : vector<288x128xf32>
    %66 = tpu.matmul %63, %65, %cst_51 {dimension_numbers = #tpu.dot_dimension_numbers<[1], [0], [0], [1], [0, 0, 1, 1], [], []>} : vector<288x128xbf16>, vector<128x128xbf16>, vector<288x128xf32> -> vector<288x128xf32>
    %67 = arith.addf %61, %66 : vector<288x128xf32>
    %c0_52 = arith.constant 0 : index
    %c42 = arith.constant 42 : index
    %c0_53 = arith.constant 0 : index
    %68 = vector.load %arg1[%c0_52, %c42, %c0_53] : memref<1x336x128xbf16, #tpu.memory_space<vmem>>, vector<1x288x128xbf16>
    %69 = vector.shape_cast %68 : vector<1x288x128xbf16> to vector<288x128xbf16>
    %c7_54 = arith.constant 7 : index
    %c0_55 = arith.constant 0 : index
    %c0_56 = arith.constant 0 : index
    %70 = vector.load %arg2[%c7_54, %c0_55, %c0_56] : memref<9x128x128xbf16, #tpu.memory_space<vmem>>, vector<1x128x128xbf16>
    %71 = vector.shape_cast %70 : vector<1x128x128xbf16> to vector<128x128xbf16>
    %cst_57 = arith.constant dense<0.000000e+00> : vector<288x128xf32>
    %72 = tpu.matmul %69, %71, %cst_57 {dimension_numbers = #tpu.dot_dimension_numbers<[1], [0], [0], [1], [0, 0, 1, 1], [], []>} : vector<288x128xbf16>, vector<128x128xbf16>, vector<288x128xf32> -> vector<288x128xf32>
    %73 = arith.addf %67, %72 : vector<288x128xf32>
    %c0_58 = arith.constant 0 : index
    %c43 = arith.constant 43 : index
    %c0_59 = arith.constant 0 : index
    %74 = vector.load %arg1[%c0_58, %c43, %c0_59] : memref<1x336x128xbf16, #tpu.memory_space<vmem>>, vector<1x288x128xbf16>
    %75 = vector.shape_cast %74 : vector<1x288x128xbf16> to vector<288x128xbf16>
    %c8 = arith.constant 8 : index
    %c0_60 = arith.constant 0 : index
    %c0_61 = arith.constant 0 : index
    %76 = vector.load %arg2[%c8, %c0_60, %c0_61] : memref<9x128x128xbf16, #tpu.memory_space<vmem>>, vector<1x128x128xbf16>
    %77 = vector.shape_cast %76 : vector<1x128x128xbf16> to vector<128x128xbf16>
    %cst_62 = arith.constant dense<0.000000e+00> : vector<288x128xf32>
    %78 = tpu.matmul %75, %77, %cst_62 {dimension_numbers = #tpu.dot_dimension_numbers<[1], [0], [0], [1], [0, 0, 1, 1], [], []>} : vector<288x128xbf16>, vector<128x128xbf16>, vector<288x128xf32> -> vector<288x128xf32>
    %79 = arith.addf %73, %78 : vector<288x128xf32>
    %80 = vector.broadcast %23 : vector<1x128xf32> to vector<288x128xf32>
    %81 = arith.mulf %79, %80 : vector<288x128xf32>
    %82 = vector.broadcast %24 : vector<1x128xf32> to vector<288x128xf32>
    %83 = arith.addf %81, %82 : vector<288x128xf32>
    %cst_63 = arith.constant 0.000000e+00 : f32
    %84 = vector.broadcast %cst_63 : f32 to vector<288x128xf32>
    %85 = arith.maximumf %83, %84 : vector<288x128xf32>
    %cst_64 = arith.constant 0.000000e+00 : f32
    %86 = vector.broadcast %cst_64 : f32 to vector<288x128xf32>
    %87 = arith.select %18, %85, %86 : vector<288x128xi1>, vector<288x128xf32>
    %88 = arith.truncf %87 : vector<288x128xf32> to vector<288x128xbf16>
    %c24_65 = arith.constant 24 : index
    %c0_66 = arith.constant 0 : index
    %89 = vector.load %arg9[%c24_65, %c0_66] : memref<336x128xbf16, #tpu.memory_space<vmem>>, vector<288x128xbf16>
    tpu.vector_store %arg9[%c24_65, %c0_66], %88 {strides = array<i32>} : memref<336x128xbf16, #tpu.memory_space<vmem>>, vector<288x128xbf16>,
    %c5_67 = arith.constant 5 : index
    %c0_68 = arith.constant 0 : index
    %90 = vector.load %arg9[%c5_67, %c0_68] : memref<336x128xbf16, #tpu.memory_space<vmem>>, vector<288x128xbf16>
    %c0_69 = arith.constant 0 : index
    %c0_70 = arith.constant 0 : index
    %c0_71 = arith.constant 0 : index
    %91 = vector.load %arg5[%c0_69, %c0_70, %c0_71] : memref<9x128x128xbf16, #tpu.memory_space<vmem>>, vector<1x128x128xbf16>
    %92 = vector.shape_cast %91 : vector<1x128x128xbf16> to vector<128x128xbf16>
    %cst_72 = arith.constant dense<0.000000e+00> : vector<288x128xf32>
    %93 = tpu.matmul %90, %92, %cst_72 {dimension_numbers = #tpu.dot_dimension_numbers<[1], [0], [0], [1], [0, 0, 1, 1], [], []>} : vector<288x128xbf16>, vector<128x128xbf16>, vector<288x128xf32> -> vector<288x128xf32>
    %c6_73 = arith.constant 6 : index
    %c0_74 = arith.constant 0 : index
    %94 = vector.load %arg9[%c6_73, %c0_74] : memref<336x128xbf16, #tpu.memory_space<vmem>>, vector<288x128xbf16>
    %c1_75 = arith.constant 1 : index
    %c0_76 = arith.constant 0 : index
    %c0_77 = arith.constant 0 : index
    %95 = vector.load %arg5[%c1_75, %c0_76, %c0_77] : memref<9x128x128xbf16, #tpu.memory_space<vmem>>, vector<1x128x128xbf16>
    %96 = vector.shape_cast %95 : vector<1x128x128xbf16> to vector<128x128xbf16>
    %cst_78 = arith.constant dense<0.000000e+00> : vector<288x128xf32>
    %97 = tpu.matmul %94, %96, %cst_78 {dimension_numbers = #tpu.dot_dimension_numbers<[1], [0], [0], [1], [0, 0, 1, 1], [], []>} : vector<288x128xbf16>, vector<128x128xbf16>, vector<288x128xf32> -> vector<288x128xf32>
    %98 = arith.addf %93, %97 : vector<288x128xf32>
    %c7_79 = arith.constant 7 : index
    %c0_80 = arith.constant 0 : index
    %99 = vector.load %arg9[%c7_79, %c0_80] : memref<336x128xbf16, #tpu.memory_space<vmem>>, vector<288x128xbf16>
    %c2_81 = arith.constant 2 : index
    %c0_82 = arith.constant 0 : index
    %c0_83 = arith.constant 0 : index
    %100 = vector.load %arg5[%c2_81, %c0_82, %c0_83] : memref<9x128x128xbf16, #tpu.memory_space<vmem>>, vector<1x128x128xbf16>
    %101 = vector.shape_cast %100 : vector<1x128x128xbf16> to vector<128x128xbf16>
    %cst_84 = arith.constant dense<0.000000e+00> : vector<288x128xf32>
    %102 = tpu.matmul %99, %101, %cst_84 {dimension_numbers = #tpu.dot_dimension_numbers<[1], [0], [0], [1], [0, 0, 1, 1], [], []>} : vector<288x128xbf16>, vector<128x128xbf16>, vector<288x128xf32> -> vector<288x128xf32>
    %103 = arith.addf %98, %102 : vector<288x128xf32>
    %c23_85 = arith.constant 23 : index
    %c0_86 = arith.constant 0 : index
    %104 = vector.load %arg9[%c23_85, %c0_86] : memref<336x128xbf16, #tpu.memory_space<vmem>>, vector<288x128xbf16>
    %c3_87 = arith.constant 3 : index
    %c0_88 = arith.constant 0 : index
    %c0_89 = arith.constant 0 : index
    %105 = vector.load %arg5[%c3_87, %c0_88, %c0_89] : memref<9x128x128xbf16, #tpu.memory_space<vmem>>, vector<1x128x128xbf16>
    %106 = vector.shape_cast %105 : vector<1x128x128xbf16> to vector<128x128xbf16>
    %cst_90 = arith.constant dense<0.000000e+00> : vector<288x128xf32>
    %107 = tpu.matmul %104, %106, %cst_90 {dimension_numbers = #tpu.dot_dimension_numbers<[1], [0], [0], [1], [0, 0, 1, 1], [], []>} : vector<288x128xbf16>, vector<128x128xbf16>, vector<288x128xf32> -> vector<288x128xf32>
    %108 = arith.addf %103, %107 : vector<288x128xf32>
    %c24_91 = arith.constant 24 : index
    %c0_92 = arith.constant 0 : index
    %109 = vector.load %arg9[%c24_91, %c0_92] : memref<336x128xbf16, #tpu.memory_space<vmem>>, vector<288x128xbf16>
    %c4_93 = arith.constant 4 : index
    %c0_94 = arith.constant 0 : index
    %c0_95 = arith.constant 0 : index
    %110 = vector.load %arg5[%c4_93, %c0_94, %c0_95] : memref<9x128x128xbf16, #tpu.memory_space<vmem>>, vector<1x128x128xbf16>
    %111 = vector.shape_cast %110 : vector<1x128x128xbf16> to vector<128x128xbf16>
    %cst_96 = arith.constant dense<0.000000e+00> : vector<288x128xf32>
    %112 = tpu.matmul %109, %111, %cst_96 {dimension_numbers = #tpu.dot_dimension_numbers<[1], [0], [0], [1], [0, 0, 1, 1], [], []>} : vector<288x128xbf16>, vector<128x128xbf16>, vector<288x128xf32> -> vector<288x128xf32>
    %113 = arith.addf %108, %112 : vector<288x128xf32>
    %c25_97 = arith.constant 25 : index
    %c0_98 = arith.constant 0 : index
    %114 = vector.load %arg9[%c25_97, %c0_98] : memref<336x128xbf16, #tpu.memory_space<vmem>>, vector<288x128xbf16>
    %c5_99 = arith.constant 5 : index
    %c0_100 = arith.constant 0 : index
    %c0_101 = arith.constant 0 : index
    %115 = vector.load %arg5[%c5_99, %c0_100, %c0_101] : memref<9x128x128xbf16, #tpu.memory_space<vmem>>, vector<1x128x128xbf16>
    %116 = vector.shape_cast %115 : vector<1x128x128xbf16> to vector<128x128xbf16>
    %cst_102 = arith.constant dense<0.000000e+00> : vector<288x128xf32>
    %117 = tpu.matmul %114, %116, %cst_102 {dimension_numbers = #tpu.dot_dimension_numbers<[1], [0], [0], [1], [0, 0, 1, 1], [], []>} : vector<288x128xbf16>, vector<128x128xbf16>, vector<288x128xf32> -> vector<288x128xf32>
    %118 = arith.addf %113, %117 : vector<288x128xf32>
    %c41_103 = arith.constant 41 : index
    %c0_104 = arith.constant 0 : index
    %119 = vector.load %arg9[%c41_103, %c0_104] : memref<336x128xbf16, #tpu.memory_space<vmem>>, vector<288x128xbf16>
    %c6_105 = arith.constant 6 : index
    %c0_106 = arith.constant 0 : index
    %c0_107 = arith.constant 0 : index
    %120 = vector.load %arg5[%c6_105, %c0_106, %c0_107] : memref<9x128x128xbf16, #tpu.memory_space<vmem>>, vector<1x128x128xbf16>
    %121 = vector.shape_cast %120 : vector<1x128x128xbf16> to vector<128x128xbf16>
    %cst_108 = arith.constant dense<0.000000e+00> : vector<288x128xf32>
    %122 = tpu.matmul %119, %121, %cst_108 {dimension_numbers = #tpu.dot_dimension_numbers<[1], [0], [0], [1], [0, 0, 1, 1], [], []>} : vector<288x128xbf16>, vector<128x128xbf16>, vector<288x128xf32> -> vector<288x128xf32>
    %123 = arith.addf %118, %122 : vector<288x128xf32>
    %c42_109 = arith.constant 42 : index
    %c0_110 = arith.constant 0 : index
    %124 = vector.load %arg9[%c42_109, %c0_110] : memref<336x128xbf16, #tpu.memory_space<vmem>>, vector<288x128xbf16>
    %c7_111 = arith.constant 7 : index
    %c0_112 = arith.constant 0 : index
    %c0_113 = arith.constant 0 : index
    %125 = vector.load %arg5[%c7_111, %c0_112, %c0_113] : memref<9x128x128xbf16, #tpu.memory_space<vmem>>, vector<1x128x128xbf16>
    %126 = vector.shape_cast %125 : vector<1x128x128xbf16> to vector<128x128xbf16>
    %cst_114 = arith.constant dense<0.000000e+00> : vector<288x128xf32>
    %127 = tpu.matmul %124, %126, %cst_114 {dimension_numbers = #tpu.dot_dimension_numbers<[1], [0], [0], [1], [0, 0, 1, 1], [], []>} : vector<288x128xbf16>, vector<128x128xbf16>, vector<288x128xf32> -> vector<288x128xf32>
    %128 = arith.addf %123, %127 : vector<288x128xf32>
    %c43_115 = arith.constant 43 : index
    %c0_116 = arith.constant 0 : index
    %129 = vector.load %arg9[%c43_115, %c0_116] : memref<336x128xbf16, #tpu.memory_space<vmem>>, vector<288x128xbf16>
    %c8_117 = arith.constant 8 : index
    %c0_118 = arith.constant 0 : index
    %c0_119 = arith.constant 0 : index
    %130 = vector.load %arg5[%c8_117, %c0_118, %c0_119] : memref<9x128x128xbf16, #tpu.memory_space<vmem>>, vector<1x128x128xbf16>
    %131 = vector.shape_cast %130 : vector<1x128x128xbf16> to vector<128x128xbf16>
    %cst_120 = arith.constant dense<0.000000e+00> : vector<288x128xf32>
    %132 = tpu.matmul %129, %131, %cst_120 {dimension_numbers = #tpu.dot_dimension_numbers<[1], [0], [0], [1], [0, 0, 1, 1], [], []>} : vector<288x128xbf16>, vector<128x128xbf16>, vector<288x128xf32> -> vector<288x128xf32>
    %133 = arith.addf %128, %132 : vector<288x128xf32>
    %c0_121 = arith.constant 0 : index
    %c24_122 = arith.constant 24 : index
    %c0_123 = arith.constant 0 : index
    %134 = vector.load %arg1[%c0_121, %c24_122, %c0_123] : memref<1x336x128xbf16, #tpu.memory_space<vmem>>, vector<1x288x128xbf16>
    %135 = vector.shape_cast %134 : vector<1x288x128xbf16> to vector<288x128xbf16>
    %136 = arith.extf %135 : vector<288x128xbf16> to vector<288x128xf32>
    %137 = vector.broadcast %25 : vector<1x128xf32> to vector<288x128xf32>
    %138 = arith.mulf %133, %137 : vector<288x128xf32>
    %139 = vector.broadcast %26 : vector<1x128xf32> to vector<288x128xf32>
    %140 = arith.addf %138, %139 : vector<288x128xf32>
    %141 = arith.addf %140, %136 : vector<288x128xf32>
    %cst_124 = arith.constant 0.000000e+00 : f32
    %142 = vector.broadcast %cst_124 : f32 to vector<288x128xf32>
    %143 = arith.select %18, %141, %142 : vector<288x128xi1>, vector<288x128xf32>
    %cst_125 = arith.constant 0.000000e+00 : f32
    %144 = vector.broadcast %cst_125 : f32 to vector<288x128xf32>
    %145 = arith.maximumf %143, %144 : vector<288x128xf32>
    %c0_126 = arith.constant 0 : index
    %c0_127 = arith.constant 0 : index
    %c0_128 = arith.constant 0 : index
    %146 = vector.load %arg8[%c0_126, %c0_127, %c0_128] : memref<1x336x128xbf16, #tpu.memory_space<vmem>>, vector<1x24x128xbf16>
    %147 = vector.shape_cast %146 : vector<1x24x128xbf16> to vector<24x128xbf16>
    %148 = vector.shape_cast %19 : vector<24x128xbf16> to vector<1x24x128xbf16>
    tpu.vector_store %arg8[%c0_126, %c0_127, %c0_128], %148 {strides = array<i32>} : memref<1x336x128xbf16, #tpu.memory_space<vmem>>, vector<1x24x128xbf16>,
    %149 = arith.truncf %145 : vector<288x128xf32> to vector<288x128xbf16>
    %c0_129 = arith.constant 0 : index
    %c24_130 = arith.constant 24 : index
    %c0_131 = arith.constant 0 : index
    %150 = vector.load %arg8[%c0_129, %c24_130, %c0_131] : memref<1x336x128xbf16, #tpu.memory_space<vmem>>, vector<1x288x128xbf16>
    %151 = vector.shape_cast %150 : vector<1x288x128xbf16> to vector<288x128xbf16>
    %152 = vector.shape_cast %149 : vector<288x128xbf16> to vector<1x288x128xbf16>
    tpu.vector_store %arg8[%c0_129, %c24_130, %c0_131], %152 {strides = array<i32>} : memref<1x336x128xbf16, #tpu.memory_space<vmem>>, vector<1x288x128xbf16>,
    %c0_132 = arith.constant 0 : index
    %c312_133 = arith.constant 312 : index
    %c0_134 = arith.constant 0 : index
    %153 = vector.load %arg8[%c0_132, %c312_133, %c0_134] : memref<1x336x128xbf16, #tpu.memory_space<vmem>>, vector<1x24x128xbf16>
    %154 = vector.shape_cast %153 : vector<1x24x128xbf16> to vector<24x128xbf16>
    %155 = vector.shape_cast %20 : vector<24x128xbf16> to vector<1x24x128xbf16>
    tpu.vector_store %arg8[%c0_132, %c312_133, %c0_134], %155 {strides = array<i32>} : memref<1x336x128xbf16, #tpu.memory_space<vmem>>, vector<1x24x128xbf16>,
    return
  }
  func.func @transform_0(%arg0: i32) -> (i32, i32, i32) {
    %c0_i32 = arith.constant 0 : i32
    %c0_i32_0 = arith.constant 0 : i32
    %c0_i32_1 = arith.constant 0 : i32
    return %arg0, %c0_i32, %c0_i32_0 : i32, i32, i32
  }
  func.func @transform_1(%arg0: i32) -> (i32, i32, i32) {
    %c0_i32 = arith.constant 0 : i32
    %c0_i32_0 = arith.constant 0 : i32
    %c0_i32_1 = arith.constant 0 : i32
    %c0_i32_2 = arith.constant 0 : i32
    return %c0_i32, %c0_i32_0, %c0_i32_1 : i32, i32, i32
  }
  func.func @transform_2(%arg0: i32) -> (i32, i32) {
    %c0_i32 = arith.constant 0 : i32
    %c0_i32_0 = arith.constant 0 : i32
    %c0_i32_1 = arith.constant 0 : i32
    return %c0_i32, %c0_i32_0 : i32, i32
  }
  func.func @transform_3(%arg0: i32) -> (i32, i32) {
    %c0_i32 = arith.constant 0 : i32
    %c0_i32_0 = arith.constant 0 : i32
    %c0_i32_1 = arith.constant 0 : i32
    return %c0_i32, %c0_i32_0 : i32, i32
  }
  func.func @transform_4(%arg0: i32) -> (i32, i32, i32) {
    %c0_i32 = arith.constant 0 : i32
    %c0_i32_0 = arith.constant 0 : i32
    %c0_i32_1 = arith.constant 0 : i32
    %c0_i32_2 = arith.constant 0 : i32
    return %c0_i32, %c0_i32_0, %c0_i32_1 : i32, i32, i32
  }
  func.func @transform_5(%arg0: i32) -> (i32, i32) {
    %c0_i32 = arith.constant 0 : i32
    %c0_i32_0 = arith.constant 0 : i32
    %c0_i32_1 = arith.constant 0 : i32
    return %c0_i32, %c0_i32_0 : i32, i32
  }
  func.func @transform_6(%arg0: i32) -> (i32, i32) {
    %c0_i32 = arith.constant 0 : i32
    %c0_i32_0 = arith.constant 0 : i32
    %c0_i32_1 = arith.constant 0 : i32
    return %c0_i32, %c0_i32_0 : i32, i32
  }
  func.func @transform_7(%arg0: i32) -> (i32, i32, i32) {
    %c0_i32 = arith.constant 0 : i32
    %c0_i32_0 = arith.constant 0 : i32
    %c0_i32_1 = arith.constant 0 : i32
    return %arg0, %c0_i32, %c0_i32_0 : i32, i32, i32
  }
}

</mosaic_0001>

<bundles_post_ra>
// kernel: tpu_custom_call.1
= control target key start
LH: loop header
LB: loop body
LE: loop exit
PB: predicated region body
PF: predicated region fallthrough
CT: control target
= control target key end

     0   :  { %s15001_s0 = inlined_call_operand.hbm [shape: bf16[2,336,128], index: 0, kind: input, shape index: {}]   ;;  %s15002_s1 = inlined_call_operand.hbm [shape: bf16[9,128,128], index: 1, kind: input, shape index: {}]   ;;  %s15003_s2 = inlined_call_operand.vmem [shape: f32[1,128], index: 2, kind: input, shape index: {}]   ;;  %s15004_s3 = inlined_call_operand.vmem [shape: f32[1,128], index: 3, kind: input, shape index: {}]   ;;  %s15005_s4 = inlined_call_operand.hbm [shape: bf16[9,128,128], index: 4, kind: input, shape index: {}]   ;;  %s15006_s5 = inlined_call_operand.vmem [shape: f32[1,128], index: 5, kind: input, shape index: {}]   ;;  %s15007_s6 = inlined_call_operand.vmem [shape: f32[1,128], index: 6, kind: input, shape index: {}]   ;;  %s15008_s7 = inlined_call_operand.hbm [shape: bf16[2,336,128], index: 7, kind: output, shape index: {}]  }
   0x1   :  { %15148 = sst [smem:[#allocation116_spill]] %s15002_s1 }
   0x2   :  { %15149 = sst [smem:[#allocation117_spill]] %s15005_s4 }
   0x3   :  { %12 = vsyncpa [#allocation4], 0 }
   0x4   :  { %14 = vsyncpa [#allocation4 + $0x1], 0 }
   0x5   :  { %15 = vsyncpa [#allocation7], 0 }
   0x6   :  { %16 = vsyncpa [#allocation5], 0 }
   0x7   :  { %18 = vsyncpa [#allocation5 + $0x1], 0  ;;  %s11228_s24 = smov 0   ;;  %s11230_s25 = smov 0  }
   0x8   :  { %s11232_s26 = smov 0   ;;  %s11234_s27 = smov 0  }
   0x9 LB: > { %s11249_s28 = sadd.s32 4294967295, %s11179_s27   ;;  %s8958_s29 = sadd.s32 4294967294, %s11179_s27   ;;  %s11179_s27 = sphi %s11234_s27, %s15777_s27   ;;  %s11175_s26 = sphi %s11232_s26, %s15776_s26   ;;  %s11171_s25 = sphi %s11230_s25, %s15775_s25   ;;  %s11167_s24 = sphi %s11228_s24, %s15774_s24  }
   0xa   : > { %p44_p0 = scmp.ne.s32.totalorder %s11171_s25, %s11167_s24  ;;  %p45_p1 = scmp.eq.s32.totalorder %s11249_s28, 0 }
   0xb   : > { %p194_p2 = scmp.eq.s32.totalorder %s11249_s28, 1  ;;  %p200_p3 = scmp.eq.s32.totalorder %s8958_s29, 1 }
   0xc   : > { %p11258_p4 = por %p45_p1, %p44_p0  ;;  %p8959_p5 = scmp.ge.s32.totalorder %s11179_s27, 1 }
   0xd   : > { %p11263_p6 = por %p200_p3, %p44_p0  ;;  %p207_p7 = scmp.lt.s32.totalorder %s11179_s27, 3 }
   0xe   : > { %s15152_s1 = sld [smem:[#allocation116_spill]]  ;;  %s11181_s13 = smov [#allocation6]  }
   0xf   : > { %p11271_p8 = pnand %p8959_p5, %p207_p7  ;;  %s220_s14 = sshll.u32 %s11181_s13, 4  ;;  %s221_s14 = int_to_ptr.vmem [resolvable:$true] %s220_s14 }
  0x10   : > { %s15154_s4 = sld [smem:[#allocation117_spill]]  ;;  %s15009_s18 = smov 64  }
  0x11   : > { %p10925_p9 = pneg %p11271_p8  ;;  %s15010_s19 = smov 4  }
  0x12   : > { %s11184_s20 = smov [#allocation8]   ;;  %s11290_s22 = sadd.s32 1, %s11179_s27  }
  0x13   : > { %p10926_p10 = pnand %p10925_p9, %p45_p1  ;;  %s240_s21 = sshll.u32 %s11184_s20, 4  ;;  %s241_s21 = int_to_ptr.vmem [resolvable:$true] %s240_s21 }
  0x14   : > { %s218_s11 = sshll.u32 %s15152_s1, 4  ;;  %s31_s23 = sadd.s32 1, %s11175_s26  ;;  %s219_s11 = int_to_ptr.hbm [resolvable:$true] %s218_s11 }
  0x15   : > { %10928 = dma.hbm_to_vmem [thread:$0]  (!%p10926_p10), %s219_s11, 9216, %s221_s14, [#allocation7], %s15009_s18, %s15009_s18, %s15010_s19  }
  0x16   : > { %s238_s17 = sshll.u32 %s15154_s4, 4  ;;  %s28_s29 = ssub.s32 %s11179_s27, %s11290_s22  ;;  %s239_s17 = int_to_ptr.hbm [resolvable:$true] %s238_s17 }
  0x17   : > { %10931 = dma.hbm_to_vmem [thread:$0]  (!%p10926_p10), %s239_s17, 9216, %s241_s21, [#allocation7], %s15009_s18, %s15009_s18, %s15010_s19  }
  0x18   : > { %p38_p12 = scmp.ne.s32.totalorder %s11175_s26, %s11171_s25  ;;  %p29_p13 = scmp.eq.s32.totalorder %s28_s29, 0 }
  0x19   : > { %p39_p0 = scmp.eq.s32.totalorder %s11179_s27, 0  ;;  %p10942_p5 = scmp.lt.s32.totalorder %s11179_s27, 2 }
  0x1a   : > { %p11300_p3 = por %p194_p2, %p38_p12  ;;  %s260_s11 = sand.u32 1, %s11175_s26  }
  0x1b   : > { %s11306_s10 = scalar_select %p29_p13, %s11175_s26, %s31_s23  }
  0x1c   : > { %p40_p7 = por %p39_p0, %p38_p12  ;;  %s10909_s13 = smul.u32 168, %s260_s11 }
  0x1d   : > { %15156 = sst [smem:[#allocation13_spill]] %s11306_s10  ;;  %s10910_s14 = smul.u32 168, %s11179_s27 }
  0x1e   : > { %p11310_p9 = pnand %p10942_p5, %p40_p7  ;;  %s264_s21 = scalar_lea.vmem [#allocation3], %s10909_s13 }
  0x1f   : > { %s269_s20 = scalar_lea.hbm %s15001_s0, %s10910_s14  ;;  %s272_s29 = sshll.u32 %s264_s21, 4  ;;  %s273_s29 = int_to_ptr.vmem [resolvable:$true] %s272_s29 }
  0x20   : > { %s270_s18 = sshll.u32 %s269_s20, 4  ;;  %s261_s23 = scalar_lea.sflag [#allocation4], %s260_s11  ;;  %s271_s18 = int_to_ptr.hbm [resolvable:$true] %s270_s18 }
  0x21   : > { %s11076_s19 = sshra.s32 %s271_s18, 4  ;;  %p11080_p10 = pneg %p11310_p9  ;;  %s11077_s19 = int_to_ptr.hbm [resolvable:$true] %s11076_s19 }
  0x22   : > { %s11078_s1 = scalar_lea.hbm %s11077_s19, 168  ;;  %s11083_s16 = scalar_lea.hbm %s15001_s0, 336 }
  0x23   : > { %p11079_p2 = scmp.ne.s32.totalorder %s11077_s19, %s11078_s1  ;;  %p11084_p0 = scmp.lt.s32.totalorder %s11077_s19, %s15001_s0 }
  0x24   : > { %p11085_p5 = scmp.lt.s32.totalorder %s11083_s16, %s11078_s1 }
  0x25   : > { %p11081_p12 = pnand %p11080_p10, %p11079_p2 }
  0x26   : > { %p11086_p7 = por %p11085_p5, %p11084_p0 }
  0x27   : > { %p11082_p13 = pneg %p11081_p12 }
  0x29   : > { %p11087_p11 = pnand %p11086_p7, %p11082_p13 }
  0x2b   : > { %11090 = shalt.err (!%p11087_p11)
}
  0x2c   : > { %s15158_s11 = smov 4   ;;  %s15159_s13 = smov 64  }
  0x2d   : > { %10935 = dma.hbm_to_vmem [thread:$0]  (!%p11310_p9), %s271_s18, 2688, %s273_s29, %s261_s23, %s15159_s13, %s15159_s13, %s15158_s11  }
  0x2e   : > { %284 = sbr.rel (%p11271_p8) target bundleno = 1797 (0x705), region = 48 }
  0x33   : > { %s11333_s4 = sand.u32 1, %s11171_s25  }
  0x34   : > { %s10911_s1 = smul.u32 168, %s11333_s4  ;;  %s287_s19 = scalar_lea.sflag [#allocation4], %s11333_s4 }
  0x36   : > { %s11339_s10 = scalar_lea.vmem [#allocation3], %s10911_s1 }
  0x37   : > { %11151 = dma.done.wait (%p11258_p4), %s287_s19, 2688  }
  0x38   : > { %11153 = vsyncadd (%p11258_p4), %s287_s19, 4294964608 }
  0x39   : > { %11155 = dma.done.wait (%p45_p1), [#allocation7], 18432  }
  0x3a   : > { %11157 = vsyncadd (%p45_p1), [#allocation7], 4294948864  ;;  %v9994_v0 = vld [vmem:[#allocation6 + $0x78] sm:$0xff]  ;;  %v9993_v2 = vld [vmem:[#allocation6 + $0x70] sm:$0xff]  ;;  %vm15042_vm0 = vcmask 1044480   ;;  %vm15043_vm5 = vcmask 1046528  }
  0x3b   : > { %v9986_v1 = vld [vmem:[#allocation6 + $0x38] sm:$0xff]  ;;  %1908 = vmatpush.bf16.msra.mxu0 %v9994_v0  ;;  %10893 = vmatpush.bf16.msra.mxu2 %v9994_v0  ;;  %v9985_v3 = vld [vmem:[#allocation6 + $0x30] sm:$0xff]  ;;  %v9992_v4 = vld [vmem:[#allocation6 + $0x68] sm:$0xff]  ;;  %vm15039_vm1 = vsmask.f32 5376  ;;  %s14421_s18 = scalar_lea.vmem [#allocation9], %s10911_s1 }
  0x3c   : > { %10901 = vmatpush.bf16.msra.mxu3 %v9986_v1  ;;  %2247 = vmatpush.bf16.msra.mxu1 %v9986_v1  ;;  %v9984_v5 = vld [vmem:[#allocation6 + $0x28] sm:$0xff]  ;;  %v1641_v6 = vld [vmem:[%s11339_s10 + $0x4] sm:$0xf]  ;;  %v1640_v7 = vld [vmem:[%s11339_s10] sm:$0xc]  ;;  %s10912_s29 = smul.u32 168, %s11249_s28 }
  0x3d   : > { %v9991_v8 = vld [vmem:[#allocation6 + $0x60] sm:$0xff]  ;;  %v1749_v10 = vunpack.c.l.b16 %v1641_v6  ;;  %v2008_v11 = vunpack.c.l.b16 %v1640_v7  ;;  %v9990_v12 = vld [vmem:[#allocation6 + $0x58] sm:$0xff]  ;;  %v9989_v20 = vld [vmem:[#allocation6 + $0x50] sm:$0xff]  ;;  %vm15038_vm2 = vsmask.f32 4352  ;;  %s8863_s13 = sshll.u32 %s14421_s18, 4  ;;  %s8864_s13 = int_to_ptr.vmem [resolvable:$true] %s8863_s13 }
  0x3e   : > { %v9983_v9 = vld [vmem:[#allocation6 + $0x20] sm:$0xff]  ;;  %v1693_v14 = vld [vmem:[%s11339_s10] sm:$0x8]  ;;  %v9988_v31 = vld [vmem:[#allocation6 + $0x48] sm:$0xff]  ;;  %vm15041_vm3 = vsmask.f32 7424  ;;  %s8862_s28 = scalar_lea.hbm %s15008_s7, %s10912_s29 }
  0x3f   : > { %1909 = vmatpush.bf16.msra.mxu0 %v9993_v2  ;;  %10894 = vmatpush.bf16.msra.mxu2 %v9993_v2  ;;  %v11352_v13 = vld [vmem:[%s11339_s10 + $0x8] sm:$0xff]  ;;  %v11359_v16 = vld [vmem:[%s11339_s10 + $0x50] sm:$0xff]  ;;  %v2009_v18 = vpack.c.b16 %v1749_v10, %v2008_v11  ;;  %v1748_v19 = vunpack.c.l.b16 %v1693_v14  ;;  %v9981_v25 = vld [vmem:[#allocation6 + $0x10] sm:$0xff]  ;;  %vm15040_vm4 = vsmask.f32 6400  ;;  %s8865_s19 = sshll.u32 %s8862_s28, 4  ;;  %s8866_s19 = int_to_ptr.hbm [resolvable:$true] %s8865_s19 }
  0x40   : > { %10902 = vmatpush.bf16.msra.mxu3 %v9985_v3  ;;  %2248 = vmatpush.bf16.msra.mxu1 %v9985_v3  ;;  %v11356_v15 = vld [vmem:[%s11339_s10 + $0x48] sm:$0xff]  ;;  %v15026_v23 = vshrl.u32 %v11359_v16, 16  ;;  %v2020_v24 = vshrl.u32 %v11352_v13, 16  ;;  %v15025_v26 = vshll.u32 %v11359_v16, 16  ;;  %v2023_v29 = vshll.u32 %v11352_v13, 16  ;;  %v9980_v36 = vld [vmem:[#allocation6 + $0x8] sm:$0xff] }
  0x41   : > { %v9982_v17 = vld [vmem:[#allocation6 + $0x18] sm:$0xff]  ;;  %v15028_v21 = vshrl.u32 %v11356_v15, 16  ;;  %v15027_v22 = vshll.u32 %v11356_v15, 16  ;;  %v2012_v27 = vshrl.u32 %v2009_v18, 16  ;;  %v2015_v28 = vshll.u32 %v2009_v18, 16  ;;  %v9987_v42 = vld [vmem:[#allocation6 + $0x40] sm:$0xff] }
  0x42   : > { %v11367_v30 = vpack.c.b16 %v1749_v10, %v1748_v19  ;;  %v2103_v34 = vrot.slane %v15026_v23, 2  ;;  %v2022_v35 = vrot.slane %v2020_v24, 2  ;;  %v2106_v37 = vrot.slane %v15025_v26, 3  ;;  %v9979_v47 = vld [vmem:[#allocation6] sm:$0xff]  ;;  %v10002_v51 = vld [vmem:[#allocation6 + $0xb8] sm:$0xff]  ;;  %v11398_v59 = vld [vmem:[%s11339_s10 + $0x58] sm:$0xff] }
  0x43   : > { %1910 = vmatpush.bf16.msra.mxu0 %v9992_v4  ;;  %10895 = vmatpush.bf16.msra.mxu2 %v9992_v4  ;;  %v2094_v32 = vrot.slane %v15028_v21, 2  ;;  %v2097_v33 = vrot.slane %v15027_v22, 3  ;;  %v2014_v38 = vrot.slane %v2012_v27, 2  ;;  %v2017_v39 = vrot.slane %v2015_v28, 3  ;;  %v10010_v52 = vld [vmem:[#allocation6 + $0xf8] sm:$0xff]  ;;  %v11395_v58 = vld [vmem:[%s11339_s10 + $0x10] sm:$0xff] }
  0x44   : > { %10903 = vmatpush.bf16.msra.mxu3 %v9984_v5  ;;  %2249 = vmatpush.bf16.msra.mxu1 %v9984_v5  ;;  %v2025_v40 = vrot.slane %v2023_v29, 3  ;;  %v1806_v41 = vrot.slane %v11352_v13, 3  ;;  %v1805_v43 = vrot.slane %v11367_v30, 3  ;;  %v1822_v44 = vrot.slane %v11356_v15, 3  ;;  %v10018_v57 = vld [vmem:[#allocation6 + $0x138] sm:$0xff]  ;;  %v10001_v60 = vld [vmem:[#allocation6 + $0xb0] sm:$0xff] }
  0x45   : > { %v1824_v45 = vrot.slane %v11359_v16, 3  ;;  %v11385_v46 = vor.u32 %v2097_v33, %v2094_v32  ;;  %v2107_v48 = vor.u32 %v2106_v37, %v2103_v34  ;;  %v2018_v49 = vor.u32 %v2017_v39, %v2014_v38  ;;  %v10009_v61 = vld [vmem:[#allocation6 + $0xf0] sm:$0xff]  ;;  %v10000_v3 = vld [vmem:[#allocation6 + $0xa8] sm:$0xff]  ;;  %v9999_v28 = vld [vmem:[#allocation6 + $0xa0] sm:$0xff]  ;;  %s8851_s30 = scalar_lea.sflag [#allocation5], %s11333_s4  ;;  %s11120_s12 = sshra.s32 %s8866_s19, 4  ;;  %s11121_s12 = int_to_ptr.hbm [resolvable:$true] %s11120_s12 }
  0x46   : > { %v2026_v50 = vor.u32 %v2025_v40, %v2022_v35  ;;  %v1807_v53 = vsel %vm15042_vm0, %v1805_v43, %v1806_v41  ;;  %v15024_v62 = vshrl.u32 %v11398_v59, 16  ;;  %v15023_v63 = vshll.u32 %v11398_v59, 16  ;;  %v10017_v2 = vld [vmem:[#allocation6 + $0x130] sm:$0xff]  ;;  %v10008_v4 = vld [vmem:[#allocation6 + $0xe8] sm:$0xff]  ;;  %s11122_s1 = scalar_lea.hbm %s11121_s12, 168  ;;  %s11126_s21 = scalar_lea.hbm %s15008_s7, 336 }
  0x47   : > { %1911 = vmatpush.bf16.msra.mxu0 %v9991_v8  ;;  %10896 = vmatpush.bf16.msra.mxu2 %v9991_v8  ;;  %v1825_v54 = vsel %vm15042_vm0, %v1822_v44, %v1824_v45  ;;  %v2108_v55 = vsel %vm15039_vm1, %v11385_v46, %v2107_v48  ;;  %v2029_v0 = vshrl.u32 %v11395_v58, 16  ;;  %v2032_v1 = vshll.u32 %v11395_v58, 16  ;;  %v11422_v27 = vld [vmem:[%s11339_s10 + $0x60] sm:$0xff]  ;;  %v10839_v22 = vld [vmem:[%s11339_s10 + $0x34] sm:$0xff]   ;;  %p11123_p1 = scmp.ne.s32.totalorder %s11121_s12, %s11122_s1  ;;  %p11127_p11 = scmp.lt.s32.totalorder %s11121_s12, %s15008_s7 }
  0x48   : > { %10904 = vmatpush.bf16.msra.mxu3 %v9983_v9  ;;  %2250 = vmatpush.bf16.msra.mxu1 %v9983_v9  ;;  %v2027_v56 = vsel %vm15039_vm1, %v2018_v49, %v2026_v50  ;;  %v2112_v5 = vrot.slane %v15024_v62, 2  ;;  %v2115_v6 = vrot.slane %v15023_v63, 3  ;;  %v10016_v9 = vld [vmem:[#allocation6 + $0x128] sm:$0xff]  ;;  %v1808_v10 = vrot.slane %v11395_v58, 3  ;;  %p11128_p9 = scmp.lt.s32.totalorder %s11126_s21, %s11122_s1 }
  0x49   : > { %v2031_v7 = vrot.slane %v2029_v0, 2  ;;  %v2034_v8 = vrot.slane %v2032_v1, 3  ;;  %v1826_v11 = vrot.slane %v11398_v59, 3  ;;  %v15022_v32 = vshrl.u32 %v11422_v27, 16  ;;  %p11124_p4 = pnand %p11123_p1, %p11300_p3 }
  0x4a   : > { %v15021_v33 = vshll.u32 %v11422_v27, 16  ;;  %p11129_p2 = por %p11128_p9, %p11127_p11 }
  0x4b   : > { %1912 = vmatpush.bf16.msra.mxu0 %v9990_v12  ;;  %10897 = vmatpush.bf16.msra.mxu2 %v9990_v12  ;;  %v2116_v12 = vor.u32 %v2115_v6, %v2112_v5  ;;  %v2035_v14 = vor.u32 %v2034_v8, %v2031_v7  ;;  %v1827_v18 = vsel %vm15042_vm0, %v1824_v45, %v1826_v11  ;;  %p11125_p8 = pneg %p11124_p4 }
  0x4c   : > { %10905 = vmatpush.bf16.msra.mxu3 %v9982_v17  ;;  %2251 = vmatpush.bf16.msra.mxu1 %v9982_v17  ;;  %v1809_v17 = vsel %vm15042_vm0, %v1806_v41, %v1808_v10  ;;  %v2124_v37 = vrot.slane %v15021_v33, 3  ;;  %v1828_v41 = vrot.slane %v11422_v27, 3 }
  0x4d   : > { %v2117_v19 = vsel %vm15039_vm1, %v2107_v48, %v2116_v12  ;;  %p11130_p10 = pnand %p11129_p2, %p11125_p8 }
  0x4f   : > { %1913 = vmatpush.bf16.msra.mxu0 %v9989_v20  ;;  %10898 = vmatpush.bf16.msra.mxu2 %v9989_v20  ;;  %v2036_v20 = vsel %vm15039_vm1, %v2026_v50, %v2035_v14  ;;  %v11443_v50 = vld [vmem:[%s11339_s10 + $0x20] sm:$0xff] }
  0x50   : > { %10906 = vmatpush.bf16.msra.mxu3 %v9981_v25  ;;  %2252 = vmatpush.bf16.msra.mxu1 %v9981_v25  ;;  %v11419_v25 = vld [vmem:[%s11339_s10 + $0x18] sm:$0xff]  ;;  %v1812_v5 = vrot.slane %v11443_v50, 3 }
  0x51   : > { %v2038_v34 = vshrl.u32 %v11419_v25, 16  ;;  %v2041_v35 = vshll.u32 %v11419_v25, 16  ;;  %v1810_v40 = vrot.slane %v11419_v25, 3 }
  0x53   : > { %1914 = vmatpush.bf16.msra.mxu0 %v9988_v31  ;;  %10899 = vmatpush.bf16.msra.mxu2 %v9988_v31  ;;  %v10007_v31 = vld [vmem:[#allocation6 + $0xe0] sm:$0xff]  ;;  %v2040_v38 = vrot.slane %v2038_v34, 2  ;;  %v2043_v39 = vrot.slane %v2041_v35, 3  ;;  %v1811_v45 = vsel %vm15042_vm0, %v1808_v10, %v1810_v40 }
  0x54   : > { %10907 = vmatpush.bf16.msra.mxu3 %v9980_v36  ;;  %2253 = vmatpush.bf16.msra.mxu1 %v9980_v36  ;;  %v2121_v36 = vrot.slane %v15022_v32, 2 }
  0x55   : > { %v2044_v43 = vor.u32 %v2043_v39, %v2040_v38 }
  0x57   : > { %1915 = vmatpush.bf16.msra.mxu0 %v9987_v42  ;;  %10900 = vmatpush.bf16.msra.mxu2 %v9987_v42  ;;  %v2125_v42 = vor.u32 %v2124_v37, %v2121_v36  ;;  %v2045_v49 = vsel %vm15039_vm1, %v2035_v14, %v2044_v43  ;;  %v11467_v14 = vld [vmem:[%s11339_s10 + $0x28] sm:$0xff] }
  0x58   : > { %10908 = vmatpush.bf16.msra.mxu3 %v9979_v47  ;;  %2254 = vmatpush.bf16.msra.mxu1 %v9979_v47  ;;  %v1829_v47 = vsel %vm15042_vm0, %v1826_v11, %v1828_v41  ;;  %v2056_v36 = vshrl.u32 %v11467_v14, 16  ;;  %v2059_v37 = vshll.u32 %v11467_v14, 16 }
  0x59   : > { %v2126_v48 = vsel %vm15039_vm1, %v2116_v12, %v2125_v42 }
  0x5a   : > { %1916 = vmatmul.bf16.vlgmr.msra.gmra.mxu0 %v1807_v53  ;;  %1961 = vmatmul.bf16.vlgmr.msra.gmra.mxu2 %v1825_v54  ;;  %v9998_v53 = vld [vmem:[#allocation6 + $0x98] sm:$0xff] }
  0x5b   : > { %2519 = vmatpush.bf16.msrb.mxu2 %v10002_v51  ;;  %2300 = vmatmul.bf16.vlgmr.msra.gmra.mxu3 %v2108_v55  ;;  %v11446_v51 = vld [vmem:[%s11339_s10 + $0x68] sm:$0xff] }
  0x5c   : > { %3037 = vmatpush.bf16.msrb.mxu3 %v10010_v52  ;;  %2255 = vmatmul.bf16.vlgmr.msra.gmra.mxu1 %v2027_v56  ;;  %v10015_v52 = vld [vmem:[#allocation6 + $0x120] sm:$0xff]  ;;  %v10006_v54 = vld [vmem:[#allocation6 + $0xd8] sm:$0xff]  ;;  %v15020_v55 = vshrl.u32 %v11446_v51, 16  ;;  %v15019_v56 = vshll.u32 %v11446_v51, 16  ;;  %v1830_v6 = vrot.slane %v11446_v51, 3 }
  0x5d   : > { %3273 = vmatpush.bf16.msrb.mxu0 %v10018_v57  ;;  %v2047_v57 = vshrl.u32 %v11443_v50, 16 }
  0x5e   : > { %v1831_v10 = vsel %vm15042_vm0, %v1828_v41, %v1830_v6  ;;  %v2061_v41 = vrot.slane %v2059_v37, 3 }
  0x5f   : > { %2520 = vmatpush.bf16.msrb.mxu2 %v10001_v60  ;;  %v2050_v60 = vshll.u32 %v11443_v50, 16 }
  0x60   : > { %3038 = vmatpush.bf16.msrb.mxu3 %v10009_v61  ;;  %v2130_v61 = vrot.slane %v15020_v55, 2 }
  0x61   : > { %3274 = vmatpush.bf16.msrb.mxu0 %v10017_v2  ;;  %v2133_v2 = vrot.slane %v15019_v56, 3 }
  0x63   : > { %2521 = vmatpush.bf16.msrb.mxu2 %v10000_v3  ;;  %v2049_v3 = vrot.slane %v2047_v57, 2  ;;  %v2134_v7 = vor.u32 %v2133_v2, %v2130_v61  ;;  %v11494_v61 = vld [vmem:[%s11339_s10 + $0x78] sm:$0xff] }
  0x64   : > { %3039 = vmatpush.bf16.msrb.mxu3 %v10008_v4  ;;  %v2052_v4 = vrot.slane %v2050_v60, 3  ;;  %v10013_v2 = vld [vmem:[#allocation6 + $0x110] sm:$0xff] }
  0x65   : > { %3275 = vmatpush.bf16.msrb.mxu0 %v10016_v9  ;;  %v1813_v9 = vsel %vm15042_vm0, %v1810_v40, %v1812_v5  ;;  %v2135_v11 = vsel %vm15039_vm1, %v2125_v42, %v2134_v7  ;;  %v2058_v40 = vrot.slane %v2056_v36, 2  ;;  %v1814_v42 = vrot.slane %v11467_v14, 3 }
  0x66   : > { %v2053_v8 = vor.u32 %v2052_v4, %v2049_v3  ;;  %v9996_v3 = vld [vmem:[#allocation6 + $0x88] sm:$0xff] }
  0x67   : > { %2522 = vmatpush.bf16.msrb.mxu2 %v9999_v28  ;;  %v10004_v4 = vld [vmem:[#allocation6 + $0xc8] sm:$0xff] }
  0x68   : > { %3040 = vmatpush.bf16.msrb.mxu3 %v10007_v31  ;;  %v2054_v12 = vsel %vm15039_vm1, %v2044_v43, %v2053_v8 }
  0x69   : > { %3276 = vmatpush.bf16.msrb.mxu0 %v10015_v52 }
  0x6a   : > { %1921 = vmatmul.bf16.gmra.mxu0 %v1809_v17  ;;  %1966 = vmatmul.bf16.gmra.mxu2 %v1827_v18  ;;  %v11470_v17 = vld [vmem:[%s11339_s10 + $0x70] sm:$0xff]  ;;  %v10014_v18 = vld [vmem:[#allocation6 + $0x118] sm:$0xff] }
  0x6b   : > { %2305 = vmatmul.bf16.gmra.mxu3 %v2117_v19  ;;  %2523 = vmatpush.bf16.msrb.mxu2 %v9998_v53  ;;  %v9997_v19 = vld [vmem:[#allocation6 + $0x90] sm:$0xff]  ;;  %v15017_v28 = vshrl.u32 %v11470_v17, 16  ;;  %v15015_v31 = vshll.u32 %v11470_v17, 16  ;;  %v1832_v43 = vrot.slane %v11470_v17, 3 }
  0x6c   : > { %2260 = vmatmul.bf16.gmra.mxu1 %v2036_v20  ;;  %3041 = vmatpush.bf16.msrb.mxu3 %v10006_v54  ;;  %v10005_v20 = vld [vmem:[#allocation6 + $0xd0] sm:$0xff]  ;;  %v11491_v54 = vld [vmem:[%s11339_s10 + $0x30] sm:$0xff] }
  0x6d   : > { %3277 = vmatpush.bf16.msrb.mxu0 %v10014_v18  ;;  %v2139_v38 = vrot.slane %v15017_v28, 2  ;;  %v2142_v39 = vrot.slane %v15015_v31, 3  ;;  %v1816_v18 = vrot.slane %v11491_v54, 3 }
  0x6f   : > { %2524 = vmatpush.bf16.msrb.mxu2 %v9997_v19  ;;  %v1834_v19 = vrot.slane %v11494_v61, 3 }
  0x70   : > { %3042 = vmatpush.bf16.msrb.mxu3 %v10005_v20 }
  0x71   : > { %3278 = vmatpush.bf16.msrb.mxu0 %v10013_v2 }
  0x73   : > { %2525 = vmatpush.bf16.msrb.mxu2 %v9996_v3 }
  0x74   : > { %3043 = vmatpush.bf16.msrb.mxu3 %v10004_v4 }
  0x7a   : > { %1926 = vmatmul.bf16.gmra.mxu0 %v1811_v45  ;;  %1971 = vmatmul.bf16.gmra.mxu2 %v1829_v47  ;;  %v2143_v45 = vor.u32 %v2142_v39, %v2139_v38  ;;  %v2062_v47 = vor.u32 %v2061_v41, %v2058_v40  ;;  %v1817_v39 = vsel %vm15042_vm0, %v1814_v42, %v1816_v18 }
  0x7b   : > { %2310 = vmatmul.bf16.gmra.mxu3 %v2126_v48  ;;  %v1815_v48 = vsel %vm15042_vm0, %v1812_v5, %v1814_v42  ;;  %v15013_v5 = vshll.u32 %v11494_v61, 16  ;;  %v1835_v40 = vsel %vm15042_vm0, %v1832_v43, %v1834_v19 }
  0x7c   : > { %2265 = vmatmul.bf16.gmra.mxu1 %v2045_v49  ;;  %v1833_v49 = vsel %vm15042_vm0, %v1830_v6, %v1832_v43  ;;  %v2144_v52 = vsel %vm15039_vm1, %v2134_v7, %v2143_v45  ;;  %v2063_v53 = vsel %vm15039_vm1, %v2053_v8, %v2062_v47  ;;  %v2065_v6 = vshrl.u32 %v11491_v54, 16 }
  0x7d   : > { %v2068_v7 = vshll.u32 %v11491_v54, 16 }
  0x8a   : > { %1931 = vmatmul.bf16.gmra.mxu0 %v1813_v9  ;;  %1976 = vmatmul.bf16.gmra.mxu2 %v1831_v10  ;;  %v15014_v9 = vshrl.u32 %v11494_v61, 16  ;;  %v2151_v10 = vrot.slane %v15013_v5, 3  ;;  %v11539_v5 = vld [vmem:[%s11339_s10 + $0x40] sm:$0xff] }
  0x8b   : > { %2315 = vmatmul.bf16.gmra.mxu3 %v2135_v11  ;;  %v2067_v11 = vrot.slane %v2065_v6, 2 }
  0x8c   : > { %2270 = vmatmul.bf16.gmra.mxu1 %v2054_v12  ;;  %v2148_v8 = vrot.slane %v15014_v9, 2  ;;  %v2070_v12 = vrot.slane %v2068_v7, 3  ;;  %v11542_v9 = vld [vmem:[%s11339_s10 + $0x88] sm:$0xff] }
  0x8e   : > { %v2152_v20 = vor.u32 %v2151_v10, %v2148_v8  ;;  %v2071_v38 = vor.u32 %v2070_v12, %v2067_v11 }
  0x90   : > { %v2153_v41 = vsel %vm15039_vm1, %v2143_v45, %v2152_v20 }
  0x9a   : > { %1936 = vmatmul.bf16.gmra.mxu0 %v1815_v48  ;;  %1981 = vmatmul.bf16.gmra.mxu2 %v1833_v49  ;;  %v2072_v48 = vsel %vm15039_vm1, %v2062_v47, %v2071_v38  ;;  %v11515_v49 = vld [vmem:[%s11339_s10 + $0x38] sm:$0xff] }
  0x9b   : > { %2320 = vmatmul.bf16.gmra.mxu3 %v2144_v52  ;;  %v11518_v52 = vld [vmem:[%s11339_s10 + $0x80] sm:$0xff]  ;;  %v2074_v42 = vshrl.u32 %v11515_v49, 16  ;;  %v2077_v43 = vshll.u32 %v11515_v49, 16  ;;  %v1818_v10 = vrot.slane %v11515_v49, 3 }
  0x9c   : > { %2275 = vmatmul.bf16.gmra.mxu1 %v2063_v53  ;;  %v10012_v53 = vld [vmem:[#allocation6 + $0x108] sm:$0xff]  ;;  %v15012_v2 = vshrl.u32 %v11518_v52, 16  ;;  %v15011_v3 = vshll.u32 %v11518_v52, 16  ;;  %v1836_v11 = vrot.slane %v11518_v52, 3 }
  0x9d   : > { %3279 = vmatpush.bf16.msrb.mxu0 %v10012_v53  ;;  %v2076_v4 = vrot.slane %v2074_v42, 2  ;;  %v2079_v8 = vrot.slane %v2077_v43, 3  ;;  %v9995_v53 = vld [vmem:[#allocation6 + $0x80] sm:$0xff]  ;;  %v10841_v49 = vld [vmem:[%s11339_s10 + $0x3c] sm:$0xff]  }
  0x9e   : > { %v2157_v45 = vrot.slane %v15012_v2, 2  ;;  %v2160_v47 = vrot.slane %v15011_v3, 3  ;;  %2526 = vmatpush.bf16.msrb.mxu2 %v9995_v53  ;;  %v10041_v53 = vld [vmem:[#allocation6 + $0x160] sm:$0xff] }
  0xa0   : > { %v2161_v12 = vor.u32 %v2160_v47, %v2157_v45  ;;  %v10043_v45 = vld [vmem:[#allocation6 + $0x170] sm:$0xff]  ;;  %v15018_v47 = vshll.u32 %v11542_v9, 16 }
  0xa2   : > { %v2162_v3 = vsel %vm15039_vm1, %v2152_v20, %v2161_v12  ;;  %v2083_v20 = vshrl.u32 %v11539_v5, 16 }
  0xaa   : > { %1941 = vmatmul.bf16.gmra.mxu0 %v1817_v39  ;;  %1986 = vmatmul.bf16.gmra.mxu2 %v1835_v40  ;;  %v2080_v39 = vor.u32 %v2079_v8, %v2076_v4  ;;  %v10044_v40 = vld [vmem:[#allocation6 + $0x178] sm:$0xff]  ;;  %v10042_v4 = vld [vmem:[#allocation6 + $0x168] sm:$0xff] }
  0xab   : > { %2325 = vmatmul.bf16.gmra.mxu3 %v2153_v41  ;;  %v1819_v41 = vsel %vm15042_vm0, %v1816_v18, %v1818_v10  ;;  %3770 = vmatpush.bf16.msrb.mxu1 %v10044_v40  ;;  %v10003_v18 = vld [vmem:[#allocation6 + $0xc0] sm:$0xff]  ;;  %v2169_v40 = vrot.slane %v15018_v47, 3  ;;  %v10040_v47 = vld [vmem:[#allocation6 + $0x158] sm:$0xff] }
  0xac   : > { %2280 = vmatmul.bf16.gmra.mxu1 %v2072_v48  ;;  %v1837_v48 = vsel %vm15042_vm0, %v1834_v19, %v1836_v11  ;;  %v2081_v2 = vsel %vm15039_vm1, %v2071_v38, %v2080_v39  ;;  %v15016_v19 = vshrl.u32 %v11542_v9, 16  ;;  %v2086_v38 = vshll.u32 %v11539_v5, 16  ;;  %3044 = vmatpush.bf16.msrb.mxu3 %v10003_v18 }
  0xad   : > { %v1838_v18 = vrot.slane %v11542_v9, 3 }
  0xae   : > { %v2166_v8 = vrot.slane %v15016_v19, 2 }
  0xaf   : > { %3771 = vmatpush.bf16.msrb.mxu1 %v10043_v45  ;;  %v1820_v45 = vrot.slane %v11539_v5, 3  ;;  %v1839_v55 = vsel %vm15042_vm0, %v1836_v11, %v1838_v18 }
  0xb0   : > { %v2170_v31 = vor.u32 %v2169_v40, %v2166_v8  ;;  %v10069_v8 = vld [vmem:[#allocation6 + $0x1b8] sm:$0xff] }
  0xb1   : > { %v1821_v56 = vsel %vm15042_vm0, %v1818_v10, %v1820_v45  ;;  %v10077_v40 = vld [vmem:[#allocation6 + $0x1f8] sm:$0xff]  ;;  %4266 = vmatpush.bf16.msra.mxu2 %v10069_v8  ;;  %v10038_v10 = vld [vmem:[#allocation6 + $0x148] sm:$0xff] }
  0xb2   : > { %v2171_v33 = vsel %vm15039_vm1, %v2161_v12, %v2170_v31  ;;  %4526 = vmatpush.bf16.msra.mxu3 %v10077_v40 }
  0xb3   : > { %3772 = vmatpush.bf16.msrb.mxu1 %v10042_v4 }
  0xb7   : > { %3773 = vmatpush.bf16.msrb.mxu1 %v10041_v53 }
  0xba   : > { %1946 = vmatmul.bf16.gmra.mxu0 %v1819_v41  ;;  %1991 = vmatmul.bf16.gmra.mxu2 %v1837_v48  ;;  %v1676_v41 = vld [vmem:[%s11339_s10 + $0x90] sm:$0x7] }
  0xbb   : > { %2330 = vmatmul.bf16.gmra.mxu3 %v2162_v3  ;;  %v2088_v3 = vrot.slane %v2086_v38, 3  ;;  %v10011_v48 = vld [vmem:[#allocation6 + $0x100] sm:$0xff]  ;;  %v1784_v28 = vunpack.c.l.b16 %v1676_v41  ;;  %3774 = vmatpush.bf16.msrb.mxu1 %v10040_v47 }
  0xbc   : > { %2285 = vmatmul.bf16.gmra.mxu1 %v2081_v2  ;;  %v2085_v2 = vrot.slane %v2083_v20, 2  ;;  %3280 = vmatpush.bf16.msrb.mxu0 %v10011_v48  ;;  %v10039_v48 = vld [vmem:[#allocation6 + $0x150] sm:$0xff] }
  0xbd   : > { %v1803_v32 = vpack.c.b16 %v1784_v28, %v1784_v28  ;;  %v2655_v28 = vld [vmem:[%s11339_s10 + $0xc] sm:$0xf] }
  0xbe   : > { %v2089_v19 = vor.u32 %v2088_v3, %v2085_v2  ;;  %v2746_v41 = vunpack.c.l.b16 %v2655_v28 }
  0xbf   : > { %v2173_v2 = vshrl.u32 %v1803_v32, 16  ;;  %v2176_v3 = vshll.u32 %v1803_v32, 16  ;;  %3775 = vmatpush.bf16.msrb.mxu1 %v10039_v48  ;;  %v1840_v47 = vrot.slane %v1803_v32, 3  ;;  %v1823_v48 = vsel %vm15042_vm0, %v1820_v45, %v1822_v44 }
  0xc0   : > { %v2090_v4 = vsel %vm15039_vm1, %v2080_v39, %v2089_v19  ;;  %v2654_v39 = vld [vmem:[%s11339_s10 + $0x8] sm:$0x8]  ;;  %v2099_v32 = vsel %vm15039_vm1, %v2089_v19, %v11385_v46  ;;  %v2372_v44 = vshll.u32 %v11367_v30, 16 }
  0xc1   : > { %v2175_v11 = vrot.slane %v2173_v2, 2  ;;  %v2178_v12 = vrot.slane %v2176_v3, 3  ;;  %v1841_v8 = vsel %vm15042_vm0, %v1838_v18, %v1840_v47 }
  0xc3   : > { %3776 = vmatpush.bf16.msrb.mxu1 %v10038_v10  ;;  %v2179_v53 = vor.u32 %v2178_v12, %v2175_v11  ;;  %v10584_v10 = vld [vmem:[%s11339_s10 + $0x10] sm:$0xff]   ;;  %v2369_v11 = vshrl.u32 %v11367_v30, 16 }
  0xc4   : > { %v2810_v12 = vshrl.u32 %v10584_v10, 16 }
  0xc5   : > { %v2180_v3 = vsel %vm15039_vm1, %v2170_v31, %v2179_v53  ;;  %v11579_v31 = vld [vmem:[%s11339_s10 + $0x14] sm:$0xff]  ;;  %v2371_v47 = vrot.slane %v2369_v11, 3  ;;  %v2376_v53 = vrot.slane %v2020_v24, 3 }
  0xc6   : > { %v3564_v26 = vshll.u32 %v11579_v31, 16 }
  0xca   : > { %1951 = vmatmul.bf16.gmra.mxu0 %v1821_v56  ;;  %1996 = vmatmul.bf16.gmra.mxu2 %v1839_v55  ;;  %v10037_v56 = vld [vmem:[#allocation6 + $0x140] sm:$0xff]  ;;  %v10085_v55 = vld [vmem:[#allocation6 + $0x238] sm:$0xff] }
  0xcb   : > { %2335 = vmatmul.bf16.gmra.mxu3 %v2171_v33  ;;  %v2745_v33 = vunpack.c.l.b16 %v2654_v39  ;;  %4834 = vmatpush.bf16.msra.mxu0 %v10085_v55  ;;  %v10019_v39 = vld [vmem:[%s11339_s10 + $0xc] sm:$0xff] }
  0xcc   : > { %2290 = vmatmul.bf16.gmra.mxu1 %v2090_v4  ;;  %v3559_v55 = vshll.u32 %v10019_v39, 16  ;;  %v3557_v63 = vshrl.u32 %v10019_v39, 16 }
  0xcd   : > { %3777 = vmatpush.bf16.msrb.mxu1 %v10037_v56  ;;  %v2782_v40 = vpack.c.b16 %v2746_v41, %v2745_v33  ;;  %v2813_v56 = vshll.u32 %v10584_v10, 16  ;;  %v2374_v33 = vrot.slane %v2372_v44, 4  ;;  %v10212_v44 = vunpack.c.l.b16 %v10584_v10 }
  0xce   : > { %v3561_v62 = vrot.slane %v3559_v55, 1 }
  0xcf   : > { %v2802_v45 = vshrl.u32 %v2782_v40, 16  ;;  %v2805_v18 = vshll.u32 %v2782_v40, 16  ;;  %v2375_v24 = vor.u32 %v2374_v33, %v2371_v47 }
  0xd1   : > { %v2807_v40 = vrot.slane %v2805_v18, 4 }
  0xd7   : > { %v1917_v4 = vpop.f32.mrf.mxu0 }
  0xd9   : > { %v2256_v2 = vpop.f32.mrf.mxu1 }
  0xda   : > { %v11574_v28 = vadd.f32 %v2256_v2, %v1917_v4  ;;  %1956 = vmatmul.bf16.gmra.mxu0 %v1823_v48  ;;  %2001 = vmatmul.bf16.gmra.mxu2 %v1841_v8  ;;  %v2377_v4 = vrot.slane %v2023_v29, 4  ;;  %v2804_v8 = vrot.slane %v2802_v45, 3  ;;  %v2812_v2 = vrot.slane %v2810_v12, 3 }
  0xdb   : > { %2340 = vmatmul.bf16.gmra.mxu3 %v2180_v3  ;;  %v3189_v12 = vpack.c.b16 %v10212_v44, %v2746_v41  ;;  %v10076_v44 = vld [vmem:[#allocation6 + $0x1f0] sm:$0xff] }
  0xdc   : > { %2295 = vmatmul.bf16.gmra.mxu1 %v2099_v32  ;;  %v2815_v32 = vrot.slane %v2813_v56, 4  ;;  %v2378_v23 = vor.u32 %v2377_v4, %v2376_v53  ;;  %v2808_v13 = vor.u32 %v2807_v40, %v2804_v8  ;;  %v10585_v53 = vld [vmem:[%s11339_s10 + $0x18] sm:$0xff]   ;;  %4527 = vmatpush.bf16.msra.mxu3 %v10076_v44 }
  0xdd   : > { %v1962_v46 = vpop.f32.mrf.mxu2 }
  0xde   : > { %v2301_v19 = vpop.f32.mrf.mxu3  ;;  %v2816_v29 = vor.u32 %v2815_v32, %v2812_v2  ;;  %v2379_v55 = vsel %vm15038_vm2, %v2375_v24, %v2378_v23  ;;  %v2380_v2 = vrot.slane %v2029_v0, 3  ;;  %v10068_v32 = vld [vmem:[#allocation6 + $0x1b0] sm:$0xff] }
  0xdf   : > { %v11585_v30 = vadd.f32 %v2301_v19, %v1962_v46  ;;  %v1919_v48 = vpop.f32.mrf.mxu0  ;;  %v3562_v46 = vor.u32 %v3561_v62, %v3557_v63  ;;  %v3566_v19 = vrot.slane %v3564_v26, 1  ;;  %v2819_v26 = vshrl.u32 %v10585_v53, 16  ;;  %v10021_v63 = vld [vmem:[%s11339_s10 + $0x1c] sm:$0xff]  ;;  %4267 = vmatpush.bf16.msra.mxu2 %v10068_v32  ;;  %v10022_v32 = vld [vmem:[%s11339_s10 + $0x24] sm:$0xff] }
  0xe0   : > { %v2817_v10 = vsel %vm15038_vm2, %v2808_v13, %v2816_v29  ;;  %v2822_v62 = vshll.u32 %v10585_v53, 16 }
  0xe1   : > { %v2258_v3 = vpop.f32.mrf.mxu1  ;;  %v3567_v47 = vsel %vm15041_vm3, %v3562_v46, %v3566_v19  ;;  %v2821_v13 = vrot.slane %v2819_v26, 3 }
  0xe2   : > { %v11588_v11 = vadd.f32 %v2258_v3, %v1919_v48  ;;  %v2381_v3 = vrot.slane %v2032_v1, 4  ;;  %v2824_v46 = vrot.slane %v2822_v62, 4 }
  0xe5   : > { %v1964_v45 = vpop.f32.mrf.mxu2 }
  0xe6   : > { %v2303_v18 = vpop.f32.mrf.mxu3 }
  0xe7   : > { %v11590_v39 = vadd.f32 %v2303_v18, %v1964_v45  ;;  %v1922_v56 = vpop.f32.mrf.mxu0  ;;  %v3568_v45 = vshrl.u32 %v11579_v31, 16  ;;  %v3572_v18 = vshll.u32 %v10021_v63, 16  ;;  %v10084_v31 = vld [vmem:[#allocation6 + $0x230] sm:$0xff] }
  0xe8   : > { %4835 = vmatpush.bf16.msra.mxu0 %v10084_v31 }
  0xe9   : > { %v2261_v48 = vpop.f32.mrf.mxu1  ;;  %v3570_v0 = vor.u32 %v3568_v45, %v3566_v19 }
  0xea   : > { %v11595_v33 = vadd.f32 %v2261_v48, %v1922_v56  ;;  %2527 = vmatmul.bf16.vlgmr.msrb.gmra.mxu2 %v2379_v55  ;;  %3281 = vmatmul.bf16.vlgmr.msrb.gmra.mxu0 %v3189_v12  ;;  %v2382_v56 = vor.u32 %v2381_v3, %v2380_v2  ;;  %v2825_v55 = vor.u32 %v2824_v46, %v2821_v13  ;;  %v3574_v48 = vrot.slane %v3572_v18, 1  ;;  %v10586_v2 = vld [vmem:[%s11339_s10 + $0x20] sm:$0xff]  }
  0xeb   : > { %3045 = vmatmul.bf16.vlgmr.msrb.gmra.mxu3 %v2817_v10  ;;  %v10831_v10 = vld [vmem:[%s11339_s10 + $0x14] sm:$0xff]   ;;  %v2828_v19 = vshrl.u32 %v10586_v2, 16  ;;  %v2831_v3 = vshll.u32 %v10586_v2, 16  ;;  %v2385_v46 = vrot.slane %v2041_v35, 4  ;;  %v10833_v2 = vld [vmem:[%s11339_s10 + $0x1c] sm:$0xff]  }
  0xec   : > { %3778 = vmatmul.bf16.vlgmr.msrb.gmra.mxu1 %v3567_v47  ;;  %v2383_v26 = vsel %vm15038_vm2, %v2378_v23, %v2382_v56 }
  0xed   : > { %v1967_v41 = vpop.f32.mrf.mxu2  ;;  %v2830_v18 = vrot.slane %v2828_v19, 3 }
  0xee   : > { %v2306_v4 = vpop.f32.mrf.mxu3 }
  0xef   : > { %v11599_v8 = vadd.f32 %v2306_v4, %v1967_v41  ;;  %v1924_v40 = vpop.f32.mrf.mxu0  ;;  %v2826_v41 = vsel %vm15038_vm2, %v2816_v29, %v2825_v55  ;;  %v3575_v4 = vsel %vm15041_vm3, %v3570_v0, %v3574_v48  ;;  %v2384_v29 = vrot.slane %v2038_v34, 3 }
  0xf0   : > { %v2833_v0 = vrot.slane %v2831_v3, 4 }
  0xf1   : > { %v2263_v24 = vpop.f32.mrf.mxu1 }
  0xf2   : > { %v11606_v12 = vadd.f32 %v2263_v24, %v1924_v40 }
  0xf5   : > { %v1969_v58 = vpop.f32.mrf.mxu2 }
  0xf6   : > { %v2308_v1 = vpop.f32.mrf.mxu3 }
  0xf7   : > { %v11609_v47 = vadd.f32 %v2308_v1, %v1969_v58  ;;  %v1927_v53 = vpop.f32.mrf.mxu0  ;;  %v3576_v58 = vshrl.u32 %v10021_v63, 16  ;;  %v3580_v1 = vshll.u32 %v10022_v32, 16 }
  0xf9   : > { %v2266_v62 = vpop.f32.mrf.mxu1  ;;  %v3578_v31 = vor.u32 %v3576_v58, %v3574_v48 }
  0xfa   : > { %v11614_v40 = vadd.f32 %v2266_v62, %v1927_v53  ;;  %2532 = vmatmul.bf16.gmra.mxu2 %v2383_v26  ;;  %3286 = vmatmul.bf16.gmra.mxu0 %v10831_v10  ;;  %v2386_v53 = vor.u32 %v2385_v46, %v2384_v29  ;;  %v2834_v26 = vor.u32 %v2833_v0, %v2830_v18  ;;  %v3582_v62 = vrot.slane %v3580_v1, 1  ;;  %v10023_v29 = vld [vmem:[%s11339_s10 + $0x2c] sm:$0xff] }
  0xfb   : > { %3050 = vmatmul.bf16.gmra.mxu3 %v2826_v41  ;;  %v2389_v0 = vrot.slane %v2050_v60, 4  ;;  %v10835_v60 = vld [vmem:[%s11339_s10 + $0x24] sm:$0xff]  }
  0xfc   : > { %3783 = vmatmul.bf16.gmra.mxu1 %v3575_v4  ;;  %v2387_v35 = vsel %vm15038_vm2, %v2382_v56, %v2386_v53  ;;  %v2835_v63 = vsel %vm15038_vm2, %v2825_v55, %v2834_v26  ;;  %v3583_v3 = vsel %vm15041_vm3, %v3578_v31, %v3582_v62  ;;  %v2388_v55 = vrot.slane %v2047_v57, 3 }
  0xfd   : > { %v1972_v44 = vpop.f32.mrf.mxu2 }
  0xfe   : > { %v2311_v24 = vpop.f32.mrf.mxu3 }
  0xff   : > { %v11618_v23 = vadd.f32 %v2311_v24, %v1972_v44  ;;  %v1929_v13 = vpop.f32.mrf.mxu0  ;;  %v10587_v24 = vld [vmem:[%s11339_s10 + $0x28] sm:$0xff]  }
 0x100   : > { %v2837_v48 = vshrl.u32 %v10587_v24, 16 }
 0x101   : > { %v2268_v45 = vpop.f32.mrf.mxu1 }
 0x102   : > { %v11624_v10 = vadd.f32 %v2268_v45, %v1929_v13  ;;  %v2840_v13 = vshll.u32 %v10587_v24, 16  ;;  %v2839_v1 = vrot.slane %v2837_v48, 3 }
 0x104   : > { %v2842_v31 = vrot.slane %v2840_v13, 4 }
 0x105   : > { %v1974_v41 = vpop.f32.mrf.mxu2 }
 0x106   : > { %v2313_v4 = vpop.f32.mrf.mxu3 }
 0x107   : > { %v11627_v34 = vadd.f32 %v2313_v4, %v1974_v41  ;;  %v1932_v25 = vpop.f32.mrf.mxu0  ;;  %v3584_v41 = vshrl.u32 %v10022_v32, 16  ;;  %v3588_v4 = vshll.u32 %v10023_v29, 16 }
 0x109   : > { %v2271_v19 = vpop.f32.mrf.mxu1  ;;  %v3590_v57 = vrot.slane %v3588_v4, 1 }
 0x10a   : > { %v11632_v44 = vadd.f32 %v2271_v19, %v1932_v25  ;;  %2537 = vmatmul.bf16.gmra.mxu2 %v2387_v35  ;;  %3291 = vmatmul.bf16.gmra.mxu0 %v10833_v2  ;;  %v10067_v25 = vld [vmem:[#allocation6 + $0x1a8] sm:$0xff]  ;;  %v2390_v19 = vor.u32 %v2389_v0, %v2388_v55 }
 0x10b   : > { %3055 = vmatmul.bf16.gmra.mxu3 %v2835_v63  ;;  %v10075_v35 = vld [vmem:[#allocation6 + $0x1e8] sm:$0xff]  ;;  %4268 = vmatpush.bf16.msra.mxu2 %v10067_v25  ;;  %v2843_v63 = vor.u32 %v2842_v31, %v2839_v1  ;;  %v2392_v25 = vrot.slane %v2056_v36, 3 }
 0x10c   : > { %3788 = vmatmul.bf16.gmra.mxu1 %v3583_v3  ;;  %4528 = vmatpush.bf16.msra.mxu3 %v10075_v35  ;;  %v3586_v3 = vor.u32 %v3584_v41, %v3582_v62  ;;  %v2391_v32 = vsel %vm15038_vm2, %v2386_v53, %v2390_v19  ;;  %v10588_v0 = vld [vmem:[%s11339_s10 + $0x30] sm:$0xff]   ;;  %v2393_v35 = vrot.slane %v2059_v37, 4 }
 0x10d   : > { %v1977_v46 = vpop.f32.mrf.mxu2  ;;  %v10083_v62 = vld [vmem:[#allocation6 + $0x228] sm:$0xff]  ;;  %v2849_v1 = vshll.u32 %v10588_v0, 16 }
 0x10e   : > { %v2316_v45 = vpop.f32.mrf.mxu3  ;;  %v10024_v31 = vld [vmem:[%s11339_s10 + $0x34] sm:$0xff]  ;;  %4836 = vmatpush.bf16.msra.mxu0 %v10083_v62 }
 0x10f   : > { %v11636_v18 = vadd.f32 %v2316_v45, %v1977_v46  ;;  %v1934_v56 = vpop.f32.mrf.mxu0  ;;  %v2844_v45 = vsel %vm15038_vm2, %v2834_v26, %v2843_v63 }
 0x111   : > { %v2273_v58 = vpop.f32.mrf.mxu1 }
 0x112   : > { %v11642_v2 = vadd.f32 %v2273_v58, %v1934_v56  ;;  %v3591_v56 = vsel %vm15041_vm3, %v3586_v3, %v3590_v57  ;;  %v2846_v58 = vshrl.u32 %v10588_v0, 16 }
 0x115   : > { %v1979_v24 = vpop.f32.mrf.mxu2 }
 0x116   : > { %v2318_v50 = vpop.f32.mrf.mxu3 }
 0x117   : > { %v11645_v46 = vadd.f32 %v2318_v50, %v1979_v24  ;;  %v1937_v48 = vpop.f32.mrf.mxu0  ;;  %v2848_v24 = vrot.slane %v2846_v58, 3  ;;  %v2851_v50 = vrot.slane %v2849_v1, 4 }
 0x119   : > { %v2276_v13 = vpop.f32.mrf.mxu1 }
 0x11a   : > { %v11650_v55 = vadd.f32 %v2276_v13, %v1937_v48  ;;  %2542 = vmatmul.bf16.gmra.mxu2 %v2391_v32  ;;  %3296 = vmatmul.bf16.gmra.mxu0 %v10835_v60  ;;  %v3592_v60 = vshrl.u32 %v10023_v29, 16  ;;  %v3596_v48 = vshll.u32 %v10024_v31, 16  ;;  %v2394_v13 = vor.u32 %v2393_v35, %v2392_v25  ;;  %v10589_v25 = vld [vmem:[%s11339_s10 + $0x38] sm:$0xff]  }
 0x11b   : > { %3060 = vmatmul.bf16.gmra.mxu3 %v2844_v45  ;;  %v2852_v45 = vor.u32 %v2851_v50, %v2848_v24  ;;  %v2858_v35 = vshll.u32 %v10589_v25, 16 }
 0x11c   : > { %3793 = vmatmul.bf16.gmra.mxu1 %v3591_v56  ;;  %v3594_v56 = vor.u32 %v3592_v60, %v3590_v57  ;;  %v3598_v0 = vrot.slane %v3596_v48, 1  ;;  %v2395_v37 = vsel %vm15038_vm2, %v2390_v19, %v2394_v13  ;;  %v2855_v57 = vshrl.u32 %v10589_v25, 16 }
 0x11d   : > { %v1982_v41 = vpop.f32.mrf.mxu2  ;;  %v2853_v29 = vsel %vm15038_vm2, %v2843_v63, %v2852_v45  ;;  %v2396_v63 = vrot.slane %v2065_v6, 3  ;;  %v2397_v48 = vrot.slane %v2068_v7, 4  ;;  %v10066_v7 = vld [vmem:[#allocation6 + $0x1a0] sm:$0xff] }
 0x11e   : > { %v2321_v4 = vpop.f32.mrf.mxu3  ;;  %v3599_v1 = vsel %vm15041_vm3, %v3594_v56, %v3598_v0  ;;  %4269 = vmatpush.bf16.msra.mxu2 %v10066_v7 }
 0x11f   : > { %v11654_v53 = vadd.f32 %v2321_v4, %v1982_v41  ;;  %v1939_v26 = vpop.f32.mrf.mxu0  ;;  %v10837_v4 = vld [vmem:[%s11339_s10 + $0x2c] sm:$0xff]  }
 0x121   : > { %v2278_v3 = vpop.f32.mrf.mxu1 }
 0x122   : > { %v11660_v32 = vadd.f32 %v2278_v3, %v1939_v26  ;;  %v10025_v3 = vld [vmem:[%s11339_s10 + $0x3c] sm:$0xff] }
 0x125   : > { %v1984_v62 = vpop.f32.mrf.mxu2 }
 0x126   : > { %v2323_v41 = vpop.f32.mrf.mxu3 }
 0x127   : > { %v11663_v36 = vadd.f32 %v2323_v41, %v1984_v62  ;;  %v1942_v14 = vpop.f32.mrf.mxu0  ;;  %v2857_v62 = vrot.slane %v2855_v57, 3  ;;  %v2860_v41 = vrot.slane %v2858_v35, 4  ;;  %v10074_v57 = vld [vmem:[#allocation6 + $0x1e0] sm:$0xff] }
 0x128   : > { %4529 = vmatpush.bf16.msra.mxu3 %v10074_v57 }
 0x129   : > { %v2281_v58 = vpop.f32.mrf.mxu1 }
 0x12a   : > { %v11668_v26 = vadd.f32 %v2281_v58, %v1942_v14  ;;  %2547 = vmatmul.bf16.gmra.mxu2 %v2395_v37  ;;  %3301 = vmatmul.bf16.gmra.mxu0 %v10837_v4  ;;  %v3600_v4 = vshrl.u32 %v10024_v31, 16  ;;  %v3604_v14 = vshll.u32 %v10025_v3, 16  ;;  %v2398_v58 = vor.u32 %v2397_v48, %v2396_v63 }
 0x12b   : > { %3065 = vmatmul.bf16.gmra.mxu3 %v2853_v29  ;;  %v2861_v29 = vor.u32 %v2860_v41, %v2857_v62 }
 0x12c   : > { %3798 = vmatmul.bf16.gmra.mxu1 %v3599_v1  ;;  %v3602_v1 = vor.u32 %v3600_v4, %v3598_v0  ;;  %v3606_v25 = vrot.slane %v3604_v14, 1  ;;  %v2399_v54 = vsel %vm15038_vm2, %v2394_v13, %v2398_v58  ;;  %v10590_v0 = vld [vmem:[%s11339_s10 + $0x40] sm:$0xff]  }
 0x12d   : > { %v1987_v24 = vpop.f32.mrf.mxu2  ;;  %v2862_v35 = vsel %vm15038_vm2, %v2852_v45, %v2861_v29  ;;  %v2864_v48 = vshrl.u32 %v10590_v0, 16  ;;  %v10026_v13 = vld [vmem:[%s11339_s10 + $0x44] sm:$0xff]  ;;  %v2400_v45 = vrot.slane %v2074_v42, 3 }
 0x12e   : > { %v2326_v50 = vpop.f32.mrf.mxu3  ;;  %v3612_v7 = vshll.u32 %v10026_v13, 16 }
 0x12f   : > { %v11672_v60 = vadd.f32 %v2326_v50, %v1987_v24  ;;  %v1944_v19 = vpop.f32.mrf.mxu0 }
 0x131   : > { %15160 = vst [vmem:[#allocation14_spill] sm:$0xff] %v11672_v60  ;;  %v2283_v56 = vpop.f32.mrf.mxu1 }
 0x132   : > { %v11678_v37 = vadd.f32 %v2283_v56, %v1944_v19  ;;  %v3607_v19 = vsel %vm15041_vm3, %v3602_v1, %v3606_v25  ;;  %v2867_v56 = vshll.u32 %v10590_v0, 16  ;;  %v2401_v1 = vrot.slane %v2077_v43, 4 }
 0x133   : > { %v3614_v0 = vrot.slane %v3612_v7, 1  ;;  %v2405_v7 = vrot.slane %v2086_v38, 4 }
 0x135   : > { %v1989_v24 = vpop.f32.mrf.mxu2 }
 0x136   : > { %v2328_v50 = vpop.f32.mrf.mxu3 }
 0x137   : > { %v11681_v21 = vadd.f32 %v2328_v50, %v1989_v24  ;;  %v1947_v6 = vpop.f32.mrf.mxu0  ;;  %v10082_v24 = vld [vmem:[#allocation6 + $0x220] sm:$0xff] }
 0x138   : > { %4837 = vmatpush.bf16.msra.mxu0 %v10082_v24  ;;  %v10027_v24 = vld [vmem:[%s11339_s10 + $0x4c] sm:$0xff] }
 0x139   : > { %15161 = vst [vmem:[#allocation15_spill] sm:$0xff] %v11681_v21  ;;  %v2286_v31 = vpop.f32.mrf.mxu1 }
 0x13a   : > { %v11686_v63 = vadd.f32 %v2286_v31, %v1947_v6  ;;  %2552 = vmatmul.bf16.gmra.mxu2 %v2399_v54  ;;  %3306 = vmatmul.bf16.gmra.mxu0 %v10839_v22  ;;  %v2866_v22 = vrot.slane %v2864_v48, 3  ;;  %v2869_v6 = vrot.slane %v2867_v56, 4  ;;  %v3608_v54 = vshrl.u32 %v10025_v3, 16 }
 0x13b   : > { %3070 = vmatmul.bf16.gmra.mxu3 %v2862_v35  ;;  %v2402_v31 = vor.u32 %v2401_v1, %v2400_v45  ;;  %v10591_v45 = vld [vmem:[%s11339_s10 + $0x48] sm:$0xff]  }
 0x13c   : > { %3803 = vmatmul.bf16.gmra.mxu1 %v3607_v19  ;;  %v2870_v35 = vor.u32 %v2869_v6, %v2866_v22  ;;  %v3610_v19 = vor.u32 %v3608_v54, %v3606_v25  ;;  %v2873_v25 = vshrl.u32 %v10591_v45, 16  ;;  %v2876_v1 = vshll.u32 %v10591_v45, 16 }
 0x13d   : > { %v1992_v62 = vpop.f32.mrf.mxu2  ;;  %v2403_v48 = vsel %vm15038_vm2, %v2398_v58, %v2402_v31 }
 0x13e   : > { %v2331_v41 = vpop.f32.mrf.mxu3  ;;  %v2871_v3 = vsel %vm15038_vm2, %v2861_v29, %v2870_v35  ;;  %v2404_v29 = vrot.slane %v2083_v20, 3 }
 0x13f   : > { %v11690_v4 = vadd.f32 %v2331_v41, %v1992_v62  ;;  %v1949_v14 = vpop.f32.mrf.mxu0 }
 0x141   : > { %15162 = vst [vmem:[#allocation16_spill] sm:$0xff] %v11690_v4  ;;  %v2288_v50 = vpop.f32.mrf.mxu1 }
 0x142   : > { %v11696_v57 = vadd.f32 %v2288_v50, %v1949_v14  ;;  %v3615_v14 = vsel %vm15041_vm3, %v3610_v19, %v3614_v0 }
 0x145   : > { %v1994_v62 = vpop.f32.mrf.mxu2 }
 0x146   : > { %v2333_v42 = vpop.f32.mrf.mxu3 }
 0x147   : > { %v11699_v41 = vadd.f32 %v2333_v42, %v1994_v62  ;;  %v1952_v43 = vpop.f32.mrf.mxu0  ;;  %v2875_v62 = vrot.slane %v2873_v25, 3  ;;  %v2878_v42 = vrot.slane %v2876_v1, 4 }
 0x149   : > { %15163 = vst [vmem:[#allocation17_spill] sm:$0xff] %v11699_v41  ;;  %v2291_v56 = vpop.f32.mrf.mxu1 }
 0x14a   : > { %v11704_v50 = vadd.f32 %v2291_v56, %v1952_v43  ;;  %2557 = vmatmul.bf16.gmra.mxu2 %v2403_v48  ;;  %3311 = vmatmul.bf16.gmra.mxu0 %v10841_v49  ;;  %v3616_v49 = vshrl.u32 %v10026_v13, 16  ;;  %v3620_v43 = vshll.u32 %v10027_v24, 16  ;;  %v2406_v56 = vor.u32 %v2405_v7, %v2404_v29  ;;  %v10592_v29 = vld [vmem:[%s11339_s10 + $0x50] sm:$0xff]  }
 0x14b   : > { %3075 = vmatmul.bf16.gmra.mxu3 %v2871_v3  ;;  %v2879_v3 = vor.u32 %v2878_v42, %v2875_v62  ;;  %v2882_v7 = vshrl.u32 %v10592_v29, 16  ;;  %v10028_v62 = vld [vmem:[%s11339_s10 + $0x54] sm:$0xff]  ;;  %v10073_v42 = vld [vmem:[#allocation6 + $0x1d8] sm:$0xff] }
 0x14c   : > { %3808 = vmatmul.bf16.gmra.mxu1 %v3615_v14  ;;  %v3618_v14 = vor.u32 %v3616_v49, %v3614_v0  ;;  %v3622_v45 = vrot.slane %v3620_v43, 1  ;;  %v2407_v38 = vsel %vm15038_vm2, %v2402_v31, %v2406_v56  ;;  %v10065_v0 = vld [vmem:[#allocation6 + $0x198] sm:$0xff]  ;;  %4530 = vmatpush.bf16.msra.mxu3 %v10073_v42 }
 0x14d   : > { %v1997_v22 = vpop.f32.mrf.mxu2  ;;  %v2880_v13 = vsel %vm15038_vm2, %v2870_v35, %v2879_v3  ;;  %4270 = vmatpush.bf16.msra.mxu2 %v10065_v0 }
 0x14e   : > { %v2336_v6 = vpop.f32.mrf.mxu3  ;;  %v3623_v1 = vsel %vm15041_vm3, %v3618_v14, %v3622_v45  ;;  %v15167_v14 = vshrl.u32 %v11356_v15, 16 }
 0x14f   : > { %v11708_v54 = vadd.f32 %v2336_v6, %v1997_v22  ;;  %v1954_v58 = vpop.f32.mrf.mxu0 }
 0x151   : > { %15164 = vst [vmem:[#allocation18_spill] sm:$0xff] %v11708_v54  ;;  %v2293_v19 = vpop.f32.mrf.mxu1  ;;  %v10843_v54 = vld [vmem:[%s11339_s10 + $0x44] sm:$0xff]  }
 0x152   : > { %v11714_v48 = vadd.f32 %v2293_v19, %v1954_v58  ;;  %v2885_v19 = vshll.u32 %v10592_v29, 16 }
 0x155   : > { %v1999_v22 = vpop.f32.mrf.mxu2 }
 0x156   : > { %v2338_v6 = vpop.f32.mrf.mxu3 }
 0x157   : > { %v11717_v20 = vadd.f32 %v2338_v6, %v1999_v22  ;;  %v1957_v5 = vpop.f32.mrf.mxu0  ;;  %v2408_v22 = vrot.slane %v15167_v14, 3  ;;  %v10845_v14 = vld [vmem:[%s11339_s10 + $0x4c] sm:$0xff]  }
 0x159   : > { %15165 = vst [vmem:[#allocation19_spill] sm:$0xff] %v11717_v20  ;;  %v2296_v25 = vpop.f32.mrf.mxu1 }
 0x15a   : > { %v11722_v58 = vadd.f32 %v2296_v25, %v1957_v5  ;;  %2562 = vmatmul.bf16.gmra.mxu2 %v2407_v38  ;;  %3316 = vmatmul.bf16.gmra.mxu0 %v10843_v54  ;;  %v15168_v54 = vshll.u32 %v11356_v15, 16  ;;  %v2884_v38 = vrot.slane %v2882_v7, 3  ;;  %v2887_v25 = vrot.slane %v2885_v19, 4 }
 0x15b   : > { %3080 = vmatmul.bf16.gmra.mxu3 %v2880_v13  ;;  %v3624_v13 = vshrl.u32 %v10027_v24, 16 }
 0x15c   : > { %3813 = vmatmul.bf16.gmra.mxu1 %v3623_v1  ;;  %v2409_v6 = vrot.slane %v15168_v54, 4  ;;  %v3628_v1 = vshll.u32 %v10028_v62, 16  ;;  %v2888_v42 = vor.u32 %v2887_v25, %v2884_v38  ;;  %v10118_v38 = vld [vmem:[#allocation8 + $0x78] sm:$0xff] }
 0x15d   : > { %v2002_v49 = vpop.f32.mrf.mxu2  ;;  %5458 = vmatpush.bf16.msra.mxu1 %v10118_v38 }
 0x15e   : > { %v2341_v31 = vpop.f32.mrf.mxu3  ;;  %v2410_v0 = vor.u32 %v2409_v6, %v2408_v22  ;;  %v2889_v24 = vsel %vm15038_vm2, %v2879_v3, %v2888_v42  ;;  %v10593_v22 = vld [vmem:[%s11339_s10 + $0x58] sm:$0xff]   ;;  %v15170_v3 = vshrl.u32 %v11359_v16, 16 }
 0x15f   : > { %v11726_v43 = vadd.f32 %v2341_v31, %v2002_v49  ;;  %v1959_v35 = vpop.f32.mrf.mxu0  ;;  %v3626_v49 = vor.u32 %v3624_v13, %v3622_v45  ;;  %v3630_v31 = vrot.slane %v3628_v1, 1  ;;  %v2891_v45 = vshrl.u32 %v10593_v22, 16 }
 0x160   : > { %v2411_v7 = vsel %vm15038_vm2, %v2406_v56, %v2410_v0  ;;  %v2894_v6 = vshll.u32 %v10593_v22, 16  ;;  %v2412_v25 = vrot.slane %v15170_v3, 3  ;;  %v15171_v13 = vshll.u32 %v11359_v16, 16 }
 0x161   : > { %15166 = vst [vmem:[#allocation20_spill] sm:$0xff] %v11726_v43  ;;  %v2298_v5 = vpop.f32.mrf.mxu1  ;;  %v10081_v43 = vld [vmem:[#allocation6 + $0x218] sm:$0xff] }
 0x162   : > { %v11732_v29 = vadd.f32 %v2298_v5, %v1959_v35  ;;  %4838 = vmatpush.bf16.msra.mxu0 %v10081_v43  ;;  %v3631_v35 = vsel %vm15041_vm3, %v3626_v49, %v3630_v31  ;;  %v10029_v5 = vld [vmem:[%s11339_s10 + $0x5c] sm:$0xff]  ;;  %v2413_v1 = vrot.slane %v15171_v13, 4  ;;  %v2893_v49 = vrot.slane %v2891_v45, 3  ;;  %v10847_v13 = vld [vmem:[%s11339_s10 + $0x54] sm:$0xff]  }
 0x163   : > { %v3636_v22 = vshll.u32 %v10029_v5, 16 }
 0x164   : > { %v2414_v4 = vor.u32 %v2413_v1, %v2412_v25  ;;  %v11758_v25 = vld [vmem:[%s11339_s10 + $0x64] sm:$0xff] }
 0x165   : > { %v2004_v20 = vpop.f32.mrf.mxu2  ;;  %v3638_v21 = vrot.slane %v3636_v22, 1 }
 0x166   : > { %v2343_v41 = vpop.f32.mrf.mxu3 }
 0x167   : > { %v11735_v15 = vadd.f32 %v2343_v41, %v2004_v20  ;;  %v3282_v54 = vpop.f32.mrf.mxu0 }
 0x169   : > { %15169 = vst [vmem:[#allocation21_spill] sm:$0xff] %v11735_v15  ;;  %v3779_v19 = vpop.f32.mrf.mxu1 }
 0x16a   : > { %2567 = vmatmul.bf16.gmra.mxu2 %v2411_v7  ;;  %3321 = vmatmul.bf16.gmra.mxu0 %v10845_v14  ;;  %v2896_v7 = vrot.slane %v2894_v6, 4  ;;  %v2415_v6 = vsel %vm15038_vm2, %v2410_v0, %v2414_v4 }
 0x16b   : > { %3085 = vmatmul.bf16.gmra.mxu3 %v2889_v24 }
 0x16c   : > { %3818 = vmatmul.bf16.gmra.mxu1 %v3631_v35  ;;  %v3632_v35 = vshrl.u32 %v10028_v62, 16  ;;  %v2897_v38 = vor.u32 %v2896_v7, %v2893_v49 }
 0x16d   : > { %v2528_v43 = vpop.f32.mrf.mxu2 }
 0x16e   : > { %v2618_v41 = vadd.f32 %v2528_v43, %v11574_v28  ;;  %v3046_v20 = vpop.f32.mrf.mxu3  ;;  %v3634_v43 = vor.u32 %v3632_v35, %v3630_v31  ;;  %v2898_v62 = vsel %vm15038_vm2, %v2888_v42, %v2897_v38  ;;  %v15173_v35 = vshll.u32 %v11398_v59, 16 }
 0x16f   : > { %v3284_v56 = vpop.f32.mrf.mxu0 }
 0x170   : > { %v3136_v14 = vadd.f32 %v3046_v20, %v2618_v41  ;;  %v3639_v20 = vsel %vm15041_vm3, %v3634_v43, %v3638_v21  ;;  %v2417_v22 = vrot.slane %v15173_v35, 4 }
 0x171   : > { %v3781_v24 = vpop.f32.mrf.mxu1 }
 0x172   : > { %v3372_v15 = vadd.f32 %v3282_v54, %v3136_v14  ;;  %v15172_v14 = vshrl.u32 %v11398_v59, 16 }
 0x174   : > { %v11747_v28 = vadd.f32 %v3779_v19, %v3372_v15  ;;  %v10594_v15 = vld [vmem:[%s11339_s10 + $0x60] sm:$0xff]   ;;  %v2416_v7 = vrot.slane %v15172_v14, 3 }
 0x175   : > { %v2530_v60 = vpop.f32.mrf.mxu2  ;;  %v2900_v19 = vshrl.u32 %v10594_v15, 16 }
 0x176   : > { %v2619_v3 = vadd.f32 %v2530_v60, %v11588_v11  ;;  %v3048_v16 = vpop.f32.mrf.mxu3  ;;  %v2903_v60 = vshll.u32 %v10594_v15, 16 }
 0x177   : > { %v3287_v45 = vpop.f32.mrf.mxu0 }
 0x178   : > { %v3137_v41 = vadd.f32 %v3048_v16, %v2619_v3  ;;  %v2905_v3 = vrot.slane %v2903_v60, 4 }
 0x179   : > { %v3784_v54 = vpop.f32.mrf.mxu1 }
 0x17a   : > { %2572 = vmatmul.bf16.gmra.mxu2 %v2415_v6  ;;  %3326 = vmatmul.bf16.gmra.mxu0 %v10847_v13  ;;  %v3373_v31 = vadd.f32 %v3284_v56, %v3137_v41  ;;  %v2902_v56 = vrot.slane %v2900_v19, 3  ;;  %v3644_v13 = vshll.u32 %v11758_v25, 16  ;;  %v10064_v6 = vld [vmem:[#allocation6 + $0x190] sm:$0xff] }
 0x17b   : > { %3090 = vmatmul.bf16.gmra.mxu3 %v2898_v62  ;;  %v10072_v41 = vld [vmem:[#allocation6 + $0x1d0] sm:$0xff]  ;;  %4271 = vmatpush.bf16.msra.mxu2 %v10064_v6  ;;  %v15174_v6 = vshrl.u32 %v11422_v27, 16 }
 0x17c   : > { %3823 = vmatmul.bf16.gmra.mxu1 %v3639_v20  ;;  %v11755_v11 = vadd.f32 %v3781_v24, %v3373_v31  ;;  %v3640_v24 = vshrl.u32 %v10029_v5, 16  ;;  %4531 = vmatpush.bf16.msra.mxu3 %v10072_v41  ;;  %v2906_v15 = vor.u32 %v2905_v3, %v2902_v56  ;;  %v3646_v31 = vrot.slane %v3644_v13, 1  ;;  %v10031_v3 = vld [vmem:[%s11339_s10 + $0x6c] sm:$0xff] }
 0x17d   : > { %v2533_v1 = vpop.f32.mrf.mxu2  ;;  %v2420_v41 = vrot.slane %v15174_v6, 3 }
 0x17e   : > { %v2620_v0 = vadd.f32 %v2533_v1, %v11595_v33  ;;  %v3051_v49 = vpop.f32.mrf.mxu3  ;;  %v2418_v33 = vor.u32 %v2417_v22, %v2416_v7  ;;  %v3642_v59 = vor.u32 %v3640_v24, %v3638_v21  ;;  %v10080_v22 = vld [vmem:[#allocation6 + $0x210] sm:$0xff] }
 0x17f   : > { %v3289_v42 = vpop.f32.mrf.mxu0  ;;  %4839 = vmatpush.bf16.msra.mxu0 %v10080_v22 }
 0x180   : > { %v3138_v43 = vadd.f32 %v3051_v49, %v2620_v0  ;;  %v10849_v0 = vld [vmem:[%s11339_s10 + $0x5c] sm:$0xff]   ;;  %v2419_v49 = vsel %vm15038_vm2, %v2414_v4, %v2418_v33  ;;  %v3647_v7 = vsel %vm15041_vm3, %v3642_v59, %v3646_v31 }
 0x181   : > { %v3786_v16 = vpop.f32.mrf.mxu1 }
 0x182   : > { %v3374_v62 = vadd.f32 %v3287_v45, %v3138_v43  ;;  %v2907_v45 = vsel %vm15038_vm2, %v2897_v38, %v2906_v15 }
 0x184   : > { %v11766_v20 = vadd.f32 %v3784_v54, %v3374_v62  ;;  %v10595_v54 = vld [vmem:[%s11339_s10 + $0x68] sm:$0xff]   ;;  %v15175_v62 = vshll.u32 %v11422_v27, 16 }
 0x185   : > { %v2535_v19 = vpop.f32.mrf.mxu2  ;;  %v2912_v43 = vshll.u32 %v10595_v54, 16 }
 0x186   : > { %v2621_v60 = vadd.f32 %v2535_v19, %v11606_v12  ;;  %v3053_v1 = vpop.f32.mrf.mxu3  ;;  %v2909_v12 = vshrl.u32 %v10595_v54, 16  ;;  %v2421_v59 = vrot.slane %v15175_v62, 4 }
 0x187   : > { %v3292_v5 = vpop.f32.mrf.mxu0 }
 0x188   : > { %v3139_v14 = vadd.f32 %v3053_v1, %v2621_v60  ;;  %v2914_v60 = vrot.slane %v2912_v43, 4  ;;  %v3648_v1 = vshrl.u32 %v11758_v25, 16 }
 0x189   : > { %v3789_v35 = vpop.f32.mrf.mxu1 }
 0x18a   : > { %2577 = vmatmul.bf16.gmra.mxu2 %v2419_v49  ;;  %3331 = vmatmul.bf16.gmra.mxu0 %v10849_v0  ;;  %v3375_v21 = vadd.f32 %v3289_v42, %v3139_v14  ;;  %v2911_v42 = vrot.slane %v2909_v12, 3  ;;  %v3652_v0 = vshll.u32 %v10031_v3, 16  ;;  %v10117_v49 = vld [vmem:[#allocation8 + $0x70] sm:$0xff]  ;;  %v3650_v54 = vor.u32 %v3648_v1, %v3646_v31 }
 0x18b   : > { %3095 = vmatmul.bf16.gmra.mxu3 %v2907_v45  ;;  %5459 = vmatpush.bf16.msra.mxu1 %v10117_v49 }
 0x18c   : > { %3828 = vmatmul.bf16.gmra.mxu1 %v3647_v7  ;;  %v11774_v56 = vadd.f32 %v3786_v16, %v3375_v21  ;;  %v2915_v7 = vor.u32 %v2914_v60, %v2911_v42  ;;  %v3654_v22 = vrot.slane %v3652_v0, 1  ;;  %v15177_v0 = vshll.u32 %v11446_v51, 16 }
 0x18d   : > { %v2538_v4 = vpop.f32.mrf.mxu2 }
 0x18e   : > { %v2622_v24 = vadd.f32 %v2538_v4, %v11614_v40  ;;  %v3056_v38 = vpop.f32.mrf.mxu3  ;;  %v2422_v40 = vor.u32 %v2421_v59, %v2420_v41  ;;  %v10851_v4 = vld [vmem:[%s11339_s10 + $0x64] sm:$0xff]   ;;  %v3655_v6 = vsel %vm15041_vm3, %v3650_v54, %v3654_v22  ;;  %v10032_v59 = vld [vmem:[%s11339_s10 + $0x74] sm:$0xff]  ;;  %v2425_v49 = vrot.slane %v15177_v0, 4 }
 0x18f   : > { %v3294_v13 = vpop.f32.mrf.mxu0 }
 0x190   : > { %v3140_v19 = vadd.f32 %v3056_v38, %v2622_v24  ;;  %v2423_v25 = vsel %vm15038_vm2, %v2418_v33, %v2422_v40 }
 0x191   : > { %v3791_v16 = vpop.f32.mrf.mxu1 }
 0x192   : > { %v3376_v14 = vadd.f32 %v3292_v5, %v3140_v19  ;;  %v2916_v5 = vsel %vm15038_vm2, %v2906_v15, %v2915_v7  ;;  %v15176_v15 = vshrl.u32 %v11446_v51, 16 }
 0x194   : > { %v11783_v45 = vadd.f32 %v3789_v35, %v3376_v14  ;;  %v10596_v35 = vld [vmem:[%s11339_s10 + $0x70] sm:$0xff]   ;;  %v2424_v1 = vrot.slane %v15176_v15, 3  ;;  %v10597_v15 = vld [vmem:[%s11339_s10 + $0x78] sm:$0xff]  }
 0x195   : > { %v2540_v27 = vpop.f32.mrf.mxu2  ;;  %v2918_v41 = vshrl.u32 %v10596_v35, 16  ;;  %v2921_v62 = vshll.u32 %v10596_v35, 16  ;;  %v10071_v35 = vld [vmem:[#allocation6 + $0x1c8] sm:$0xff]  ;;  %v2930_v0 = vshll.u32 %v10597_v15, 16 }
 0x196   : > { %v2623_v21 = vadd.f32 %v2540_v27, %v11624_v10  ;;  %v3058_v12 = vpop.f32.mrf.mxu3  ;;  %4532 = vmatpush.bf16.msra.mxu3 %v10071_v35 }
 0x197   : > { %v3297_v43 = vpop.f32.mrf.mxu0  ;;  %v2920_v14 = vrot.slane %v2918_v41, 3  ;;  %v2923_v54 = vrot.slane %v2921_v62, 4  ;;  %v10853_v62 = vld [vmem:[%s11339_s10 + $0x6c] sm:$0xff]  }
 0x198   : > { %v3141_v24 = vadd.f32 %v3058_v12, %v2623_v21  ;;  %v3660_v21 = vshll.u32 %v10032_v59, 16  ;;  %v10063_v12 = vld [vmem:[#allocation6 + $0x188] sm:$0xff] }
 0x199   : > { %v3794_v38 = vpop.f32.mrf.mxu1  ;;  %4272 = vmatpush.bf16.msra.mxu2 %v10063_v12  ;;  %v15179_v12 = vshll.u32 %v11470_v17, 16 }
 0x19a   : > { %2582 = vmatmul.bf16.gmra.mxu2 %v2423_v25  ;;  %3336 = vmatmul.bf16.gmra.mxu0 %v10851_v4  ;;  %v3377_v31 = vadd.f32 %v3294_v13, %v3141_v24  ;;  %v2426_v25 = vor.u32 %v2425_v49, %v2424_v1  ;;  %v2924_v24 = vor.u32 %v2923_v54, %v2920_v14  ;;  %v10033_v49 = vld [vmem:[%s11339_s10 + $0x7c] sm:$0xff] }
 0x19b   : > { %3100 = vmatmul.bf16.gmra.mxu3 %v2916_v5  ;;  %v10079_v14 = vld [vmem:[#allocation6 + $0x208] sm:$0xff] }
 0x19c   : > { %3833 = vmatmul.bf16.gmra.mxu1 %v3655_v6  ;;  %v11791_v10 = vadd.f32 %v3791_v16, %v3377_v31  ;;  %v3656_v16 = vshrl.u32 %v10031_v3, 16  ;;  %v3662_v6 = vrot.slane %v3660_v21, 1  ;;  %4840 = vmatpush.bf16.msra.mxu0 %v10079_v14 }
 0x19d   : > { %v2543_v42 = vpop.f32.mrf.mxu2 }
 0x19e   : > { %v2624_v33 = vadd.f32 %v2543_v42, %v11632_v44  ;;  %v3061_v19 = vpop.f32.mrf.mxu3  ;;  %v3658_v5 = vor.u32 %v3656_v16, %v3654_v22  ;;  %v2427_v42 = vsel %vm15038_vm2, %v2422_v40, %v2426_v25  ;;  %v15178_v16 = vshrl.u32 %v11470_v17, 16 }
 0x19f   : > { %v3299_v60 = vpop.f32.mrf.mxu0 }
 0x1a0   : > { %v3142_v13 = vadd.f32 %v3061_v19, %v2624_v33  ;;  %v2925_v33 = vsel %vm15038_vm2, %v2915_v7, %v2924_v24  ;;  %v3663_v19 = vsel %vm15041_vm3, %v3658_v5, %v3662_v6  ;;  %v2428_v21 = vrot.slane %v15178_v16, 3 }
 0x1a1   : > { %v3796_v27 = vpop.f32.mrf.mxu1 }
 0x1a2   : > { %v3378_v4 = vadd.f32 %v3297_v43, %v3142_v13 }
 0x1a4   : > { %v11799_v44 = vadd.f32 %v3794_v38, %v3378_v4 }
 0x1a5   : > { %v2545_v51 = vpop.f32.mrf.mxu2 }
 0x1a6   : > { %v2625_v31 = vadd.f32 %v2545_v51, %v11642_v2  ;;  %v3063_v41 = vpop.f32.mrf.mxu3  ;;  %v2927_v2 = vshrl.u32 %v10597_v15, 16  ;;  %v3664_v51 = vshrl.u32 %v10032_v59, 16 }
 0x1a7   : > { %v3302_v3 = vpop.f32.mrf.mxu0 }
 0x1a8   : > { %v3143_v43 = vadd.f32 %v3063_v41, %v2625_v31  ;;  %v2929_v4 = vrot.slane %v2927_v2, 3  ;;  %v3668_v31 = vshll.u32 %v10033_v49, 16  ;;  %v10855_v2 = vld [vmem:[%s11339_s10 + $0x74] sm:$0xff]  }
 0x1a9   : > { %v3799_v38 = vpop.f32.mrf.mxu1 }
 0x1aa   : > { %2587 = vmatmul.bf16.gmra.mxu2 %v2427_v42  ;;  %3341 = vmatmul.bf16.gmra.mxu0 %v10853_v62  ;;  %v3379_v22 = vadd.f32 %v3299_v60, %v3143_v43  ;;  %v2429_v60 = vrot.slane %v15179_v12, 4  ;;  %v3666_v43 = vor.u32 %v3664_v51, %v3662_v6 }
 0x1ab   : > { %3105 = vmatmul.bf16.gmra.mxu3 %v2925_v33  ;;  %v3670_v33 = vrot.slane %v3668_v31, 1 }
 0x1ac   : > { %3838 = vmatmul.bf16.gmra.mxu1 %v3663_v19  ;;  %v11807_v1 = vadd.f32 %v3796_v27, %v3379_v22  ;;  %v2932_v27 = vrot.slane %v2930_v0, 4  ;;  %v2430_v62 = vor.u32 %v2429_v60, %v2428_v21  ;;  %v10116_v19 = vld [vmem:[#allocation8 + $0x68] sm:$0xff]  ;;  %v10034_v21 = vld [vmem:[%s11339_s10 + $0x84] sm:$0xff] }
 0x1ad   : > { %v2548_v13 = vpop.f32.mrf.mxu2  ;;  %5460 = vmatpush.bf16.msra.mxu1 %v10116_v19  ;;  %v3676_v19 = vshll.u32 %v10034_v21, 16 }
 0x1ae   : > { %v2626_v40 = vadd.f32 %v2548_v13, %v11650_v55  ;;  %v3066_v54 = vpop.f32.mrf.mxu3  ;;  %v2933_v55 = vor.u32 %v2932_v27, %v2929_v4  ;;  %v2431_v59 = vsel %vm15038_vm2, %v2426_v25, %v2430_v62  ;;  %v3671_v13 = vsel %vm15041_vm3, %v3666_v43, %v3670_v33 }
 0x1af   : > { %v3304_v7 = vpop.f32.mrf.mxu0  ;;  %v15181_v27 = vshll.u32 %v11494_v61, 16 }
 0x1b0   : > { %v3144_v5 = vadd.f32 %v3066_v54, %v2626_v40  ;;  %v10598_v40 = vld [vmem:[%s11339_s10 + $0x80] sm:$0xff]  }
 0x1b1   : > { %v3801_v35 = vpop.f32.mrf.mxu1  ;;  %v2939_v16 = vshll.u32 %v10598_v40, 16  ;;  %v2433_v51 = vrot.slane %v15181_v27, 4 }
 0x1b2   : > { %v3380_v41 = vadd.f32 %v3302_v3, %v3144_v5  ;;  %v2934_v3 = vsel %vm15038_vm2, %v2924_v24, %v2933_v55  ;;  %v15180_v24 = vshrl.u32 %v11494_v61, 16 }
 0x1b4   : > { %v11815_v42 = vadd.f32 %v3799_v38, %v3380_v41  ;;  %v2432_v5 = vrot.slane %v15180_v24, 3  ;;  %v2941_v41 = vrot.slane %v2939_v16, 4 }
 0x1b5   : > { %v2550_v15 = vpop.f32.mrf.mxu2 }
 0x1b6   : > { %v2627_v17 = vadd.f32 %v2550_v15, %v11660_v32  ;;  %v3068_v22 = vpop.f32.mrf.mxu3  ;;  %v2936_v32 = vshrl.u32 %v10598_v40, 16 }
 0x1b7   : > { %v3307_v0 = vpop.f32.mrf.mxu0 }
 0x1b8   : > { %v3145_v14 = vadd.f32 %v3068_v22, %v2627_v17  ;;  %v2434_v17 = vor.u32 %v2433_v51, %v2432_v5 }
 0x1b9   : > { %v3804_v38 = vpop.f32.mrf.mxu1 }
 0x1ba   : > { %2592 = vmatmul.bf16.gmra.mxu2 %v2431_v59  ;;  %3346 = vmatmul.bf16.gmra.mxu0 %v10855_v2  ;;  %v3381_v6 = vadd.f32 %v3304_v7, %v3145_v14  ;;  %v2938_v7 = vrot.slane %v2936_v32, 3  ;;  %v3678_v59 = vrot.slane %v3676_v19, 1 }
 0x1bb   : > { %3110 = vmatmul.bf16.gmra.mxu3 %v2934_v3 }
 0x1bc   : > { %3843 = vmatmul.bf16.gmra.mxu1 %v3671_v13  ;;  %v11823_v54 = vadd.f32 %v3801_v35, %v3381_v6  ;;  %v3672_v35 = vshrl.u32 %v10033_v49, 16  ;;  %v10857_v13 = vld [vmem:[%s11339_s10 + $0x7c] sm:$0xff]   ;;  %v2435_v6 = vsel %vm15038_vm2, %v2430_v62, %v2434_v17  ;;  %v11842_v62 = vld [vmem:[%s11339_s10 + $0x8c] sm:$0xff] }
 0x1bd   : > { %v2553_v12 = vpop.f32.mrf.mxu2 }
 0x1be   : > { %v2628_v25 = vadd.f32 %v2553_v12, %v11668_v26  ;;  %v3071_v60 = vpop.f32.mrf.mxu3  ;;  %v2942_v26 = vor.u32 %v2941_v41, %v2938_v7  ;;  %v3674_v2 = vor.u32 %v3672_v35, %v3670_v33  ;;  %v10062_v12 = vld [vmem:[#allocation6 + $0x180] sm:$0xff]  ;;  %v15182_v7 = vshrl.u32 %v11518_v52, 16 }
 0x1bf   : > { %v3309_v4 = vpop.f32.mrf.mxu0  ;;  %4273 = vmatpush.bf16.msra.mxu2 %v10062_v12  ;;  %v10859_v12 = vld [vmem:[%s11339_s10 + $0x84] sm:$0xff]  }
 0x1c0   : > { %v3146_v31 = vadd.f32 %v3071_v60, %v2628_v25  ;;  %v2943_v49 = vsel %vm15038_vm2, %v2933_v55, %v2942_v26  ;;  %v3679_v16 = vsel %vm15041_vm3, %v3674_v2, %v3678_v59  ;;  %v10070_v25 = vld [vmem:[#allocation6 + $0x1c0] sm:$0xff]  ;;  %v3680_v2 = vshrl.u32 %v10034_v21, 16 }
 0x1c1   : > { %v3806_v43 = vpop.f32.mrf.mxu1  ;;  %4533 = vmatpush.bf16.msra.mxu3 %v10070_v25 }
 0x1c2   : > { %v3382_v15 = vadd.f32 %v3307_v0, %v3146_v31  ;;  %v2436_v31 = vrot.slane %v15182_v7, 3 }
 0x1c4   : > { %v11831_v22 = vadd.f32 %v3804_v38, %v3382_v15  ;;  %v10599_v38 = vld [vmem:[%s11339_s10 + $0x88] sm:$0xff]  }
 0x1c5   : > { %v2555_v14 = vpop.f32.mrf.mxu2  ;;  %v2948_v24 = vshll.u32 %v10599_v38, 16 }
 0x1c6   : > { %v2629_v3 = vadd.f32 %v2555_v14, %v11678_v37  ;;  %v3073_v61 = vpop.f32.mrf.mxu3  ;;  %v2945_v37 = vshrl.u32 %v10599_v38, 16  ;;  %v3684_v14 = vshll.u32 %v11842_v62, 16 }
 0x1c7   : > { %v3312_v40 = vpop.f32.mrf.mxu0 }
 0x1c8   : > { %v3147_v32 = vadd.f32 %v3073_v61, %v2629_v3  ;;  %v2947_v35 = vrot.slane %v2945_v37, 3  ;;  %v10078_v3 = vld [vmem:[#allocation6 + $0x200] sm:$0xff] }
 0x1c9   : > { %v3809_v0 = vpop.f32.mrf.mxu1  ;;  %4841 = vmatpush.bf16.msra.mxu0 %v10078_v3  ;;  %v3688_v3 = vshrl.u32 %v11842_v62, 16  ;;  %v10860_v62 = vld [vmem:[%s11339_s10 + $0x8c] sm:$0xff]  }
 0x1ca   : > { %2597 = vmatmul.bf16.gmra.mxu2 %v2435_v6  ;;  %3351 = vmatmul.bf16.gmra.mxu0 %v10857_v13  ;;  %v3383_v33 = vadd.f32 %v3309_v4, %v3147_v32  ;;  %v15183_v4 = vshll.u32 %v11518_v52, 16  ;;  %v3682_v32 = vor.u32 %v3680_v2, %v3678_v59  ;;  %v3686_v52 = vrot.slane %v3684_v14, 1 }
 0x1cb   : > { %3115 = vmatmul.bf16.gmra.mxu3 %v2943_v49 }
 0x1cc   : > { %3848 = vmatmul.bf16.gmra.mxu1 %v3679_v16  ;;  %v11839_v60 = vadd.f32 %v3806_v43, %v3383_v33  ;;  %v2437_v41 = vrot.slane %v15183_v4, 4  ;;  %v2950_v43 = vrot.slane %v2948_v24, 4  ;;  %v3687_v24 = vsel %vm15041_vm3, %v3682_v32, %v3686_v52  ;;  %v2690_v32 = vld [vmem:[%s11339_s10 + $0x98] sm:$0xf] }
 0x1cd   : > { %v2558_v55 = vpop.f32.mrf.mxu2  ;;  %v15184_v4 = vshrl.u32 %v11542_v9, 16 }
 0x1ce   : > { %v2630_v5 = vadd.f32 %v2558_v55, %v11686_v63  ;;  %v3076_v27 = vpop.f32.mrf.mxu3  ;;  %v2438_v63 = vor.u32 %v2437_v41, %v2436_v31  ;;  %v2951_v6 = vor.u32 %v2950_v43, %v2947_v35  ;;  %v10115_v55 = vld [vmem:[#allocation8 + $0x60] sm:$0xff]  ;;  %v15185_v41 = vshll.u32 %v11542_v9, 16 }
 0x1cf   : > { %v3314_v51 = vpop.f32.mrf.mxu0  ;;  %5461 = vmatpush.bf16.msra.mxu1 %v10115_v55  ;;  %v3444_v55 = vld [vmem:[%s11339_s10 + $0x9c] sm:$0x1] }
 0x1d0   : > { %v3148_v19 = vadd.f32 %v3076_v27, %v2630_v5  ;;  %v2439_v21 = vsel %vm15038_vm2, %v2434_v17, %v2438_v63  ;;  %v11867_v5 = vld [vmem:[%s11339_s10 + $0x94] sm:$0xff]  ;;  %v2441_v35 = vrot.slane %v15185_v41, 4 }
 0x1d1   : > { %v11849_v15 = vpop.f32.mrf.mxu1 }
 0x1d2   : > { %v3384_v61 = vadd.f32 %v3312_v40, %v3148_v19  ;;  %v2952_v40 = vsel %vm15038_vm2, %v2942_v26, %v2951_v6 }
 0x1d4   : > { %v11852_v13 = vadd.f32 %v3809_v0, %v3384_v61  ;;  %v11860_v0 = vld [vmem:[%s11339_s10 + $0x90] sm:$0xff]   ;;  %v3692_v61 = vshll.u32 %v11867_v5, 16 }
 0x1d5   : > { %v2560_v49 = vpop.f32.mrf.mxu2  ;;  %v2957_v17 = vshll.u32 %v11860_v0, 16 }
 0x1d6   : > { %v2631_v16 = vadd.f32 %v2560_v49, %v11696_v57  ;;  %v3078_v38 = vpop.f32.mrf.mxu3  ;;  %v2954_v57 = vshrl.u32 %v11860_v0, 16 }
 0x1d7   : > { %v3317_v25 = vpop.f32.mrf.mxu0  ;;  %v2959_v43 = vrot.slane %v2957_v17, 4 }
 0x1d8   : > { %v3149_v33 = vadd.f32 %v3078_v38, %v2631_v16  ;;  %v2956_v19 = vrot.slane %v2954_v57, 3 }
 0x1d9   : > { %v3814_v37 = vpop.f32.mrf.mxu1 }
 0x1da   : > { %2602 = vmatmul.bf16.gmra.mxu2 %v2439_v21  ;;  %3356 = vmatmul.bf16.gmra.mxu0 %v10859_v12  ;;  %v11862_v59 = vadd.f32 %v3314_v51, %v3149_v33  ;;  %v2440_v51 = vrot.slane %v15184_v4, 3  ;;  %v2781_v12 = vunpack.c.l.b16 %v2690_v32  ;;  %v2960_v9 = vor.u32 %v2959_v43, %v2956_v19 }
 0x1db   : > { %3120 = vmatmul.bf16.gmra.mxu3 %v2952_v40  ;;  %v3690_v33 = vor.u32 %v3688_v3, %v3686_v52  ;;  %v3694_v40 = vrot.slane %v3692_v61, 1 }
 0x1dc   : > { %3853 = vmatmul.bf16.gmra.mxu1 %v3687_v24  ;;  %v2442_v16 = vor.u32 %v2441_v35, %v2440_v51  ;;  %v2800_v4 = vpack.c.b16 %v2781_v12, %v2781_v12  ;;  %v2961_v51 = vsel %vm15038_vm2, %v2951_v6, %v2960_v9  ;;  %v3535_v35 = vunpack.c.l.b16 %v3444_v55 }
 0x1dd   : > { %v2563_v26 = vpop.f32.mrf.mxu2 }
 0x1de   : > { %v2632_v27 = vadd.f32 %v2563_v26, %v11704_v50  ;;  %v3081_v7 = vpop.f32.mrf.mxu3  ;;  %v2346_v50 = vld [vmem:[%s11339_s10 + $0x90] sm:$0xf]  ;;  %v2966_v43 = vshll.u32 %v2800_v4, 16 }
 0x1df   : > { %v3319_v31 = vpop.f32.mrf.mxu0  ;;  %v2365_v38 = vunpack.c.l.b16 %v2346_v50 }
 0x1e0   : > { %v3150_v2 = vadd.f32 %v3081_v7, %v2632_v27  ;;  %v2443_v27 = vsel %vm15038_vm2, %v2438_v63, %v2442_v16  ;;  %v2963_v63 = vshrl.u32 %v2800_v4, 16  ;;  %v2968_v55 = vrot.slane %v2966_v43, 4 }
 0x1e1   : > { %v11874_v14 = vpop.f32.mrf.mxu1  ;;  %v2366_v7 = vpack.c.b16 %v2365_v38, %v2365_v38  ;;  %v10277_v4 = vunpack.c.h.b16 %v11860_v0 }
 0x1e2   : > { %v3386_v49 = vadd.f32 %v3317_v25, %v3150_v2  ;;  %v3554_v2 = vpack.c.b16 %v3535_v35, %v3535_v35  ;;  %v2965_v38 = vrot.slane %v2963_v63, 3 }
 0x1e3   : > { %v2448_v19 = vshll.u32 %v2366_v7, 16  ;;  %v3206_v43 = vpack.c.b16 %v2781_v12, %v10277_v4 }
 0x1e4   : > { %v11880_v21 = vadd.f32 %v3814_v37, %v3386_v49  ;;  %v3695_v37 = vsel %vm15041_vm3, %v3690_v33, %v3694_v40  ;;  %v3905_v33 = vld [vmem:[%s11339_s10 + $0x14] sm:$0xff]  }
 0x1e5   : > { %v2565_v24 = vpop.f32.mrf.mxu2  ;;  %v2450_v49 = vrot.slane %v2448_v19, 4 }
 0x1e6   : > { %v2633_v57 = vadd.f32 %v2565_v24, %v11714_v48  ;;  %v3083_v17 = vpop.f32.mrf.mxu3  ;;  %v2445_v48 = vshrl.u32 %v2366_v7, 16 }
 0x1e7   : > { %v3322_v26 = vpop.f32.mrf.mxu0 }
 0x1e8   : > { %v3151_v25 = vadd.f32 %v3083_v17, %v2633_v57  ;;  %v2447_v32 = vrot.slane %v2445_v48, 3  ;;  %v3696_v17 = vshrl.u32 %v11867_v5, 16 }
 0x1e9   : > { %v3819_v41 = vpop.f32.mrf.mxu1 }
 0x1ea   : > { %2607 = vmatmul.bf16.gmra.mxu2 %v2443_v27  ;;  %3361 = vmatmul.bf16.gmra.mxu0 %v10860_v62  ;;  %v11888_v52 = vadd.f32 %v3319_v31, %v3151_v25  ;;  %v11013_v31 = vld [vmem:[%s11339_s10 + $0x14] sm:$0xf0]  ;;  %v3700_v62 = vshll.u32 %v3554_v2, 16  ;;  %v11014_v27 = vld [vmem:[%s11339_s10 + $0x14] sm:$0xe] }
 0x1eb   : > { %3125 = vmatmul.bf16.gmra.mxu3 %v2961_v51  ;;  %v2969_v51 = vor.u32 %v2968_v55, %v2965_v38  ;;  %v11015_v2 = vor.u32 %v11014_v27, %v11013_v31  ;;  %v10114_v38 = vld [vmem:[#allocation8 + $0x58] sm:$0xff]  ;;  %v4053_v55 = vshrl.u32 %v3905_v33, 16 }
 0x1ec   : > { %3858 = vmatmul.bf16.gmra.mxu1 %v3695_v37  ;;  %v3698_v37 = vor.u32 %v3696_v17, %v3694_v40  ;;  %v3702_v35 = vrot.slane %v3700_v62, 1 }
 0x1ed   : > { %v2568_v3 = vpop.f32.mrf.mxu2  ;;  %v2970_v0 = vsel %vm15038_vm2, %v2960_v9, %v2969_v51  ;;  %v4684_v12 = vshrl.u32 %v11015_v2, 16  ;;  %5462 = vmatpush.bf16.msra.mxu1 %v10114_v38 }
 0x1ee   : > { %v2634_v6 = vadd.f32 %v2568_v3, %v11722_v58  ;;  %v3086_v61 = vpop.f32.mrf.mxu3  ;;  %v2451_v58 = vor.u32 %v2450_v49, %v2447_v32  ;;  %v4055_v32 = vshll.u32 %v3905_v33, 16  ;;  %v4687_v49 = vshll.u32 %v11015_v2, 16 }
 0x1ef   : > { %v3324_v50 = vpop.f32.mrf.mxu0 }
 0x1f0   : > { %v3152_v24 = vadd.f32 %v3086_v61, %v2634_v6  ;;  %v2452_v5 = vsel %vm15038_vm2, %v2442_v16, %v2451_v58  ;;  %v11903_v6 = vld [vmem:[%s11339_s10 + $0x1c] sm:$0xff]  ;;  %v4057_v17 = vrot.slane %v4055_v32, 1  ;;  %v4689_v27 = vrot.slane %v4687_v49, 2 }
 0x1f1   : > { %v11893_v57 = vpop.f32.mrf.mxu1  ;;  %v4064_v16 = vshrl.u32 %v11903_v6, 16  ;;  %v4424_v33 = vrot.slane %v11903_v6, 1 }
 0x1f2   : > { %v3388_v7 = vadd.f32 %v3322_v26, %v3152_v24 }
 0x1f4   : > { %v11898_v25 = vadd.f32 %v3819_v41, %v3388_v7  ;;  %v3703_v41 = vsel %vm15041_vm3, %v3698_v37, %v3702_v35  ;;  %v4691_v7 = vrot.slane %v4064_v16, 1  ;;  %v4058_v35 = vor.u32 %v4057_v17, %v4053_v55 }
 0x1f5   : > { %v2570_v48 = vpop.f32.mrf.mxu2 }
 0x1f6   : > { %v2635_v19 = vadd.f32 %v2570_v48, %v11732_v29  ;;  %v3088_v63 = vpop.f32.mrf.mxu3  ;;  %v4060_v29 = vshll.u32 %v11903_v6, 16 }
 0x1f7   : > { %v3327_v3 = vpop.f32.mrf.mxu0 }
 0x1f8   : > { %v3153_v26 = vadd.f32 %v3088_v63, %v2635_v19  ;;  %v4692_v4 = vrot.slane %v4060_v29, 2  ;;  %v4062_v48 = vrot.slane %v4060_v29, 1 }
 0x1f9   : > { %v3824_v61 = vpop.f32.mrf.mxu1 }
 0x1fa   : > { %2612 = vmatmul.bf16.gmra.mxu2 %v2452_v5  ;;  %3366 = vmatmul.bf16.gmra.mxu0 %v3206_v43  ;;  %v11907_v40 = vadd.f32 %v3324_v50, %v3153_v26  ;;  %v4686_v50 = vrot.slane %v4684_v12, 1  ;;  %v4693_v63 = vor.u32 %v4692_v4, %v4691_v7  ;;  %v4063_v32 = vsel %vm15041_vm3, %v4058_v35, %v4062_v48  ;;  %v11921_v12 = vld [vmem:[%s11339_s10 + $0x24] sm:$0xff] }
 0x1fb   : > { %3130 = vmatmul.bf16.gmra.mxu3 %v2970_v0  ;;  %v4066_v4 = vor.u32 %v4064_v16, %v4062_v48  ;;  %v4426_v35 = vrot.slane %v11921_v12, 1 }
 0x1fc   : > { %3863 = vmatmul.bf16.gmra.mxu1 %v3703_v41  ;;  %v4690_v19 = vor.u32 %v4689_v27, %v4686_v50 }
 0x1fd   : > { %v2573_v31 = vpop.f32.mrf.mxu2  ;;  %v4427_v16 = vsel %vm15043_vm5, %v4424_v33, %v4426_v35 }
 0x1fe   : > { %v2636_v9 = vadd.f32 %v2573_v31, %v11585_v30  ;;  %v3091_v24 = vpop.f32.mrf.mxu3  ;;  %v4423_v30 = vrot.slane %v11015_v2, 1  ;;  %v4068_v2 = vshll.u32 %v11921_v12, 16 }
 0x1ff   : > { %v3329_v62 = vpop.f32.mrf.mxu0 }
 0x200   : > { %v3154_v58 = vadd.f32 %v3091_v24, %v2636_v9  ;;  %v4696_v17 = vrot.slane %v4068_v2, 2 }
 0x201   : > { %v11912_v51 = vpop.f32.mrf.mxu1 }
 0x202   : > { %v3390_v37 = vadd.f32 %v3327_v3, %v3154_v58  ;;  %v4694_v3 = vsel %vm15040_vm4, %v4690_v19, %v4693_v63 }
 0x204   : > { %v11914_v43 = vadd.f32 %v3824_v61, %v3390_v37  ;;  %v4425_v61 = vsel %vm15043_vm5, %v4423_v30, %v4424_v33 }
 0x205   : > { %v2575_v5 = vpop.f32.mrf.mxu2 }
 0x206   : > { %v2637_v26 = vadd.f32 %v2575_v5, %v11590_v39  ;;  %v3093_v0 = vpop.f32.mrf.mxu3  ;;  %v4072_v39 = vshrl.u32 %v11921_v12, 16 }
 0x207   : > { %v3332_v41 = vpop.f32.mrf.mxu0 }
 0x208   : > { %v3155_v29 = vadd.f32 %v3093_v0, %v2637_v26  ;;  %v4695_v55 = vrot.slane %v4072_v39, 1 }
 0x209   : > { %v3829_v49 = vpop.f32.mrf.mxu1 }
 0x20a   : > { %4274 = vmatmul.bf16.vlgmr.msra.gmra.mxu2 %v4063_v32  ;;  %4842 = vmatmul.bf16.vlgmr.msra.gmra.mxu0 %v4694_v3  ;;  %v11924_v6 = vadd.f32 %v3329_v62, %v3155_v29  ;;  %v4070_v62 = vrot.slane %v4068_v2, 1  ;;  %v4697_v58 = vor.u32 %v4696_v17, %v4695_v55  ;;  %v11938_v32 = vld [vmem:[%s11339_s10 + $0x2c] sm:$0xff] }
 0x20b   : > { %4534 = vmatmul.bf16.vlgmr.msra.gmra.mxu3 %v4425_v61  ;;  %v4076_v12 = vshll.u32 %v11938_v32, 16 }
 0x20c   : > { %v4071_v26 = vsel %vm15041_vm3, %v4066_v4, %v4070_v62  ;;  %v4698_v0 = vsel %vm15040_vm4, %v4693_v63, %v4697_v58  ;;  %v4428_v4 = vrot.slane %v11938_v32, 1 }
 0x20d   : > { %v2578_v38 = vpop.f32.mrf.mxu2  ;;  %v4078_v17 = vrot.slane %v4076_v12, 1 }
 0x20e   : > { %v2638_v31 = vadd.f32 %v2578_v38, %v11599_v8  ;;  %v3096_v9 = vpop.f32.mrf.mxu3  ;;  %v4700_v38 = vrot.slane %v4076_v12, 2 }
 0x20f   : > { %v3334_v24 = vpop.f32.mrf.mxu0 }
 0x210   : > { %v3156_v50 = vadd.f32 %v3096_v9, %v2638_v31  ;;  %v10113_v9 = vld [vmem:[#allocation8 + $0x50] sm:$0xff] }
 0x211   : > { %v11929_v27 = vpop.f32.mrf.mxu1  ;;  %5463 = vmatpush.bf16.msra.mxu1 %v10113_v9 }
 0x212   : > { %v3392_v7 = vadd.f32 %v3332_v41, %v3156_v50 }
 0x214   : > { %v11931_v37 = vadd.f32 %v3829_v49, %v3392_v7 }
 0x215   : > { %v2580_v19 = vpop.f32.mrf.mxu2 }
 0x216   : > { %15186 = vst [vmem:[#allocation22_spill] sm:$0xff] %v11931_v37  ;;  %v2639_v30 = vadd.f32 %v2580_v19, %v11609_v47  ;;  %v3098_v8 = vpop.f32.mrf.mxu3  ;;  %v4080_v47 = vshrl.u32 %v11938_v32, 16 }
 0x217   : > { %v3337_v5 = vpop.f32.mrf.mxu0 }
 0x218   : > { %v3157_v3 = vadd.f32 %v3098_v8, %v2639_v30  ;;  %v4699_v2 = vrot.slane %v4080_v47, 1 }
 0x219   : > { %v3834_v48 = vpop.f32.mrf.mxu1 }
 0x21a   : > { %4279 = vmatmul.bf16.gmra.mxu2 %v4071_v26  ;;  %4847 = vmatmul.bf16.gmra.mxu0 %v4698_v0  ;;  %v11941_v41 = vadd.f32 %v3334_v24, %v3157_v3  ;;  %v4074_v24 = vor.u32 %v4072_v39, %v4070_v62  ;;  %v4701_v50 = vor.u32 %v4700_v38, %v4699_v2  ;;  %v11955_v3 = vld [vmem:[%s11339_s10 + $0x34] sm:$0xff] }
 0x21b   : > { %4539 = vmatmul.bf16.gmra.mxu3 %v4427_v16  ;;  %v4429_v39 = vsel %vm15043_vm5, %v4426_v35, %v4428_v4  ;;  %v4084_v32 = vshll.u32 %v11955_v3, 16 }
 0x21c   : > { %v4079_v26 = vsel %vm15041_vm3, %v4074_v24, %v4078_v17  ;;  %v4702_v0 = vsel %vm15040_vm4, %v4697_v58, %v4701_v50  ;;  %v4430_v24 = vrot.slane %v11955_v3, 1 }
 0x21d   : > { %v2583_v29 = vpop.f32.mrf.mxu2 }
 0x21e   : > { %v2640_v61 = vadd.f32 %v2583_v29, %v11618_v23  ;;  %v3101_v49 = vpop.f32.mrf.mxu3 }
 0x21f   : > { %v3339_v63 = vpop.f32.mrf.mxu0 }
 0x220   : > { %v3158_v31 = vadd.f32 %v3101_v49, %v2640_v61  ;;  %v4704_v49 = vrot.slane %v4084_v32, 2 }
 0x221   : > { %v11946_v33 = vpop.f32.mrf.mxu1 }
 0x222   : > { %v3394_v55 = vadd.f32 %v3337_v5, %v3158_v31  ;;  %v4082_v31 = vor.u32 %v4080_v47, %v4078_v17  ;;  %v4431_v47 = vsel %vm15043_vm5, %v4428_v4, %v4430_v24 }
 0x224   : > { %v11948_v7 = vadd.f32 %v3834_v48, %v3394_v55 }
 0x225   : > { %v2585_v19 = vpop.f32.mrf.mxu2 }
 0x226   : > { %15187 = vst [vmem:[#allocation23_spill] sm:$0xff] %v11948_v7  ;;  %v2641_v23 = vadd.f32 %v2585_v19, %v11627_v34  ;;  %v3103_v30 = vpop.f32.mrf.mxu3  ;;  %v4088_v34 = vshrl.u32 %v11955_v3, 16 }
 0x227   : > { %v3342_v8 = vpop.f32.mrf.mxu0 }
 0x228   : > { %v3159_v5 = vadd.f32 %v3103_v30, %v2641_v23  ;;  %v4703_v61 = vrot.slane %v4088_v34, 1 }
 0x229   : > { %v3839_v62 = vpop.f32.mrf.mxu1 }
 0x22a   : > { %4284 = vmatmul.bf16.gmra.mxu2 %v4079_v26  ;;  %4852 = vmatmul.bf16.gmra.mxu0 %v4702_v0  ;;  %v11958_v16 = vadd.f32 %v3339_v63, %v3159_v5  ;;  %v4086_v63 = vrot.slane %v4084_v32, 1  ;;  %v4705_v9 = vor.u32 %v4704_v49, %v4703_v61  ;;  %v11972_v5 = vld [vmem:[%s11339_s10 + $0x3c] sm:$0xff] }
 0x22b   : > { %4544 = vmatmul.bf16.gmra.mxu3 %v4429_v39  ;;  %v4092_v3 = vshll.u32 %v11972_v5, 16 }
 0x22c   : > { %v4087_v26 = vsel %vm15041_vm3, %v4082_v31, %v4086_v63  ;;  %v4706_v0 = vsel %vm15040_vm4, %v4701_v50, %v4705_v9 }
 0x22d   : > { %v2588_v48 = vpop.f32.mrf.mxu2 }
 0x22e   : > { %v2642_v12 = vadd.f32 %v2588_v48, %v11636_v18  ;;  %v3106_v29 = vpop.f32.mrf.mxu3 }
 0x22f   : > { %v3344_v58 = vpop.f32.mrf.mxu0 }
 0x230   : > { %v3160_v2 = vadd.f32 %v3106_v29, %v2642_v12  ;;  %v4708_v29 = vrot.slane %v4092_v3, 2 }
 0x231   : > { %v11963_v35 = vpop.f32.mrf.mxu1 }
 0x232   : > { %v3396_v38 = vadd.f32 %v3342_v8, %v3160_v2  ;;  %v4090_v2 = vor.u32 %v4088_v34, %v4086_v63 }
 0x234   : > { %v11965_v55 = vadd.f32 %v3839_v62, %v3396_v38 }
 0x235   : > { %v2590_v19 = vpop.f32.mrf.mxu2 }
 0x236   : > { %15188 = vst [vmem:[#allocation24_spill] sm:$0xff] %v11965_v55  ;;  %v2643_v23 = vadd.f32 %v2590_v19, %v11645_v46  ;;  %v3108_v18 = vpop.f32.mrf.mxu3  ;;  %v4096_v46 = vshrl.u32 %v11972_v5, 16  ;;  %v4432_v19 = vrot.slane %v11972_v5, 1  ;;  %v12065_v55 = vld [vmem:[%s11339_s10 + $0x5c] sm:$0xff] }
 0x237   : > { %v3347_v30 = vpop.f32.mrf.mxu0 }
 0x238   : > { %v3161_v39 = vadd.f32 %v3108_v18, %v2643_v23  ;;  %v4707_v12 = vrot.slane %v4096_v46, 1  ;;  %v10112_v23 = vld [vmem:[#allocation8 + $0x48] sm:$0xff]  ;;  %v4433_v63 = vsel %vm15043_vm5, %v4430_v24, %v4432_v19 }
 0x239   : > { %v3844_v17 = vpop.f32.mrf.mxu1  ;;  %5464 = vmatpush.bf16.msra.mxu1 %v10112_v23 }
 0x23a   : > { %4289 = vmatmul.bf16.gmra.mxu2 %v4087_v26  ;;  %4857 = vmatmul.bf16.gmra.mxu0 %v4706_v0  ;;  %v11975_v8 = vadd.f32 %v3344_v58, %v3161_v39  ;;  %v4094_v58 = vrot.slane %v4092_v3, 1  ;;  %v4709_v38 = vor.u32 %v4708_v29, %v4707_v12 }
 0x23b   : > { %4549 = vmatmul.bf16.gmra.mxu3 %v4431_v47 }
 0x23c   : > { %v4095_v39 = vsel %vm15041_vm3, %v4090_v2, %v4094_v58  ;;  %v4710_v47 = vsel %vm15040_vm4, %v4705_v9, %v4709_v38  ;;  %v4098_v23 = vor.u32 %v4096_v46, %v4094_v58 }
 0x23d   : > { %v2593_v62 = vpop.f32.mrf.mxu2 }
 0x23e   : > { %v2644_v32 = vadd.f32 %v2593_v62, %v11654_v53  ;;  %v3111_v48 = vpop.f32.mrf.mxu3  ;;  %v11989_v62 = vld [vmem:[%s11339_s10 + $0x44] sm:$0xff] }
 0x23f   : > { %v3349_v50 = vpop.f32.mrf.mxu0 }
 0x240   : > { %v3162_v61 = vadd.f32 %v3111_v48, %v2644_v32  ;;  %v15192_v32 = vld [vmem:[#allocation14_spill] sm:$0xff] }
 0x241   : > { %v11980_v4 = vpop.f32.mrf.mxu1 }
 0x242   : > { %15189 = vst [vmem:[#allocation25_spill] sm:$0xff] %v11980_v4  ;;  %v3398_v49 = vadd.f32 %v3347_v30, %v3162_v61 }
 0x244   : > { %v11982_v31 = vadd.f32 %v3844_v17, %v3398_v49  ;;  %v4104_v17 = vshrl.u32 %v11989_v62, 16 }
 0x245   : > { %v2595_v18 = vpop.f32.mrf.mxu2 }
 0x246   : > { %15190 = vst [vmem:[#allocation26_spill] sm:$0xff] %v11982_v31  ;;  %v2645_v53 = vadd.f32 %v2595_v18, %v11663_v36  ;;  %v3113_v26 = vpop.f32.mrf.mxu3  ;;  %v4100_v36 = vshll.u32 %v11989_v62, 16  ;;  %v4711_v29 = vrot.slane %v4104_v17, 1 }
 0x247   : > { %v3352_v0 = vpop.f32.mrf.mxu0 }
 0x248   : > { %v3163_v34 = vadd.f32 %v3113_v26, %v2645_v53  ;;  %v4712_v61 = vrot.slane %v4100_v36, 2  ;;  %v4434_v26 = vrot.slane %v11989_v62, 1 }
 0x249   : > { %v3849_v30 = vpop.f32.mrf.mxu1 }
 0x24a   : > { %4294 = vmatmul.bf16.gmra.mxu2 %v4095_v39  ;;  %4862 = vmatmul.bf16.gmra.mxu0 %v4710_v47  ;;  %v11992_v5 = vadd.f32 %v3349_v50, %v3163_v34  ;;  %v4102_v50 = vrot.slane %v4100_v36, 1  ;;  %v4713_v18 = vor.u32 %v4712_v61, %v4711_v29  ;;  %v15195_v47 = vld [vmem:[#allocation15_spill] sm:$0xff]  ;;  %v4435_v46 = vsel %vm15043_vm5, %v4432_v19, %v4434_v26  ;;  %v15197_v61 = vld [vmem:[#allocation16_spill] sm:$0xff] }
 0x24b   : > { %4554 = vmatmul.bf16.gmra.mxu3 %v4433_v63  ;;  %v333_v29 = vlaneseq }
 0x24c   : > { %15191 = vst [vmem:[#allocation27_spill] sm:$0xff] %v11992_v5  ;;  %v4103_v31 = vsel %vm15041_vm3, %v4098_v23, %v4102_v50  ;;  %v15209_v5 = vmov 0  }
 0x24d   : > { %v2598_v3 = vpop.f32.mrf.mxu2  ;;  %v12014_v19 = vshrl.u32 %v333_v29, 7  ;;  %v12029_v29 = vadd.f32 %v11849_v15, %v11862_v59 }
 0x24e   : > { %v2646_v48 = vadd.f32 %v2598_v3, %v15192_v32  ;;  %v3116_v9 = vpop.f32.mrf.mxu3  ;;  %v12004_v3 = vld [vmem:[%s11339_s10 + $0x4c] sm:$0xff] }
 0x24f   : > { %v3354_v12 = vpop.f32.mrf.mxu0  ;;  %v4108_v62 = vshll.u32 %v12004_v3, 16 }
 0x250   : > { %v3164_v49 = vadd.f32 %v3116_v9, %v2646_v48  ;;  %v4714_v48 = vsel %vm15040_vm4, %v4709_v38, %v4713_v18 }
 0x251   : > { %v11997_v24 = vpop.f32.mrf.mxu1  ;;  %v4716_v23 = vrot.slane %v4108_v62, 2 }
 0x252   : > { %15193 = vst [vmem:[#allocation14_spill] sm:$0xff] %v11997_v24  ;;  %v3400_v2 = vadd.f32 %v3352_v0, %v3164_v49 }
 0x254   : > { %v11999_v53 = vadd.f32 %v3849_v30, %v3400_v2  ;;  %v4112_v30 = vshrl.u32 %v12004_v3, 16 }
 0x255   : > { %v2600_v39 = vpop.f32.mrf.mxu2 }
 0x256   : > { %15194 = vst [vmem:[#allocation28_spill] sm:$0xff] %v11999_v53  ;;  %v2647_v34 = vadd.f32 %v2600_v39, %v15195_v47  ;;  %v3118_v63 = vpop.f32.mrf.mxu3  ;;  %v4715_v38 = vrot.slane %v4112_v30, 1  ;;  %v4106_v47 = vor.u32 %v4104_v17, %v4102_v50  ;;  %v12033_v17 = vadd.f32 %v11874_v14, %v11888_v52 }
 0x257   : > { %v3357_v32 = vpop.f32.mrf.mxu0  ;;  %v15030_v52 = vmov 0  }
 0x258   : > { %v3165_v9 = vadd.f32 %v3118_v63, %v2647_v34  ;;  %v373_v34 = vand.u32 65535, %v12014_v19  ;;  %1630 = vst [vmem:[#allocation2] sm:$0xf] %v15030_v52 }
 0x259   : > { %v3854_v58 = vpop.f32.mrf.mxu1  ;;  %1631 = vst [vmem:[#allocation2 + $0x4] sm:$0xf] %v15030_v52 }
 0x25a   : > { %4299 = vmatmul.bf16.gmra.mxu2 %v4103_v31  ;;  %4867 = vmatmul.bf16.gmra.mxu0 %v4714_v48  ;;  %v12009_v0 = vadd.f32 %v3354_v12, %v3165_v9  ;;  %v4110_v12 = vrot.slane %v4108_v62, 1  ;;  %v12017_v48 = vor.u32 %v4716_v23, %v4715_v38  ;;  %v12020_v9 = vld [vmem:[%s11339_s10 + $0x54] sm:$0xff]  ;;  %1632 = vst [vmem:[#allocation2 + $0x8] sm:$0xf] %v15030_v52 }
 0x25b   : > { %4559 = vmatmul.bf16.gmra.mxu3 %v4435_v46  ;;  %v4116_v14 = vshll.u32 %v12020_v9, 16  ;;  %1633 = vst [vmem:[#allocation2 + $0x9c] sm:$0xf] %v15030_v52 }
 0x25c   : > { %15196 = vst [vmem:[#allocation15_spill] sm:$0xff] %v12009_v0  ;;  %v4718_v59 = vsel %vm15040_vm4, %v4713_v18, %v12017_v48 }
 0x25d   : > { %v2603_v36 = vpop.f32.mrf.mxu2  ;;  %1634 = vst [vmem:[#allocation2 + $0xa0] sm:$0xf] %v15030_v52 }
 0x25e   : > { %v2648_v49 = vadd.f32 %v2603_v36, %v15197_v61  ;;  %v3121_v2 = vpop.f32.mrf.mxu3  ;;  %v374_v36 = vshrl.u32 %v12014_v19, 16  ;;  %v12025_v61 = vmul.u32 58254, %v373_v34  ;;  %1635 = vst [vmem:[#allocation2 + $0xa4] sm:$0xf] %v15030_v52 }
 0x25f   : > { %v3359_v39 = vpop.f32.mrf.mxu0 }
 0x260   : > { %v3166_v31 = vadd.f32 %v3121_v2, %v2648_v49  ;;  %v4111_v49 = vsel %vm15041_vm3, %v4106_v47, %v4110_v12  ;;  %v376_v2 = vmul.u32 14564, %v373_v34  ;;  %v12039_v38 = vmul.u32 14564, %v374_v36 }
 0x261   : > { %v12022_v46 = vpop.f32.mrf.mxu1  ;;  %v380_v23 = vshll.u32 %v12025_v61, 16  ;;  %v12050_v34 = vadd.f32 %v11893_v57, %v11907_v40 }
 0x262   : > { %v3402_v63 = vadd.f32 %v3357_v32, %v3166_v31  ;;  %15198 = vst [vmem:[#allocation16_spill] sm:$0xff] %v12022_v46  ;;  %v15029_v32 = vrot.slane %v12004_v3, 1  ;;  %v15200_v31 = vld [vmem:[#allocation17_spill] sm:$0xff]  ;;  %v382_v47 = vshll.u32 %v12039_v38, 16 }
 0x263   : > { %vm384_vm6 = vc.u32 %v376_v2, %v380_v23  ;;  %v386_v40 = vadd.s32 %v380_v23, %v376_v2  ;;  %v4114_v2 = vor.u32 %v4112_v30, %v4110_v12  ;;  %v381_v23 = vshrl.u32 %v12025_v61, 16 }
 0x264   : > { %v12035_v50 = vadd.f32 %v3854_v58, %v3402_v63  ;;  %v379_v63 = vmul.u32 58254, %v374_v36  ;;  %v4437_v18 = vsel %vm15043_vm5, %v4434_v26, %v15029_v32  ;;  %v12062_v36 = vadd.f32 %v11929_v27, %v11941_v41 }
 0x265   : > { %v2605_v62 = vpop.f32.mrf.mxu2  ;;  %v385_v57 = vsel %vm384_vm6, 1, %v15030_v52  ;;  %v15204_v27 = vshrl.u32 %v12020_v9, 16  ;;  %v4720_v26 = vrot.slane %v4116_v14, 2  ;;  %vm388_vm7 = vc.u32 %v386_v40, %v382_v47 }
 0x266   : > { %15199 = vst [vmem:[#allocation29_spill] sm:$0xff] %v12035_v50  ;;  %v2649_v53 = vadd.f32 %v2605_v62, %v15200_v31  ;;  %v3123_v15 = vpop.f32.mrf.mxu3  ;;  %v12054_v62 = vadd.f32 %v11912_v51, %v11924_v6  ;;  %v10111_v50 = vld [vmem:[#allocation8 + $0x40] sm:$0xff]  ;;  %v12070_v51 = vadd.s32 8, %v12014_v19  ;;  %v12074_v6 = vadd.f32 %v11946_v33, %v11958_v16 }
 0x267   : > { %v3362_v58 = vpop.f32.mrf.mxu0  ;;  %15201 = vst [vmem:[#allocation17_spill] sm:$0xff] %v12062_v36  ;;  %v4719_v41 = vrot.slane %v15204_v27, 1  ;;  %5465 = vmatpush.bf16.msra.mxu1 %v10111_v50  ;;  %v4118_v32 = vrot.slane %v4116_v14, 1  ;;  %v389_v33 = vsel %vm388_vm7, 1, %v15030_v52  ;;  %v383_v12 = vshrl.u32 %v12039_v38, 16  ;;  %v15205_v50 = vld [vmem:[#allocation18_spill] sm:$0xff] }
 0x268   : > { %v3167_v31 = vadd.f32 %v3123_v15, %v2649_v53  ;;  %15202 = vst [vmem:[#allocation30_spill] sm:$0xff] %v12074_v6  ;;  %v387_v15 = vadd.s32 %v385_v57, %v379_v63  ;;  %v402_v16 = vand.u32 65535, %v12070_v51  ;;  %v12094_v40 = vadd.f32 %v11963_v35, %v11975_v8 }
 0x269   : > { %v4438_v30 = vrot.slane %v12020_v9, 1  ;;  %v12098_v38 = vadd.s32 16, %v12014_v19  ;;  %v4119_v52 = vsel %vm15041_vm3, %v4114_v2, %v4118_v32 }
 0x26a   : > { %4304 = vmatmul.bf16.gmra.mxu2 %v4111_v49  ;;  %4872 = vmatmul.bf16.gmra.mxu0 %v4718_v59  ;;  %v12076_v53 = vadd.f32 %v3359_v39, %v3167_v31  ;;  %v403_v39 = vshrl.u32 %v12070_v51, 16  ;;  %v3859_v59 = vpop.f32.mrf.mxu1  ;;  %v4124_v31 = vshll.u32 %v12065_v55, 16  ;;  %v391_v61 = vadd.s32 %v389_v33, %v387_v15  ;;  %15206 = vst [vmem:[#allocation18_spill] sm:$0xff] %v12094_v40 }
 0x26b   : > { %4564 = vmatmul.bf16.gmra.mxu3 %v4437_v18  ;;  %v405_v47 = vmul.u32 14564, %v402_v16  ;;  %v406_v18 = vmul.u32 58254, %v402_v16  ;;  %v4721_v16 = vor.u32 %v4720_v26, %v4719_v41 }
 0x26c   : > { %15203 = vst [vmem:[#allocation31_spill] sm:$0xff] %v12076_v53  ;;  %v407_v57 = vmul.u32 14564, %v403_v39  ;;  %v392_v46 = vadd.s32 %v391_v61, %v381_v23  ;;  %v408_v33 = vmul.u32 58254, %v403_v39  ;;  %v15207_v53 = vshrl.u32 %v12065_v55, 16  ;;  %v12107_v39 = vld [vmem:[%s11339_s10 + $0x64] sm:$0xff] }
 0x26d   : > { %v2608_v49 = vpop.f32.mrf.mxu2  ;;  %v4724_v40 = vrot.slane %v4124_v31, 2  ;;  %v15208_v23 = vshrl.u32 %v12020_v9, 16  ;;  %v410_v41 = vshrl.u32 %v406_v18, 16  ;;  %v432_v9 = vshrl.u32 %v12098_v38, 16 }
 0x26e   : > { %v2650_v14 = vadd.f32 %v2608_v49, %v15205_v50  ;;  %v3126_v63 = vpop.f32.mrf.mxu3  ;;  %v409_v49 = vshll.u32 %v406_v18, 16  ;;  %v411_v50 = vshll.u32 %v407_v57, 16  ;;  %v4723_v24 = vrot.slane %v15207_v53, 1 }
 0x26f   : > { %v3364_v27 = vpop.f32.mrf.mxu0  ;;  %v393_v35 = vadd.s32 %v392_v46, %v383_v12  ;;  %v4122_v61 = vor.u32 %v15208_v23, %v4118_v32  ;;  %v15211_v32 = vld [vmem:[#allocation19_spill] sm:$0xff] }
 0x270   : > { %v3168_v15 = vadd.f32 %v3126_v63, %v2650_v14  ;;  %vm413_vm8 = vc.u32 %v405_v47, %v409_v49  ;;  %v415_v0 = vadd.s32 %v409_v49, %v405_v47  ;;  %v431_v63 = vand.u32 65535, %v12098_v38 }
 0x271   : > { %v394_v4 = vshrl.u32 %v393_v35, 4  ;;  %v414_v14 = vsel %vm413_vm8, 1, %v15209_v5  ;;  %v15033_v49 = vrot.slane %v12065_v55, 1  ;;  %v412_v35 = vshrl.u32 %v407_v57, 16 }
 0x272   : > { %v3404_v8 = vadd.f32 %v3362_v58, %v3168_v15  ;;  %v416_v26 = vadd.s32 %v414_v14, %v408_v33  ;;  %vm417_vm9 = vc.u32 %v415_v0, %v411_v50  ;;  %v4126_v58 = vrot.slane %v4124_v31, 1  ;;  %v12118_v18 = vpop.f32.mrf.mxu1 }
 0x273   : > { %v395_v53 = vmul.u32 18, %v394_v4  ;;  %v418_v12 = vsel %vm417_vm9, 1, %v15209_v5  ;;  %15212 = vst [vmem:[#allocation19_spill] sm:$0xff] %v12118_v18  ;;  %v12120_v0 = vor.u32 %v4724_v40, %v4723_v24  ;;  %v4132_v4 = vshll.u32 %v12107_v39, 16 }
 0x274   : > { %v12110_v2 = vadd.f32 %v3859_v59, %v3404_v8  ;;  %v420_v23 = vadd.s32 %v418_v12, %v416_v26  ;;  %v4722_v59 = vsel %vm15040_vm4, %v12017_v48, %v4721_v16  ;;  %v12123_v31 = vmul.u32 58254, %v431_v63 }
 0x275   : > { %v2610_v46 = vpop.f32.mrf.mxu2  ;;  %v15213_v50 = vrot.slane %v12004_v3, 1  ;;  %v15032_v57 = vshrl.u32 %v12107_v39, 16  ;;  %v12130_v26 = vsel %vm15041_vm3, %v4122_v61, %v4126_v58  ;;  %v12133_v48 = vsub.s32 %v12014_v19, %v395_v53 }
 0x276   : > { %15210 = vst [vmem:[#allocation32_spill] sm:$0xff] %v12110_v2  ;;  %v2651_v47 = vadd.f32 %v2610_v46, %v15211_v32  ;;  %v3128_v15 = vpop.f32.mrf.mxu3  ;;  %v421_v14 = vadd.s32 %v420_v23, %v410_v41  ;;  %v434_v24 = vmul.u32 14564, %v431_v63  ;;  %v12135_v40 = vmul.u32 14564, %v432_v9 }
 0x277   : > { %v3367_v6 = vpop.f32.mrf.mxu0  ;;  %v4439_v8 = vsel %vm15043_vm5, %v15213_v50, %v4438_v30  ;;  %v12142_v3 = vsel %vm15043_vm5, %v4438_v30, %v15033_v49  ;;  %v12146_v61 = vsel %vm15040_vm4, %v4721_v16, %v12120_v0  ;;  %v4728_v53 = vrot.slane %v4132_v4, 2 }
 0x278   : > { %v3169_v33 = vadd.f32 %v3128_v15, %v2651_v47  ;;  %v422_v41 = vadd.s32 %v421_v14, %v412_v35  ;;  %v437_v12 = vmul.u32 58254, %v432_v9  ;;  %v438_v63 = vshll.u32 %v12123_v31, 16  ;;  %v15216_v9 = vld [vmem:[#allocation20_spill] sm:$0xff] }
 0x279   : > { %v12151_v47 = vrot.slane %v4132_v4, 1  ;;  %v4727_v30 = vrot.slane %v15032_v57, 1  ;;  %vm1414_vm10 = vcmp.ne.s32.totalorder %v12133_v48, 0  ;;  %vm1450_vm11 = vcmp.lt.s32.totalorder %v12133_v48, 0 }
 0x27a   : > { %4309 = vmatmul.bf16.gmra.mxu2 %v4119_v52  ;;  %4877 = vmatmul.bf16.gmra.mxu0 %v4722_v59  ;;  %v12137_v46 = vadd.f32 %v3364_v27, %v3169_v33  ;;  %v423_v32 = vshrl.u32 %v422_v41, 4  ;;  %v15215_v52 = vshrl.u32 %v12065_v55, 16  ;;  %v440_v16 = vshll.u32 %v12135_v40, 16  ;;  %vm12174_vm14 = vmand %vm1450_vm11, %vm1414_vm10 }
 0x27b   : > { %4569 = vmatmul.bf16.gmra.mxu3 %v4439_v8  ;;  %vm442_vm12 = vc.u32 %v434_v24, %v438_v63  ;;  %v12161_v50 = vadd.s32 18, %v12133_v48  ;;  %v12165_v41 = vadd.s32 24, %v12014_v19  ;;  %v12167_v57 = vor.u32 %v4728_v53, %v4727_v30 }
 0x27c   : > { %15214 = vst [vmem:[#allocation33_spill] sm:$0xff] %v12137_v46  ;;  %v4130_v27 = vor.u32 %v15215_v52, %v4126_v58  ;;  %v424_v59 = vmul.u32 18, %v423_v32  ;;  %v443_v33 = vsel %vm442_vm12, 1, %v15209_v5  ;;  %v444_v58 = vadd.s32 %v438_v63, %v434_v24  ;;  %v3864_v32 = vpop.f32.mrf.mxu1  ;;  %v15222_v24 = vld [vmem:[#allocation21_spill] sm:$0xff] }
 0x27d   : > { %v2613_v15 = vpop.f32.mrf.mxu2  ;;  %v445_v14 = vadd.s32 %v443_v33, %v437_v12  ;;  %v460_v63 = vand.u32 65535, %v12165_v41  ;;  %v12182_v53 = vadd.s32 32, %v12014_v19 }
 0x27e   : > { %v2652_v35 = vadd.f32 %v2613_v15, %v15216_v9  ;;  %v3131_v23 = vpop.f32.mrf.mxu3  ;;  %v439_v15 = vshrl.u32 %v12123_v31, 16  ;;  %vm446_vm13 = vc.u32 %v444_v58, %v440_v16  ;;  %v461_v9 = vshrl.u32 %v12165_v41, 16 }
 0x27f   : > { %v3369_v4 = vpop.f32.mrf.mxu0  ;;  %v447_v12 = vsel %vm446_vm13, 1, %v15209_v5  ;;  %v12185_v30 = vsub.s32 %v12070_v51, %v424_v59  ;;  %v12189_v16 = vsel %vm15041_vm3, %v4130_v27, %v12151_v47  ;;  %v463_v58 = vmul.u32 14564, %v460_v63 }
 0x280   : > { %v3170_v52 = vadd.f32 %v3131_v23, %v2652_v35  ;;  %v441_v35 = vshrl.u32 %v12135_v40, 16  ;;  %v12193_v23 = vld [vmem:[%s11339_s10 + $0x6c] sm:$0xff]  ;;  %v449_v33 = vadd.s32 %v447_v12, %v445_v14  ;;  %v464_v49 = vmul.u32 58254, %v460_v63 }
 0x281   : > { %v12195_v8 = vmul.u32 14564, %v461_v9  ;;  %v1558_v51 = vsel %vm12174_vm14, %v12161_v50, %v12133_v48  ;;  %v15221_v27 = vrot.slane %v12065_v55, 1  ;;  %v12213_v59 = vsel %vm15040_vm4, %v12120_v0, %v12167_v57 }
 0x282   : > { %v3406_v31 = vadd.f32 %v3367_v6, %v3170_v52  ;;  %v15220_v6 = vrot.slane %v12107_v39, 1  ;;  %v450_v52 = vadd.s32 %v449_v33, %v439_v15  ;;  %v467_v12 = vshll.u32 %v464_v49, 16 }
 0x283   : > { %v489_v63 = vand.u32 65535, %v12182_v53  ;;  %v4140_v55 = vshll.u32 %v12193_v23, 16  ;;  %vm1415_vm15 = vcmp.ne.s32.totalorder %v12185_v30, 0  ;;  %vm1451_vm7 = vcmp.lt.s32.totalorder %v12185_v30, 0 }
 0x284   : > { %v12197_v2 = vadd.f32 %v3864_v32, %v3406_v31  ;;  %v12208_v40 = vsel %vm15043_vm5, %v15221_v27, %v15220_v6  ;;  %v466_v32 = vmul.u32 58254, %v461_v9  ;;  %v469_v31 = vshll.u32 %v12195_v8, 16  ;;  %v12226_v6 = vld [vmem:[#allocation2 + $0x4] sm:$0xf]  ;;  %vm12241_vm9 = vmand %vm1451_vm7, %vm1415_vm15 }
 0x285   : > { %v2615_v14 = vpop.f32.mrf.mxu2  ;;  %v451_v0 = vadd.s32 %v450_v52, %v441_v35  ;;  %vm471_vm6 = vc.u32 %v463_v58, %v467_v12  ;;  %v12223_v9 = vadd.s32 18, %v12185_v30  ;;  %v468_v18 = vshrl.u32 %v464_v49, 16 }
 0x286   : > { %15219 = vst [vmem:[#allocation20_spill] sm:$0xff] %v12197_v2  ;;  %v2653_v48 = vadd.f32 %v2615_v14, %v15222_v24  ;;  %v3133_v50 = vpop.f32.mrf.mxu3  ;;  %v473_v2 = vadd.s32 %v467_v12, %v463_v58  ;;  %v472_v33 = vsel %vm471_vm6, 1, %v15209_v5  ;;  %v5244_v14 = vld [vmem:[#allocation2] sm:$0x8]  ;;  %v15224_v52 = vshrl.u32 %v12193_v23, 16 }
 0x287   : > { %v4843_v27 = vpop.f32.mrf.mxu0  ;;  %v452_v24 = vshrl.u32 %v451_v0, 4  ;;  %v474_v46 = vadd.s32 %v472_v33, %v466_v32  ;;  %v470_v49 = vshrl.u32 %v12195_v8, 16  ;;  %v5299_v32 = vunpack.c.l.b16 %v5244_v14  ;;  %v10126_v33 = vld [vmem:[#allocation8 + $0xb8] sm:$0xff] }
 0x288   : > { %v3171_v15 = vadd.f32 %v3133_v50, %v2653_v48  ;;  %vm475_vm8 = vc.u32 %v473_v2, %v469_v31  ;;  %v4731_v12 = vrot.slane %v15224_v52, 1  ;;  %v4732_v48 = vrot.slane %v4140_v55, 2  ;;  %6067 = vmatpush.bf16.msrb.mxu3 %v10126_v33  ;;  %v10142_v33 = vld [vmem:[#allocation8 + $0x138] sm:$0xff] }
 0x289   : > { %v476_v58 = vsel %vm475_vm8, 1, %v15209_v5  ;;  %v453_v50 = vmul.u32 18, %v452_v24  ;;  %v12248_v31 = vrot.slane %v4140_v55, 1  ;;  %v490_v8 = vshrl.u32 %v12182_v53, 16  ;;  %6821 = vmatpush.bf16.msrb.mxu1 %v10142_v33 }
 0x28a   : > { %4314 = vmatmul.bf16.gmra.mxu2 %v12130_v26  ;;  %4882 = vmatmul.bf16.gmra.mxu0 %v12146_v61  ;;  %v12230_v35 = vadd.f32 %v3369_v4, %v3171_v15  ;;  %v478_v2 = vadd.s32 %v476_v58, %v474_v46  ;;  %v15227_v61 = vshrl.u32 %v12107_v39, 16  ;;  %v10110_v15 = vld [vmem:[#allocation8 + $0x38] sm:$0xff]  ;;  %v15034_v24 = vrot.slane %v12193_v23, 1 }
 0x28b   : > { %4574 = vmatmul.bf16.gmra.mxu3 %v12142_v3  ;;  %v12253_v0 = vsub.s32 %v12098_v38, %v453_v50  ;;  %v12256_v58 = vmul.u32 58254, %v489_v63  ;;  %v12259_v55 = vor.u32 %v4732_v48, %v4731_v12  ;;  %v12261_v3 = vmul.u32 14564, %v490_v8  ;;  %5796 = vmatpush.bf16.msrb.mxu2 %v10110_v15 }
 0x28c   : > { %15223 = vst [vmem:[#allocation21_spill] sm:$0xff] %v12230_v35  ;;  %v4138_v4 = vor.u32 %v15227_v61, %v12151_v47  ;;  %v479_v14 = vadd.s32 %v478_v2, %v468_v18  ;;  %v492_v61 = vmul.u32 14564, %v489_v63  ;;  %vm12263_vm10 = vcmp.lt.s32.totalorder %v1558_v51, 16  ;;  %v12279_v51 = vld [vmem:[%s15003_s2] ss:$0 sm:$0xff] }
 0x28d   : > { %v4275_v46 = vpop.f32.mrf.mxu2  ;;  %v15228_v35 = vmov 0  ;;  %v1559_v18 = vsel %vm12241_vm9, %v12223_v9, %v12185_v30  ;;  %vm1416_vm11 = vcmp.ne.s32.totalorder %v12253_v0, 0  ;;  %v15231_v12 = vunpack.c.l.b16 %v12226_v6 }
 0x28e   : > { %v4365_v52 = vadd.f32 %v4275_v46, %v11747_v28  ;;  %v4535_v47 = vpop.f32.mrf.mxu3  ;;  %v15229_v35 = vsel %vm12263_vm10, 4294967295, %v15228_v35  ;;  %v480_v28 = vadd.s32 %v479_v14, %v470_v49  ;;  %vm1452_vm12 = vcmp.lt.s32.totalorder %v12253_v0, 0 }
 0x28f   : > { %15230 = vst [vmem:[#allocation34_spill] sm:$0xff] %v15229_v35  ;;  %v4845_v38 = vpop.f32.mrf.mxu0  ;;  %v12274_v63 = vpack.c.b16 %v15231_v12, %v5299_v32  ;;  %v495_v50 = vmul.u32 58254, %v490_v8  ;;  %v496_v30 = vshll.u32 %v12256_v58, 16  ;;  %v12285_v49 = vsel %vm15041_vm3, %v4138_v4, %v12248_v31  ;;  %v12298_v8 = vld [vmem:[%s15004_s3] ss:$0 sm:$0xff]  ;;  %vm12310_vm14 = vmand %vm1452_vm12, %vm1416_vm11 }
 0x290   : > { %v4625_v48 = vadd.f32 %v4535_v47, %v4365_v52  ;;  %v481_v9 = vshrl.u32 %v480_v28, 4  ;;  %v15232_v2 = vrot.slane %v12107_v39, 1  ;;  %v498_v26 = vshll.u32 %v12261_v3, 16  ;;  %v10134_v39 = vld [vmem:[#allocation8 + $0xf8] sm:$0xff]  ;;  %v12319_v12 = vld [vmem:[%s11339_s10 + $0x74] sm:$0xff] }
 0x291   : > { %v12301_v15 = vadd.s32 18, %v12253_v0  ;;  %v12306_v4 = vsel %vm15040_vm4, %v12167_v57, %v12259_v55  ;;  %vm500_vm13 = vc.u32 %v492_v61, %v496_v30  ;;  %v502_v47 = vadd.s32 %v496_v30, %v492_v61  ;;  %6585 = vmatpush.bf16.msrb.mxu0 %v10134_v39 }
 0x292   : > { %v12292_v32 = vsel %vm15043_vm5, %v15232_v2, %v15034_v24  ;;  %v4933_v46 = vadd.f32 %v4843_v27, %v4625_v48  ;;  %v482_v14 = vmul.u32 18, %v481_v9  ;;  %v501_v52 = vsel %vm500_vm13, 1, %v15209_v5 }
 0x293   : > { %v12316_v28 = vadd.s32 40, %v12014_v19  ;;  %v497_v2 = vshrl.u32 %v12256_v58, 16  ;;  %v503_v24 = vadd.s32 %v501_v52, %v495_v50  ;;  %vm504_vm15 = vc.u32 %v502_v47, %v498_v26 }
 0x294   : > { %v4972_v57 = vmul.f32 %v12279_v51, %v4933_v46  ;;  %v12325_v9 = vsub.s32 %v12165_v41, %v482_v14  ;;  %v1560_v58 = vsel %vm12310_vm14, %v12301_v15, %v12253_v0  ;;  %v505_v50 = vsel %vm504_vm15, 1, %v15209_v5 }
 0x295   : > { %v4277_v7 = vpop.f32.mrf.mxu2  ;;  %v518_v61 = vand.u32 65535, %v12316_v28  ;;  %v519_v30 = vshrl.u32 %v12316_v28, 16  ;;  %v499_v41 = vshrl.u32 %v12261_v3, 16  ;;  %v507_v26 = vadd.s32 %v505_v50, %v503_v24 }
 0x296   : > { %v5011_v36 = vadd.f32 %v12298_v8, %v4972_v57  ;;  %v4366_v46 = vadd.f32 %v4277_v7, %v11755_v11  ;;  %v4537_v37 = vpop.f32.mrf.mxu3  ;;  %v4148_v33 = vshll.u32 %v12319_v12, 16  ;;  %v15035_v14 = vshrl.u32 %v12319_v12, 16 }
 0x297   : > { %v4848_v39 = vpop.f32.mrf.mxu0  ;;  %v521_v57 = vmul.u32 14564, %v518_v61  ;;  %v522_v11 = vmul.u32 58254, %v518_v61  ;;  %vm12339_vm6 = vcmp.lt.s32.totalorder %v1559_v18, 16  ;;  %v15235_v7 = vmov 0 }
 0x298   : > { %v5047_v52 = vmax.f32 %v5011_v36, 0.0  ;;  %v4626_v47 = vadd.f32 %v4537_v37, %v4366_v46  ;;  %v15236_v7 = vsel %vm12339_vm6, 4294967295, %v15235_v7  ;;  %vm1417_vm7 = vcmp.ne.s32.totalorder %v12325_v9, 0 }
 0x299   : > { %15237 = vst [vmem:[#allocation35_spill] sm:$0xff] %v15236_v7  ;;  %vm1453_vm8 = vcmp.lt.s32.totalorder %v12325_v9, 0  ;;  %v508_v0 = vadd.s32 %v507_v26, %v497_v2  ;;  %v523_v15 = vmul.u32 14564, %v519_v30  ;;  %v524_v37 = vmul.u32 58254, %v519_v30 }
 0x29a   : > { %v5083_v3 = vsel %vm12263_vm10, %v5047_v52, 0.0  ;;  %v4934_v24 = vadd.f32 %v4845_v38, %v4626_v47  ;;  %4319 = vmatmul.bf16.gmra.mxu2 %v12189_v16  ;;  %4887 = vmatmul.bf16.gmra.mxu0 %v12213_v59  ;;  %v525_v36 = vshll.u32 %v522_v11, 16  ;;  %v12351_v27 = vadd.s32 18, %v12325_v9  ;;  %vm12358_vm9 = vmand %vm1453_vm8, %vm1417_vm7 }
 0x29b   : > { %v5119_v18 = vpack.c.bf16 %v5083_v3, %v5083_v3  ;;  %4579 = vmatmul.bf16.gmra.mxu3 %v12208_v40  ;;  %v509_v61 = vadd.s32 %v508_v0, %v499_v41  ;;  %v527_v46 = vshll.u32 %v523_v15, 16  ;;  %v526_v59 = vshrl.u32 %v522_v11, 16 }
 0x29c   : > { %v4973_v2 = vmul.f32 %v12279_v51, %v4934_v24  ;;  %vm529_vm11 = vc.u32 %v521_v57, %v525_v36  ;;  %v531_v38 = vadd.s32 %v525_v36, %v521_v57  ;;  %v15240_v41 = vshrl.u32 %v12193_v23, 16 }
 0x29d   : > { %5155 = vst [vmem:[#allocation2 + $0xc] sm:$0xf] %v5119_v18  ;;  %v4280_v40 = vpop.f32.mrf.mxu2  ;;  %v510_v30 = vshrl.u32 %v509_v61, 4  ;;  %v530_v50 = vsel %vm529_vm11, 1, %v15209_v5  ;;  %v12366_v52 = vrot.slane %v4148_v33, 1  ;;  %vm12370_vm13 = vcmp.lt.s32.totalorder %v1560_v58, 16 }
 0x29e   : > { %v4146_v26 = vor.u32 %v15240_v41, %v12248_v31  ;;  %v5012_v47 = vadd.f32 %v12298_v8, %v4973_v2  ;;  %v4367_v0 = vadd.f32 %v4280_v40, %v11766_v20  ;;  %v4540_v3 = vpop.f32.mrf.mxu3  ;;  %v532_v24 = vadd.s32 %v530_v50, %v524_v37 }
 0x29f   : > { %vm533_vm12 = vc.u32 %v531_v38, %v527_v46  ;;  %v15241_v57 = vmov 0  ;;  %v4850_v11 = vpop.f32.mrf.mxu0  ;;  %v1561_v36 = vsel %vm12358_vm9, %v12351_v27, %v12325_v9  ;;  %v511_v31 = vmul.u32 18, %v510_v30 }
 0x2a0   : > { %v15242_v57 = vsel %vm12370_vm13, 4294967295, %v15241_v57  ;;  %v534_v18 = vsel %vm533_vm12, 1, %v15209_v5  ;;  %v4735_v61 = vrot.slane %v15035_v14, 1  ;;  %v5048_v20 = vmax.f32 %v5012_v47, 0.0 }
 0x2a1   : > { %15243 = vst [vmem:[#allocation36_spill] sm:$0xff] %v15242_v57  ;;  %v4627_v2 = vadd.f32 %v4540_v3, %v4367_v0  ;;  %v528_v37 = vshrl.u32 %v523_v15, 16  ;;  %v536_v46 = vadd.s32 %v534_v18, %v532_v24  ;;  %v12382_v58 = vsub.s32 %v12182_v53, %v511_v31 }
 0x2a2   : > { %v12386_v38 = vsel %vm15041_vm3, %v4146_v26, %v12366_v52  ;;  %v4736_v40 = vrot.slane %v4148_v33, 2  ;;  %v12389_v9 = vadd.s32 48, %v12014_v19  ;;  %v12393_v50 = vadd.s32 56, %v12014_v19 }
 0x2a3   : > { %v4935_v27 = vadd.f32 %v4848_v39, %v4627_v2  ;;  %v537_v16 = vadd.s32 %v536_v46, %v526_v59  ;;  %vm1418_vm14 = vcmp.ne.s32.totalorder %v12382_v58, 0  ;;  %vm1454_vm15 = vcmp.lt.s32.totalorder %v12382_v58, 0 }
 0x2a4   : > { %v12398_v53 = vadd.s32 18, %v12382_v58  ;;  %v547_v15 = vand.u32 65535, %v12389_v9  ;;  %v5084_v33 = vsel %vm12339_vm6, %v5048_v20, 0.0  ;;  %v12404_v59 = vld [vmem:[#allocation2 + $0x8] sm:$0xff]  ;;  %vm12406_vm7 = vmand %vm1454_vm15, %vm1418_vm14  ;;  %v548_v47 = vshrl.u32 %v12389_v9, 16 }
 0x2a5   : > { %v4974_v39 = vmul.f32 %v12279_v51, %v4935_v27  ;;  %v538_v26 = vadd.s32 %v537_v16, %v528_v37  ;;  %v4282_v0 = vpop.f32.mrf.mxu2  ;;  %v12415_v24 = vor.u32 %v4736_v40, %v4735_v61  ;;  %v15037_v27 = vrot.slane %v12404_v59, 3 }
 0x2a6   : > { %v1562_v3 = vsel %vm12406_vm7, %v12398_v53, %v12382_v58  ;;  %v550_v31 = vmul.u32 14564, %v547_v15  ;;  %v551_v18 = vmul.u32 58254, %v547_v15  ;;  %v4368_v2 = vadd.f32 %v4282_v0, %v11774_v56  ;;  %v4542_v46 = vpop.f32.mrf.mxu3 }
 0x2a7   : > { %v5013_v20 = vadd.f32 %v12298_v8, %v4974_v39  ;;  %v576_v37 = vand.u32 65535, %v12393_v50  ;;  %v4853_v16 = vpop.f32.mrf.mxu0  ;;  %v539_v14 = vshrl.u32 %v538_v26, 4  ;;  %v552_v30 = vmul.u32 14564, %v548_v47 }
 0x2a8   : > { %v553_v48 = vmul.u32 58254, %v548_v47  ;;  %v554_v7 = vshll.u32 %v551_v18, 16  ;;  %v4628_v58 = vadd.f32 %v4542_v46, %v4368_v2  ;;  %v15246_v61 = vrot.slane %v12274_v63, 3 }
 0x2a9   : > { %v5049_v41 = vmax.f32 %v5013_v20, 0.0  ;;  %v555_v53 = vshrl.u32 %v551_v18, 16  ;;  %vm12426_vm8 = vcmp.lt.s32.totalorder %v1561_v36, 16  ;;  %v15247_v56 = vmov 0 }
 0x2aa   : > { %v5357_v40 = vsel %vm15042_vm0, %v15246_v61, %v15037_v27  ;;  %v15248_v56 = vsel %vm12426_vm8, 4294967295, %v15247_v56  ;;  %v540_v15 = vmul.u32 18, %v539_v14  ;;  %v556_v39 = vshll.u32 %v552_v30, 16  ;;  %4324 = vmatmul.bf16.gmra.mxu2 %v12285_v49  ;;  %4892 = vmatmul.bf16.gmra.mxu0 %v12306_v4 }
 0x2ab   : > { %15249 = vst [vmem:[#allocation37_spill] sm:$0xff] %v15248_v56  ;;  %5466 = vmatmul.bf16.vlgmr.msra.gmra.mxu1 %v5357_v40  ;;  %v557_v26 = vshrl.u32 %v552_v30, 16  ;;  %vm558_vm9 = vc.u32 %v550_v31, %v554_v7  ;;  %v5085_v47 = vsel %vm12370_vm13, %v5049_v41, 0.0  ;;  %v4936_v0 = vadd.f32 %v4850_v11, %v4628_v58  ;;  %4584 = vmatmul.bf16.gmra.mxu3 %v12292_v32  ;;  %v10193_v56 = vld [vmem:[#allocation8 + $0x1b8] sm:$0xff] }
 0x2ac   : > { %v559_v20 = vsel %vm558_vm9, 1, %v15209_v5  ;;  %v560_v18 = vadd.s32 %v554_v7, %v550_v31  ;;  %v10281_v36 = vpack.c.bf16 %v5085_v47, %v5084_v33  ;;  %v541_v2 = vsub.s32 %v12316_v28, %v540_v15  ;;  %v10109_v33 = vld [vmem:[#allocation8 + $0x30] sm:$0xff] }
 0x2ad   : > { %v561_v14 = vadd.s32 %v559_v20, %v553_v48  ;;  %v577_v30 = vshrl.u32 %v12393_v50, 16  ;;  %v4975_v46 = vmul.f32 %v12279_v51, %v4936_v0  ;;  %v579_v41 = vmul.u32 14564, %v576_v37  ;;  %v4285_v49 = vpop.f32.mrf.mxu2  ;;  %5797 = vmatpush.bf16.msrb.mxu2 %v10109_v33  ;;  %v12455_v20 = vld [vmem:[%s11339_s10 + $0x7c] sm:$0xff] }
 0x2ae   : > { %vm562_vm11 = vc.u32 %v560_v18, %v556_v39  ;;  %v580_v11 = vmul.u32 58254, %v576_v37  ;;  %10681 = vst [vmem:[#allocation2 + $0x10] sm:$0xff] %v10281_v36   ;;  %vm1419_vm12 = vcmp.ne.s32.totalorder %v541_v2, 0  ;;  %vm1455_vm14 = vcmp.lt.s32.totalorder %v541_v2, 0  ;;  %v4545_v48 = vpop.f32.mrf.mxu3 }
 0x2af   : > { %v1527_v4 = vadd.s32 18, %v541_v2  ;;  %v563_v7 = vsel %vm562_vm11, 1, %v15209_v5  ;;  %v5014_v32 = vadd.f32 %v12298_v8, %v4975_v46  ;;  %v4369_v28 = vadd.f32 %v4285_v49, %v11783_v45  ;;  %vm12442_vm15 = vmand %vm1455_vm14, %vm1419_vm12  ;;  %v4855_v61 = vpop.f32.mrf.mxu0 }
 0x2b0   : > { %v565_v58 = vadd.s32 %v563_v7, %v561_v14  ;;  %v581_v37 = vmul.u32 14564, %v577_v30  ;;  %v15252_v40 = vrot.slane %v12319_v12, 1  ;;  %v15253_v15 = vrot.slane %v12193_v23, 1 }
 0x2b1   : > { %v4738_v47 = vsel %vm15040_vm4, %v12259_v55, %v12415_v24  ;;  %v582_v45 = vmul.u32 58254, %v577_v30  ;;  %v583_v0 = vshll.u32 %v580_v11, 16  ;;  %v5050_v18 = vmax.f32 %v5014_v32, 0.0 }
 0x2b2   : > { %v4447_v39 = vsel %vm15043_vm5, %v15253_v15, %v15252_v40  ;;  %vm12457_vm7 = vcmp.lt.s32.totalorder %v1562_v3, 16  ;;  %v15254_v36 = vmov 0  ;;  %v4629_v14 = vadd.f32 %v4545_v48, %v4369_v28  ;;  %v10125_v15 = vld [vmem:[#allocation8 + $0xb0] sm:$0xff] }
 0x2b3   : > { %v15255_v36 = vsel %vm12457_vm7, 4294967295, %v15254_v36  ;;  %v566_v46 = vadd.s32 %v565_v58, %v555_v53  ;;  %v1563_v23 = vsel %vm12442_vm15, %v1527_v4, %v541_v2  ;;  %v585_v49 = vshll.u32 %v581_v37, 16  ;;  %6068 = vmatpush.bf16.msrb.mxu3 %v10125_v15 }
 0x2b4   : > { %15256 = vst [vmem:[#allocation38_spill] sm:$0xff] %v15255_v36  ;;  %vm587_vm9 = vc.u32 %v579_v41, %v583_v0  ;;  %v589_v7 = vadd.s32 %v583_v0, %v579_v41  ;;  %v4937_v40 = vadd.f32 %v4853_v16, %v4629_v14  ;;  %v584_v33 = vshrl.u32 %v580_v11, 16 }
 0x2b5   : > { %v567_v55 = vadd.s32 %v566_v46, %v557_v26  ;;  %v588_v30 = vsel %vm587_vm9, 1, %v15209_v5  ;;  %v586_v27 = vshrl.u32 %v581_v37, 16  ;;  %v4156_v3 = vshll.u32 %v12455_v20, 16  ;;  %v12468_v2 = vld [vmem:[#allocation2 + $0x10] sm:$0xff]  ;;  %v4287_v26 = vpop.f32.mrf.mxu2 }
 0x2b6   : > { %v590_v32 = vadd.s32 %v588_v30, %v582_v45  ;;  %vm591_vm11 = vc.u32 %v589_v7, %v585_v49  ;;  %v5086_v53 = vsel %vm12426_vm8, %v5050_v18, 0.0  ;;  %v4976_v28 = vmul.f32 %v12279_v51, %v4937_v40  ;;  %v4547_v0 = vpop.f32.mrf.mxu3 }
 0x2b7   : > { %v568_v4 = vshrl.u32 %v567_v55, 4  ;;  %v592_v16 = vsel %vm591_vm11, 1, %v15209_v5  ;;  %v15257_v11 = vshrl.u32 %v12319_v12, 16  ;;  %v4160_v31 = vshrl.u32 %v12455_v20, 16  ;;  %v4858_v49 = vpop.f32.mrf.mxu0 }
 0x2b8   : > { %v594_v41 = vadd.s32 %v592_v16, %v590_v32  ;;  %v4740_v58 = vrot.slane %v4156_v3, 2  ;;  %v5015_v37 = vadd.f32 %v12298_v8, %v4976_v28  ;;  %v4370_v45 = vadd.f32 %v4287_v26, %v11791_v10 }
 0x2b9   : > { %v4154_v48 = vor.u32 %v15257_v11, %v12366_v52  ;;  %v5358_v18 = vrot.slane %v12468_v2, 3  ;;  %v569_v14 = vmul.u32 18, %v568_v4  ;;  %vm12478_vm12 = vcmp.lt.s32.totalorder %v1563_v23, 16 }
 0x2ba   : > { %v15258_v46 = vmov 0  ;;  %v595_v7 = vadd.s32 %v594_v41, %v584_v33  ;;  %v4158_v40 = vrot.slane %v4156_v3, 1  ;;  %v4448_v52 = vrot.slane %v12455_v20, 1  ;;  %4329 = vmatmul.bf16.gmra.mxu2 %v12386_v38  ;;  %4897 = vmatmul.bf16.gmra.mxu0 %v4738_v47 }
 0x2bb   : > { %v15259_v46 = vsel %vm12478_vm12, 4294967295, %v15258_v46  ;;  %v4739_v55 = vrot.slane %v4160_v31, 1  ;;  %v5051_v30 = vmax.f32 %v5015_v37, 0.0  ;;  %v4630_v15 = vadd.f32 %v4547_v0, %v4370_v45  ;;  %4589 = vmatmul.bf16.gmra.mxu3 %v4447_v39 }
 0x2bc   : > { %15260 = vst [vmem:[#allocation39_spill] sm:$0xff] %v15259_v46  ;;  %v15261_v10 = vrot.slane %v12404_v59, 3  ;;  %v570_v28 = vsub.s32 %v12389_v9, %v569_v14  ;;  %v596_v23 = vadd.s32 %v595_v7, %v586_v27  ;;  %v12492_v33 = vadd.s32 64, %v12014_v19  ;;  %v10133_v14 = vld [vmem:[#allocation8 + $0xf0] sm:$0xff] }
 0x2bd   : > { %v12489_v4 = vor.u32 %v4740_v58, %v4739_v55  ;;  %v12495_v3 = vadd.s32 72, %v12014_v19  ;;  %v5087_v16 = vsel %vm12457_vm7, %v5051_v30, 0.0  ;;  %v4938_v26 = vadd.f32 %v4855_v61, %v4630_v15  ;;  %v10141_v7 = vld [vmem:[#allocation8 + $0x130] sm:$0xff]  ;;  %6586 = vmatpush.bf16.msrb.mxu0 %v10133_v14 }
 0x2be   : > { %v5359_v32 = vsel %vm15042_vm0, %v15261_v10, %v5358_v18  ;;  %vm1420_vm14 = vcmp.ne.s32.totalorder %v570_v28, 0  ;;  %vm1456_vm15 = vcmp.lt.s32.totalorder %v570_v28, 0  ;;  %v10286_v9 = vpack.c.bf16 %v5087_v16, %v5086_v53  ;;  %v4290_v53 = vpop.f32.mrf.mxu2  ;;  %v4550_v15 = vpop.f32.mrf.mxu3  ;;  %6822 = vmatpush.bf16.msrb.mxu1 %v10141_v7 }
 0x2bf   : > { %5471 = vmatmul.bf16.gmra.mxu1 %v5359_v32  ;;  %vm12500_vm9 = vmand %vm1456_vm15, %vm1420_vm14  ;;  %v1528_v27 = vadd.s32 18, %v570_v28  ;;  %v597_v41 = vshrl.u32 %v596_v23, 4  ;;  %v12505_v11 = vsel %vm15041_vm3, %v4154_v48, %v4158_v40  ;;  %v4977_v58 = vmul.f32 %v12279_v51, %v4938_v26 }
 0x2c0   : > { %v605_v61 = vand.u32 65535, %v12492_v33  ;;  %v606_v38 = vshrl.u32 %v12492_v33, 16  ;;  %v634_v47 = vand.u32 65535, %v12495_v3  ;;  %10682 = vst [vmem:[#allocation2 + $0x18] sm:$0xff] %v10286_v9   ;;  %v15264_v45 = vrot.slane %v12319_v12, 1 }
 0x2c1   : > { %v1564_v39 = vsel %vm12500_vm9, %v1528_v27, %v570_v28  ;;  %v598_v37 = vmul.u32 18, %v597_v41  ;;  %v12523_v0 = vsel %vm15040_vm4, %v12415_v24, %v12489_v4  ;;  %v5016_v55 = vadd.f32 %v12298_v8, %v4977_v58  ;;  %v4860_v28 = vpop.f32.mrf.mxu0 }
 0x2c2   : > { %v12518_v48 = vsel %vm15043_vm5, %v15264_v45, %v4448_v52  ;;  %v4371_v30 = vadd.f32 %v4290_v53, %v11799_v44  ;;  %v635_v10 = vshrl.u32 %v12495_v3, 16  ;;  %v12528_v32 = vor.u32 %v4160_v31, %v4158_v40 }
 0x2c3   : > { %vm12530_vm11 = vcmp.lt.s32.totalorder %v1564_v39, 16  ;;  %v15265_v12 = vmov 0  ;;  %v599_v23 = vsub.s32 %v12393_v50, %v598_v37  ;;  %v608_v24 = vmul.u32 14564, %v605_v61 }
 0x2c4   : > { %v15266_v12 = vsel %vm12530_vm11, 4294967295, %v15265_v12  ;;  %v609_v16 = vmul.u32 58254, %v605_v61  ;;  %v610_v26 = vmul.u32 14564, %v606_v38  ;;  %v5052_v9 = vmax.f32 %v5016_v55, 0.0 }
 0x2c5   : > { %15267 = vst [vmem:[#allocation40_spill] sm:$0xff] %v15266_v12  ;;  %v4631_v59 = vadd.f32 %v4550_v15, %v4371_v30  ;;  %v611_v44 = vmul.u32 58254, %v606_v38  ;;  %v12535_v27 = vmul.u32 58254, %v634_v47  ;;  %vm1421_vm14 = vcmp.ne.s32.totalorder %v599_v23, 0 }
 0x2c6   : > { %vm1457_vm15 = vcmp.lt.s32.totalorder %v599_v23, 0  ;;  %v1529_v31 = vadd.s32 18, %v599_v23  ;;  %v612_v40 = vshll.u32 %v609_v16, 16  ;;  %v5088_v41 = vsel %vm12478_vm12, %v5052_v9, 0.0  ;;  %v4292_v30 = vpop.f32.mrf.mxu2 }
 0x2c7   : > { %v4939_v58 = vadd.f32 %v4858_v49, %v4631_v59  ;;  %vm12539_vm9 = vmand %vm1457_vm15, %vm1421_vm14  ;;  %v614_v61 = vshll.u32 %v610_v26, 16  ;;  %v637_v53 = vmul.u32 14564, %v634_v47  ;;  %v613_v39 = vshrl.u32 %v609_v16, 16  ;;  %v12546_v14 = vld [vmem:[#allocation2 + $0x18] sm:$0xff]  ;;  %v4552_v16 = vpop.f32.mrf.mxu3 }
 0x2c8   : > { %v1565_v38 = vsel %vm12539_vm9, %v1529_v31, %v599_v23  ;;  %vm616_vm2 = vc.u32 %v608_v24, %v612_v40  ;;  %v618_v37 = vadd.s32 %v612_v40, %v608_v24  ;;  %v615_v7 = vshrl.u32 %v610_v26, 16  ;;  %v12553_v59 = vld [vmem:[%s11339_s10 + $0x84] sm:$0xff] }
 0x2c9   : > { %v4978_v45 = vmul.f32 %v12279_v51, %v4939_v58  ;;  %v617_v49 = vsel %vm616_vm2, 1, %v15209_v5  ;;  %v12549_v55 = vmul.u32 14564, %v635_v10  ;;  %v640_v9 = vmul.u32 58254, %v635_v10 }
 0x2ca   : > { %v619_v15 = vadd.s32 %v617_v49, %v611_v44  ;;  %vm620_vm14 = vc.u32 %v618_v37, %v614_v61  ;;  %v641_v47 = vshll.u32 %v12535_v27, 16  ;;  %v4372_v24 = vadd.f32 %v4292_v30, %v11807_v1  ;;  %v4863_v44 = vpop.f32.mrf.mxu0  ;;  %4334 = vmatmul.bf16.gmra.mxu2 %v12505_v11  ;;  %4902 = vmatmul.bf16.gmra.mxu0 %v12523_v0 }
 0x2cb   : > { %v5017_v23 = vadd.f32 %v12298_v8, %v4978_v45  ;;  %v5360_v31 = vrot.slane %v12546_v14, 3  ;;  %v621_v26 = vsel %vm620_vm14, 1, %v15209_v5  ;;  %vm12559_vm2 = vcmp.lt.s32.totalorder %v1565_v38, 16  ;;  %4594 = vmatmul.bf16.gmra.mxu3 %v12518_v48 }
 0x2cc   : > { %v15270_v40 = vmov 0  ;;  %v623_v58 = vadd.s32 %v621_v26, %v619_v15  ;;  %v642_v10 = vshrl.u32 %v12535_v27, 16  ;;  %v643_v50 = vshll.u32 %v12549_v55, 16 }
 0x2cd   : > { %v15271_v40 = vsel %vm12559_vm2, 4294967295, %v15270_v40  ;;  %v5053_v61 = vmax.f32 %v5017_v23, 0.0  ;;  %v4632_v37 = vadd.f32 %v4552_v16, %v4372_v24  ;;  %v5361_v1 = vsel %vm15042_vm0, %v5358_v18, %v5360_v31 }
 0x2ce   : > { %15272 = vst [vmem:[#allocation41_spill] sm:$0xff] %v15271_v40  ;;  %vm645_vm15 = vc.u32 %v637_v53, %v641_v47  ;;  %v624_v38 = vadd.s32 %v623_v58, %v613_v39  ;;  %v647_v49 = vadd.s32 %v641_v47, %v637_v53  ;;  %v4164_v30 = vshll.u32 %v12553_v59, 16  ;;  %v4295_v11 = vpop.f32.mrf.mxu2 }
 0x2cf   : > { %5476 = vmatmul.bf16.gmra.mxu1 %v5361_v1  ;;  %v646_v45 = vsel %vm645_vm15, 1, %v15209_v5  ;;  %v5089_v27 = vsel %vm12530_vm11, %v5053_v61, 0.0  ;;  %v4940_v15 = vadd.f32 %v4860_v28, %v4632_v37  ;;  %v4450_v2 = vrot.slane %v12553_v59, 1  ;;  %v4555_v26 = vpop.f32.mrf.mxu3 }
 0x2d0   : > { %v648_v23 = vadd.s32 %v646_v45, %v640_v9  ;;  %v10291_v18 = vpack.c.bf16 %v5089_v27, %v5088_v41  ;;  %v625_v39 = vadd.s32 %v624_v38, %v615_v7  ;;  %vm649_vm9 = vc.u32 %v647_v49, %v643_v50 }
 0x2d1   : > { %v4166_v24 = vrot.slane %v4164_v30, 1  ;;  %v4979_v53 = vmul.f32 %v12279_v51, %v4940_v15  ;;  %v644_v47 = vshrl.u32 %v12549_v55, 16  ;;  %v650_v16 = vsel %vm649_vm9, 1, %v15209_v5 }
 0x2d2   : > { %v4168_v28 = vshrl.u32 %v12553_v59, 16  ;;  %10683 = vst [vmem:[#allocation2 + $0x20] sm:$0xff] %v10291_v18   ;;  %v626_v0 = vshrl.u32 %v625_v39, 4  ;;  %v652_v9 = vadd.s32 %v650_v16, %v648_v23  ;;  %v12587_v48 = vsel %vm15043_vm5, %v4448_v52, %v4450_v2  ;;  %v4865_v37 = vpop.f32.mrf.mxu0 }
 0x2d3   : > { %v4744_v41 = vrot.slane %v4164_v30, 2  ;;  %v5018_v7 = vadd.f32 %v12298_v8, %v4979_v53  ;;  %v4373_v55 = vadd.f32 %v4295_v11, %v11815_v42  ;;  %v12592_v50 = vadd.s32 80, %v12014_v19 }
 0x2d4   : > { %v4743_v58 = vrot.slane %v4168_v28, 1  ;;  %v627_v61 = vmul.u32 18, %v626_v0  ;;  %v653_v1 = vadd.s32 %v652_v9, %v642_v10  ;;  %v4167_v38 = vsel %vm15041_vm3, %v12528_v32, %v4166_v24 }
 0x2d5   : > { %v12597_v20 = vadd.s32 88, %v12014_v19  ;;  %v5054_v52 = vmax.f32 %v5018_v7, 0.0  ;;  %v4633_v45 = vadd.f32 %v4555_v26, %v4373_v55  ;;  %v663_v42 = vand.u32 65535, %v12592_v50 }
 0x2d6   : > { %v12599_v49 = vor.u32 %v4744_v41, %v4743_v58  ;;  %v628_v30 = vsub.s32 %v12492_v33, %v627_v61  ;;  %v654_v27 = vadd.s32 %v653_v1, %v644_v47  ;;  %v664_v15 = vshrl.u32 %v12592_v50, 16  ;;  %v10108_v33 = vld [vmem:[#allocation8 + $0x28] sm:$0xff]  ;;  %v4297_v41 = vpop.f32.mrf.mxu2 }
 0x2d7   : > { %v12604_v23 = vor.u32 %v4168_v28, %v4166_v24  ;;  %v5090_v10 = vsel %vm12559_vm2, %v5054_v52, 0.0  ;;  %v4941_v32 = vadd.f32 %v4863_v44, %v4633_v45  ;;  %v692_v39 = vand.u32 65535, %v12597_v20  ;;  %v10124_v47 = vld [vmem:[#allocation8 + $0xa8] sm:$0xff]  ;;  %5798 = vmatpush.bf16.msrb.mxu2 %v10108_v33  ;;  %v4557_v1 = vpop.f32.mrf.mxu3 }
 0x2d8   : > { %v4746_v18 = vsel %vm15040_vm4, %v12489_v4, %v12599_v49  ;;  %vm1422_vm14 = vcmp.ne.s32.totalorder %v628_v30, 0  ;;  %vm1458_vm15 = vcmp.lt.s32.totalorder %v628_v30, 0  ;;  %v1530_v53 = vadd.s32 18, %v628_v30  ;;  %6069 = vmatpush.bf16.msrb.mxu3 %v10124_v47 }
 0x2d9   : > { %v655_v16 = vshrl.u32 %v654_v27, 4  ;;  %vm12612_vm9 = vmand %vm1458_vm15, %vm1422_vm14  ;;  %v4980_v24 = vmul.f32 %v12279_v51, %v4941_v32  ;;  %v12617_v28 = vld [vmem:[#allocation2 + $0x20] sm:$0xff]  ;;  %v666_v44 = vmul.u32 14564, %v663_v42  ;;  %v667_v0 = vmul.u32 58254, %v663_v42 }
 0x2da   : > { %v12619_v9 = vmul.u32 14564, %v664_v15  ;;  %v1566_v4 = vsel %vm12612_vm9, %v1530_v53, %v628_v30  ;;  %v669_v55 = vmul.u32 58254, %v664_v15  ;;  %v693_v26 = vshrl.u32 %v12597_v20, 16  ;;  %v4868_v27 = vpop.f32.mrf.mxu0  ;;  %4339 = vmatmul.bf16.gmra.mxu2 %v4167_v38  ;;  %4907 = vmatmul.bf16.gmra.mxu0 %v4746_v18 }
 0x2db   : > { %v656_v7 = vmul.u32 18, %v655_v16  ;;  %v5019_v58 = vadd.f32 %v12298_v8, %v4980_v24  ;;  %v4374_v61 = vadd.f32 %v4297_v41, %v11823_v54  ;;  %v5362_v52 = vrot.slane %v12617_v28, 3  ;;  %4599 = vmatmul.bf16.gmra.mxu3 %v12587_v48 }
 0x2dc   : > { %v695_v45 = vmul.u32 14564, %v692_v39  ;;  %vm12627_vm14 = vcmp.lt.s32.totalorder %v1566_v4, 16  ;;  %v15275_v42 = vmov 0  ;;  %v670_v15 = vshll.u32 %v667_v0, 16 }
 0x2dd   : > { %v15276_v42 = vsel %vm12627_vm14, 4294967295, %v15275_v42  ;;  %v657_v30 = vsub.s32 %v12495_v3, %v656_v7  ;;  %v671_v32 = vshrl.u32 %v667_v0, 16  ;;  %v5055_v53 = vmax.f32 %v5019_v58, 0.0  ;;  %v12649_v58 = vld [vmem:[%s11339_s10 + $0x8c] sm:$0xff] }
 0x2de   : > { %15277 = vst [vmem:[#allocation42_spill] sm:$0xff] %v15276_v42  ;;  %v4634_v16 = vadd.f32 %v4557_v1, %v4374_v61  ;;  %v5363_v54 = vsel %vm15042_vm0, %v5360_v31, %v5362_v52  ;;  %v672_v33 = vshll.u32 %v12619_v9, 16  ;;  %vm674_vm1 = vc.u32 %v666_v44, %v670_v15 }
 0x2df   : > { %vm1423_vm15 = vcmp.ne.s32.totalorder %v657_v30, 0  ;;  %vm1459_vm9 = vcmp.lt.s32.totalorder %v657_v30, 0  ;;  %v1531_v47 = vadd.s32 18, %v657_v30  ;;  %5481 = vmatmul.bf16.gmra.mxu1 %v5363_v54  ;;  %v5091_v3 = vsel %vm12627_vm14, %v5055_v53, 0.0 }
 0x2e0   : > { %vm12640_vm4 = vmand %vm1459_vm9, %vm1423_vm15  ;;  %v4942_v24 = vadd.f32 %v4865_v37, %v4634_v16  ;;  %v675_v14 = vsel %vm674_vm1, 1, %v15209_v5  ;;  %v676_v31 = vadd.s32 %v670_v15, %v666_v44  ;;  %v10296_v0 = vpack.c.bf16 %v5091_v3, %v5090_v10  ;;  %v4300_v10 = vpop.f32.mrf.mxu2  ;;  %v4560_v15 = vpop.f32.mrf.mxu3 }
 0x2e1   : > { %v1567_v4 = vsel %vm12640_vm4, %v1531_v47, %v657_v30  ;;  %v677_v41 = vadd.s32 %v675_v14, %v669_v55  ;;  %v696_v7 = vmul.u32 58254, %v692_v39  ;;  %v673_v1 = vshrl.u32 %v12619_v9, 16 }
 0x2e2   : > { %v4981_v61 = vmul.f32 %v12279_v51, %v4942_v24  ;;  %vm678_vm15 = vc.u32 %v676_v31, %v672_v33  ;;  %v697_v37 = vmul.u32 14564, %v693_v26  ;;  %10684 = vst [vmem:[#allocation2 + $0x28] sm:$0xff] %v10296_v0   ;;  %vm12653_vm9 = vcmp.lt.s32.totalorder %v1567_v4, 16  ;;  %v4870_v24 = vpop.f32.mrf.mxu0 }
 0x2e3   : > { %v15280_v38 = vmov 0  ;;  %v679_v18 = vsel %vm678_vm15, 1, %v15209_v5  ;;  %v698_v44 = vmul.u32 58254, %v693_v26  ;;  %v699_v48 = vshll.u32 %v696_v7, 16 }
 0x2e4   : > { %v15281_v38 = vsel %vm12653_vm9, 4294967295, %v15280_v38  ;;  %v5020_v39 = vadd.f32 %v12298_v8, %v4981_v61  ;;  %v4375_v55 = vadd.f32 %v4300_v10, %v11831_v22  ;;  %v681_v30 = vadd.s32 %v679_v18, %v677_v41 }
 0x2e5   : > { %15282 = vst [vmem:[#allocation43_spill] sm:$0xff] %v15281_v38  ;;  %v701_v53 = vshll.u32 %v697_v37, 16  ;;  %v700_v9 = vshrl.u32 %v696_v7, 16  ;;  %vm703_vm1 = vc.u32 %v695_v45, %v699_v48  ;;  %v705_v16 = vadd.s32 %v699_v48, %v695_v45 }
 0x2e6   : > { %v4172_v54 = vshll.u32 %v12649_v58, 16  ;;  %v5056_v33 = vmax.f32 %v5020_v39, 0.0  ;;  %v682_v47 = vadd.s32 %v681_v30, %v671_v32  ;;  %v4635_v3 = vadd.f32 %v4560_v15, %v4375_v55 }
 0x2e7   : > { %v704_v11 = vsel %vm703_vm1, 1, %v15209_v5  ;;  %vm707_vm4 = vc.u32 %v705_v16, %v701_v53  ;;  %v4452_v31 = vrot.slane %v12649_v58, 1  ;;  %v702_v4 = vshrl.u32 %v697_v37, 16 }
 0x2e8   : > { %v706_v26 = vadd.s32 %v704_v11, %v698_v44  ;;  %v4174_v14 = vrot.slane %v4172_v54, 1  ;;  %v683_v22 = vadd.s32 %v682_v47, %v673_v1  ;;  %v4943_v0 = vadd.f32 %v4868_v27, %v4635_v3  ;;  %v4302_v1 = vpop.f32.mrf.mxu2  ;;  %v4562_v16 = vpop.f32.mrf.mxu3  ;;  %v10140_v3 = vld [vmem:[#allocation8 + $0x128] sm:$0xff] }
 0x2e9   : > { %v708_v41 = vsel %vm707_vm4, 1, %v15209_v5  ;;  %v12666_v45 = vsel %vm12653_vm9, %v5056_v33, 0.0  ;;  %v4176_v61 = vshrl.u32 %v12649_v58, 16  ;;  %v4748_v44 = vrot.slane %v4172_v54, 2  ;;  %v12672_v48 = vld [vmem:[#allocation2 + $0x28] sm:$0xff]  ;;  %6823 = vmatpush.bf16.msrb.mxu1 %v10140_v3 }
 0x2ea   : > { %v710_v7 = vadd.s32 %v708_v41, %v706_v26  ;;  %v4175_v32 = vsel %vm15041_vm3, %v12604_v23, %v4174_v14  ;;  %v684_v10 = vshrl.u32 %v683_v22, 4  ;;  %v4982_v18 = vmul.f32 %v12279_v51, %v4943_v0 }
 0x2eb   : > { %v12675_v27 = vadd.s32 96, %v12014_v19  ;;  %v4453_v39 = vsel %vm15043_vm5, %v4450_v2, %v4452_v31  ;;  %v4747_v23 = vrot.slane %v4176_v61, 1  ;;  %v12683_v55 = vadd.s32 104, %v12014_v19  ;;  %v10132_v2 = vld [vmem:[#allocation8 + $0xe8] sm:$0xff]  ;;  %4344 = vmatmul.bf16.gmra.mxu2 %v4175_v32 }
 0x2ec   : > { %v711_v37 = vadd.s32 %v710_v7, %v700_v9  ;;  %v685_v30 = vmul.u32 18, %v684_v10  ;;  %v5021_v15 = vadd.f32 %v12298_v8, %v4982_v18  ;;  %v4376_v53 = vadd.f32 %v4302_v1, %v11839_v60  ;;  %6587 = vmatpush.bf16.msrb.mxu0 %v10132_v2  ;;  %v4873_v18 = vpop.f32.mrf.mxu0  ;;  %4604 = vmatmul.bf16.gmra.mxu3 %v4453_v39 }
 0x2ed   : > { %v5364_v54 = vrot.slane %v12672_v48, 3  ;;  %v12688_v9 = vor.u32 %v4748_v44, %v4747_v23  ;;  %v721_v47 = vand.u32 65535, %v12675_v27  ;;  %v722_v59 = vshrl.u32 %v12675_v27, 16 }
 0x2ee   : > { %v712_v33 = vadd.s32 %v711_v37, %v702_v4  ;;  %v686_v11 = vsub.s32 %v12592_v50, %v685_v30  ;;  %v5057_v26 = vmax.f32 %v5021_v15, 0.0  ;;  %v4636_v22 = vadd.f32 %v4562_v16, %v4376_v53 }
 0x2ef   : > { %v5365_v60 = vsel %vm15042_vm0, %v5362_v52, %v5364_v54  ;;  %vm15283_vm15 = vsmask.f32 6400  ;;  %v724_v41 = vmul.u32 14564, %v721_v47  ;;  %v12701_v7 = vmul.u32 58254, %v721_v47 }
 0x2f0   : > { %v713_v0 = vshrl.u32 %v712_v33, 4  ;;  %v4750_v4 = vsel %vm15283_vm15, %v12599_v49, %v12688_v9  ;;  %5486 = vmatmul.bf16.gmra.mxu1 %v5365_v60  ;;  %vm1424_vm1 = vcmp.ne.s32.totalorder %v686_v11, 0  ;;  %vm1460_vm4 = vcmp.lt.s32.totalorder %v686_v11, 0  ;;  %v4305_v15 = vpop.f32.mrf.mxu2  ;;  %v4565_v33 = vpop.f32.mrf.mxu3  ;;  %v12722_v60 = vld [vmem:[%s11339_s10 + $0x94] sm:$0xff] }
 0x2f1   : > { %v1532_v50 = vadd.s32 18, %v686_v11  ;;  %v4944_v10 = vadd.f32 %v4870_v24, %v4636_v22  ;;  %4912 = vmatmul.bf16.gmra.mxu0 %v4750_v4  ;;  %vm1496_vm3 = vmand %vm1460_vm4, %vm1424_vm1  ;;  %v726_v52 = vmul.u32 14564, %v722_v59  ;;  %v728_v44 = vshll.u32 %v12701_v7, 16 }
 0x2f2   : > { %v714_v28 = vmul.u32 18, %v713_v0  ;;  %v12704_v49 = vor.u32 %v4176_v61, %v4174_v14  ;;  %v727_v23 = vmul.u32 58254, %v722_v59  ;;  %v729_v30 = vshrl.u32 %v12701_v7, 16 }
 0x2f3   : > { %v1568_v1 = vsel %vm1496_vm3, %v1532_v50, %v686_v11  ;;  %v4983_v37 = vmul.f32 %v12279_v51, %v4944_v10  ;;  %v15284_v24 = vmov 0  ;;  %v730_v39 = vshll.u32 %v726_v52, 16 }
 0x2f4   : > { %vm12708_vm15 = vcmp.lt.s32.totalorder %v1568_v1, 16  ;;  %v715_v32 = vsub.s32 %v12597_v20, %v714_v28  ;;  %v750_v53 = vand.u32 65535, %v12683_v55  ;;  %v4377_v16 = vadd.f32 %v4305_v15, %v11852_v13 }
 0x2f5   : > { %v15285_v24 = vsel %vm12708_vm15, 4294967295, %v15284_v24  ;;  %v5093_v14 = vsel %vm12708_vm15, %v5057_v26, 0.0  ;;  %v5022_v61 = vadd.f32 %v12298_v8, %v4983_v37  ;;  %vm732_vm3 = vc.u32 %v724_v41, %v728_v44 }
 0x2f6   : > { %15286 = vst [vmem:[#allocation44_spill] sm:$0xff] %v15285_v24  ;;  %v10301_v47 = vpack.c.bf16 %v5093_v14, %v12666_v45  ;;  %vm1425_vm1 = vcmp.ne.s32.totalorder %v715_v32, 0  ;;  %vm1461_vm4 = vcmp.lt.s32.totalorder %v715_v32, 0  ;;  %v1533_v59 = vadd.s32 18, %v715_v32 }
 0x2f7   : > { %vm1497_vm0 = vmand %vm1461_vm4, %vm1425_vm1  ;;  %v5058_v20 = vmax.f32 %v5022_v61, 0.0  ;;  %v733_v2 = vsel %vm732_vm3, 1, %v15209_v5  ;;  %v734_v3 = vadd.s32 %v728_v44, %v724_v41  ;;  %v4637_v11 = vadd.f32 %v4565_v33, %v4377_v16 }
 0x2f8   : > { %10685 = vst [vmem:[#allocation2 + $0x30] sm:$0xff] %v10301_v47   ;;  %v1569_v26 = vsel %vm1497_vm0, %v1533_v59, %v715_v32  ;;  %v735_v22 = vadd.s32 %v733_v2, %v727_v23  ;;  %v751_v8 = vshrl.u32 %v12683_v55, 16  ;;  %v753_v13 = vmul.u32 14564, %v750_v53  ;;  %v4875_v23 = vpop.f32.mrf.mxu0  ;;  %v4307_v32 = vpop.f32.mrf.mxu2 }
 0x2f9   : > { %vm12724_vm5 = vcmp.lt.s32.totalorder %v1569_v26, 16  ;;  %v15287_v0 = vmov 0  ;;  %vm736_vm15 = vc.u32 %v734_v3, %v730_v39  ;;  %v4945_v45 = vadd.f32 %v4873_v18, %v4637_v11  ;;  %v4567_v16 = vpop.f32.mrf.mxu3 }
 0x2fa   : > { %v15288_v0 = vsel %vm12724_vm5, 4294967295, %v15287_v0  ;;  %v754_v4 = vmul.u32 58254, %v750_v53  ;;  %v12730_v7 = vsel %vm12724_vm5, %v5058_v20, 0.0  ;;  %v731_v41 = vshrl.u32 %v726_v52, 16 }
 0x2fb   : > { %15289 = vst [vmem:[#allocation45_spill] sm:$0xff] %v15288_v0  ;;  %v737_v50 = vsel %vm736_vm15, 1, %v15209_v5  ;;  %v755_v10 = vmul.u32 14564, %v751_v8  ;;  %v4984_v44 = vmul.f32 %v12279_v51, %v4945_v45  ;;  %v756_v1 = vmul.u32 58254, %v751_v8  ;;  %v12740_v51 = vld [vmem:[%s15004_s3] ss:$0 sm:$0xff] }
 0x2fc   : > { %v739_v28 = vadd.s32 %v737_v50, %v735_v22  ;;  %v757_v37 = vshll.u32 %v754_v4, 16  ;;  %v758_v15 = vshrl.u32 %v754_v4, 16  ;;  %v4180_v18 = vshll.u32 %v12722_v60, 16 }
 0x2fd   : > { %v759_v14 = vshll.u32 %v755_v10, 16  ;;  %v4454_v39 = vrot.slane %v12722_v60, 1  ;;  %v4378_v61 = vadd.f32 %v4307_v32, %v12029_v29  ;;  %v760_v52 = vshrl.u32 %v755_v10, 16 }
 0x2fe   : > { %v740_v53 = vadd.s32 %v739_v28, %v729_v30  ;;  %vm761_vm0 = vc.u32 %v753_v13, %v757_v37  ;;  %v12743_v33 = vadd.f32 %v12740_v51, %v4984_v44  ;;  %v763_v59 = vadd.s32 %v757_v37, %v753_v13  ;;  %v12773_v44 = vld [vmem:[%s15003_s2] ss:$0 sm:$0xff] }
 0x2ff   : > { %v762_v47 = vsel %vm761_vm0, 1, %v15209_v5  ;;  %v12746_v20 = vrot.slane %v4180_v18, 1  ;;  %v4638_v3 = vadd.f32 %v4567_v16, %v4378_v61  ;;  %vm15290_vm15 = vcmask 1046528   ;;  %v12753_v11 = vld [vmem:[#allocation2 + $0x30] sm:$0xff] }
 0x300   : > { %v741_v2 = vadd.s32 %v740_v53, %v731_v41  ;;  %v764_v30 = vadd.s32 %v762_v47, %v756_v1  ;;  %v4455_v29 = vsel %vm15290_vm15, %v4452_v31, %v4454_v39  ;;  %vm765_vm3 = vc.u32 %v763_v59, %v759_v14  ;;  %v4310_v14 = vpop.f32.mrf.mxu2 }
 0x301   : > { %vm15291_vm1 = vsmask.f32 7424  ;;  %v4184_v22 = vshrl.u32 %v12722_v60, 16  ;;  %v4752_v8 = vrot.slane %v4180_v18, 2  ;;  %v766_v45 = vsel %vm765_vm3, 1, %v15209_v5  ;;  %4609 = vmatmul.bf16.gmra.mxu3 %v4455_v29  ;;  %v4570_v47 = vpop.f32.mrf.mxu3  ;;  %v10107_v29 = vld [vmem:[#allocation8 + $0x20] sm:$0xff] }
 0x302   : > { %v4183_v26 = vsel %vm15291_vm1, %v12704_v49, %v12746_v20  ;;  %v742_v13 = vshrl.u32 %v741_v2, 4  ;;  %v4946_v4 = vadd.f32 %v4875_v23, %v4638_v3  ;;  %v5366_v41 = vrot.slane %v12753_v11, 3  ;;  %5799 = vmatpush.bf16.msrb.mxu2 %v10107_v29 }
 0x303   : > { %4349 = vmatmul.bf16.gmra.mxu2 %v4183_v26  ;;  %v768_v58 = vadd.s32 %v766_v45, %v764_v30  ;;  %v4751_v31 = vrot.slane %v4184_v22, 1  ;;  %v12764_v50 = vadd.s32 112, %v12014_v19  ;;  %v12767_v49 = vadd.s32 120, %v12014_v19 }
 0x304   : > { %v743_v10 = vmul.u32 18, %v742_v13  ;;  %v5059_v28 = vmax.f32 %v12743_v33, 0.0  ;;  %v4985_v1 = vmul.f32 %v12773_v44, %v4946_v4  ;;  %vm15292_vm4 = vcmask 1044480  }
 0x305   : > { %v5367_v37 = vsel %vm15292_vm4, %v5364_v54, %v5366_v41  ;;  %v769_v23 = vadd.s32 %v768_v58, %v758_v15  ;;  %v12781_v32 = vor.u32 %v4752_v8, %v4751_v31  ;;  %v779_v18 = vand.u32 65535, %v12764_v50  ;;  %v4878_v15 = vpop.f32.mrf.mxu0 }
 0x306   : > { %5491 = vmatmul.bf16.gmra.mxu1 %v5367_v37  ;;  %v780_v53 = vshrl.u32 %v12764_v50, 16  ;;  %v744_v61 = vsub.s32 %v12675_v27, %v743_v10  ;;  %v12787_v16 = vadd.f32 %v12740_v51, %v4985_v1  ;;  %v4379_v33 = vadd.f32 %v4310_v14, %v11880_v21 }
 0x307   : > { %v808_v48 = vand.u32 65535, %v12767_v49  ;;  %v770_v54 = vadd.s32 %v769_v23, %v760_v52  ;;  %vm15293_vm0 = vsmask.f32 6400  ;;  %v782_v2 = vmul.u32 14564, %v779_v18 }
 0x308   : > { %v4754_v59 = vsel %vm15293_vm0, %v12688_v9, %v12781_v32  ;;  %v783_v30 = vmul.u32 58254, %v779_v18  ;;  %vm1426_vm15 = vcmp.ne.s32.totalorder %v744_v61, 0  ;;  %vm1462_vm3 = vcmp.lt.s32.totalorder %v744_v61, 0 }
 0x309   : > { %v1534_v3 = vadd.s32 18, %v744_v61  ;;  %v5060_v27 = vmax.f32 %v12787_v16, 0.0  ;;  %4917 = vmatmul.bf16.gmra.mxu0 %v4754_v59  ;;  %vm1498_vm1 = vmand %vm1462_vm3, %vm1426_vm15  ;;  %v771_v21 = vshrl.u32 %v770_v54, 4  ;;  %v784_v26 = vmul.u32 14564, %v780_v53  ;;  %v4312_v16 = vpop.f32.mrf.mxu2 }
 0x30a   : > { %v785_v8 = vmul.u32 58254, %v780_v53  ;;  %v786_v13 = vshll.u32 %v783_v30, 16  ;;  %v787_v45 = vshrl.u32 %v783_v30, 16  ;;  %v4639_v4 = vadd.f32 %v4570_v47, %v4379_v33  ;;  %v4572_v30 = vpop.f32.mrf.mxu3 }
 0x30b   : > { %v1570_v52 = vsel %vm1498_vm1, %v1534_v3, %v744_v61  ;;  %v809_v58 = vshrl.u32 %v12767_v49, 16  ;;  %v15294_v9 = vmov 0  ;;  %v772_v31 = vmul.u32 18, %v771_v21  ;;  %v12808_v3 = vld [vmem:[%s11339_s10 + $0x9c] sm:$0xff]  ;;  %v10123_v21 = vld [vmem:[#allocation8 + $0xa0] sm:$0xff] }
 0x30c   : > { %vm12796_vm4 = vcmp.lt.s32.totalorder %v1570_v52, 16  ;;  %v788_v10 = vshll.u32 %v784_v26, 16  ;;  %v789_v1 = vshrl.u32 %v784_v26, 16  ;;  %vm790_vm0 = vc.u32 %v782_v2, %v786_v13  ;;  %v10131_v26 = vld [vmem:[#allocation8 + $0xe0] sm:$0xff]  ;;  %6070 = vmatpush.bf16.msrb.mxu3 %v10123_v21 }
 0x30d   : > { %v15295_v9 = vsel %vm12796_vm4, 4294967295, %v15294_v9  ;;  %v5095_v37 = vsel %vm12796_vm4, %v5059_v28, 0.0  ;;  %v792_v23 = vadd.s32 %v786_v13, %v782_v2  ;;  %v4947_v14 = vadd.f32 %v4878_v15, %v4639_v4  ;;  %6588 = vmatpush.bf16.msrb.mxu0 %v10131_v26 }
 0x30e   : > { %15296 = vst [vmem:[#allocation46_spill] sm:$0xff] %v15295_v9  ;;  %v10306_v18 = vpack.c.bf16 %v5095_v37, %v12730_v7  ;;  %v773_v53 = vsub.s32 %v12683_v55, %v772_v31  ;;  %v791_v61 = vsel %vm790_vm0, 1, %v15209_v5  ;;  %v811_v33 = vmul.u32 14564, %v808_v48 }
 0x30f   : > { %v793_v47 = vadd.s32 %v791_v61, %v785_v8  ;;  %vm794_vm15 = vc.u32 %v792_v23, %v788_v10  ;;  %v4986_v54 = vmul.f32 %v12773_v44, %v4947_v14  ;;  %v4380_v59 = vadd.f32 %v4312_v16, %v12033_v17  ;;  %v4880_v8 = vpop.f32.mrf.mxu0  ;;  %v10106_v61 = vld [vmem:[#allocation8 + $0x18] sm:$0xff] }
 0x310   : > { %10686 = vst [vmem:[#allocation2 + $0x38] sm:$0xff] %v10306_v18   ;;  %vm1427_vm3 = vcmp.ne.s32.totalorder %v773_v53, 0  ;;  %vm1463_vm1 = vcmp.lt.s32.totalorder %v773_v53, 0  ;;  %v1535_v28 = vadd.s32 18, %v773_v53  ;;  %v795_v7 = vsel %vm794_vm15, 1, %v15209_v5  ;;  %v10130_v16 = vld [vmem:[#allocation8 + $0xd8] sm:$0xff]  ;;  %5800 = vmatpush.bf16.msrb.mxu2 %v10106_v61 }
 0x311   : > { %vm1499_vm4 = vmand %vm1463_vm1, %vm1427_vm3  ;;  %v797_v55 = vadd.s32 %v795_v7, %v793_v47  ;;  %v12812_v15 = vadd.f32 %v12740_v51, %v4986_v54  ;;  %v812_v2 = vmul.u32 58254, %v808_v48  ;;  %v12814_v29 = vmul.u32 14564, %v809_v58  ;;  %6589 = vmatpush.bf16.msrb.mxu0 %v10130_v16 }
 0x312   : > { %v1571_v17 = vsel %vm1499_vm4, %v1535_v28, %v773_v53  ;;  %v814_v13 = vmul.u32 58254, %v809_v58  ;;  %v4640_v52 = vadd.f32 %v4572_v30, %v4380_v59  ;;  %v4186_v4 = vor.u32 %v4184_v22, %v12746_v20  ;;  %v4315_v30 = vpop.f32.mrf.mxu2 }
 0x313   : > { %vm12819_vm0 = vcmp.lt.s32.totalorder %v1571_v17, 16  ;;  %v15297_v31 = vmov 0  ;;  %v798_v10 = vadd.s32 %v797_v55, %v787_v45  ;;  %v815_v37 = vshll.u32 %v812_v2, 16  ;;  %v10122_v45 = vld [vmem:[#allocation8 + $0x98] sm:$0xff] }
 0x314   : > { %v15298_v31 = vsel %vm12819_vm0, 4294967295, %v15297_v31  ;;  %v4188_v48 = vshll.u32 %v12808_v3, 16  ;;  %v12826_v23 = vsel %vm12819_vm0, %v5060_v27, 0.0  ;;  %v5061_v58 = vmax.f32 %v12812_v15, 0.0  ;;  %6071 = vmatpush.bf16.msrb.mxu3 %v10122_v45 }
 0x315   : > { %15299 = vst [vmem:[#allocation47_spill] sm:$0xff] %v15298_v31  ;;  %v816_v14 = vshrl.u32 %v812_v2, 16  ;;  %v817_v18 = vshll.u32 %v12814_v29, 16  ;;  %v799_v20 = vadd.s32 %v798_v10, %v789_v1  ;;  %vm819_vm4 = vc.u32 %v811_v33, %v815_v37  ;;  %v4575_v10 = vpop.f32.mrf.mxu3 }
 0x316   : > { %v821_v22 = vadd.s32 %v815_v37, %v811_v33  ;;  %v4948_v53 = vadd.f32 %v4880_v8, %v4640_v52  ;;  %v820_v47 = vsel %vm819_vm4, 1, %v15209_v5  ;;  %v12831_v54 = vrot.slane %v4188_v48, 1 }
 0x317   : > { %v4456_v59 = vrot.slane %v12808_v3, 1  ;;  %v4192_v27 = vshrl.u32 %v12808_v3, 16  ;;  %v800_v28 = vshrl.u32 %v799_v20, 4  ;;  %v822_v7 = vadd.s32 %v820_v47, %v814_v13  ;;  %v12836_v55 = vld [vmem:[#allocation2 + $0x38] sm:$0xff] }
 0x318   : > { %vm823_vm15 = vc.u32 %v821_v22, %v817_v18  ;;  %v4987_v1 = vmul.f32 %v12773_v44, %v4948_v53  ;;  %vm15300_vm3 = vsmask.f32 7424  ;;  %vm15301_vm1 = vcmask 1046528  }
 0x319   : > { %v824_v33 = vsel %vm823_vm15, 1, %v15209_v5  ;;  %v4191_v2 = vsel %vm15300_vm3, %v4186_v4, %v12831_v54  ;;  %v4457_v21 = vsel %vm15301_vm1, %v4454_v39, %v4456_v59  ;;  %v4755_v26 = vrot.slane %v4192_v27, 1 }
 0x31a   : > { %v801_v17 = vmul.u32 18, %v800_v28  ;;  %v818_v8 = vshrl.u32 %v12814_v29, 16  ;;  %v826_v13 = vadd.s32 %v824_v33, %v822_v7  ;;  %4354 = vmatmul.bf16.gmra.mxu2 %v4191_v2  ;;  %4614 = vmatmul.bf16.gmra.mxu3 %v4457_v21  ;;  %v4756_v52 = vrot.slane %v4188_v48, 2  ;;  %v4883_v48 = vpop.f32.mrf.mxu0  ;;  %v10139_v28 = vld [vmem:[#allocation8 + $0x120] sm:$0xff] }
 0x31b   : > { %v12850_v4 = vadd.f32 %v12740_v51, %v4987_v1  ;;  %v5368_v37 = vrot.slane %v12836_v55, 3  ;;  %v4381_v60 = vadd.f32 %v4315_v30, %v11898_v25  ;;  %v12855_v39 = vadd.s32 128, %v12014_v19  ;;  %6824 = vmatpush.bf16.msrb.mxu1 %v10139_v28 }
 0x31c   : > { %v802_v18 = vsub.s32 %v12764_v50, %v801_v17  ;;  %v827_v20 = vadd.s32 %v826_v13, %v816_v14  ;;  %v12858_v22 = vor.u32 %v4756_v52, %v4755_v26  ;;  %v12861_v29 = vadd.s32 136, %v12014_v19  ;;  %v10121_v13 = vld [vmem:[#allocation8 + $0x90] sm:$0xff] }
 0x31d   : > { %vm15302_vm4 = vcmask 1044480   ;;  %v837_v25 = vand.u32 65535, %v12855_v39  ;;  %v838_v61 = vshrl.u32 %v12855_v39, 16  ;;  %v4641_v45 = vadd.f32 %v4575_v10, %v4381_v60  ;;  %6072 = vmatpush.bf16.msrb.mxu3 %v10121_v13 }
 0x31e   : > { %v5369_v53 = vsel %vm15302_vm4, %v5366_v41, %v5368_v37  ;;  %vm1428_vm15 = vcmp.ne.s32.totalorder %v802_v18, 0  ;;  %vm1464_vm3 = vcmp.lt.s32.totalorder %v802_v18, 0  ;;  %v1536_v50 = vadd.s32 18, %v802_v18  ;;  %v4317_v41 = vpop.f32.mrf.mxu2 }
 0x31f   : > { %v828_v14 = vadd.s32 %v827_v20, %v818_v8  ;;  %5496 = vmatmul.bf16.gmra.mxu1 %v5369_v53  ;;  %vm1500_vm1 = vmand %vm1464_vm3, %vm1428_vm15  ;;  %vm15303_vm0 = vsmask.f32 6400  ;;  %v840_v47 = vmul.u32 14564, %v837_v25  ;;  %v12873_v30 = vmul.u32 58254, %v837_v25  ;;  %v10105_v8 = vld [vmem:[#allocation8 + $0x10] sm:$0xff] }
 0x320   : > { %v4758_v16 = vsel %vm15303_vm0, %v12781_v32, %v12858_v22  ;;  %v12875_v11 = vmul.u32 14564, %v838_v61  ;;  %v1572_v7 = vsel %vm1500_vm1, %v1536_v50, %v802_v18  ;;  %v5062_v33 = vmax.f32 %v12850_v4, 0.0  ;;  %v10129_v18 = vld [vmem:[#allocation8 + $0xd0] sm:$0xff]  ;;  %5801 = vmatpush.bf16.msrb.mxu2 %v10105_v8 }
 0x321   : > { %v829_v1 = vshrl.u32 %v828_v14, 4  ;;  %4922 = vmatmul.bf16.gmra.mxu0 %v4758_v16  ;;  %v4949_v2 = vadd.f32 %v4883_v48, %v4641_v45  ;;  %vm12878_vm4 = vcmp.lt.s32.totalorder %v1572_v7, 16  ;;  %v15304_v21 = vmov 0  ;;  %v4577_v45 = vpop.f32.mrf.mxu3  ;;  %v10120_v16 = vld [vmem:[#allocation8 + $0x88] sm:$0xff] }
 0x322   : > { %v15305_v21 = vsel %vm12878_vm4, 4294967295, %v15304_v21  ;;  %v843_v26 = vmul.u32 58254, %v838_v61  ;;  %v844_v32 = vshll.u32 %v12873_v30, 16  ;;  %v846_v17 = vshll.u32 %v12875_v11, 16  ;;  %6590 = vmatpush.bf16.msrb.mxu0 %v10129_v18  ;;  %6073 = vmatpush.bf16.msrb.mxu3 %v10120_v16 }
 0x323   : > { %15306 = vst [vmem:[#allocation48_spill] sm:$0xff] %v15305_v21  ;;  %v5097_v52 = vsel %vm12878_vm4, %v5061_v58, 0.0  ;;  %v830_v10 = vmul.u32 18, %v829_v1  ;;  %v845_v4 = vshrl.u32 %v12873_v30, 16  ;;  %v4988_v60 = vmul.f32 %v12773_v44, %v4949_v2  ;;  %v4885_v1 = vpop.f32.mrf.mxu0 }
 0x324   : > { %v10311_v20 = vpack.c.bf16 %v5097_v52, %v12826_v23  ;;  %vm848_vm0 = vc.u32 %v840_v47, %v844_v32  ;;  %v850_v48 = vadd.s32 %v844_v32, %v840_v47  ;;  %v4382_v53 = vadd.f32 %v4317_v41, %v12050_v34  ;;  %v10104_v34 = vld [vmem:[#allocation8 + $0x8] sm:$0xff]  ;;  %v3941_v52 = vld [vmem:[%s11339_s10 + $0xa4] sm:$0x1] }
 0x325   : > { %v831_v25 = vsub.s32 %v12767_v49, %v830_v10  ;;  %v849_v15 = vsel %vm848_vm0, 1, %v15209_v5  ;;  %v12895_v61 = vadd.f32 %v12740_v51, %v4988_v60  ;;  %v866_v58 = vand.u32 65535, %v12861_v29  ;;  %v10128_v47 = vld [vmem:[#allocation8 + $0xc8] sm:$0xff]  ;;  %5802 = vmatpush.bf16.msrb.mxu2 %v10104_v34  ;;  %v4661_v10 = vld [vmem:[%s11339_s10 + $0xa4] sm:$0x3] }
 0x326   : > { %10687 = vst [vmem:[#allocation2 + $0x40] sm:$0xff] %v10311_v20   ;;  %v851_v50 = vadd.s32 %v849_v15, %v843_v26  ;;  %vm852_vm15 = vc.u32 %v850_v48, %v846_v17  ;;  %v867_v23 = vshrl.u32 %v12861_v29, 16  ;;  %v4642_v14 = vadd.f32 %v4577_v45, %v4382_v53  ;;  %v4320_v60 = vpop.f32.mrf.mxu2  ;;  %6591 = vmatpush.bf16.msrb.mxu0 %v10128_v47  ;;  %v10103_v53 = vld [vmem:[#allocation8] sm:$0xff] }
 0x327   : > { %vm1429_vm3 = vcmp.ne.s32.totalorder %v831_v25, 0  ;;  %vm1465_vm1 = vcmp.lt.s32.totalorder %v831_v25, 0  ;;  %v1537_v49 = vadd.s32 18, %v831_v25  ;;  %v853_v30 = vsel %vm852_vm15, 1, %v15209_v5  ;;  %v10119_v15 = vld [vmem:[#allocation8 + $0x80] sm:$0xff] }
 0x328   : > { %vm12900_vm0 = vmand %vm1465_vm1, %vm1429_vm3  ;;  %v847_v28 = vshrl.u32 %v12875_v11, 16  ;;  %v855_v7 = vadd.s32 %v853_v30, %v851_v50  ;;  %v869_v2 = vmul.u32 14564, %v866_v58  ;;  %v870_v26 = vmul.u32 58254, %v866_v58  ;;  %6074 = vmatpush.bf16.msrb.mxu3 %v10119_v15 }
 0x329   : > { %v1573_v32 = vsel %vm12900_vm0, %v1537_v49, %v831_v25  ;;  %v5063_v17 = vmax.f32 %v12895_v61, 0.0  ;;  %v12908_v8 = vmul.u32 14564, %v867_v23  ;;  %v4950_v13 = vadd.f32 %v4885_v1, %v4642_v14  ;;  %v10127_v25 = vld [vmem:[#allocation8 + $0xc0] sm:$0xff]  ;;  %5803 = vmatpush.bf16.msrb.mxu2 %v10103_v53 }
 0x32a   : > { %vm12912_vm15 = vcmp.lt.s32.totalorder %v1573_v32, 16  ;;  %v15309_v11 = vmov 0  ;;  %v856_v18 = vadd.s32 %v855_v7, %v845_v4  ;;  %v872_v20 = vmul.u32 58254, %v867_v23  ;;  %6592 = vmatpush.bf16.msrb.mxu0 %v10127_v25 }
 0x32b   : > { %v15310_v11 = vsel %vm12912_vm15, 4294967295, %v15309_v11  ;;  %v873_v48 = vshll.u32 %v870_v26, 16  ;;  %v12918_v58 = vsel %vm12912_vm15, %v5062_v33, 0.0  ;;  %v874_v45 = vshrl.u32 %v870_v26, 16 }
 0x32c   : > { %15311 = vst [vmem:[#allocation49_spill] sm:$0xff] %v15310_v11  ;;  %v875_v50 = vshll.u32 %v12908_v8, 16  ;;  %v4989_v14 = vmul.f32 %v12773_v44, %v4950_v13  ;;  %v857_v34 = vadd.s32 %v856_v18, %v847_v28  ;;  %v4032_v47 = vunpack.c.l.b16 %v3941_v52  ;;  %v4580_v18 = vpop.f32.mrf.mxu3  ;;  %7813 = vmatpush.bf16.msra.mxu3 %v10193_v56 }
 0x32d   : > { %vm877_vm3 = vc.u32 %v869_v2, %v873_v48  ;;  %v879_v16 = vadd.s32 %v873_v48, %v869_v2  ;;  %v876_v4 = vshrl.u32 %v12908_v8, 16  ;;  %v4680_v30 = vunpack.c.l.b16 %v4661_v10  ;;  %v12927_v33 = vld [vmem:[#allocation2 + $0x40] sm:$0xff] }
 0x32e   : > { %v878_v23 = vsel %vm877_vm3, 1, %v15209_v5  ;;  %v12925_v49 = vadd.f32 %v12740_v51, %v4989_v14  ;;  %v858_v41 = vshrl.u32 %v857_v34, 4  ;;  %v4051_v28 = vpack.c.b16 %v4032_v47, %v4032_v47  ;;  %v4888_v14 = vpop.f32.mrf.mxu0 }
 0x32f   : > { %v880_v7 = vadd.s32 %v878_v23, %v872_v20  ;;  %vm881_vm1 = vc.u32 %v879_v16, %v875_v50  ;;  %v4194_v2 = vor.u32 %v4192_v27, %v12831_v54  ;;  %v4681_v26 = vpack.c.b16 %v4680_v30, %v4680_v30 }
 0x330   : > { %v882_v1 = vsel %vm881_vm1, 1, %v15209_v5  ;;  %v5370_v32 = vrot.slane %v12927_v33, 3  ;;  %v859_v8 = vmul.u32 18, %v858_v41  ;;  %v4196_v52 = vshll.u32 %v4051_v28, 16 }
 0x331   : > { %v884_v13 = vadd.s32 %v882_v1, %v880_v7  ;;  %v4458_v10 = vrot.slane %v4051_v28, 1  ;;  %v4760_v48 = vshrl.u32 %v4681_v26, 16  ;;  %v4763_v53 = vshll.u32 %v4681_v26, 16 }
 0x332   : > { %vm15312_vm0 = vcmask 1044480   ;;  %v4383_v15 = vadd.f32 %v4320_v60, %v11914_v43  ;;  %v860_v54 = vsub.s32 %v12855_v39, %v859_v8  ;;  %v4198_v25 = vrot.slane %v4196_v52, 1 }
 0x333   : > { %v5371_v20 = vsel %vm15312_vm0, %v5368_v37, %v5370_v32  ;;  %v885_v27 = vadd.s32 %v884_v13, %v874_v45  ;;  %vm15313_vm3 = vcmask 1046528   ;;  %v4762_v34 = vrot.slane %v4760_v48, 1  ;;  %v4322_v37 = vpop.f32.mrf.mxu2 }
 0x334   : > { %v4459_v50 = vsel %vm15313_vm3, %v4456_v59, %v4458_v10  ;;  %5501 = vmatmul.bf16.gmra.mxu1 %v5371_v20  ;;  %v4765_v16 = vrot.slane %v4763_v53, 2  ;;  %v12945_v47 = vadd.s32 144, %v12014_v19  ;;  %v4643_v55 = vadd.f32 %v4580_v18, %v4383_v15  ;;  %v4582_v15 = vpop.f32.mrf.mxu3 }
 0x335   : > { %4619 = vmatmul.bf16.gmra.mxu3 %v4459_v50  ;;  %vm1430_vm1 = vcmp.ne.s32.totalorder %v860_v54, 0  ;;  %vm1466_vm0 = vcmp.lt.s32.totalorder %v860_v54, 0  ;;  %v1538_v43 = vadd.s32 18, %v860_v54  ;;  %v886_v39 = vadd.s32 %v885_v27, %v876_v4 }
 0x336   : > { %vm1502_vm15 = vmand %vm1466_vm0, %vm1430_vm1  ;;  %vm15314_vm4 = vsmask.f32 7424  ;;  %v4766_v3 = vor.u32 %v4765_v16, %v4762_v34  ;;  %v895_v59 = vand.u32 65535, %v12945_v47  ;;  %v896_v45 = vshrl.u32 %v12945_v47, 16  ;;  %v4890_v50 = vpop.f32.mrf.mxu0 }
 0x337   : > { %v4199_v60 = vsel %vm15314_vm4, %v4194_v2, %v4198_v25  ;;  %v1574_v23 = vsel %vm1502_vm15, %v1538_v43, %v860_v54  ;;  %v887_v30 = vshrl.u32 %v886_v39, 4  ;;  %v4951_v41 = vadd.f32 %v4888_v14, %v4643_v55  ;;  %v5191_v43 = vld [vmem:[#allocation2] sm:$0xc] }
 0x338   : > { %4359 = vmatmul.bf16.gmra.mxu2 %v4199_v60  ;;  %v4384_v7 = vadd.f32 %v4322_v37, %v12054_v62  ;;  %vm12951_vm3 = vcmp.lt.s32.totalorder %v1574_v23, 16  ;;  %v15315_v28 = vmov 0  ;;  %vm15318_vm5 = vsmask.f32 6400 }
 0x339   : > { %v15316_v28 = vsel %vm12951_vm3, 4294967295, %v15315_v28  ;;  %v4767_v4 = vsel %vm15318_vm5, %v12858_v22, %v4766_v3  ;;  %v898_v1 = vmul.u32 14564, %v895_v59  ;;  %v899_v2 = vmul.u32 58254, %v895_v59 }
 0x33a   : > { %15317 = vst [vmem:[#allocation50_spill] sm:$0xff] %v15316_v28  ;;  %v5099_v26 = vsel %vm12951_vm3, %v5063_v17, 0.0  ;;  %v888_v8 = vmul.u32 18, %v887_v30  ;;  %v5064_v13 = vmax.f32 %v12925_v49, 0.0  ;;  %4927 = vmatmul.bf16.gmra.mxu0 %v4767_v4  ;;  %v900_v52 = vmul.u32 14564, %v896_v45 }
 0x33b   : > { %v10316_v62 = vpack.c.bf16 %v5099_v26, %v12918_v58  ;;  %v901_v10 = vmul.u32 58254, %v896_v45  ;;  %v902_v18 = vshll.u32 %v899_v2, 16  ;;  %v4990_v48 = vmul.f32 %v12773_v44, %v4951_v41 }
 0x33c   : > { %v889_v22 = vsub.s32 %v12861_v29, %v888_v8  ;;  %v903_v53 = vshrl.u32 %v899_v2, 16  ;;  %v904_v20 = vshll.u32 %v900_v52, 16  ;;  %v12966_v61 = vadd.s32 152, %v12014_v19 }
 0x33d   : > { %10688 = vst [vmem:[#allocation2 + $0x48] sm:$0xff] %v10316_v62   ;;  %vm906_vm5 = vc.u32 %v898_v1, %v902_v18  ;;  %v908_v17 = vadd.s32 %v902_v18, %v898_v1  ;;  %v12969_v49 = vadd.f32 %v12740_v51, %v4990_v48  ;;  %v4644_v54 = vadd.f32 %v4582_v15, %v4384_v7 }
 0x33e   : > { %vm1431_vm4 = vcmp.ne.s32.totalorder %v889_v22, 0  ;;  %vm1467_vm15 = vcmp.lt.s32.totalorder %v889_v22, 0  ;;  %v1539_v58 = vadd.s32 18, %v889_v22  ;;  %v907_v27 = vsel %vm906_vm5, 1, %v15209_v5 }
 0x33f   : > { %vm1503_vm1 = vmand %vm1467_vm15, %vm1431_vm4  ;;  %v905_v29 = vshrl.u32 %v900_v52, 16  ;;  %v909_v25 = vadd.s32 %v907_v27, %v901_v10  ;;  %vm910_vm0 = vc.u32 %v908_v17, %v904_v20  ;;  %v924_v14 = vand.u32 65535, %v12966_v61  ;;  %v10991_v10 = vld [vmem:[#allocation2 + $0x8] sm:$0xff] }
 0x340   : > { %v1575_v34 = vsel %vm1503_vm1, %v1539_v58, %v889_v22  ;;  %v911_v16 = vsel %vm910_vm0, 1, %v15209_v5  ;;  %v925_v55 = vshrl.u32 %v12966_v61, 16  ;;  %v4952_v37 = vadd.f32 %v4890_v50, %v4644_v54 }
 0x341   : > { %vm12975_vm3 = vcmp.lt.s32.totalorder %v1575_v34, 16  ;;  %v15319_v39 = vmov 0  ;;  %v913_v60 = vadd.s32 %v911_v16, %v909_v25  ;;  %v927_v3 = vmul.u32 14564, %v924_v14  ;;  %v4325_v34 = vpop.f32.mrf.mxu2 }
 0x342   : > { %v15320_v39 = vsel %vm12975_vm3, 4294967295, %v15319_v39  ;;  %v928_v59 = vmul.u32 58254, %v924_v14  ;;  %v12981_v45 = vsel %vm12975_vm3, %v5064_v13, 0.0  ;;  %v5065_v23 = vmax.f32 %v12969_v49, 0.0 }
 0x343   : > { %15321 = vst [vmem:[#allocation51_spill] sm:$0xff] %v15320_v39  ;;  %v929_v30 = vmul.u32 14564, %v925_v55  ;;  %v4991_v41 = vmul.f32 %v12773_v44, %v4952_v37  ;;  %v914_v7 = vadd.s32 %v913_v60, %v903_v53  ;;  %v930_v4 = vmul.u32 58254, %v925_v55  ;;  %v6202_v60 = vld [vmem:[#allocation2 + $0x8] sm:$0x8] }
 0x344   : > { %v931_v1 = vshll.u32 %v928_v59, 16  ;;  %v5558_v2 = vunpack.c.l.b16 %v5191_v43  ;;  %v932_v26 = vshrl.u32 %v928_v59, 16  ;;  %v12985_v62 = vld [vmem:[#allocation2 + $0x48] sm:$0xff]  ;;  %v5569_v18 = vshrl.u32 %v10991_v10, 16 }
 0x345   : > { %v933_v8 = vshll.u32 %v929_v30, 16  ;;  %v934_v52 = vshrl.u32 %v929_v30, 16  ;;  %v915_v48 = vadd.s32 %v914_v7, %v905_v29  ;;  %v15322_v22 = vunpack.c.l.b16 %v12226_v6 }
 0x346   : > { %vm935_vm5 = vc.u32 %v927_v3, %v931_v1  ;;  %v937_v13 = vadd.s32 %v931_v1, %v927_v3  ;;  %v12991_v53 = vadd.f32 %v12740_v51, %v4991_v41  ;;  %v5372_v17 = vrot.slane %v12985_v62, 3  ;;  %v13003_v1 = vld [vmem:[#allocation2 + $0xc] sm:$0xf] }
 0x347   : > { %v5559_v20 = vpack.c.b16 %v15322_v22, %v5558_v2  ;;  %v936_v15 = vsel %vm935_vm5, 1, %v15209_v5  ;;  %v5571_v54 = vrot.slane %v5569_v18, 2  ;;  %v916_v58 = vshrl.u32 %v915_v48, 4  ;;  %v10698_v48 = vld [vmem:[#allocation2 + $0x10] sm:$0xff]  }
 0x348   : > { %v938_v27 = vadd.s32 %v936_v15, %v930_v4  ;;  %vm939_vm4 = vc.u32 %v937_v13, %v933_v8  ;;  %vm15323_vm15 = vcmask 1044480   ;;  %v5572_v14 = vshll.u32 %v10991_v10, 16  ;;  %v13007_v15 = vpop.f32.mrf.mxu1 }
 0x349   : > { %v5561_v25 = vshrl.u32 %v5559_v20, 16  ;;  %v940_v50 = vsel %vm939_vm4, 1, %v15209_v5  ;;  %v5373_v6 = vsel %vm15323_vm15, %v5370_v32, %v5372_v17  ;;  %v5564_v29 = vshll.u32 %v5559_v20, 16 }
 0x34a   : > { %v917_v16 = vmul.u32 18, %v916_v58  ;;  %v942_v55 = vadd.s32 %v940_v50, %v938_v27  ;;  %5506 = vmatmul.bf16.gmra.mxu1 %v5373_v6  ;;  %v5917_v43 = vshrl.u32 %v12274_v63, 16  ;;  %v5574_v59 = vrot.slane %v5572_v14, 3 }
 0x34b   : > { %v5563_v37 = vrot.slane %v5561_v25, 2  ;;  %v5566_v3 = vrot.slane %v5564_v29, 3  ;;  %v5920_v30 = vshll.u32 %v12274_v63, 16  ;;  %v5924_v41 = vrot.slane %v5569_v18, 3  ;;  %v15329_v29 = vld [vmem:[#allocation22_spill] sm:$0xff] }
 0x34c   : > { %v918_v7 = vsub.s32 %v12945_v47, %v917_v16  ;;  %v943_v33 = vadd.s32 %v942_v55, %v932_v26  ;;  %v5919_v4 = vrot.slane %v5917_v43, 3  ;;  %v5925_v32 = vrot.slane %v5572_v14, 4  ;;  %v4585_v16 = vpop.f32.mrf.mxu3 }
 0x34d   : > { %v5567_v2 = vor.u32 %v5566_v3, %v5563_v37  ;;  %v13005_v8 = vor.u32 %v5574_v59, %v5571_v54  ;;  %v5922_v10 = vrot.slane %v5920_v30, 4  ;;  %v6293_v13 = vunpack.c.l.b16 %v6202_v60  ;;  %v4893_v59 = vpop.f32.mrf.mxu0 }
 0x34e   : > { %vm1432_vm1 = vcmp.ne.s32.totalorder %v918_v7, 0  ;;  %vm1468_vm0 = vcmp.lt.s32.totalorder %v918_v7, 0  ;;  %v1540_v22 = vadd.s32 18, %v918_v7  ;;  %v944_v20 = vadd.s32 %v943_v33, %v934_v52  ;;  %v4327_v33 = vpop.f32.mrf.mxu2 }
 0x34f   : > { %vm1504_vm5 = vmand %vm1468_vm0, %vm1432_vm1  ;;  %vm15324_vm4 = vsmask.f32 5376  ;;  %v5923_v47 = vor.u32 %v5922_v10, %v5919_v4  ;;  %v13011_v26 = vor.u32 %v5925_v32, %v5924_v41  ;;  %v15052_v18 = vunpack.c.l.b16 %v13003_v1 }
 0x350   : > { %v5576_v63 = vsel %vm15324_vm4, %v5567_v2, %v13005_v8  ;;  %v1576_v54 = vsel %vm1504_vm5, %v1540_v22, %v918_v7  ;;  %v945_v58 = vshrl.u32 %v944_v20, 4  ;;  %v6358_v27 = vshrl.u32 %v10698_v48, 16  ;;  %v13037_v20 = vpop.f32.mrf.mxu1 }
 0x351   : > { %5804 = vmatmul.bf16.vlgmr.msrb.gmra.mxu2 %v5576_v63  ;;  %v6361_v25 = vshll.u32 %v10698_v48, 16  ;;  %vm13014_vm15 = vcmp.lt.s32.totalorder %v1576_v54, 16  ;;  %v15325_v50 = vmov 0  ;;  %vm15328_vm3 = vsmask.f32 4352  ;;  %v10138_v48 = vld [vmem:[#allocation8 + $0x118] sm:$0xff] }
 0x352   : > { %v15326_v50 = vsel %vm13014_vm15, 4294967295, %v15325_v50  ;;  %v5927_v52 = vsel %vm15328_vm3, %v5923_v47, %v13011_v26  ;;  %v6330_v6 = vpack.c.b16 %v15052_v18, %v6293_v13  ;;  %v4385_v14 = vadd.f32 %v4325_v34, %v15329_v29  ;;  %6825 = vmatpush.bf16.msrb.mxu1 %v10138_v48 }
 0x353   : > { %15327 = vst [vmem:[#allocation52_spill] sm:$0xff] %v15326_v50  ;;  %v5101_v55 = vsel %vm13014_vm15, %v5065_v23, 0.0  ;;  %v946_v37 = vmul.u32 18, %v945_v58  ;;  %6075 = vmatmul.bf16.vlgmr.msrb.gmra.mxu3 %v5927_v52  ;;  %v6360_v43 = vrot.slane %v6358_v27, 3  ;;  %v6363_v60 = vrot.slane %v6361_v25, 4  ;;  %v15330_v27 = vld [vmem:[#allocation17_spill] sm:$0xff] }
 0x354   : > { %v10321_v3 = vpack.c.bf16 %v5101_v55, %v12981_v45  ;;  %v6350_v30 = vshrl.u32 %v6330_v6, 16  ;;  %v6353_v41 = vshll.u32 %v6330_v6, 16  ;;  %v13029_v7 = vadd.s32 160, %v12014_v19 }
 0x355   : > { %v947_v34 = vsub.s32 %v12966_v61, %v946_v37  ;;  %v5066_v49 = vmax.f32 %v12991_v53, 0.0  ;;  %v13033_v4 = vor.u32 %v6363_v60, %v6360_v43  ;;  %v4645_v23 = vadd.f32 %v4585_v16, %v4385_v14 }
 0x356   : > { %10689 = vst [vmem:[#allocation2 + $0x50] sm:$0xff] %v10321_v3   ;;  %v6352_v32 = vrot.slane %v6350_v30, 3  ;;  %v6355_v2 = vrot.slane %v6353_v41, 4  ;;  %v953_v10 = vand.u32 65535, %v13029_v7  ;;  %v954_v45 = vshrl.u32 %v13029_v7, 16  ;;  %v4587_v41 = vpop.f32.mrf.mxu3 }
 0x357   : > { %vm1433_vm3 = vcmp.ne.s32.totalorder %v947_v34, 0  ;;  %vm1469_vm1 = vcmp.lt.s32.totalorder %v947_v34, 0  ;;  %v1541_v13 = vadd.s32 18, %v947_v34  ;;  %v4953_v22 = vadd.f32 %v4893_v59, %v4645_v23 }
 0x358   : > { %vm1505_vm0 = vmand %vm1469_vm1, %vm1433_vm3  ;;  %v6356_v61 = vor.u32 %v6355_v2, %v6352_v32  ;;  %v956_v53 = vmul.u32 14564, %v953_v10  ;;  %v957_v63 = vmul.u32 58254, %v953_v10  ;;  %v958_v47 = vmul.u32 14564, %v954_v45  ;;  %v4330_v2 = vpop.f32.mrf.mxu2 }
 0x359   : > { %v1577_v54 = vsel %vm1505_vm0, %v1541_v13, %v947_v34  ;;  %v4992_v58 = vmul.f32 %v12773_v44, %v4953_v22  ;;  %v4386_v25 = vadd.f32 %v4327_v33, %v15330_v27  ;;  %v13042_v52 = vadd.s32 168, %v12014_v19 }
 0x35a   : > { %vm13044_vm5 = vcmp.lt.s32.totalorder %v1577_v54, 16  ;;  %v15331_v6 = vmov 0  ;;  %vm15334_vm4 = vsmask.f32 4352  ;;  %v959_v14 = vmul.u32 58254, %v954_v45  ;;  %v4895_v45 = vpop.f32.mrf.mxu0 }
 0x35b   : > { %v15332_v6 = vsel %vm13044_vm5, 4294967295, %v15331_v6  ;;  %v6365_v29 = vsel %vm15334_vm4, %v6356_v61, %v13033_v4  ;;  %v960_v16 = vshll.u32 %v957_v63, 16  ;;  %v13052_v55 = vsel %vm13044_vm5, %v5066_v49, 0.0 }
 0x35c   : > { %15333 = vst [vmem:[#allocation22_spill] sm:$0xff] %v15332_v6  ;;  %6593 = vmatmul.bf16.vlgmr.msrb.gmra.mxu0 %v6365_v29  ;;  %v961_v37 = vshrl.u32 %v957_v63, 16  ;;  %v962_v43 = vshll.u32 %v958_v47, 16  ;;  %v13055_v60 = vadd.f32 %v12740_v51, %v4992_v58  ;;  %v982_v59 = vand.u32 65535, %v13042_v52  ;;  %v10992_v63 = vld [vmem:[#allocation2 + $0x10] sm:$0xff] }
 0x35d   : > { %vm964_vm3 = vc.u32 %v956_v53, %v960_v16  ;;  %v966_v3 = vadd.s32 %v960_v16, %v956_v53  ;;  %v983_v30 = vshrl.u32 %v13042_v52, 16  ;;  %v963_v33 = vshrl.u32 %v958_v47, 16  ;;  %v13061_v32 = vld [vmem:[#allocation2 + $0x50] sm:$0xff] }
 0x35e   : > { %v965_v34 = vsel %vm964_vm3, 1, %v15209_v5  ;;  %v5067_v23 = vmax.f32 %v13055_v60, 0.0  ;;  %v4646_v49 = vadd.f32 %v4587_v41, %v4386_v25  ;;  %v985_v48 = vmul.u32 14564, %v982_v59  ;;  %v10706_v36 = vld [vmem:[#allocation2 + $0x50] sm:$0xff]  }
 0x35f   : > { %v967_v10 = vadd.s32 %v965_v34, %v959_v14  ;;  %vm968_vm1 = vc.u32 %v966_v3, %v962_v43  ;;  %v986_v13 = vmul.u32 58254, %v982_v59  ;;  %v987_v61 = vmul.u32 14564, %v983_v30  ;;  %v10699_v43 = vld [vmem:[#allocation2 + $0x18] sm:$0xff]   ;;  %v13066_v34 = vpop.f32.mrf.mxu1 }
 0x360   : > { %v969_v22 = vsel %vm968_vm1, 1, %v15209_v5  ;;  %v4954_v53 = vadd.f32 %v4895_v45, %v4646_v49  ;;  %v5578_v54 = vshrl.u32 %v10992_v63, 16  ;;  %v988_v58 = vmul.u32 58254, %v983_v30 }
 0x361   : > { %v971_v47 = vadd.s32 %v969_v22, %v967_v10  ;;  %v989_v27 = vshll.u32 %v986_v13, 16  ;;  %v15053_v29 = vrot.slane %v13061_v32, 3  ;;  %v990_v25 = vshrl.u32 %v986_v13, 16 }
 0x362   : > { %v991_v16 = vshll.u32 %v987_v61, 16  ;;  %v992_v41 = vshrl.u32 %v987_v61, 16  ;;  %v4993_v14 = vmul.f32 %v12773_v44, %v4954_v53  ;;  %vm15335_vm4 = vcmask 1044480  }
 0x363   : > { %v972_v3 = vadd.s32 %v971_v47, %v961_v37  ;;  %vm993_vm0 = vc.u32 %v985_v48, %v989_v27  ;;  %v995_v59 = vadd.s32 %v989_v27, %v985_v48  ;;  %v5375_v30 = vsel %vm15335_vm4, %v5372_v17, %v15053_v29 }
 0x364   : > { %v994_v49 = vsel %vm993_vm0, 1, %v15209_v5  ;;  %5511 = vmatmul.bf16.gmra.mxu1 %v5375_v30  ;;  %v5580_v10 = vrot.slane %v5578_v54, 2  ;;  %v5581_v45 = vshll.u32 %v10992_v63, 16  ;;  %v5928_v13 = vrot.slane %v5578_v54, 3  ;;  %v15336_v63 = vld [vmem:[#allocation23_spill] sm:$0xff] }
 0x365   : > { %v973_v22 = vadd.s32 %v972_v3, %v963_v33  ;;  %v996_v44 = vadd.s32 %v994_v49, %v988_v58  ;;  %vm997_vm3 = vc.u32 %v995_v59, %v991_v16  ;;  %v6367_v37 = vshrl.u32 %v10699_v43, 16  ;;  %v4332_v58 = vpop.f32.mrf.mxu2 }
 0x366   : > { %v998_v61 = vsel %vm997_vm3, 1, %v15209_v5  ;;  %v13076_v48 = vadd.f32 %v12740_v51, %v4993_v14  ;;  %v5583_v53 = vrot.slane %v5581_v45, 3  ;;  %v5929_v47 = vrot.slane %v5581_v45, 4  ;;  %v15337_v14 = vld [vmem:[#allocation30_spill] sm:$0xff]  ;;  %v4590_v45 = vpop.f32.mrf.mxu3 }
 0x367   : > { %v974_v62 = vshrl.u32 %v973_v22, 4  ;;  %v1000_v27 = vadd.s32 %v998_v61, %v996_v44  ;;  %v6369_v17 = vrot.slane %v6367_v37, 3  ;;  %v6370_v18 = vshll.u32 %v10699_v43, 16 }
 0x368   : > { %v13078_v29 = vor.u32 %v5583_v53, %v5580_v10  ;;  %v13080_v30 = vor.u32 %v5929_v47, %v5928_v13  ;;  %v4387_v33 = vadd.f32 %v4330_v2, %v15336_v63  ;;  %v13084_v54 = vadd.s32 176, %v12014_v19 }
 0x369   : > { %v975_v16 = vmul.u32 18, %v974_v62  ;;  %v1001_v3 = vadd.s32 %v1000_v27, %v990_v25  ;;  %v6372_v51 = vrot.slane %v6370_v18, 4  ;;  %v4388_v59 = vadd.f32 %v4332_v58, %v15337_v14  ;;  %v13101_v62 = vpop.f32.mrf.mxu1 }
 0x36a   : > { %vm15338_vm1 = vsmask.f32 5376  ;;  %vm15339_vm0 = vsmask.f32 4352  ;;  %v1011_v10 = vand.u32 65535, %v13084_v54  ;;  %v1012_v2 = vshrl.u32 %v13084_v54, 16 }
 0x36b   : > { %v5585_v49 = vsel %vm15338_vm1, %v13005_v8, %v13078_v29  ;;  %v5931_v43 = vsel %vm15339_vm0, %v13011_v26, %v13080_v30  ;;  %v976_v13 = vsub.s32 %v13029_v7, %v975_v16  ;;  %v1002_v22 = vadd.s32 %v1001_v3, %v992_v41  ;;  %v4898_v8 = vpop.f32.mrf.mxu0 }
 0x36c   : > { %5809 = vmatmul.bf16.gmra.mxu2 %v5585_v49  ;;  %6080 = vmatmul.bf16.gmra.mxu3 %v5931_v43  ;;  %v13096_v18 = vor.u32 %v6372_v51, %v6369_v17  ;;  %v13099_v25 = vadd.s32 184, %v12014_v19  ;;  %v1014_v44 = vmul.u32 14564, %v1011_v10  ;;  %v1015_v37 = vmul.u32 58254, %v1011_v10 }
 0x36d   : > { %v1016_v61 = vmul.u32 14564, %v1012_v2  ;;  %v1017_v26 = vmul.u32 58254, %v1012_v2  ;;  %vm1434_vm4 = vcmp.ne.s32.totalorder %v976_v13, 0  ;;  %vm1470_vm3 = vcmp.lt.s32.totalorder %v976_v13, 0 }
 0x36e   : > { %v1542_v53 = vadd.s32 18, %v976_v13  ;;  %v1003_v47 = vshrl.u32 %v1002_v22, 4  ;;  %vm1506_vm1 = vmand %vm1470_vm3, %vm1434_vm4  ;;  %v6374_v7 = vsel %vm15339_vm0, %v13033_v4, %v13096_v18  ;;  %v1018_v41 = vshll.u32 %v1015_v37, 16 }
 0x36f   : > { %v1019_v27 = vshrl.u32 %v1015_v37, 16  ;;  %v1020_v17 = vshll.u32 %v1016_v61, 16  ;;  %6598 = vmatmul.bf16.gmra.mxu0 %v6374_v7  ;;  %v1021_v16 = vshrl.u32 %v1016_v61, 16  ;;  %v4647_v3 = vadd.f32 %v4590_v45, %v4387_v33  ;;  %v4592_v61 = vpop.f32.mrf.mxu3  ;;  %v15347_v7 = vld [vmem:[#allocation15_spill] sm:$0xff] }
 0x370   : > { %v1578_v63 = vsel %vm1506_vm1, %v1542_v53, %v976_v13  ;;  %v1004_v58 = vmul.u32 18, %v1003_v47  ;;  %v15340_v51 = vmov 0  ;;  %vm1022_vm15 = vc.u32 %v1014_v44, %v1018_v41  ;;  %v15346_v53 = vld [vmem:[#allocation25_spill] sm:$0xff] }
 0x371   : > { %vm13106_vm5 = vcmp.lt.s32.totalorder %v1578_v63, 16  ;;  %v1024_v14 = vadd.s32 %v1018_v41, %v1014_v44  ;;  %v1040_v49 = vand.u32 65535, %v13099_v25  ;;  %v1023_v10 = vsel %vm1022_vm15, 1, %v15209_v5  ;;  %v15348_v41 = vld [vmem:[#allocation14_spill] sm:$0xff]  ;;  %v13153_v60 = vpop.f32.mrf.mxu1 }
 0x372   : > { %v15341_v51 = vsel %vm13106_vm5, 4294967295, %v15340_v51  ;;  %v5103_v4 = vsel %vm13106_vm5, %v5067_v23, 0.0  ;;  %v1005_v43 = vsub.s32 %v13042_v52, %v1004_v58  ;;  %v4955_v2 = vadd.f32 %v4898_v8, %v4647_v3  ;;  %v13127_v23 = vld [vmem:[%s15003_s2] ss:$0 sm:$0xff]  ;;  %15351 = vst [vmem:[#allocation23_spill] sm:$0xff] %v13153_v60 }
 0x373   : > { %15342 = vst [vmem:[#allocation17_spill] sm:$0xff] %v15341_v51  ;;  %v10326_v33 = vpack.c.bf16 %v5103_v4, %v13052_v55  ;;  %v1025_v45 = vadd.s32 %v1023_v10, %v1017_v26  ;;  %vm1026_vm4 = vc.u32 %v1024_v14, %v1020_v17  ;;  %v1041_v13 = vshrl.u32 %v13099_v25, 16  ;;  %v15345_v26 = vld [vmem:[#allocation27_spill] sm:$0xff]  ;;  %v4900_v4 = vpop.f32.mrf.mxu0 }
 0x374   : > { %vm1435_vm3 = vcmp.ne.s32.totalorder %v1005_v43, 0  ;;  %vm1471_vm1 = vcmp.lt.s32.totalorder %v1005_v43, 0  ;;  %v1543_v22 = vadd.s32 18, %v1005_v43  ;;  %v1027_v44 = vsel %vm1026_vm4, 1, %v15209_v5 }
 0x375   : > { %10690 = vst [vmem:[#allocation2 + $0x58] sm:$0xff] %v10326_v33   ;;  %vm13120_vm0 = vmand %vm1471_vm1, %vm1435_vm3  ;;  %v1029_v52 = vadd.s32 %v1027_v44, %v1025_v45  ;;  %v4994_v55 = vmul.f32 %v13127_v23, %v4955_v2  ;;  %v1043_v8 = vmul.u32 14564, %v1040_v49  ;;  %v1044_v37 = vmul.u32 58254, %v1040_v49  ;;  %v15349_v33 = vld [vmem:[#allocation31_spill] sm:$0xff]  ;;  %v15350_v49 = vld [vmem:[#allocation16_spill] sm:$0xff] }
 0x376   : > { %v13132_v47 = vadd.f32 %v15346_v53, %v15345_v26  ;;  %v13136_v17 = vadd.f32 %v15348_v41, %v15347_v7  ;;  %v1045_v63 = vmul.u32 14564, %v1041_v13  ;;  %v4648_v58 = vadd.f32 %v4592_v61, %v4388_v59  ;;  %v13148_v26 = vld [vmem:[%s15004_s3] ss:$0 sm:$0xff]  ;;  %v10995_v41 = vld [vmem:[#allocation2 + $0x18] sm:$0xff] }
 0x377   : > { %v1579_v3 = vsel %vm13120_vm0, %v1543_v22, %v1005_v43  ;;  %v1030_v14 = vadd.s32 %v1029_v52, %v1019_v27  ;;  %v1046_v10 = vmul.u32 58254, %v1041_v13  ;;  %v1047_v2 = vshll.u32 %v1044_v37, 16  ;;  %v10700_v52 = vld [vmem:[#allocation2 + $0x20] sm:$0xff]  }
 0x378   : > { %v13142_v45 = vadd.f32 %v15350_v49, %v15349_v33  ;;  %v13151_v59 = vadd.f32 %v13148_v26, %v4994_v55  ;;  %v1049_v27 = vshll.u32 %v1045_v63, 16  ;;  %v1048_v13 = vshrl.u32 %v1044_v37, 16 }
 0x379   : > { %v1031_v43 = vadd.s32 %v1030_v14, %v1021_v16  ;;  %vm1051_vm15 = vc.u32 %v1043_v8, %v1047_v2  ;;  %v1053_v22 = vadd.s32 %v1047_v2, %v1043_v8  ;;  %vm13155_vm4 = vcmp.lt.s32.totalorder %v1579_v3, 16  ;;  %v4335_v2 = vpop.f32.mrf.mxu2 }
 0x37a   : > { %v15352_v61 = vmov 0  ;;  %v1052_v53 = vsel %vm1051_vm15, 1, %v15209_v5  ;;  %v4956_v7 = vadd.f32 %v4900_v4, %v4648_v58  ;;  %v5587_v33 = vshrl.u32 %v10995_v41, 16 }
 0x37b   : > { %v15353_v61 = vsel %vm13155_vm4, 4294967295, %v15352_v61  ;;  %v5590_v49 = vshll.u32 %v10995_v41, 16  ;;  %v1032_v55 = vshrl.u32 %v1031_v43, 4  ;;  %v1050_v44 = vshrl.u32 %v1045_v63, 16 }
 0x37c   : > { %15354 = vst [vmem:[#allocation30_spill] sm:$0xff] %v15353_v61  ;;  %v1054_v51 = vadd.s32 %v1052_v53, %v1046_v10  ;;  %vm1055_vm3 = vc.u32 %v1053_v22, %v1049_v27  ;;  %v13161_v37 = vld [vmem:[#allocation2 + $0x58] sm:$0xff]  ;;  %v5589_v8 = vrot.slane %v5587_v33, 2  ;;  %v6376_v3 = vshrl.u32 %v10700_v52, 16 }
 0x37d   : > { %v1056_v16 = vsel %vm1055_vm3, 1, %v15209_v5  ;;  %v5592_v14 = vrot.slane %v5590_v49, 3  ;;  %v1033_v6 = vmul.u32 18, %v1032_v55  ;;  %v5932_v39 = vrot.slane %v5587_v33, 3  ;;  %v15358_v33 = vld [vmem:[#allocation24_spill] sm:$0xff] }
 0x37e   : > { %v1058_v50 = vadd.s32 %v1056_v16, %v1054_v51  ;;  %v5933_v28 = vrot.slane %v5590_v49, 4  ;;  %v5069_v58 = vmax.f32 %v13151_v59, 0.0  ;;  %v4995_v4 = vmul.f32 %v13127_v23, %v4956_v7 }
 0x37f   : > { %v15062_v63 = vrot.slane %v13161_v37, 3  ;;  %v13166_v10 = vor.u32 %v5592_v14, %v5589_v8  ;;  %v1034_v27 = vsub.s32 %v13084_v54, %v1033_v6  ;;  %v6379_v53 = vshll.u32 %v10700_v52, 16  ;;  %v13180_v54 = vpop.f32.mrf.mxu1 }
 0x380   : > { %v1059_v43 = vadd.s32 %v1058_v50, %v1048_v13  ;;  %v13169_v22 = vor.u32 %v5933_v28, %v5932_v39  ;;  %v15355_v51 = vrot.slane %v13061_v32, 3  ;;  %vm15356_vm1 = vcmask 1044480   ;;  %v4903_v28 = vpop.f32.mrf.mxu0  ;;  %v4595_v39 = vpop.f32.mrf.mxu3 }
 0x381   : > { %vm15357_vm0 = vsmask.f32 5376  ;;  %v6378_v7 = vrot.slane %v6376_v3, 3  ;;  %v4389_v49 = vadd.f32 %v4335_v2, %v15358_v33  ;;  %vm1436_vm15 = vcmp.ne.s32.totalorder %v1034_v27, 0 }
 0x382   : > { %v5377_v41 = vsel %vm15356_vm1, %v15355_v51, %v15062_v63  ;;  %v5594_v59 = vsel %vm15357_vm0, %v13078_v29, %v13166_v10  ;;  %vm1472_vm3 = vcmp.lt.s32.totalorder %v1034_v27, 0  ;;  %v1544_v6 = vadd.s32 18, %v1034_v27 }
 0x383   : > { %v1060_v50 = vadd.s32 %v1059_v43, %v1050_v44  ;;  %5516 = vmatmul.bf16.gmra.mxu1 %v5377_v41  ;;  %5814 = vmatmul.bf16.gmra.mxu2 %v5594_v59  ;;  %vm1508_vm5 = vmand %vm1472_vm3, %vm1436_vm15  ;;  %vm15359_vm1 = vsmask.f32 4352  ;;  %v6381_v13 = vrot.slane %v6379_v53, 4  ;;  %v13186_v29 = vadd.s32 192, %v12014_v19 }
 0x384   : > { %v5935_v32 = vsel %vm15359_vm1, %v13080_v30, %v13169_v22  ;;  %v4649_v52 = vadd.f32 %v4595_v39, %v4389_v49  ;;  %v1580_v55 = vsel %vm1508_vm5, %v1544_v6, %v1034_v27  ;;  %v13189_v44 = vadd.f32 %v13148_v26, %v4995_v4  ;;  %vm15364_vm5 = vmmov %vm15359_vm1  ;;  %v4337_v49 = vpop.f32.mrf.mxu2 }
 0x385   : > { %v1061_v16 = vshrl.u32 %v1060_v50, 4  ;;  %6085 = vmatmul.bf16.gmra.mxu3 %v5935_v32  ;;  %v13192_v8 = vadd.s32 200, %v12014_v19  ;;  %vm13194_vm0 = vcmp.lt.s32.totalorder %v1580_v55, 16  ;;  %v15360_v14 = vmov 0 }
 0x386   : > { %v15361_v14 = vsel %vm13194_vm0, 4294967295, %v15360_v14  ;;  %v13198_v3 = vor.u32 %v6381_v13, %v6378_v7  ;;  %v1069_v30 = vand.u32 65535, %v13186_v29  ;;  %v1070_v2 = vshrl.u32 %v13186_v29, 16 }
 0x387   : > { %15362 = vst [vmem:[#allocation27_spill] sm:$0xff] %v15361_v14  ;;  %v15363_v27 = vmax.f32 %v13076_v48, 0.0  ;;  %v5105_v43 = vsel %vm13194_vm0, %v5069_v58, 0.0  ;;  %v1062_v53 = vmul.u32 18, %v1061_v16  ;;  %v4957_v51 = vadd.f32 %v4903_v28, %v4649_v52  ;;  %v15367_v16 = vld [vmem:[#allocation18_spill] sm:$0xff]  ;;  %v13224_v63 = vpop.f32.mrf.mxu1 }
 0x388   : > { %v6383_v59 = vsel %vm15364_vm5, %v13096_v18, %v13198_v3  ;;  %v1072_v7 = vmul.u32 14564, %v1069_v30  ;;  %v1073_v33 = vmul.u32 58254, %v1069_v30  ;;  %v1074_v50 = vmul.u32 14564, %v1070_v2  ;;  %15368 = vst [vmem:[#allocation25_spill] sm:$0xff] %v13224_v63  ;;  %v4597_v14 = vpop.f32.mrf.mxu3 }
 0x389   : > { %v5104_v4 = vsel %vm13155_vm4, %v15363_v27, 0.0  ;;  %v1063_v6 = vsub.s32 %v13099_v25, %v1062_v53  ;;  %6603 = vmatmul.bf16.gmra.mxu0 %v6383_v59  ;;  %v1098_v39 = vand.u32 65535, %v13192_v8  ;;  %v1075_v58 = vmul.u32 58254, %v1070_v2 }
 0x38a   : > { %v10331_v41 = vpack.c.bf16 %v5105_v43, %v5104_v4  ;;  %v1076_v32 = vshll.u32 %v1073_v33, 16  ;;  %v4996_v28 = vmul.f32 %v13127_v23, %v4957_v51  ;;  %v1099_v13 = vshrl.u32 %v13192_v8, 16  ;;  %v4905_v43 = vpop.f32.mrf.mxu0 }
 0x38b   : > { %vm1437_vm15 = vcmp.ne.s32.totalorder %v1063_v6, 0  ;;  %vm1473_vm3 = vcmp.lt.s32.totalorder %v1063_v6, 0  ;;  %v1545_v18 = vadd.s32 18, %v1063_v6  ;;  %v1078_v52 = vshll.u32 %v1074_v50, 16 }
 0x38c   : > { %10691 = vst [vmem:[#allocation2 + $0x60] sm:$0xff] %v10331_v41   ;;  %vm13216_vm1 = vmand %vm1473_vm3, %vm1437_vm15  ;;  %vm1080_vm5 = vc.u32 %v1072_v7, %v1076_v32  ;;  %v1082_v25 = vadd.s32 %v1076_v32, %v1072_v7  ;;  %v4390_v30 = vadd.f32 %v4337_v49, %v15367_v16  ;;  %v1101_v27 = vmul.u32 14564, %v1098_v39  ;;  %v10996_v16 = vld [vmem:[#allocation2 + $0x20] sm:$0xff]  ;;  %v4340_v21 = vpop.f32.mrf.mxu2 }
 0x38d   : > { %v1581_v2 = vsel %vm13216_vm1, %v1545_v18, %v1063_v6  ;;  %v1081_v4 = vsel %vm1080_vm5, 1, %v15209_v5  ;;  %v1102_v53 = vmul.u32 58254, %v1098_v39  ;;  %v1103_v51 = vmul.u32 14564, %v1099_v13  ;;  %v10701_v6 = vld [vmem:[#allocation2 + $0x28] sm:$0xff]  }
 0x38e   : > { %v1077_v41 = vshrl.u32 %v1073_v33, 16  ;;  %v1079_v59 = vshrl.u32 %v1074_v50, 16  ;;  %v1083_v48 = vadd.s32 %v1081_v4, %v1075_v58  ;;  %vm1084_vm15 = vc.u32 %v1082_v25, %v1078_v52 }
 0x38f   : > { %v1085_v7 = vsel %vm1084_vm15, 1, %v15209_v5  ;;  %v13228_v49 = vadd.f32 %v13148_v26, %v4996_v28  ;;  %v1104_v32 = vmul.u32 58254, %v1099_v13  ;;  %v1105_v55 = vshll.u32 %v1102_v53, 16 }
 0x390   : > { %vm13230_vm3 = vcmp.lt.s32.totalorder %v1581_v2, 16  ;;  %v15369_v18 = vmov 0  ;;  %v1087_v39 = vadd.s32 %v1085_v7, %v1083_v48  ;;  %v1106_v33 = vshrl.u32 %v1102_v53, 16 }
 0x391   : > { %v15370_v18 = vsel %vm13230_vm3, 4294967295, %v15369_v18  ;;  %v1107_v50 = vshll.u32 %v1103_v51, 16  ;;  %vm1109_vm1 = vc.u32 %v1101_v27, %v1105_v55  ;;  %v1111_v58 = vadd.s32 %v1105_v55, %v1101_v27 }
 0x392   : > { %15371 = vst [vmem:[#allocation15_spill] sm:$0xff] %v15370_v18  ;;  %v4650_v52 = vadd.f32 %v4597_v14, %v4390_v30  ;;  %v5596_v4 = vshrl.u32 %v10996_v16, 16  ;;  %v1088_v61 = vadd.s32 %v1087_v39, %v1077_v41  ;;  %v1110_v28 = vsel %vm1109_vm1, 1, %v15209_v5 }
 0x393   : > { %v13234_v25 = vld [vmem:[#allocation2 + $0x60] sm:$0xff]  ;;  %v5599_v13 = vshll.u32 %v10996_v16, 16  ;;  %v6385_v11 = vshrl.u32 %v10701_v6, 16  ;;  %v1112_v2 = vadd.s32 %v1110_v28, %v1104_v32  ;;  %vm1113_vm5 = vc.u32 %v1111_v58, %v1107_v50  ;;  %v4908_v50 = vpop.f32.mrf.mxu0 }
 0x394   : > { %v4958_v31 = vadd.f32 %v4905_v43, %v4650_v52  ;;  %v15071_v48 = vrot.slane %v13234_v25, 3  ;;  %v1089_v53 = vadd.s32 %v1088_v61, %v1079_v59  ;;  %v1114_v7 = vsel %vm1113_vm5, 1, %v15209_v5 }
 0x395   : > { %v5598_v27 = vrot.slane %v5596_v4, 2  ;;  %v5601_v14 = vrot.slane %v5599_v13, 3  ;;  %v1108_v30 = vshrl.u32 %v1103_v51, 16  ;;  %v1116_v55 = vadd.s32 %v1114_v7, %v1112_v2  ;;  %v15374_v51 = vld [vmem:[#allocation26_spill] sm:$0xff]  ;;  %v13248_v7 = vpop.f32.mrf.mxu1 }
 0x396   : > { %v15372_v41 = vrot.slane %v13161_v37, 3  ;;  %vm15373_vm15 = vcmask 1044480   ;;  %v5936_v16 = vrot.slane %v5596_v4, 3  ;;  %v1090_v9 = vshrl.u32 %v1089_v53, 4  ;;  %v4600_v53 = vpop.f32.mrf.mxu3 }
 0x397   : > { %v4997_v32 = vmul.f32 %v13127_v23, %v4958_v31  ;;  %v13245_v43 = vor.u32 %v5601_v14, %v5598_v27  ;;  %v5937_v61 = vrot.slane %v5599_v13, 4  ;;  %v1117_v59 = vadd.s32 %v1116_v55, %v1106_v33 }
 0x398   : > { %v5379_v39 = vsel %vm15373_vm15, %v15372_v41, %v15071_v48  ;;  %v6387_v58 = vrot.slane %v6385_v11, 3  ;;  %v6388_v52 = vshll.u32 %v10701_v6, 16  ;;  %v4391_v28 = vadd.f32 %v4340_v21, %v15374_v51  ;;  %v10137_v21 = vld [vmem:[#allocation8 + $0x110] sm:$0xff] }
 0x399   : > { %5521 = vmatmul.bf16.gmra.mxu1 %v5379_v39  ;;  %v1091_v2 = vmul.u32 18, %v1090_v9  ;;  %vm15375_vm1 = vsmask.f32 5376  ;;  %v13253_v4 = vor.u32 %v5937_v61, %v5936_v16  ;;  %v13256_v31 = vadd.s32 208, %v12014_v19  ;;  %v4342_v16 = vpop.f32.mrf.mxu2 }
 0x39a   : > { %v5603_v37 = vsel %vm15375_vm1, %v13166_v10, %v13245_v43  ;;  %v5071_v33 = vmax.f32 %v13228_v49, 0.0  ;;  %v1118_v13 = vadd.s32 %v1117_v59, %v1108_v30  ;;  %v6390_v11 = vrot.slane %v6388_v52, 4  ;;  %6826 = vmatpush.bf16.msrb.mxu1 %v10137_v21 }
 0x39b   : > { %5819 = vmatmul.bf16.gmra.mxu2 %v5603_v37  ;;  %v4651_v6 = vadd.f32 %v4600_v53, %v4391_v28  ;;  %v1092_v9 = vsub.s32 %v13186_v29, %v1091_v2  ;;  %vm15376_vm5 = vsmask.f32 4352  ;;  %v1127_v10 = vand.u32 65535, %v13256_v31 }
 0x39c   : > { %v5939_v27 = vsel %vm15376_vm5, %v13169_v22, %v13253_v4  ;;  %v1128_v14 = vshrl.u32 %v13256_v31, 16  ;;  %v15377_v55 = vmax.f32 %v13189_v44, 0.0  ;;  %v1119_v30 = vshrl.u32 %v1118_v13, 4  ;;  %v10702_v13 = vld [vmem:[#allocation2 + $0x30] sm:$0xff]  }
 0x39d   : > { %6090 = vmatmul.bf16.gmra.mxu3 %v5939_v27  ;;  %v13269_v41 = vor.u32 %v6390_v11, %v6387_v58  ;;  %v4959_v39 = vadd.f32 %v4908_v50, %v4651_v6  ;;  %vm1438_vm15 = vcmp.ne.s32.totalorder %v1092_v9, 0  ;;  %vm1474_vm1 = vcmp.lt.s32.totalorder %v1092_v9, 0  ;;  %v4910_v27 = vpop.f32.mrf.mxu0 }
 0x39e   : > { %v5106_v49 = vsel %vm13230_vm3, %v15377_v55, 0.0  ;;  %v1546_v29 = vadd.s32 18, %v1092_v9  ;;  %v13272_v22 = vadd.f32 %v13148_v26, %v4997_v32  ;;  %vm1510_vm5 = vmand %vm1474_vm1, %vm1438_vm15  ;;  %v1120_v61 = vmul.u32 18, %v1119_v30  ;;  %v13297_v55 = vpop.f32.mrf.mxu1 }
 0x39f   : > { %vm15378_vm0 = vsmask.f32 4352  ;;  %v1131_v59 = vmul.u32 58254, %v1127_v10  ;;  %v1132_v52 = vmul.u32 14564, %v1128_v14  ;;  %v1130_v58 = vmul.u32 14564, %v1127_v10  ;;  %15384 = vst [vmem:[#allocation31_spill] sm:$0xff] %v13297_v55 }
 0x3a0   : > { %v6392_v44 = vsel %vm15378_vm0, %v13198_v3, %v13269_v41  ;;  %v1582_v51 = vsel %vm1510_vm5, %v1546_v29, %v1092_v9  ;;  %v4998_v50 = vmul.f32 %v13127_v23, %v4959_v39  ;;  %v13279_v28 = vadd.s32 216, %v12014_v19 }
 0x3a1   : > { %6608 = vmatmul.bf16.gmra.mxu0 %v6392_v44  ;;  %vm13281_vm3 = vcmp.lt.s32.totalorder %v1582_v51, 16  ;;  %v15379_v32 = vmov 0  ;;  %v1121_v2 = vsub.s32 %v13192_v8, %v1120_v61  ;;  %v1134_v37 = vshll.u32 %v1131_v59, 16 }
 0x3a2   : > { %v15380_v32 = vsel %vm13281_vm3, 4294967295, %v15379_v32  ;;  %v4392_v53 = vadd.f32 %v4342_v16, %v13132_v47  ;;  %v5107_v3 = vsel %vm13281_vm3, %v5071_v33, 0.0  ;;  %v1133_v11 = vmul.u32 58254, %v1128_v14  ;;  %v4602_v14 = vpop.f32.mrf.mxu3 }
 0x3a3   : > { %15381 = vst [vmem:[#allocation14_spill] sm:$0xff] %v15380_v32  ;;  %v1136_v6 = vshll.u32 %v1132_v52, 16  ;;  %v10336_v21 = vpack.c.bf16 %v5107_v3, %v5106_v49  ;;  %vm1439_vm0 = vcmp.ne.s32.totalorder %v1121_v2, 0  ;;  %vm1475_vm15 = vcmp.lt.s32.totalorder %v1121_v2, 0 }
 0x3a4   : > { %v1547_v9 = vadd.s32 18, %v1121_v2  ;;  %vm13290_vm1 = vmand %vm1475_vm15, %vm1439_vm0  ;;  %vm1138_vm5 = vc.u32 %v1130_v58, %v1134_v37  ;;  %v1140_v8 = vadd.s32 %v1134_v37, %v1130_v58  ;;  %v13295_v47 = vadd.f32 %v13148_v26, %v4998_v50 }
 0x3a5   : > { %v1156_v33 = vand.u32 65535, %v13279_v28  ;;  %10692 = vst [vmem:[#allocation2 + $0x68] sm:$0xff] %v10336_v21   ;;  %v1139_v30 = vsel %vm1138_vm5, 1, %v15209_v5  ;;  %v1157_v39 = vshrl.u32 %v13279_v28, 16  ;;  %v4652_v29 = vadd.f32 %v4602_v14, %v4392_v53 }
 0x3a6   : > { %v1583_v49 = vsel %vm13290_vm1, %v1547_v9, %v1121_v2  ;;  %v1135_v16 = vshrl.u32 %v1131_v59, 16  ;;  %v1137_v61 = vshrl.u32 %v1132_v52, 16  ;;  %v1141_v44 = vadd.s32 %v1139_v30, %v1133_v11  ;;  %v10997_v9 = vld [vmem:[#allocation2 + $0x28] sm:$0xff] }
 0x3a7   : > { %vm1142_vm0 = vc.u32 %v1140_v8, %v1136_v6  ;;  %v1159_v58 = vmul.u32 14564, %v1156_v33  ;;  %v1160_v50 = vmul.u32 58254, %v1156_v33  ;;  %v1161_v37 = vmul.u32 14564, %v1157_v39  ;;  %v4345_v6 = vpop.f32.mrf.mxu2 }
 0x3a8   : > { %v1143_v51 = vsel %vm1142_vm0, 1, %v15209_v5  ;;  %vm13305_vm15 = vcmp.lt.s32.totalorder %v1583_v49, 16  ;;  %v15385_v3 = vmov 0  ;;  %v5605_v10 = vshrl.u32 %v10997_v9, 16 }
 0x3a9   : > { %v15386_v3 = vsel %vm13305_vm15, 4294967295, %v15385_v3  ;;  %v1145_v21 = vadd.s32 %v1143_v51, %v1141_v44  ;;  %v1162_v53 = vmul.u32 58254, %v1157_v39  ;;  %v1163_v59 = vshll.u32 %v1160_v50, 16 }
 0x3aa   : > { %15387 = vst [vmem:[#allocation16_spill] sm:$0xff] %v15386_v3  ;;  %v1165_v52 = vshll.u32 %v1161_v37, 16  ;;  %v4960_v11 = vadd.f32 %v4910_v27, %v4652_v29  ;;  %v1164_v14 = vshrl.u32 %v1160_v50, 16  ;;  %v5607_v30 = vrot.slane %v5605_v10, 2  ;;  %v4913_v29 = vpop.f32.mrf.mxu0 }
 0x3ab   : > { %v1146_v8 = vadd.s32 %v1145_v21, %v1135_v16  ;;  %v5608_v33 = vshll.u32 %v10997_v9, 16  ;;  %vm1167_vm1 = vc.u32 %v1159_v58, %v1163_v59  ;;  %v1169_v49 = vadd.s32 %v1163_v59, %v1159_v58  ;;  %v13315_v9 = vpop.f32.mrf.mxu1 }
 0x3ac   : > { %v5940_v48 = vrot.slane %v5605_v10, 3  ;;  %v6394_v32 = vshrl.u32 %v10702_v13, 16  ;;  %v1166_v44 = vshrl.u32 %v1161_v37, 16  ;;  %v1168_v51 = vsel %vm1167_vm1, 1, %v15209_v5  ;;  %v13311_v2 = vld [vmem:[#allocation2 + $0x68] sm:$0xff] }
 0x3ad   : > { %v1147_v18 = vadd.s32 %v1146_v8, %v1137_v61  ;;  %v5610_v0 = vrot.slane %v5608_v33, 3  ;;  %v1170_v39 = vadd.s32 %v1168_v51, %v1162_v53  ;;  %vm1171_vm5 = vc.u32 %v1169_v49, %v1165_v52 }
 0x3ae   : > { %v4999_v27 = vmul.f32 %v13127_v23, %v4960_v11  ;;  %v5941_v16 = vrot.slane %v5608_v33, 4  ;;  %v1172_v21 = vsel %vm1171_vm5, 1, %v15209_v5  ;;  %v15078_v58 = vrot.slane %v13311_v2, 3  ;;  %v15390_v11 = vld [vmem:[#allocation28_spill] sm:$0xff] }
 0x3af   : > { %v1148_v50 = vshrl.u32 %v1147_v18, 4  ;;  %v6396_v61 = vrot.slane %v6394_v32, 3  ;;  %v1174_v37 = vadd.s32 %v1172_v21, %v1170_v39  ;;  %v13318_v10 = vor.u32 %v5610_v0, %v5607_v30 }
 0x3b0   : > { %v13320_v59 = vor.u32 %v5941_v16, %v5940_v48  ;;  %v6397_v8 = vshll.u32 %v10702_v13, 16  ;;  %v15388_v52 = vrot.slane %v13234_v25, 3  ;;  %vm15389_vm0 = vcmask 1044480   ;;  %v4605_v13 = vpop.f32.mrf.mxu3 }
 0x3b1   : > { %v1149_v53 = vmul.u32 18, %v1148_v50  ;;  %v4393_v33 = vadd.f32 %v4345_v6, %v15390_v11  ;;  %v13329_v49 = vadd.s32 224, %v12014_v19  ;;  %v1175_v51 = vadd.s32 %v1174_v37, %v1164_v14 }
 0x3b2   : > { %v5381_v18 = vsel %vm15389_vm0, %v15388_v52, %v15078_v58  ;;  %vm15391_vm1 = vsmask.f32 5376  ;;  %vm15392_vm5 = vsmask.f32 4352  ;;  %v6399_v32 = vrot.slane %v6397_v8, 4 }
 0x3b3   : > { %5526 = vmatmul.bf16.gmra.mxu1 %v5381_v18  ;;  %v5612_v0 = vsel %vm15391_vm1, %v13245_v43, %v13318_v10  ;;  %v5943_v48 = vsel %vm15392_vm5, %v13253_v4, %v13320_v59  ;;  %v1150_v25 = vsub.s32 %v13256_v31, %v1149_v53  ;;  %v1185_v6 = vand.u32 65535, %v13329_v49  ;;  %v4347_v4 = vpop.f32.mrf.mxu2 }
 0x3b4   : > { %5824 = vmatmul.bf16.gmra.mxu2 %v5612_v0  ;;  %6095 = vmatmul.bf16.gmra.mxu3 %v5943_v48  ;;  %v1186_v30 = vshrl.u32 %v13329_v49, 16  ;;  %v4653_v14 = vadd.f32 %v4605_v13, %v4393_v33  ;;  %v15393_v39 = vmax.f32 %v13272_v22, 0.0  ;;  %v1176_v16 = vadd.s32 %v1175_v51, %v1166_v44 }
 0x3b5   : > { %v13344_v50 = vor.u32 %v6399_v32, %v6396_v61  ;;  %v13347_v21 = vadd.s32 232, %v12014_v19  ;;  %vm1440_vm0 = vcmp.ne.s32.totalorder %v1150_v25, 0  ;;  %vm1476_vm1 = vcmp.lt.s32.totalorder %v1150_v25, 0  ;;  %v4915_v32 = vpop.f32.mrf.mxu0 }
 0x3b6   : > { %v5108_v43 = vsel %vm13305_vm15, %v15393_v39, 0.0  ;;  %v1548_v31 = vadd.s32 18, %v1150_v25  ;;  %v1188_v37 = vmul.u32 14564, %v1185_v6  ;;  %vm1512_vm5 = vmand %vm1476_vm1, %vm1440_vm0  ;;  %v1177_v8 = vshrl.u32 %v1176_v16, 4 }
 0x3b7   : > { %vm15394_vm3 = vsmask.f32 4352  ;;  %v1189_v53 = vmul.u32 58254, %v1185_v6  ;;  %v1190_v52 = vmul.u32 14564, %v1186_v30  ;;  %v13353_v44 = vadd.f32 %v13148_v26, %v4999_v27  ;;  %v13365_v6 = vpop.f32.mrf.mxu1 }
 0x3b8   : > { %v6401_v22 = vsel %vm15394_vm3, %v13269_v41, %v13344_v50  ;;  %v1584_v18 = vsel %vm1512_vm5, %v1548_v31, %v1150_v25  ;;  %v4961_v61 = vadd.f32 %v4913_v29, %v4653_v14  ;;  %v4394_v11 = vadd.f32 %v4347_v4, %v13136_v17  ;;  %15399 = vst [vmem:[#allocation18_spill] sm:$0xff] %v13365_v6 }
 0x3b9   : > { %6613 = vmatmul.bf16.gmra.mxu0 %v6401_v22  ;;  %vm13356_vm15 = vcmp.lt.s32.totalorder %v1584_v18, 16  ;;  %v15395_v33 = vmov 0  ;;  %v1178_v51 = vmul.u32 18, %v1177_v8  ;;  %v1191_v0 = vmul.u32 58254, %v1186_v30  ;;  %v4607_v18 = vpop.f32.mrf.mxu3 }
 0x3ba   : > { %v15396_v33 = vsel %vm13356_vm15, 4294967295, %v15395_v33  ;;  %v1192_v48 = vshll.u32 %v1189_v53, 16  ;;  %v15398_v41 = vmax.f32 %v13295_v47, 0.0  ;;  %v1194_v25 = vshll.u32 %v1190_v52, 16 }
 0x3bb   : > { %15397 = vst [vmem:[#allocation24_spill] sm:$0xff] %v15396_v33  ;;  %v5000_v27 = vmul.f32 %v13127_v23, %v4961_v61  ;;  %v1214_v17 = vand.u32 65535, %v13347_v21  ;;  %v1179_v14 = vsub.s32 %v13279_v28, %v1178_v51  ;;  %v1193_v30 = vshrl.u32 %v1189_v53, 16 }
 0x3bc   : > { %v5109_v13 = vsel %vm13356_vm15, %v15398_v41, 0.0  ;;  %vm1196_vm3 = vc.u32 %v1188_v37, %v1192_v48  ;;  %v1198_v39 = vadd.s32 %v1192_v48, %v1188_v37  ;;  %v1215_v4 = vshrl.u32 %v13347_v21, 16 }
 0x3bd   : > { %v10341_v29 = vpack.c.bf16 %v5109_v13, %v5108_v43  ;;  %v1197_v16 = vsel %vm1196_vm3, 1, %v15209_v5  ;;  %v13371_v47 = vadd.f32 %v13148_v26, %v5000_v27  ;;  %vm1441_vm0 = vcmp.ne.s32.totalorder %v1179_v14, 0 }
 0x3be   : > { %vm1477_vm1 = vcmp.lt.s32.totalorder %v1179_v14, 0  ;;  %v1549_v31 = vadd.s32 18, %v1179_v14  ;;  %v1199_v8 = vadd.s32 %v1197_v16, %v1191_v0  ;;  %vm1200_vm15 = vc.u32 %v1198_v39, %v1194_v25  ;;  %v4350_v0 = vpop.f32.mrf.mxu2 }
 0x3bf   : > { %10693 = vst [vmem:[#allocation2 + $0x70] sm:$0xff] %v10341_v29   ;;  %vm1513_vm5 = vmand %vm1477_vm1, %vm1441_vm0  ;;  %v1217_v43 = vmul.u32 14564, %v1214_v17  ;;  %v1218_v22 = vmul.u32 58254, %v1214_v17  ;;  %v1219_v28 = vmul.u32 14564, %v1215_v4  ;;  %v5074_v53 = vmax.f32 %v13353_v44, 0.0  ;;  %v10703_v29 = vld [vmem:[#allocation2 + $0x38] sm:$0xff]  }
 0x3c0   : > { %v1585_v37 = vsel %vm1513_vm5, %v1549_v31, %v1179_v14  ;;  %v1201_v61 = vsel %vm1200_vm15, 1, %v15209_v5  ;;  %v4654_v51 = vadd.f32 %v4607_v18, %v4394_v11  ;;  %v1195_v48 = vshrl.u32 %v1190_v52, 16  ;;  %v10998_v44 = vld [vmem:[#allocation2 + $0x30] sm:$0xff]  ;;  %v4918_v31 = vpop.f32.mrf.mxu0 }
 0x3c1   : > { %v1203_v41 = vadd.s32 %v1201_v61, %v1199_v8  ;;  %v1220_v13 = vmul.u32 58254, %v1215_v4  ;;  %v1221_v27 = vshll.u32 %v1218_v22, 16  ;;  %vm13376_vm3 = vcmp.lt.s32.totalorder %v1585_v37, 16  ;;  %v13382_v61 = vpop.f32.mrf.mxu1 }
 0x3c2   : > { %v15400_v58 = vmov 0  ;;  %v1222_v25 = vshrl.u32 %v1218_v22, 16  ;;  %v1223_v17 = vshll.u32 %v1219_v28, 16  ;;  %v5614_v16 = vshrl.u32 %v10998_v44, 16 }
 0x3c3   : > { %v15401_v58 = vsel %vm13376_vm3, 4294967295, %v15400_v58  ;;  %v1204_v39 = vadd.s32 %v1203_v41, %v1193_v30  ;;  %vm1225_vm0 = vc.u32 %v1217_v43, %v1221_v27  ;;  %v1227_v14 = vadd.s32 %v1221_v27, %v1217_v43 }
 0x3c4   : > { %15402 = vst [vmem:[#allocation26_spill] sm:$0xff] %v15401_v58  ;;  %v1226_v11 = vsel %vm1225_vm0, 1, %v15209_v5  ;;  %v4962_v52 = vadd.f32 %v4915_v32, %v4654_v51  ;;  %v5617_v4 = vshll.u32 %v10998_v44, 16  ;;  %v6403_v8 = vshrl.u32 %v10703_v29, 16 }
 0x3c5   : > { %v1205_v18 = vadd.s32 %v1204_v39, %v1195_v48  ;;  %v1228_v37 = vadd.s32 %v1226_v11, %v1220_v13  ;;  %vm1229_vm15 = vc.u32 %v1227_v14, %v1223_v17  ;;  %v5616_v22 = vrot.slane %v5614_v16, 2 }
 0x3c6   : > { %v13384_v33 = vld [vmem:[#allocation2 + $0x70] sm:$0xff]  ;;  %v1224_v30 = vshrl.u32 %v1219_v28, 16  ;;  %v1230_v43 = vsel %vm1229_vm15, 1, %v15209_v5  ;;  %v5619_v41 = vrot.slane %v5617_v4, 3  ;;  %v5944_v27 = vrot.slane %v5614_v16, 3 }
 0x3c7   : > { %v1206_v3 = vshrl.u32 %v1205_v18, 4  ;;  %v1232_v24 = vadd.s32 %v1230_v43, %v1228_v37  ;;  %v15084_v32 = vrot.slane %v13384_v33, 3  ;;  %v5945_v51 = vrot.slane %v5617_v4, 4  ;;  %v10136_v18 = vld [vmem:[#allocation8 + $0x108] sm:$0xff] }
 0x3c8   : > { %v5001_v48 = vmul.f32 %v13127_v23, %v4962_v52  ;;  %v13389_v13 = vor.u32 %v5619_v41, %v5616_v22  ;;  %v6405_v17 = vrot.slane %v6403_v8, 3  ;;  %v6406_v39 = vshll.u32 %v10703_v29, 16  ;;  %v15406_v37 = vld [vmem:[#allocation29_spill] sm:$0xff]  ;;  %6827 = vmatpush.bf16.msrb.mxu1 %v10136_v18 }
 0x3c9   : > { %v1207_v14 = vmul.u32 18, %v1206_v3  ;;  %v1233_v44 = vadd.s32 %v1232_v24, %v1222_v25  ;;  %v15403_v28 = vrot.slane %v13311_v2, 3  ;;  %vm15404_vm1 = vcmask 1044480   ;;  %v4610_v24 = vpop.f32.mrf.mxu3 }
 0x3ca   : > { %v13396_v16 = vor.u32 %v5945_v51, %v5944_v27  ;;  %vm15405_vm5 = vsmask.f32 5376  ;;  %v6408_v4 = vrot.slane %v6406_v39, 4  ;;  %v4395_v8 = vadd.f32 %v4350_v0, %v15406_v37  ;;  %v4920_v39 = vpop.f32.mrf.mxu0 }
 0x3cb   : > { %v5383_v11 = vsel %vm15404_vm1, %v15403_v28, %v15084_v32  ;;  %v5621_v52 = vsel %vm15405_vm5, %v13318_v10, %v13389_v13  ;;  %v13403_v3 = vadd.s32 240, %v12014_v19  ;;  %v5110_v2 = vsel %vm13376_vm3, %v5074_v53, 0.0  ;;  %v13418_v28 = vpop.f32.mrf.mxu1 }
 0x3cc   : > { %5531 = vmatmul.bf16.gmra.mxu1 %v5383_v11  ;;  %v1208_v29 = vsub.s32 %v13329_v49, %v1207_v14  ;;  %v1234_v25 = vadd.s32 %v1233_v44, %v1224_v30  ;;  %5829 = vmatmul.bf16.gmra.mxu2 %v5621_v52  ;;  %vm15407_vm0 = vsmask.f32 4352  ;;  %v13411_v10 = vor.u32 %v6408_v4, %v6405_v17  ;;  %v4352_v11 = vpop.f32.mrf.mxu2 }
 0x3cd   : > { %v5947_v22 = vsel %vm15407_vm0, %v13320_v59, %v13396_v16  ;;  %v1243_v0 = vand.u32 65535, %v13403_v3  ;;  %v1244_v43 = vshrl.u32 %v13403_v3, 16  ;;  %v4655_v41 = vadd.f32 %v4610_v24, %v4395_v8  ;;  %vm15408_vm3 = vmmov %vm15407_vm0  ;;  %15409 = vst [vmem:[#allocation28_spill] sm:$0xff] %v13418_v28 }
 0x3ce   : > { %6100 = vmatmul.bf16.gmra.mxu3 %v5947_v22  ;;  %vm1442_vm15 = vcmp.ne.s32.totalorder %v1208_v29, 0  ;;  %vm1478_vm1 = vcmp.lt.s32.totalorder %v1208_v29, 0  ;;  %v1550_v53 = vadd.s32 18, %v1208_v29  ;;  %v1235_v27 = vshrl.u32 %v1234_v25, 4 }
 0x3cf   : > { %vm1514_vm5 = vmand %vm1478_vm1, %vm1442_vm15  ;;  %v6410_v49 = vsel %vm15408_vm3, %v13344_v50, %v13411_v10  ;;  %v1246_v30 = vmul.u32 14564, %v1243_v0  ;;  %v1247_v59 = vmul.u32 58254, %v1243_v0  ;;  %v1248_v51 = vmul.u32 14564, %v1244_v43 }
 0x3d0   : > { %v1586_v17 = vsel %vm1514_vm5, %v1550_v53, %v1208_v29  ;;  %v1236_v14 = vmul.u32 18, %v1235_v27  ;;  %6618 = vmatmul.bf16.gmra.mxu0 %v6410_v49  ;;  %v4963_v44 = vadd.f32 %v4918_v31, %v4655_v41  ;;  %v13421_v18 = vadd.s32 248, %v12014_v19 }
 0x3d1   : > { %vm13423_vm0 = vcmp.lt.s32.totalorder %v1586_v17, 16  ;;  %v15410_v52 = vmov 0  ;;  %v1249_v4 = vmul.u32 58254, %v1244_v43  ;;  %v1250_v50 = vshll.u32 %v1247_v59, 16 }
 0x3d2   : > { %v15411_v52 = vsel %vm13423_vm0, 4294967295, %v15410_v52  ;;  %v1252_v37 = vshll.u32 %v1248_v51, 16  ;;  %v15413_v8 = vmax.f32 %v13371_v47, 0.0  ;;  %v1237_v31 = vsub.s32 %v13347_v21, %v1236_v14  ;;  %v15416_v14 = vld [vmem:[#allocation33_spill] sm:$0xff] }
 0x3d3   : > { %15412 = vst [vmem:[#allocation29_spill] sm:$0xff] %v15411_v52  ;;  %v13433_v29 = vadd.f32 %v13148_v26, %v5001_v48  ;;  %v5002_v25 = vmul.f32 %v13127_v23, %v4963_v44  ;;  %vm1254_vm3 = vc.u32 %v1246_v30, %v1250_v50  ;;  %v1256_v0 = vadd.s32 %v1250_v50, %v1246_v30  ;;  %v15417_v44 = vld [vmem:[#allocation19_spill] sm:$0xff] }
 0x3d4   : > { %v5111_v24 = vsel %vm13423_vm0, %v15413_v8, 0.0  ;;  %v4396_v41 = vadd.f32 %v4352_v11, %v13142_v45  ;;  %vm1443_vm15 = vcmp.ne.s32.totalorder %v1237_v31, 0  ;;  %vm1479_vm1 = vcmp.lt.s32.totalorder %v1237_v31, 0 }
 0x3d5   : > { %v10346_v22 = vpack.c.bf16 %v5111_v24, %v5110_v2  ;;  %v1551_v43 = vadd.s32 18, %v1237_v31  ;;  %v1255_v47 = vsel %vm1254_vm3, 1, %v15209_v5  ;;  %vm13438_vm5 = vmand %vm1479_vm1, %vm1443_vm15  ;;  %v1251_v21 = vshrl.u32 %v1247_v59, 16  ;;  %v4612_v2 = vpop.f32.mrf.mxu3 }
 0x3d6   : > { %v1257_v48 = vadd.s32 %v1255_v47, %v1249_v4  ;;  %vm1258_vm0 = vc.u32 %v1256_v0, %v1252_v37  ;;  %v1272_v27 = vand.u32 65535, %v13421_v18  ;;  %v1273_v30 = vshrl.u32 %v13421_v18, 16 }
 0x3d7   : > { %10694 = vst [vmem:[#allocation2 + $0x78] sm:$0xff] %v10346_v22   ;;  %v1587_v49 = vsel %vm13438_vm5, %v1551_v43, %v1237_v31  ;;  %v1259_v45 = vsel %vm1258_vm0, 1, %v15209_v5  ;;  %v4656_v17 = vadd.f32 %v4612_v2, %v4396_v41  ;;  %v13449_v11 = vadd.f32 %v15417_v44, %v15416_v14  ;;  %v10999_v41 = vld [vmem:[#allocation2 + $0x38] sm:$0xff] }
 0x3d8   : > { %v5076_v50 = vmax.f32 %v13433_v29, 0.0  ;;  %v1253_v59 = vshrl.u32 %v1248_v51, 16  ;;  %v1261_v4 = vadd.s32 %v1259_v45, %v1257_v48  ;;  %v13453_v37 = vadd.f32 %v13148_v26, %v5002_v25  ;;  %v13459_v51 = vpop.f32.mrf.mxu0  ;;  %v13461_v48 = vpop.f32.mrf.mxu1 }
 0x3d9   : > { %v1275_v8 = vmul.u32 14564, %v1272_v27  ;;  %v1276_v24 = vmul.u32 58254, %v1272_v27  ;;  %v1277_v22 = vmul.u32 14564, %v1273_v30  ;;  %vm13455_vm3 = vcmp.lt.s32.totalorder %v1587_v49, 16  ;;  %v4355_v49 = vpop.f32.mrf.mxu2 }
 0x3da   : > { %v15418_v31 = vmov 0  ;;  %v1262_v0 = vadd.s32 %v1261_v4, %v1251_v21  ;;  %v5623_v43 = vshrl.u32 %v10999_v41, 16  ;;  %v5626_v47 = vshll.u32 %v10999_v41, 16 }
 0x3db   : > { %v15419_v31 = vsel %vm13455_vm3, 4294967295, %v15418_v31  ;;  %v1278_v53 = vmul.u32 58254, %v1273_v30  ;;  %v1279_v2 = vshll.u32 %v1276_v24, 16  ;;  %v1281_v14 = vshll.u32 %v1277_v22, 16 }
 0x3dc   : > { %15420 = vst [vmem:[#allocation33_spill] sm:$0xff] %v15419_v31  ;;  %v4964_v29 = vadd.f32 %v4920_v39, %v4656_v17  ;;  %v1263_v25 = vadd.s32 %v1262_v0, %v1253_v59  ;;  %v1280_v45 = vshrl.u32 %v1276_v24, 16  ;;  %v5625_v27 = vrot.slane %v5623_v43, 2  ;;  %v10704_v17 = vld [vmem:[#allocation2 + $0x40] sm:$0xff]  }
 0x3dd   : > { %v5628_v44 = vrot.slane %v5626_v47, 3  ;;  %vm1283_vm0 = vc.u32 %v1275_v8, %v1279_v2  ;;  %v1285_v32 = vadd.s32 %v1279_v2, %v1275_v8  ;;  %v5948_v21 = vrot.slane %v5623_v43, 3 }
 0x3de   : > { %v13463_v52 = vld [vmem:[#allocation2 + $0x78] sm:$0xff]  ;;  %v5949_v4 = vrot.slane %v5626_v47, 4  ;;  %v1264_v41 = vshrl.u32 %v1263_v25, 4  ;;  %v1282_v30 = vshrl.u32 %v1277_v22, 16  ;;  %v1284_v58 = vsel %vm1283_vm0, 1, %v15209_v5 }
 0x3df   : > { %v13466_v39 = vor.u32 %v5628_v44, %v5625_v27  ;;  %v1286_v38 = vadd.s32 %v1284_v58, %v1278_v53  ;;  %vm1287_vm15 = vc.u32 %v1285_v32, %v1281_v14  ;;  %v15088_v59 = vrot.slane %v13463_v52, 3  ;;  %v4615_v14 = vpop.f32.mrf.mxu3 }
 0x3e0   : > { %v13469_v24 = vor.u32 %v5949_v4, %v5948_v21  ;;  %v1265_v0 = vmul.u32 18, %v1264_v41  ;;  %v1288_v8 = vsel %vm1287_vm15, 1, %v15209_v5  ;;  %v5003_v2 = vmul.f32 %v13127_v23, %v4964_v29 }
 0x3e1   : > { %vm15421_vm1 = vsmask.f32 5376  ;;  %v1290_v43 = vadd.s32 %v1288_v8, %v1286_v38  ;;  %v15422_v47 = vrot.slane %v13384_v33, 3  ;;  %vm15423_vm5 = vcmask 1044480  }
 0x3e2   : > { %v5630_v22 = vsel %vm15421_vm1, %v13389_v13, %v13466_v39  ;;  %vm15424_vm0 = vsmask.f32 4352  ;;  %v6412_v53 = vshrl.u32 %v10704_v17, 16  ;;  %v1266_v23 = vsub.s32 %v13403_v3, %v1265_v0  ;;  %v15425_v13 = vld [vmem:[#allocation32_spill] sm:$0xff]  ;;  %v13497_v0 = vpop.f32.mrf.mxu0 }
 0x3e3   : > { %v5385_v58 = vsel %vm15423_vm5, %v15422_v47, %v15088_v59  ;;  %5834 = vmatmul.bf16.gmra.mxu2 %v5630_v22  ;;  %v5951_v32 = vsel %vm15424_vm0, %v13396_v16, %v13469_v24  ;;  %v6415_v29 = vshll.u32 %v10704_v17, 16  ;;  %v4397_v38 = vadd.f32 %v4355_v49, %v15425_v13  ;;  %v4357_v47 = vpop.f32.mrf.mxu2 }
 0x3e4   : > { %5536 = vmatmul.bf16.gmra.mxu1 %v5385_v58  ;;  %6105 = vmatmul.bf16.gmra.mxu3 %v5951_v32  ;;  %v13487_v25 = vadd.s32 256, %v12014_v19  ;;  %v5077_v33 = vmax.f32 %v13453_v37, 0.0  ;;  %v1291_v27 = vadd.s32 %v1290_v43, %v1280_v45  ;;  %v6414_v44 = vrot.slane %v6412_v53, 3  ;;  %v13499_v37 = vpop.f32.mrf.mxu1 }
 0x3e5   : > { %v13491_v21 = vadd.s32 264, %v12014_v19  ;;  %vm1444_vm15 = vcmp.ne.s32.totalorder %v1266_v23, 0  ;;  %vm1480_vm1 = vcmp.lt.s32.totalorder %v1266_v23, 0  ;;  %v1552_v16 = vadd.s32 18, %v1266_v23  ;;  %15426 = vst [vmem:[#allocation19_spill] sm:$0xff] %v13499_v37 }
 0x3e6   : > { %v6417_v4 = vrot.slane %v6415_v29, 4  ;;  %v5112_v3 = vsel %vm13455_vm3, %v5076_v50, 0.0  ;;  %vm1516_vm5 = vmand %vm1480_vm1, %vm1444_vm15  ;;  %v1292_v41 = vadd.s32 %v1291_v27, %v1282_v30  ;;  %v1301_v49 = vand.u32 65535, %v13487_v25  ;;  %v15431_v27 = vld [vmem:[#allocation21_spill] sm:$0xff] }
 0x3e7   : > { %v1302_v17 = vshrl.u32 %v13487_v25, 16  ;;  %v1588_v45 = vsel %vm1516_vm5, %v1552_v16, %v1266_v23  ;;  %v13502_v8 = vadd.f32 %v13148_v26, %v5003_v2  ;;  %v4657_v43 = vadd.f32 %v4615_v14, %v4397_v38 }
 0x3e8   : > { %v13504_v22 = vor.u32 %v6417_v4, %v6414_v44  ;;  %vm13506_vm0 = vcmp.lt.s32.totalorder %v1588_v45, 16  ;;  %v15427_v50 = vmov 0  ;;  %v1293_v30 = vshrl.u32 %v1292_v41, 4 }
 0x3e9   : > { %v15428_v50 = vsel %vm13506_vm0, 4294967295, %v15427_v50  ;;  %v1304_v58 = vmul.u32 14564, %v1301_v49  ;;  %v1305_v32 = vmul.u32 58254, %v1301_v49  ;;  %v5113_v53 = vsel %vm13506_vm0, %v5077_v33, 0.0  ;;  %v4617_v49 = vpop.f32.mrf.mxu3 }
 0x3ea   : > { %15429 = vst [vmem:[#allocation32_spill] sm:$0xff] %v15428_v50  ;;  %vm15430_vm15 = vsmask.f32 4352  ;;  %v1306_v26 = vmul.u32 14564, %v1302_v17  ;;  %v1330_v2 = vand.u32 65535, %v13491_v21  ;;  %v10351_v29 = vpack.c.bf16 %v5113_v53, %v5112_v3  ;;  %v13536_v50 = vpop.f32.mrf.mxu0 }
 0x3eb   : > { %v6419_v23 = vsel %vm15430_vm15, %v13411_v10, %v13504_v22  ;;  %v1294_v14 = vmul.u32 18, %v1293_v30  ;;  %v1307_v13 = vmul.u32 58254, %v1302_v17  ;;  %v1308_v38 = vshll.u32 %v1305_v32, 16 }
 0x3ec   : > { %6623 = vmatmul.bf16.gmra.mxu0 %v6419_v23  ;;  %v13518_v44 = vadd.f32 %v13007_v15, %v15431_v27  ;;  %v1310_v16 = vshll.u32 %v1306_v26, 16  ;;  %v4965_v4 = vadd.f32 %v13459_v51, %v4657_v43  ;;  %v1331_v33 = vshrl.u32 %v13491_v21, 16  ;;  %10695 = vst [vmem:[#allocation2 + $0x80] sm:$0xff] %v10351_v29   ;;  %v13530_v15 = vld [vmem:[%s15003_s2] ss:$0 sm:$0xff] }
 0x3ed   : > { %v13523_v10 = vsub.s32 %v13421_v18, %v1294_v14  ;;  %vm1312_vm1 = vc.u32 %v1304_v58, %v1308_v38  ;;  %v1314_v3 = vadd.s32 %v1308_v38, %v1304_v58  ;;  %v1334_v45 = vmul.u32 58254, %v1330_v2  ;;  %v11001_v23 = vld [vmem:[#allocation2 + $0x40] sm:$0xff] }
 0x3ee   : > { %v1313_v17 = vsel %vm1312_vm1, 1, %v15209_v5  ;;  %v5004_v51 = vmul.f32 %v13530_v15, %v4965_v4  ;;  %v1335_v43 = vmul.u32 14564, %v1331_v33  ;;  %v4398_v18 = vadd.f32 %v4357_v47, %v13449_v11  ;;  %v13538_v4 = vpop.f32.mrf.mxu1 }
 0x3ef   : > { %v1315_v30 = vadd.s32 %v1313_v17, %v1307_v13  ;;  %v1333_v53 = vmul.u32 14564, %v1330_v2  ;;  %v5632_v29 = vshrl.u32 %v11001_v23, 16  ;;  %v1309_v14 = vshrl.u32 %v1305_v32, 16  ;;  %v13547_v32 = vld [vmem:[%s15004_s3] ss:$0 sm:$0xff]  ;;  %v4360_v2 = vpop.f32.mrf.mxu2 }
 0x3f0   : > { %v1311_v58 = vshrl.u32 %v1306_v26, 16  ;;  %vm1316_vm5 = vc.u32 %v1314_v3, %v1310_v16  ;;  %v1337_v38 = vshll.u32 %v1334_v45, 16  ;;  %vm1445_vm15 = vcmp.ne.s32.totalorder %v13523_v10, 0 }
 0x3f1   : > { %v1317_v27 = vsel %vm1316_vm5, 1, %v15209_v5  ;;  %v1336_v41 = vmul.u32 58254, %v1331_v33  ;;  %v1339_v59 = vshll.u32 %v1335_v43, 16  ;;  %v13542_v11 = vadd.s32 18, %v13523_v10 }
 0x3f2   : > { %v1319_v47 = vadd.s32 %v1317_v27, %v1315_v30  ;;  %v13550_v26 = vadd.f32 %v13547_v32, %v5004_v51  ;;  %v1338_v13 = vshrl.u32 %v1334_v45, 16  ;;  %vm1341_vm5 = vc.u32 %v1333_v53, %v1337_v38  ;;  %v10705_v27 = vld [vmem:[#allocation2 + $0x48] sm:$0xff]  }
 0x3f3   : > { %v1343_v16 = vadd.s32 %v1337_v38, %v1333_v53  ;;  %v4658_v33 = vadd.f32 %v4617_v49, %v4398_v18  ;;  %v1342_v17 = vsel %vm1341_vm5, 1, %v15209_v5  ;;  %v13553_v31 = vld [vmem:[#allocation2 + $0x80] sm:$0xff]  ;;  %v5634_v37 = vrot.slane %v5632_v29, 2 }
 0x3f4   : > { %v1320_v3 = vadd.s32 %v1319_v47, %v1309_v14  ;;  %v5635_v30 = vshll.u32 %v11001_v23, 16  ;;  %v1340_v42 = vshrl.u32 %v1335_v43, 16  ;;  %v1344_v40 = vadd.s32 %v1342_v17, %v1336_v41 }
 0x3f5   : > { %vm1345_vm1 = vc.u32 %v1343_v16, %v1339_v59  ;;  %v5952_v12 = vrot.slane %v5632_v29, 3  ;;  %vm15432_vm0 = vcmp.lt.s32.totalorder %v13523_v10, 0  ;;  %v15098_v18 = vrot.slane %v13553_v31, 3  ;;  %v4620_v29 = vpop.f32.mrf.mxu3 }
 0x3f6   : > { %vm13559_vm3 = vmand %vm15432_vm0, %vm1445_vm15  ;;  %v1321_v49 = vadd.s32 %v1320_v3, %v1311_v58  ;;  %v1346_v45 = vsel %vm1345_vm1, 1, %v15209_v5  ;;  %v5637_v53 = vrot.slane %v5635_v30, 3  ;;  %v4966_v43 = vadd.f32 %v13497_v0, %v4658_v33 }
 0x3f7   : > { %v1348_v23 = vadd.s32 %v1346_v45, %v1344_v40  ;;  %v5953_v41 = vrot.slane %v5635_v30, 4  ;;  %v6421_v59 = vshrl.u32 %v10705_v27, 16  ;;  %v15435_v38 = vrot.slane %v13463_v52, 3  ;;  %v15438_v45 = vld [vmem:[#allocation20_spill] sm:$0xff] }
 0x3f8   : > { %v1322_v14 = vshrl.u32 %v1321_v49, 4  ;;  %vm15436_vm0 = vcmask 1044480   ;;  %v13571_v16 = vor.u32 %v5637_v53, %v5634_v37  ;;  %v6424_v58 = vshll.u32 %v10705_v27, 16 }
 0x3f9   : > { %v5387_v47 = vsel %vm15436_vm0, %v15435_v38, %v15098_v18  ;;  %v1589_v40 = vsel %vm13559_vm3, %v13542_v11, %v13523_v10  ;;  %v1349_v3 = vadd.s32 %v1348_v23, %v1338_v13  ;;  %v13577_v0 = vor.u32 %v5953_v41, %v5952_v12  ;;  %v13590_v11 = vpop.f32.mrf.mxu0  ;;  %v13592_v13 = vpop.f32.mrf.mxu1 }
 0x3fa   : > { %5541 = vmatmul.bf16.gmra.mxu1 %v5387_v47  ;;  %v6423_v33 = vrot.slane %v6421_v59, 3  ;;  %v1323_v17 = vmul.u32 18, %v1322_v14  ;;  %vm15437_vm15 = vsmask.f32 5376  ;;  %v6426_v49 = vrot.slane %v6424_v58, 4 }
 0x3fb   : > { %v5639_v30 = vsel %vm15437_vm15, %v13466_v39, %v13571_v16  ;;  %v4399_v37 = vadd.f32 %v4360_v2, %v15438_v45  ;;  %v5079_v27 = vmax.f32 %v13550_v26, 0.0  ;;  %v1350_v53 = vadd.s32 %v1349_v3, %v1340_v42  ;;  %v4362_v26 = vpop.f32.mrf.mxu2  ;;  %v10135_v45 = vld [vmem:[#allocation8 + $0x100] sm:$0xff] }
 0x3fc   : > { %5839 = vmatmul.bf16.gmra.mxu2 %v5639_v30  ;;  %vm15439_vm3 = vsmask.f32 4352  ;;  %v13588_v12 = vadd.s32 272, %v12014_v19  ;;  %v1324_v39 = vsub.s32 %v13487_v25, %v1323_v17  ;;  %v5005_v51 = vmul.f32 %v13530_v15, %v4966_v43  ;;  %6828 = vmatpush.bf16.msrb.mxu1 %v10135_v45 }
 0x3fd   : > { %v5955_v10 = vsel %vm15439_vm3, %v13469_v24, %v13577_v0  ;;  %v13596_v2 = vor.u32 %v6426_v49, %v6423_v33  ;;  %v4659_v42 = vadd.f32 %v4620_v29, %v4399_v37  ;;  %v1351_v23 = vshrl.u32 %v1350_v53, 4  ;;  %vm15440_vm0 = vmmov %vm15439_vm3  ;;  %v4622_v58 = vpop.f32.mrf.mxu3 }
 0x3fe   : > { %6110 = vmatmul.bf16.gmra.mxu3 %v5955_v10  ;;  %v1359_v41 = vand.u32 65535, %v13588_v12  ;;  %v1360_v24 = vshrl.u32 %v13588_v12, 16  ;;  %v13601_v59 = vadd.s32 280, %v12014_v19  ;;  %vm1446_vm1 = vcmp.ne.s32.totalorder %v1324_v39, 0 }
 0x3ff   : > { %vm1482_vm5 = vcmp.lt.s32.totalorder %v1324_v39, 0  ;;  %v1554_v14 = vadd.s32 18, %v1324_v39  ;;  %v6428_v25 = vsel %vm15440_vm0, %v13504_v22, %v13596_v2  ;;  %vm13606_vm15 = vcmp.lt.s32.totalorder %v1589_v40, 16 }
 0x400   : > { %v15441_v43 = vmov 0  ;;  %vm1518_vm3 = vmand %vm1482_vm5, %vm1446_vm1  ;;  %v1352_v29 = vmul.u32 18, %v1351_v23  ;;  %6628 = vmatmul.bf16.gmra.mxu0 %v6428_v25  ;;  %v1363_v38 = vmul.u32 58254, %v1359_v41  ;;  %v13610_v47 = vmul.u32 14564, %v1360_v24 }
 0x401   : > { %v15442_v43 = vsel %vm13606_vm15, 4294967295, %v15441_v43  ;;  %v1590_v19 = vsel %vm1518_vm3, %v1554_v14, %v1324_v39  ;;  %v13613_v3 = vadd.f32 %v13547_v32, %v5005_v51  ;;  %v1362_v33 = vmul.u32 14564, %v1359_v41  ;;  %v13634_v23 = vpop.f32.mrf.mxu0 }
 0x402   : > { %15443 = vst [vmem:[#allocation21_spill] sm:$0xff] %v15442_v43  ;;  %v4967_v17 = vadd.f32 %v13536_v50, %v4659_v42  ;;  %vm13616_vm4 = vcmp.lt.s32.totalorder %v1590_v19, 16  ;;  %v15444_v22 = vmov 0  ;;  %v1353_v40 = vsub.s32 %v13491_v21, %v1352_v29  ;;  %v13632_v42 = vpop.f32.mrf.mxu1 }
 0x403   : > { %v15445_v22 = vsel %vm13616_vm4, 4294967295, %v15444_v22  ;;  %v1366_v30 = vshll.u32 %v1363_v38, 16  ;;  %v1388_v49 = vand.u32 65535, %v13601_v59  ;;  %v15447_v37 = vmax.f32 %v13502_v8, 0.0 }
 0x404   : > { %15446 = vst [vmem:[#allocation20_spill] sm:$0xff] %v15445_v22  ;;  %v5115_v10 = vsel %vm13616_vm4, %v5079_v27, 0.0  ;;  %v1365_v39 = vmul.u32 58254, %v1360_v24  ;;  %v1368_v50 = vshll.u32 %v13610_v47, 16  ;;  %vm1447_vm1 = vcmp.ne.s32.totalorder %v1353_v40, 0  ;;  %v13637_v27 = vpop.f32.mrf.mxu2 }
 0x405   : > { %v5114_v53 = vsel %vm13606_vm15, %v15447_v37, 0.0  ;;  %vm1483_vm5 = vcmp.lt.s32.totalorder %v1353_v40, 0  ;;  %v5006_v21 = vmul.f32 %v13530_v15, %v4967_v17  ;;  %v1555_v8 = vadd.s32 18, %v1353_v40  ;;  %v6076_v22 = vpop.f32.mrf.mxu3 }
 0x406   : > { %v13629_v51 = vpack.c.bf16 %v5115_v10, %v5114_v53  ;;  %vm1370_vm0 = vc.u32 %v1362_v33, %v1366_v30  ;;  %v1372_v41 = vadd.s32 %v1366_v30, %v1362_v33  ;;  %v1389_v14 = vshrl.u32 %v13601_v59, 16  ;;  %vm13640_vm3 = vmand %vm1483_vm5, %vm1447_vm1 }
 0x407   : > { %v1371_v29 = vsel %vm1370_vm0, 1, %v15209_v5  ;;  %v4400_v19 = vadd.f32 %v4362_v26, %v13518_v44  ;;  %v1392_v17 = vmul.u32 58254, %v1388_v49  ;;  %v1367_v45 = vshrl.u32 %v1363_v38, 16 }
 0x408   : > { %10696 = vst [vmem:[#allocation2 + $0x88] sm:$0xff] %v13629_v51   ;;  %v1373_v37 = vadd.s32 %v1371_v29, %v1365_v39  ;;  %vm1374_vm4 = vc.u32 %v1372_v41, %v1368_v50  ;;  %v1391_v33 = vmul.u32 14564, %v1388_v49  ;;  %v1369_v30 = vshrl.u32 %v13610_v47, 16  ;;  %v11003_v39 = vld [vmem:[#allocation2 + $0x48] sm:$0xff] }
 0x409   : > { %v1375_v53 = vsel %vm1374_vm4, 1, %v15209_v5  ;;  %v13650_v10 = vadd.f32 %v13547_v32, %v5006_v21  ;;  %v1393_v18 = vmul.u32 14564, %v1389_v14  ;;  %v1591_v25 = vsel %vm13640_vm3, %v1555_v8, %v1353_v40  ;;  %v10168_v21 = vld [vmem:[#allocation8 + $0x178] sm:$0xff] }
 0x40a   : > { %v1377_v43 = vadd.s32 %v1375_v53, %v1373_v37  ;;  %v1394_v46 = vmul.u32 58254, %v1389_v14  ;;  %v1395_v44 = vshll.u32 %v1392_v17, 16  ;;  %v1396_v26 = vshrl.u32 %v1392_v17, 16  ;;  %v13659_v17 = vpop.f32.mrf.mxu1  ;;  %v13661_v37 = vpop.f32.mrf.mxu0  ;;  %7317 = vmatpush.bf16.msra.mxu2 %v10168_v21 }
 0x40b   : > { %v1397_v38 = vshll.u32 %v1393_v18, 16  ;;  %v5641_v50 = vshrl.u32 %v11003_v39, 16  ;;  %v5644_v49 = vshll.u32 %v11003_v39, 16  ;;  %v4660_v29 = vadd.f32 %v4622_v58, %v4400_v19 }
 0x40c   : > { %v1378_v41 = vadd.s32 %v1377_v43, %v1367_v45  ;;  %vm1399_vm1 = vc.u32 %v1391_v33, %v1395_v44  ;;  %v1401_v47 = vadd.s32 %v1395_v44, %v1391_v33  ;;  %vm13654_vm4 = vcmp.lt.s32.totalorder %v1591_v25, 16  ;;  %v5807_v19 = vpop.f32.mrf.mxu2 }
 0x40d   : > { %v15450_v57 = vmov 0  ;;  %v1400_v40 = vsel %vm1399_vm1, 1, %v15209_v5  ;;  %v5643_v8 = vrot.slane %v5641_v50, 2  ;;  %v5646_v14 = vrot.slane %v5644_v49, 3 }
 0x40e   : > { %v15451_v57 = vsel %vm13654_vm4, 4294967295, %v15450_v57  ;;  %v5956_v24 = vrot.slane %v5641_v50, 3  ;;  %v1379_v43 = vadd.s32 %v1378_v41, %v1369_v30  ;;  %v1398_v45 = vshrl.u32 %v1393_v18, 16 }
 0x40f   : > { %15452 = vst [vmem:[#allocation53_spill] sm:$0xff] %v15451_v57  ;;  %v1402_v33 = vadd.s32 %v1400_v40, %v1394_v46  ;;  %vm1403_vm5 = vc.u32 %v1401_v47, %v1397_v38  ;;  %v13663_v58 = vld [vmem:[#allocation2 + $0x88] sm:$0xff]  ;;  %v13666_v53 = vor.u32 %v5646_v14, %v5643_v8  ;;  %v5957_v44 = vrot.slane %v5644_v49, 4  ;;  %v6078_v47 = vpop.f32.mrf.mxu3  ;;  %v11004_v14 = vld [vmem:[#allocation2 + $0x50] sm:$0xff] }
 0x410   : > { %v1404_v25 = vsel %vm1403_vm5, 1, %v15209_v5  ;;  %v6430_v39 = vshrl.u32 %v10706_v36, 16  ;;  %v1380_v50 = vshrl.u32 %v1379_v43, 4  ;;  %v4968_v28 = vadd.f32 %v13590_v11, %v4660_v29 }
 0x411   : > { %v1406_v35 = vadd.s32 %v1404_v25, %v1402_v33  ;;  %v5388_v30 = vrot.slane %v13663_v58, 3  ;;  %vm15453_vm0 = vsmask.f32 5376  ;;  %v13673_v18 = vor.u32 %v5957_v44, %v5956_v24 }
 0x412   : > { %v5648_v46 = vsel %vm15453_vm0, %v13571_v16, %v13666_v53  ;;  %v6432_v38 = vrot.slane %v6430_v39, 3  ;;  %v6433_v41 = vshll.u32 %v10706_v36, 16  ;;  %v1381_v21 = vmul.u32 18, %v1380_v50  ;;  %v13697_v44 = vpop.f32.mrf.mxu0 }
 0x413   : > { %v5081_v49 = vmax.f32 %v13650_v10, 0.0  ;;  %v1407_v40 = vadd.s32 %v1406_v35, %v1396_v26  ;;  %v15454_v56 = vrot.slane %v13553_v31, 3  ;;  %vm15455_vm3 = vcmask 1044480   ;;  %5844 = vmatmul.bf16.gmra.mxu2 %v5648_v46  ;;  %v10201_v46 = vld [vmem:[#allocation8 + $0x1f8] sm:$0xff] }
 0x414   : > { %vm15456_vm1 = vsmask.f32 4352  ;;  %v6435_v29 = vrot.slane %v6433_v41, 4  ;;  %v5806_v36 = vadd.f32 %v13637_v27, %v13037_v20  ;;  %v5808_v8 = vadd.f32 %v5807_v19, %v13066_v34  ;;  %v5810_v27 = vpop.f32.mrf.mxu2  ;;  %8072 = vmatpush.bf16.msra.mxu0 %v10201_v46 }
 0x415   : > { %v5389_v11 = vsel %vm15455_vm3, %v15454_v56, %v5388_v30  ;;  %v5959_v16 = vsel %vm15456_vm1, %v13577_v0, %v13673_v18  ;;  %v1382_v35 = vsub.s32 %v13588_v12, %v1381_v21  ;;  %v1408_v10 = vadd.s32 %v1407_v40, %v1398_v45  ;;  %v13695_v0 = vpop.f32.mrf.mxu1 }
 0x416   : > { %5546 = vmatmul.bf16.gmra.mxu1 %v5389_v11  ;;  %v5007_v26 = vmul.f32 %v13530_v15, %v4968_v28  ;;  %6115 = vmatmul.bf16.gmra.mxu3 %v5959_v16  ;;  %v5650_v24 = vshrl.u32 %v11004_v14, 16  ;;  %v13689_v43 = vor.u32 %v6435_v29, %v6432_v38  ;;  %v13691_v33 = vadd.f32 %v6076_v22, %v5806_v36  ;;  %v10707_v15 = vld [vmem:[#allocation2 + $0x58] sm:$0xff]  }
 0x417   : > { %v13693_v25 = vadd.f32 %v6078_v47, %v5808_v8  ;;  %v5653_v20 = vshll.u32 %v11004_v14, 16  ;;  %vm1448_vm5 = vcmp.ne.s32.totalorder %v1382_v35, 0  ;;  %vm1484_vm0 = vcmp.lt.s32.totalorder %v1382_v35, 0  ;;  %v6081_v21 = vpop.f32.mrf.mxu3 }
 0x418   : > { %v1556_v34 = vadd.s32 18, %v1382_v35  ;;  %v1409_v12 = vshrl.u32 %v1408_v10, 4  ;;  %vm1520_vm3 = vmand %vm1484_vm0, %vm1448_vm5  ;;  %v6437_v28 = vsel %vm15456_vm1, %v13596_v2, %v13689_v43  ;;  %v15457_v22 = vmax.f32 %v13613_v3, 0.0 }
 0x419   : > { %v5046_v50 = vadd.f32 %v13547_v32, %v5007_v26  ;;  %6633 = vmatmul.bf16.gmra.mxu0 %v6437_v28  ;;  %v15458_v38 = vmov 0  ;;  %v5652_v41 = vrot.slane %v5650_v24, 2  ;;  %v5655_v47 = vrot.slane %v5653_v20, 3 }
 0x41a   : > { %v5116_v45 = vsel %vm13654_vm4, %v15457_v22, 0.0  ;;  %v1592_v19 = vsel %vm1520_vm3, %v1556_v34, %v1382_v35  ;;  %v1410_v39 = vmul.u32 18, %v1409_v12  ;;  %v5811_v2 = vadd.f32 %v5810_v27, %v13101_v62  ;;  %v10209_v62 = vld [vmem:[#allocation8 + $0x238] sm:$0xff]  ;;  %v13724_v10 = vpop.f32.mrf.mxu0 }
 0x41b   : > { %vm13707_vm15 = vcmp.lt.s32.totalorder %v1592_v19, 16  ;;  %v5960_v56 = vrot.slane %v5650_v24, 3  ;;  %v6439_v11 = vshrl.u32 %v10707_v15, 16  ;;  %v5961_v16 = vrot.slane %v5653_v20, 4  ;;  %15461 = vst [vmem:[#allocation55_spill] sm:$0xff] %v13724_v10  ;;  %8379 = vmatpush.bf16.msra.mxu1 %v10209_v62 }
 0x41c   : > { %v15459_v38 = vsel %vm13707_vm15, 4294967295, %v15458_v38  ;;  %v5117_v3 = vsel %vm13707_vm15, %v5081_v49, 0.0  ;;  %v1411_v40 = vsub.s32 %v13601_v59, %v1410_v39  ;;  %v6442_v29 = vshll.u32 %v10707_v15, 16  ;;  %v13726_v14 = vpop.f32.mrf.mxu2 }
 0x41d   : > { %15460 = vst [vmem:[#allocation54_spill] sm:$0xff] %v15459_v38  ;;  %v13715_v32 = vpack.c.bf16 %v5117_v3, %v5116_v45  ;;  %v13717_v36 = vadd.f32 %v6081_v21, %v5811_v2  ;;  %v5082_v35 = vmax.f32 %v5046_v50, 0.0  ;;  %v13720_v49 = vor.u32 %v5655_v47, %v5652_v41  ;;  %v13722_v59 = vpop.f32.mrf.mxu1  ;;  %v11005_v47 = vld [vmem:[#allocation2 + $0x58] sm:$0xff]  ;;  %v11007_v38 = vld [vmem:[#allocation2 + $0x10] sm:$0xff]  }
 0x41e   : > { %vm1449_vm5 = vcmp.ne.s32.totalorder %v1411_v40, 0  ;;  %vm1485_vm0 = vcmp.lt.s32.totalorder %v1411_v40, 0  ;;  %v1557_v8 = vadd.s32 18, %v1411_v40  ;;  %15462 = vst [vmem:[#allocation56_spill] sm:$0xff] %v13726_v14  ;;  %v15463_v24 = vmov 0  ;;  %v13747_v3 = vld [vmem:[#allocation2 + $0x14] sm:$0xff]  }
 0x41f   : > { %10697 = vst [vmem:[#allocation2 + $0x90] sm:$0xff] %v13715_v32   ;;  %vm1521_vm3 = vmand %vm1485_vm0, %vm1449_vm5  ;;  %v5962_v20 = vor.u32 %v5961_v16, %v5960_v56  ;;  %v6441_v34 = vrot.slane %v6439_v11, 3  ;;  %v6444_v12 = vrot.slane %v6442_v29, 4  ;;  %vm15466_vm5 = vsmask.f32 5376  ;;  %v13737_v22 = vpop.f32.mrf.mxu3  ;;  %v10708_v29 = vld [vmem:[#allocation2 + $0x60] sm:$0xff]  }
 0x420   : > { %v1593_v26 = vsel %vm1521_vm3, %v1557_v8, %v1411_v40  ;;  %v5657_v15 = vsel %vm15466_vm5, %v13666_v53, %v13720_v49  ;;  %15467 = vst [vmem:[#allocation58_spill] sm:$0xff] %v13737_v22  ;;  %vm15468_vm0 = vsmask.f32 4352  ;;  %v5659_v2 = vshrl.u32 %v11005_v47, 16  ;;  %v11162_v40 = vld [vmem:[#allocation2 + $0x14] sm:$0xf0] }
 0x421   : > { %vm13728_vm1 = vcmp.lt.s32.totalorder %v1593_v26, 16  ;;  %v5963_v45 = vsel %vm15468_vm0, %v13673_v18, %v5962_v20  ;;  %v13741_v19 = vor.u32 %v6444_v12, %v6441_v34  ;;  %v5662_v21 = vshll.u32 %v11005_v47, 16  ;;  %vm15469_vm3 = vmmov %vm15468_vm0  ;;  %v11163_v16 = vld [vmem:[#allocation2 + $0x14] sm:$0xe] }
 0x422   : > { %v15464_v24 = vsel %vm13728_vm1, 4294967295, %v15463_v24  ;;  %v5118_v27 = vsel %vm13728_vm1, %v5082_v35, 0.0  ;;  %v13745_v41 = vpop.f32.mrf.mxu0  ;;  %v5661_v35 = vrot.slane %v5659_v2, 2  ;;  %v5964_v34 = vrot.slane %v5659_v2, 3 }
 0x423   : > { %15465 = vst [vmem:[#allocation57_spill] sm:$0xff] %v15464_v24  ;;  %v5154_v28 = vpack.c.bf16 %v5118_v27, %v5118_v27  ;;  %5849 = vmatmul.bf16.gmra.mxu2 %v5657_v15  ;;  %v6446_v18 = vsel %vm15469_vm3, %v13689_v43, %v13741_v19  ;;  %v5664_v62 = vrot.slane %v5662_v21, 3  ;;  %vm15470_vm5 = vcmask 1044480  }
 0x424   : > { %v5815_v53 = vpop.f32.mrf.mxu2  ;;  %v5965_v43 = vrot.slane %v5662_v21, 4  ;;  %v6451_v15 = vshll.u32 %v10708_v29, 16  ;;  %vm15473_vm0 = vsmask.f32 5376  ;;  %v10365_v57 = vunpack.c.l.b16 %v11007_v38 }
 0x425   : > { %5190 = vst [vmem:[#allocation2 + $0x98] sm:$0xf] %v5154_v28  ;;  %v13743_v46 = vpop.f32.mrf.mxu1  ;;  %v5816_v11 = vadd.f32 %v5815_v53, %v13180_v54  ;;  %v6448_v28 = vshrl.u32 %v10708_v29, 16  ;;  %v10167_v54 = vld [vmem:[#allocation8 + $0x170] sm:$0xff]  ;;  %v13765_v47 = vor.u32 %v5664_v62, %v5661_v35  ;;  %v15478_v38 = vunpack.c.l.b16 %v13003_v1 }
 0x426   : > { %6120 = vmatmul.bf16.gmra.mxu3 %v5963_v45  ;;  %v5227_v39 = vld [vmem:[#allocation2 + $0x90] sm:$0x7]  ;;  %v13761_v45 = vld [vmem:[#allocation2 + $0x1c] sm:$0xff]  ;;  %7318 = vmatpush.bf16.msra.mxu2 %v10167_v54 }
 0x427   : > { %v5335_v50 = vunpack.c.l.b16 %v5227_v39  ;;  %v6086_v26 = vpop.f32.mrf.mxu3  ;;  %v10192_v39 = vld [vmem:[#allocation8 + $0x1b0] sm:$0xff]  ;;  %v6450_v21 = vrot.slane %v6448_v28, 3  ;;  %v15110_v29 = vshrl.u32 %v13761_v45, 16 }
 0x428   : > { %v13756_v12 = vadd.f32 %v6086_v26, %v5816_v11  ;;  %7814 = vmatpush.bf16.msra.mxu3 %v10192_v39  ;;  %v6453_v11 = vrot.slane %v6451_v15, 4  ;;  %v11006_v39 = vld [vmem:[#allocation2 + $0x60] sm:$0xff] }
 0x429   : > { %v13752_v56 = vpack.c.b16 %v5335_v50, %v5335_v50  ;;  %6638 = vmatmul.bf16.gmra.mxu0 %v6446_v18  ;;  %v13763_v50 = vor.u32 %v11163_v16, %v11162_v40  ;;  %v5666_v16 = vsel %vm15473_vm0, %v13720_v49, %v13765_v47  ;;  %v8236_v26 = vrot.slane %v15110_v29, 1 }
 0x42a   : > { %v13769_v2 = vpop.f32.mrf.mxu0  ;;  %v5668_v24 = vshrl.u32 %v11006_v39, 16  ;;  %vm15476_vm0 = vsmask.f32 6400 }
 0x42b   : > { %v5390_v8 = vrot.slane %v13752_v56, 3  ;;  %15471 = vst [vmem:[#allocation59_spill] sm:$0xff] %v13769_v2  ;;  %v8229_v40 = vshrl.u32 %v13763_v50, 16  ;;  %v8232_v62 = vshll.u32 %v13763_v50, 16  ;;  %v13800_v2 = vld [vmem:[#allocation2 + $0x24] sm:$0xff] }
 0x42c   : > { %v13771_v18 = vpop.f32.mrf.mxu2 }
 0x42d   : > { %v5391_v27 = vsel %vm15470_vm5, %v5388_v30, %v5390_v8  ;;  %v13767_v53 = vpop.f32.mrf.mxu1  ;;  %15472 = vst [vmem:[#allocation60_spill] sm:$0xff] %v13771_v18  ;;  %v13773_v30 = vor.u32 %v5965_v43, %v5964_v34  ;;  %v15111_v8 = vshll.u32 %v13761_v45, 16  ;;  %v8231_v43 = vrot.slane %v8229_v40, 1  ;;  %vm15475_vm5 = vmmov %vm15469_vm3 }
 0x42e   : > { %5551 = vmatmul.bf16.gmra.mxu1 %v5391_v27  ;;  %v6454_v27 = vor.u32 %v6453_v11, %v6450_v21  ;;  %v8234_v28 = vrot.slane %v8232_v62, 2  ;;  %v10709_v11 = vld [vmem:[#allocation2 + $0x68] sm:$0xff]   ;;  %v5670_v62 = vrot.slane %v5668_v24, 2  ;;  %vm15484_vm1 = vmmov %vm15475_vm5 }
 0x42f   : > { %v13781_v35 = vpop.f32.mrf.mxu3  ;;  %v5967_v34 = vsel %vm15469_vm3, %v5962_v20, %v13773_v30  ;;  %v8237_v15 = vrot.slane %v15111_v8, 2  ;;  %vm15481_vm3 = vsmask.f32 5376 }
 0x430   : > { %15474 = vst [vmem:[#allocation61_spill] sm:$0xff] %v13781_v35  ;;  %v8235_v6 = vor.u32 %v8234_v28, %v8231_v43  ;;  %v6455_v20 = vsel %vm15475_vm5, %v13741_v19, %v6454_v27  ;;  %v5968_v43 = vrot.slane %v5668_v24, 3  ;;  %v6457_v19 = vshrl.u32 %v10709_v11, 16 }
 0x431   : > { %v8238_v55 = vor.u32 %v8237_v15, %v8236_v26  ;;  %v6460_v15 = vshll.u32 %v10709_v11, 16 }
 0x432   : > { %v13792_v49 = vpop.f32.mrf.mxu0 }
 0x433   : > { %5854 = vmatmul.bf16.gmra.mxu2 %v5666_v16  ;;  %v5671_v16 = vshll.u32 %v11006_v39, 16  ;;  %v13798_v40 = vsel %vm15476_vm0, %v8235_v6, %v8238_v55  ;;  %v6737_v39 = vpack.c.b16 %v10365_v57, %v15478_v38  ;;  %v10208_v6 = vld [vmem:[#allocation8 + $0x230] sm:$0xff] }
 0x434   : > { %v5820_v29 = vpop.f32.mrf.mxu2  ;;  %15477 = vst [vmem:[#allocation62_spill] sm:$0xff] %v13798_v40  ;;  %8380 = vmatpush.bf16.msra.mxu1 %v10208_v6 }
 0x435   : > { %v13790_v54 = vpop.f32.mrf.mxu1  ;;  %v5821_v21 = vadd.f32 %v5820_v29, %v13248_v7  ;;  %v5969_v28 = vrot.slane %v5671_v16, 4  ;;  %v15115_v7 = vshll.u32 %v13800_v2, 16  ;;  %v10200_v29 = vld [vmem:[#allocation8 + $0x1f0] sm:$0xff] }
 0x436   : > { %6125 = vmatmul.bf16.gmra.mxu3 %v5967_v34  ;;  %v5673_v34 = vrot.slane %v5671_v16, 3  ;;  %8073 = vmatpush.bf16.msra.mxu0 %v10200_v29  ;;  %v6459_v16 = vrot.slane %v6457_v19, 3 }
 0x437   : > { %v6091_v8 = vpop.f32.mrf.mxu3  ;;  %v8241_v57 = vrot.slane %v15115_v7, 2 }
 0x438   : > { %v13804_v26 = vadd.f32 %v6091_v8, %v5821_v21  ;;  %v5674_v40 = vor.u32 %v5673_v34, %v5670_v62  ;;  %v5970_v8 = vor.u32 %v5969_v28, %v5968_v43  ;;  %v6462_v21 = vrot.slane %v6460_v15, 4  ;;  %v11008_v43 = vld [vmem:[#allocation2 + $0x68] sm:$0xff] }
 0x439   : > { %6643 = vmatmul.bf16.gmra.mxu0 %v6455_v20  ;;  %v15114_v20 = vshrl.u32 %v13800_v2, 16  ;;  %v5677_v28 = vshrl.u32 %v11008_v43, 16  ;;  %v5680_v19 = vshll.u32 %v11008_v43, 16 }
 0x43a   : > { %v13810_v35 = vpop.f32.mrf.mxu0  ;;  %v5675_v62 = vsel %vm15481_vm3, %v13765_v47, %v5674_v40  ;;  %v5971_v38 = vsel %vm15475_vm5, %v13773_v30, %v5970_v8 }
 0x43b   : > { %15479 = vst [vmem:[#allocation63_spill] sm:$0xff] %v13810_v35  ;;  %v8240_v24 = vrot.slane %v15114_v20, 1  ;;  %v5679_v30 = vrot.slane %v5677_v28, 2  ;;  %v5972_v20 = vrot.slane %v5677_v28, 3 }
 0x43c   : > { %v13814_v1 = vpop.f32.mrf.mxu2 }
 0x43d   : > { %v13808_v5 = vpop.f32.mrf.mxu1  ;;  %15480 = vst [vmem:[#allocation64_spill] sm:$0xff] %v13814_v1  ;;  %v8242_v11 = vor.u32 %v8241_v57, %v8240_v24 }
 0x43e   : > { %6829 = vmatmul.bf16.vlgmr.msrb.gmra.mxu1 %v6737_v39  ;;  %v6463_v39 = vor.u32 %v6462_v21, %v6459_v16  ;;  %v5682_v16 = vrot.slane %v5680_v19, 3 }
 0x43f   : > { %v13820_v34 = vpop.f32.mrf.mxu3  ;;  %v13825_v29 = vsel %vm15476_vm0, %v8238_v55, %v8242_v11  ;;  %v13833_v55 = vld [vmem:[#allocation2 + $0x2c] sm:$0xff] }
 0x440   : > { %15482 = vst [vmem:[#allocation65_spill] sm:$0xff] %v13820_v34  ;;  %v6464_v57 = vsel %vm15484_vm1, %v6454_v27, %v6463_v39  ;;  %v15116_v27 = vshll.u32 %v13833_v55, 16  ;;  %v10166_v34 = vld [vmem:[#allocation8 + $0x168] sm:$0xff]  ;;  %vm15487_vm1 = vmmov %vm15481_vm3 }
 0x441   : > { %15483 = vst [vmem:[#allocation66_spill] sm:$0xff] %v13825_v29  ;;  %v5973_v29 = vrot.slane %v5680_v19, 4  ;;  %7319 = vmatpush.bf16.msra.mxu2 %v10166_v34  ;;  %vm15489_vm3 = vmmov %vm15475_vm5 }
 0x442   : > { %v13827_v6 = vpop.f32.mrf.mxu0  ;;  %vm15490_vm5 = vmmov %vm15476_vm0 }
 0x443   : > { %5859 = vmatmul.bf16.gmra.mxu2 %v5675_v62  ;;  %v10710_v62 = vld [vmem:[#allocation2 + $0x70] sm:$0xff]   ;;  %vm15492_vm0 = vmmov %vm15489_vm3 }
 0x444   : > { %v5825_v15 = vpop.f32.mrf.mxu2  ;;  %v6466_v43 = vshrl.u32 %v10710_v62, 16  ;;  %v6469_v35 = vshll.u32 %v10710_v62, 16 }
 0x445   : > { %v13830_v47 = vpop.f32.mrf.mxu1  ;;  %v5826_v24 = vadd.f32 %v5825_v15, %v13315_v9  ;;  %v15117_v9 = vshrl.u32 %v13833_v55, 16  ;;  %v5683_v15 = vor.u32 %v5682_v16, %v5679_v30 }
 0x446   : > { %6130 = vmatmul.bf16.gmra.mxu3 %v5971_v38  ;;  %v10863_v38 = vld [vmem:[#allocation2 + $0x14] sm:$0xff]   ;;  %v6468_v19 = vrot.slane %v6466_v43, 3 }
 0x447   : > { %v6096_v21 = vpop.f32.mrf.mxu3  ;;  %v8244_v28 = vrot.slane %v15117_v9, 1  ;;  %v10191_v9 = vld [vmem:[#allocation8 + $0x1a8] sm:$0xff] }
 0x448   : > { %v13835_v7 = vadd.f32 %v6096_v21, %v5826_v24  ;;  %v5974_v24 = vor.u32 %v5973_v29, %v5972_v20  ;;  %v6471_v21 = vrot.slane %v6469_v35, 4  ;;  %v11009_v20 = vld [vmem:[#allocation2 + $0x70] sm:$0xff]  ;;  %7815 = vmatpush.bf16.msra.mxu3 %v10191_v9 }
 0x449   : > { %6648 = vmatmul.bf16.gmra.mxu0 %v6464_v57  ;;  %v8245_v57 = vrot.slane %v15116_v27, 2  ;;  %v5686_v29 = vshrl.u32 %v11009_v20, 16  ;;  %v5689_v35 = vshll.u32 %v11009_v20, 16 }
 0x44a   : > { %v13845_v62 = vpop.f32.mrf.mxu0  ;;  %v5975_v16 = vsel %vm15489_vm3, %v5970_v8, %v5974_v24  ;;  %v6472_v27 = vor.u32 %v6471_v21, %v6468_v19  ;;  %v13860_v21 = vld [vmem:[#allocation2 + $0x34] sm:$0xff]  ;;  %vm15496_vm3 = vmmov %vm15492_vm0 }
 0x44b   : > { %15486 = vst [vmem:[#allocation68_spill] sm:$0xff] %v13845_v62  ;;  %v8246_v18 = vor.u32 %v8245_v57, %v8244_v28  ;;  %v10711_v28 = vld [vmem:[#allocation2 + $0x78] sm:$0xff]   ;;  %v5691_v8 = vrot.slane %v5689_v35, 3  ;;  %v15119_v10 = vshrl.u32 %v13860_v21, 16 }
 0x44c   : > { %v13841_v1 = vpop.f32.mrf.mxu2  ;;  %v6473_v57 = vsel %vm15492_vm0, %v6463_v39, %v6472_v27  ;;  %v5977_v39 = vrot.slane %v5689_v35, 4 }
 0x44d   : > { %15485 = vst [vmem:[#allocation67_spill] sm:$0xff] %v13841_v1  ;;  %v13848_v63 = vpop.f32.mrf.mxu1  ;;  %v13854_v34 = vsel %vm15490_vm5, %v8242_v11, %v8246_v18  ;;  %v10865_v11 = vld [vmem:[#allocation2 + $0x1c] sm:$0xff]   ;;  %v8248_v9 = vrot.slane %v15119_v10, 1 }
 0x44e   : > { %6834 = vmatmul.bf16.gmra.mxu1 %v10863_v38  ;;  %v5684_v38 = vsel %vm15487_vm1, %v5674_v40, %v5683_v15  ;;  %15491 = vst [vmem:[#allocation70_spill] sm:$0xff] %v13854_v34  ;;  %v10207_v1 = vld [vmem:[#allocation8 + $0x228] sm:$0xff] }
 0x44f   : > { %v13850_v30 = vpop.f32.mrf.mxu3  ;;  %8381 = vmatpush.bf16.msra.mxu1 %v10207_v1 }
 0x450   : > { %15488 = vst [vmem:[#allocation69_spill] sm:$0xff] %v13850_v30  ;;  %v6475_v30 = vshrl.u32 %v10711_v28, 16 }
 0x452   : > { %v13858_v62 = vpop.f32.mrf.mxu0 }
 0x453   : > { %5864 = vmatmul.bf16.gmra.mxu2 %v5684_v38  ;;  %15493 = vst [vmem:[#allocation71_spill] sm:$0xff] %v13858_v62  ;;  %v5688_v38 = vrot.slane %v5686_v29, 2 }
 0x454   : > { %v5830_v43 = vpop.f32.mrf.mxu2 }
 0x455   : > { %v5831_v40 = vadd.f32 %v5830_v43, %v13382_v61  ;;  %v13864_v20 = vpop.f32.mrf.mxu1  ;;  %v6478_v61 = vshll.u32 %v10711_v28, 16  ;;  %v15118_v43 = vshll.u32 %v13860_v21, 16  ;;  %v5692_v22 = vor.u32 %v5691_v8, %v5688_v38 }
 0x456   : > { %6135 = vmatmul.bf16.gmra.mxu3 %v5975_v16  ;;  %v5976_v16 = vrot.slane %v5686_v29, 3 }
 0x457   : > { %v6101_v19 = vpop.f32.mrf.mxu3  ;;  %v8249_v14 = vrot.slane %v15118_v43, 2  ;;  %v6480_v28 = vrot.slane %v6478_v61, 4 }
 0x458   : > { %v13862_v34 = vadd.f32 %v6101_v19, %v5831_v40  ;;  %v5978_v35 = vor.u32 %v5977_v39, %v5976_v16  ;;  %v6477_v40 = vrot.slane %v6475_v30, 3  ;;  %v5695_v30 = vshrl.u32 %v13463_v52, 16  ;;  %v10712_v16 = vld [vmem:[#allocation2 + $0x80] sm:$0xff]  }
 0x459   : > { %6653 = vmatmul.bf16.gmra.mxu0 %v6473_v57  ;;  %v10199_v57 = vld [vmem:[#allocation8 + $0x1e8] sm:$0xff]  ;;  %v8250_v19 = vor.u32 %v8249_v14, %v8248_v9  ;;  %v5698_v14 = vshll.u32 %v13463_v52, 16  ;;  %v6484_v10 = vshrl.u32 %v10712_v16, 16 }
 0x45a   : > { %8074 = vmatpush.bf16.msra.mxu0 %v10199_v57  ;;  %v5979_v38 = vsel %vm15496_vm3, %v5974_v24, %v5978_v35  ;;  %v6481_v8 = vor.u32 %v6480_v28, %v6477_v40  ;;  %v13878_v43 = vpop.f32.mrf.mxu0  ;;  %v5697_v61 = vrot.slane %v5695_v30, 2  ;;  %v13889_v40 = vld [vmem:[#allocation2 + $0x3c] sm:$0xff]  ;;  %v5980_v28 = vrot.slane %v5695_v30, 3  ;;  %vm15501_vm3 = vmmov %vm15490_vm5 }
 0x45b   : > { %15497 = vst [vmem:[#allocation74_spill] sm:$0xff] %v13878_v43  ;;  %v13881_v57 = vsel %vm15490_vm5, %v8246_v18, %v8250_v19  ;;  %v5700_v24 = vrot.slane %v5698_v14, 3  ;;  %v10867_v18 = vld [vmem:[#allocation2 + $0x24] sm:$0xff]   ;;  %v15120_v52 = vshll.u32 %v13889_v40, 16  ;;  %vm15503_vm5 = vmmov %vm15492_vm0 }
 0x45c   : > { %v13870_v29 = vpop.f32.mrf.mxu2  ;;  %15498 = vst [vmem:[#allocation75_spill] sm:$0xff] %v13881_v57  ;;  %v6487_v57 = vshll.u32 %v10712_v16, 16  ;;  %v6486_v16 = vrot.slane %v6484_v10, 3 }
 0x45d   : > { %15494 = vst [vmem:[#allocation72_spill] sm:$0xff] %v13870_v29  ;;  %v13883_v1 = vpop.f32.mrf.mxu1 }
 0x45e   : > { %6839 = vmatmul.bf16.gmra.mxu1 %v10865_v11  ;;  %v5693_v11 = vsel %vm15487_vm1, %v5683_v15, %v5692_v22  ;;  %v6482_v15 = vsel %vm15492_vm0, %v6472_v27, %v6481_v8  ;;  %v15121_v27 = vshrl.u32 %v13889_v40, 16 }
 0x45f   : > { %v13875_v60 = vpop.f32.mrf.mxu3 }
 0x460   : > { %15495 = vst [vmem:[#allocation73_spill] sm:$0xff] %v13875_v60  ;;  %v5701_v60 = vor.u32 %v5700_v24, %v5697_v61  ;;  %v8252_v30 = vrot.slane %v15121_v27, 1  ;;  %v5707_v27 = vshll.u32 %v13553_v31, 16 }
 0x462   : > { %v5702_v29 = vsel %vm15487_vm1, %v5692_v22, %v5701_v60 }
 0x463   : > { %5869 = vmatmul.bf16.gmra.mxu2 %v5693_v11  ;;  %v5981_v11 = vrot.slane %v5698_v14, 4 }
 0x465   : > { %v13901_v14 = vpop.f32.mrf.mxu1 }
 0x466   : > { %6140 = vmatmul.bf16.gmra.mxu3 %v5979_v38  ;;  %v5835_v39 = vpop.f32.mrf.mxu2 }
 0x467   : > { %v5836_v9 = vadd.f32 %v5835_v39, %v13461_v48  ;;  %v6106_v38 = vpop.f32.mrf.mxu3  ;;  %v8253_v48 = vrot.slane %v15120_v52, 2  ;;  %v5982_v39 = vor.u32 %v5981_v11, %v5980_v28  ;;  %v5704_v52 = vshrl.u32 %v13553_v31, 16  ;;  %v10869_v11 = vld [vmem:[#allocation2 + $0x2c] sm:$0xff]  }
 0x468   : > { %v6493_v31 = vshrl.u32 %v13629_v51, 16 }
 0x469   : > { %6658 = vmatmul.bf16.gmra.mxu0 %v6482_v15  ;;  %v13891_v43 = vadd.f32 %v6106_v38, %v5836_v9  ;;  %v13895_v15 = vpop.f32.mrf.mxu0  ;;  %v6489_v9 = vrot.slane %v6487_v57, 4  ;;  %v8254_v38 = vor.u32 %v8253_v48, %v8252_v30  ;;  %v5983_v61 = vsel %vm15503_vm5, %v5978_v35, %v5982_v39  ;;  %v13919_v35 = vld [vmem:[#allocation2 + $0x44] sm:$0xff]  ;;  %vm15509_vm5 = vmmov %vm15492_vm0 }
 0x46a   : > { %15500 = vst [vmem:[#allocation77_spill] sm:$0xff] %v13895_v15  ;;  %v5984_v48 = vrot.slane %v5704_v52, 3  ;;  %v5985_v30 = vrot.slane %v5707_v27, 4 }
 0x46b   : > { %15499 = vst [vmem:[#allocation76_spill] sm:$0xff] %v13891_v43  ;;  %v6490_v24 = vor.u32 %v6489_v9, %v6486_v16  ;;  %v6496_v16 = vshll.u32 %v13629_v51, 16  ;;  %v10165_v9 = vld [vmem:[#allocation8 + $0x160] sm:$0xff]  ;;  %v6495_v51 = vrot.slane %v6493_v31, 3 }
 0x46c   : > { %7320 = vmatpush.bf16.msra.mxu2 %v10165_v9 }
 0x46d   : > { %v6491_v10 = vsel %vm15492_vm0, %v6481_v8, %v6490_v24  ;;  %v13917_v22 = vpop.f32.mrf.mxu1  ;;  %v15123_v8 = vshll.u32 %v13919_v35, 16 }
 0x46e   : > { %6844 = vmatmul.bf16.gmra.mxu1 %v10867_v18  ;;  %v13905_v18 = vsel %vm15501_vm3, %v8250_v19, %v8254_v38  ;;  %v13910_v15 = vpop.f32.mrf.mxu2  ;;  %v5709_v19 = vrot.slane %v5707_v27, 3  ;;  %v13931_v27 = vor.u32 %v5985_v30, %v5984_v48 }
 0x46f   : > { %15502 = vst [vmem:[#allocation78_spill] sm:$0xff] %v13905_v18  ;;  %v13915_v28 = vpop.f32.mrf.mxu3 }
 0x470   : > { %15504 = vst [vmem:[#allocation79_spill] sm:$0xff] %v13910_v15  ;;  %v6498_v15 = vrot.slane %v6496_v16, 4 }
 0x471   : > { %v13913_v57 = vpop.f32.mrf.mxu0  ;;  %15506 = vst [vmem:[#allocation81_spill] sm:$0xff] %v13915_v28  ;;  %v8257_v28 = vrot.slane %v15123_v8, 2 }
 0x472   : > { %15505 = vst [vmem:[#allocation80_spill] sm:$0xff] %v13913_v57  ;;  %v13948_v31 = vor.u32 %v6498_v15, %v6495_v51 }
 0x473   : > { %5874 = vmatmul.bf16.gmra.mxu2 %v5702_v29  ;;  %v5706_v29 = vrot.slane %v5704_v52, 2 }
 0x475   : > { %v13925_v57 = vor.u32 %v5709_v19, %v5706_v29 }
 0x476   : > { %6145 = vmatmul.bf16.gmra.mxu3 %v5983_v61  ;;  %v10190_v61 = vld [vmem:[#allocation8 + $0x1a0] sm:$0xff] }
 0x477   : > { %7816 = vmatpush.bf16.msra.mxu3 %v10190_v61  ;;  %v5711_v29 = vsel %vm15487_vm1, %v5701_v60, %v13925_v57  ;;  %v13944_v30 = vpop.f32.mrf.mxu1  ;;  %v5713_v60 = vshrl.u32 %v13663_v58, 16  ;;  %v6500_v61 = vsel %vm15492_vm0, %v6490_v24, %v13948_v31 }
 0x479   : > { %6663 = vmatmul.bf16.gmra.mxu0 %v6491_v10  ;;  %v15122_v10 = vshrl.u32 %v13919_v35, 16  ;;  %v5988_v8 = vrot.slane %v5713_v60, 3 }
 0x47b   : > { %v8256_v52 = vrot.slane %v15122_v10, 1 }
 0x47d   : > { %v13933_v43 = vor.u32 %v8257_v28, %v8256_v52  ;;  %v13935_v62 = vpop.f32.mrf.mxu0  ;;  %v5987_v28 = vsel %vm15509_vm5, %v5982_v39, %v13931_v27  ;;  %v10871_v52 = vld [vmem:[#allocation2 + $0x34] sm:$0xff]   ;;  %v5715_v39 = vrot.slane %v5713_v60, 2  ;;  %vm15517_vm5 = vmmov %vm15492_vm0 }
 0x47e   : > { %6849 = vmatmul.bf16.gmra.mxu1 %v10869_v11  ;;  %v10198_v11 = vld [vmem:[#allocation8 + $0x1e0] sm:$0xff]  ;;  %15507 = vst [vmem:[#allocation82_spill] sm:$0xff] %v13935_v62  ;;  %v10163_v62 = vld [vmem:[#allocation8 + $0x150] sm:$0xff] }
 0x47f   : > { %v5840_v18 = vpop.f32.mrf.mxu2  ;;  %8075 = vmatpush.bf16.msra.mxu0 %v10198_v11  ;;  %v13942_v48 = vsel %vm15501_vm3, %v8254_v38, %v13933_v43  ;;  %vm15514_vm3 = vmmov %vm15492_vm0  ;;  %vm15518_vm0 = vsmask.f32 6400 }
 0x480   : > { %v5841_v19 = vadd.f32 %v5840_v18, %v13538_v4  ;;  %15508 = vst [vmem:[#allocation83_spill] sm:$0xff] %v13942_v48  ;;  %v5716_v4 = vshll.u32 %v13663_v58, 16  ;;  %v10206_v18 = vld [vmem:[#allocation8 + $0x220] sm:$0xff] }
 0x481   : > { %v6111_v9 = vpop.f32.mrf.mxu3  ;;  %8382 = vmatpush.bf16.msra.mxu1 %v10206_v18  ;;  %v6505_v18 = vshll.u32 %v13715_v32, 16 }
 0x482   : > { %v13950_v16 = vadd.f32 %v6111_v9, %v5841_v19  ;;  %v5718_v15 = vrot.slane %v5716_v4, 3  ;;  %v10164_v19 = vld [vmem:[#allocation8 + $0x158] sm:$0xff]  ;;  %v5989_v24 = vrot.slane %v5716_v4, 4 }
 0x483   : > { %5879 = vmatmul.bf16.gmra.mxu2 %v5711_v29  ;;  %v6502_v29 = vshrl.u32 %v13715_v32, 16  ;;  %v10189_v9 = vld [vmem:[#allocation8 + $0x198] sm:$0xff]  ;;  %v6507_v32 = vrot.slane %v6505_v18, 4  ;;  %v5725_v18 = vshll.u32 %v13752_v56, 16 }
 0x484   : > { %15510 = vst [vmem:[#allocation84_spill] sm:$0xff] %v13950_v16  ;;  %7321 = vmatpush.bf16.msra.mxu2 %v10164_v19  ;;  %v13967_v48 = vor.u32 %v5718_v15, %v5715_v39  ;;  %7817 = vmatpush.bf16.msra.mxu3 %v10189_v9  ;;  %v10188_v16 = vld [vmem:[#allocation8 + $0x190] sm:$0xff]  ;;  %v13970_v60 = vor.u32 %v5989_v24, %v5988_v8  ;;  %v10162_v39 = vld [vmem:[#allocation8 + $0x148] sm:$0xff] }
 0x485   : > { %v13958_v10 = vpop.f32.mrf.mxu0  ;;  %v6504_v4 = vrot.slane %v6502_v29, 3  ;;  %v10187_v15 = vld [vmem:[#allocation8 + $0x188] sm:$0xff] }
 0x486   : > { %6150 = vmatmul.bf16.gmra.mxu3 %v5987_v28  ;;  %v10197_v28 = vld [vmem:[#allocation8 + $0x1d8] sm:$0xff]  ;;  %15511 = vst [vmem:[#allocation85_spill] sm:$0xff] %v13958_v10  ;;  %v10196_v10 = vld [vmem:[#allocation8 + $0x1d0] sm:$0xff]  ;;  %v10195_v19 = vld [vmem:[#allocation8 + $0x1c8] sm:$0xff] }
 0x487   : > { %v5842_v38 = vpop.f32.mrf.mxu2  ;;  %8076 = vmatpush.bf16.msra.mxu0 %v10197_v28  ;;  %v13983_v29 = vor.u32 %v6507_v32, %v6504_v4 }
 0x488   : > { %v5843_v11 = vadd.f32 %v5842_v38, %v13592_v13  ;;  %v5895_v13 = vld [vmem:[#allocation2 + $0x90] sm:$0xf]  ;;  %v13965_v38 = vpop.f32.mrf.mxu1  ;;  %7322 = vmatpush.bf16.msra.mxu2 %v10163_v62  ;;  %7818 = vmatpush.bf16.msra.mxu3 %v10188_v16  ;;  %v5991_v62 = vsel %vm15514_vm3, %v13931_v27, %v13970_v60  ;;  %v10194_v27 = vld [vmem:[#allocation8 + $0x1c0] sm:$0xff]  ;;  %vm15520_vm3 = vmmov %vm15518_vm0 }
 0x489   : > { %6668 = vmatmul.bf16.gmra.mxu0 %v6500_v61  ;;  %v6113_v51 = vpop.f32.mrf.mxu3  ;;  %v13963_v61 = vld [vmem:[#allocation2 + $0x4c] sm:$0xff] }
 0x48a   : > { %v13960_v58 = vadd.f32 %v6113_v51, %v5843_v11  ;;  %v15125_v11 = vshll.u32 %v13963_v61, 16  ;;  %v5914_v51 = vunpack.c.l.b16 %v5895_v13  ;;  %v15124_v9 = vshrl.u32 %v13963_v61, 16  ;;  %v10161_v13 = vld [vmem:[#allocation8 + $0x140] sm:$0xff] }
 0x48b   : > { %8077 = vmatpush.bf16.msra.mxu0 %v10196_v10 }
 0x48c   : > { %15512 = vst [vmem:[#allocation86_spill] sm:$0xff] %v13960_v58  ;;  %v6238_v58 = vld [vmem:[#allocation2 + $0x98] sm:$0xf]  ;;  %v8261_v8 = vrot.slane %v15125_v11, 2  ;;  %v8260_v10 = vrot.slane %v15124_v9, 1  ;;  %7323 = vmatpush.bf16.msra.mxu2 %v10162_v39  ;;  %7819 = vmatpush.bf16.msra.mxu3 %v10187_v15  ;;  %v6509_v39 = vsel %vm15517_vm5, %v13948_v31, %v13983_v29 }
 0x48d   : > { %v13976_v28 = vunpack.c.l.b16 %v6238_v58  ;;  %v5722_v58 = vshrl.u32 %v13752_v56, 16 }
 0x48e   : > { %6854 = vmatmul.bf16.gmra.mxu1 %v10871_v52  ;;  %v5720_v52 = vsel %vm15487_vm1, %v13925_v57, %v13967_v48  ;;  %v5915_v57 = vpack.c.b16 %v5914_v51, %v5914_v51  ;;  %v8262_v4 = vor.u32 %v8261_v8, %v8260_v10  ;;  %v5727_v8 = vrot.slane %v5725_v18, 3  ;;  %v14005_v10 = vld [vmem:[#allocation2 + $0x54] sm:$0xff] }
 0x48f   : > { %15513 = vst [vmem:[#allocation87_spill] sm:$0xff] %v13976_v28  ;;  %8078 = vmatpush.bf16.msra.mxu0 %v10195_v19  ;;  %v6348_v51 = vpack.c.b16 %v13976_v28, %v13976_v28 }
 0x490   : > { %v5993_v11 = vshrl.u32 %v5915_v57, 16  ;;  %v5996_v56 = vshll.u32 %v5915_v57, 16  ;;  %v14001_v15 = vsel %vm15518_vm0, %v13933_v43, %v8262_v4  ;;  %7324 = vmatpush.bf16.msra.mxu2 %v10161_v13  ;;  %v15128_v57 = vshll.u32 %v14005_v10, 16  ;;  %vm15523_vm0 = vmmov %vm15517_vm5 }
 0x491   : > { %15519 = vst [vmem:[#allocation90_spill] sm:$0xff] %v14001_v15  ;;  %v6511_v28 = vshrl.u32 %v6348_v51, 16  ;;  %v6514_v31 = vshll.u32 %v6348_v51, 16  ;;  %v15127_v43 = vshrl.u32 %v14005_v10, 16 }
 0x493   : > { %5884 = vmatmul.bf16.gmra.mxu2 %v5720_v52  ;;  %v10186_v52 = vld [vmem:[#allocation8 + $0x180] sm:$0xff]  ;;  %8079 = vmatpush.bf16.msra.mxu0 %v10194_v27  ;;  %v8264_v18 = vrot.slane %v15127_v43, 1  ;;  %v6516_v51 = vrot.slane %v6514_v31, 4  ;;  %v10143_v43 = vld [vmem:[#allocation2 + $0xc] sm:$0xff] }
 0x494   : > { %7820 = vmatpush.bf16.msra.mxu3 %v10186_v52  ;;  %v8265_v52 = vrot.slane %v15128_v57, 2 }
 0x496   : > { %6155 = vmatmul.bf16.gmra.mxu3 %v5991_v62  ;;  %v13987_v16 = vpop.f32.mrf.mxu0  ;;  %v5845_v24 = vpop.f32.mrf.mxu2  ;;  %v8266_v15 = vor.u32 %v8265_v52, %v8264_v18  ;;  %v7602_v52 = vshll.u32 %v13747_v3, 16 }
 0x497   : > { %15515 = vst [vmem:[#allocation88_spill] sm:$0xff] %v13987_v16  ;;  %v5846_v32 = vadd.f32 %v5845_v24, %v13632_v42  ;;  %v13994_v62 = vpop.f32.mrf.mxu1  ;;  %v5724_v42 = vrot.slane %v5722_v58, 2  ;;  %v10873_v24 = vld [vmem:[#allocation2 + $0x3c] sm:$0xff]   ;;  %v5995_v16 = vrot.slane %v5993_v11, 3 }
 0x498   : > { %15516 = vst [vmem:[#allocation89_spill] sm:$0xff] %v13994_v62  ;;  %v5998_v62 = vrot.slane %v5996_v56, 4 }
 0x499   : > { %v6116_v9 = vpop.f32.mrf.mxu3  ;;  %6673 = vmatmul.bf16.gmra.mxu0 %v6509_v39  ;;  %v5728_v13 = vor.u32 %v5727_v8, %v5724_v42 }
 0x49a   : > { %v14003_v19 = vadd.f32 %v6116_v9, %v5846_v32  ;;  %v5999_v11 = vor.u32 %v5998_v62, %v5995_v16  ;;  %v6513_v32 = vrot.slane %v6511_v28, 3  ;;  %v14027_v16 = vld [vmem:[#allocation2 + $0x14] sm:$0xff] }
 0x49b   : > { %v5729_v42 = vsel %vm15487_vm1, %v13967_v48, %v5728_v13  ;;  %vm15526_vm1 = vsmask.f32 7424 }
 0x49c   : > { %v6000_v8 = vsel %vm15517_vm5, %v13970_v60, %v5999_v11  ;;  %v7111_v60 = vshll.u32 %v14027_v16, 16  ;;  %v10875_v11 = vld [vmem:[#allocation2 + $0x44] sm:$0xff]   ;;  %vm15528_vm5 = vmmov %vm15526_vm1 }
 0x49e   : > { %6859 = vmatmul.bf16.gmra.mxu1 %v10873_v24  ;;  %v14009_v39 = vpop.f32.mrf.mxu0  ;;  %v5847_v9 = vpop.f32.mrf.mxu2 }
 0x49f   : > { %v5848_v58 = vadd.f32 %v5847_v9, %v13659_v17  ;;  %v14018_v24 = vpop.f32.mrf.mxu1  ;;  %v14023_v17 = vsel %vm15520_vm3, %v8262_v4, %v8266_v15  ;;  %v6517_v9 = vor.u32 %v6516_v51, %v6513_v32 }
 0x4a0   : > { %15521 = vst [vmem:[#allocation91_spill] sm:$0xff] %v14023_v17  ;;  %v7600_v17 = vshrl.u32 %v13747_v3, 16  ;;  %v7970_v3 = vrot.slane %v13761_v45, 1 }
 0x4a1   : > { %v6118_v27 = vpop.f32.mrf.mxu3  ;;  %v6518_v48 = vsel %vm15523_vm0, %v13983_v29, %v6517_v9  ;;  %v10205_v29 = vld [vmem:[#allocation8 + $0x218] sm:$0xff]  ;;  %v7113_v9 = vrot.slane %v7111_v60, 1  ;;  %vm15529_vm0 = vcmask 1046528  }
 0x4a2   : > { %v14016_v56 = vadd.f32 %v6118_v27, %v5848_v58  ;;  %v7106_v58 = vshll.u32 %v10143_v43, 16  ;;  %v14040_v27 = vld [vmem:[#allocation2 + $0x5c] sm:$0xff]  ;;  %8383 = vmatpush.bf16.msra.mxu1 %v10205_v29 }
 0x4a3   : > { %5889 = vmatmul.bf16.gmra.mxu2 %v5729_v42  ;;  %v15129_v51 = vshrl.u32 %v14040_v27, 16 }
 0x4a4   : > { %v7108_v32 = vrot.slane %v7106_v58, 1 }
 0x4a6   : > { %6160 = vmatmul.bf16.gmra.mxu3 %v6000_v8  ;;  %v5850_v28 = vpop.f32.mrf.mxu2  ;;  %v14029_v62 = vpop.f32.mrf.mxu0  ;;  %v7104_v8 = vshrl.u32 %v10143_v43, 16 }
 0x4a7   : > { %15522 = vst [vmem:[#allocation92_spill] sm:$0xff] %v14029_v62  ;;  %v5851_v31 = vadd.f32 %v5850_v28, %v13695_v0  ;;  %v15130_v0 = vshll.u32 %v14040_v27, 16  ;;  %v7604_v28 = vrot.slane %v7602_v52, 1 }
 0x4a8   : > { %v7109_v57 = vor.u32 %v7108_v32, %v7104_v8  ;;  %v7969_v8 = vrot.slane %v13763_v50, 1 }
 0x4a9   : > { %v6121_v13 = vpop.f32.mrf.mxu3  ;;  %6678 = vmatmul.bf16.gmra.mxu0 %v6518_v48  ;;  %v8268_v48 = vrot.slane %v15129_v51, 1  ;;  %v7605_v29 = vor.u32 %v7604_v28, %v7600_v17  ;;  %v6684_v17 = vadd.f32 %v13634_v23, %v13691_v33  ;;  %v7115_v23 = vshrl.u32 %v14027_v16, 16 }
 0x4aa   : > { %v14034_v4 = vadd.f32 %v6121_v13, %v5851_v31  ;;  %v8269_v13 = vrot.slane %v15130_v0, 2  ;;  %v7114_v52 = vsel %vm15526_vm1, %v7109_v57, %v7113_v9  ;;  %v15531_v51 = vshll.u32 %v13800_v2, 16 }
 0x4ab   : > { %v14036_v18 = vpop.f32.mrf.mxu1 }
 0x4ac   : > { %15524 = vst [vmem:[#allocation93_spill] sm:$0xff] %v14034_v4  ;;  %v8270_v60 = vor.u32 %v8269_v13, %v8268_v48  ;;  %v7971_v13 = vsel %vm15529_vm0, %v7969_v8, %v7970_v3  ;;  %v7617_v0 = vrot.slane %v15531_v51, 1 }
 0x4ae   : > { %6864 = vmatmul.bf16.gmra.mxu1 %v10875_v11  ;;  %v5852_v42 = vpop.f32.mrf.mxu2  ;;  %v15525_v11 = vshll.u32 %v13761_v45, 16  ;;  %v14052_v4 = vpop.f32.mrf.mxu0 }
 0x4af   : > { %v5853_v31 = vadd.f32 %v5852_v42, %v13722_v59  ;;  %v14060_v42 = vsel %vm15520_vm3, %v8266_v15, %v8270_v60 }
 0x4b0   : > { %v7609_v62 = vrot.slane %v15525_v11, 1  ;;  %15527 = vst [vmem:[#allocation94_spill] sm:$0xff] %v14060_v42 }
 0x4b1   : > { %v6123_v58 = vpop.f32.mrf.mxu3 }
 0x4b2   : > { %v14054_v43 = vadd.f32 %v6123_v58, %v5853_v31  ;;  %v7610_v32 = vsel %vm15528_vm5, %v7605_v29, %v7609_v62  ;;  %v14065_v31 = vld [vmem:[#allocation2 + $0x1c] sm:$0xff]  ;;  %vm15534_vm5 = vmmov %vm15526_vm1 }
 0x4b3   : > { %v14056_v59 = vpop.f32.mrf.mxu1  ;;  %7325 = vmatmul.bf16.vlgmr.msra.gmra.mxu2 %v7114_v52  ;;  %v7119_v58 = vshll.u32 %v14065_v31, 16  ;;  %v14074_v52 = vld [vmem:[#allocation2 + $0x64] sm:$0xff] }
 0x4b4   : > { %v15131_v8 = vshrl.u32 %v14074_v52, 16 }
 0x4b5   : > { %v7121_v33 = vrot.slane %v7119_v58, 1 }
 0x4b6   : > { %7821 = vmatmul.bf16.vlgmr.msra.gmra.mxu3 %v7610_v32  ;;  %v5855_v11 = vpop.f32.mrf.mxu2  ;;  %v14076_v50 = vpop.f32.mrf.mxu0  ;;  %v10877_v32 = vld [vmem:[#allocation2 + $0x4c] sm:$0xff]  }
 0x4b7   : > { %v5856_v48 = vadd.f32 %v5855_v11, %v13743_v46  ;;  %15530 = vst [vmem:[#allocation95_spill] sm:$0xff] %v14076_v50  ;;  %v15132_v46 = vshll.u32 %v14074_v52, 16 }
 0x4b9   : > { %v6126_v57 = vpop.f32.mrf.mxu3  ;;  %8080 = vmatmul.bf16.vlgmr.msra.gmra.mxu0 %v7971_v13  ;;  %v8272_v13 = vrot.slane %v15131_v8, 1 }
 0x4ba   : > { %v14071_v15 = vadd.f32 %v6126_v57, %v5856_v48  ;;  %v8273_v57 = vrot.slane %v15132_v46, 2 }
 0x4bb   : > { %v6830_v28 = vpop.f32.mrf.mxu1 }
 0x4bc   : > { %v14078_v29 = vadd.f32 %v6830_v28, %v6684_v17  ;;  %v7117_v28 = vor.u32 %v7115_v23, %v7113_v9  ;;  %v8274_v16 = vor.u32 %v8273_v57, %v8272_v13  ;;  %v7972_v23 = vrot.slane %v13800_v2, 1 }
 0x4bd   : > { %v6686_v57 = vadd.f32 %v13697_v44, %v13717_v36  ;;  %v10204_v44 = vld [vmem:[#allocation8 + $0x210] sm:$0xff] }
 0x4be   : > { %6869 = vmatmul.bf16.gmra.mxu1 %v10877_v32  ;;  %v5857_v11 = vpop.f32.mrf.mxu2  ;;  %v6685_v32 = vadd.f32 %v13661_v37, %v13693_v25  ;;  %v14100_v9 = vsel %vm15520_vm3, %v8270_v60, %v8274_v16  ;;  %v14104_v37 = vpop.f32.mrf.mxu0 }
 0x4bf   : > { %v5858_v48 = vadd.f32 %v5857_v11, %v13767_v53  ;;  %v7122_v53 = vsel %vm15526_vm1, %v7117_v28, %v7121_v33  ;;  %v15532_v11 = vshrl.u32 %v13761_v45, 16  ;;  %15533 = vst [vmem:[#allocation96_spill] sm:$0xff] %v14100_v9  ;;  %v7973_v45 = vsel %vm15529_vm0, %v7970_v3, %v7972_v23  ;;  %v14112_v28 = vld [vmem:[#allocation2 + $0x6c] sm:$0xff]  ;;  %8384 = vmatpush.bf16.msra.mxu1 %v10204_v44 }
 0x4c1   : > { %v6128_v17 = vpop.f32.mrf.mxu3  ;;  %v7613_v8 = vor.u32 %v15532_v11, %v7609_v62  ;;  %v7123_v11 = vshrl.u32 %v14065_v31, 16 }
 0x4c2   : > { %v14092_v42 = vadd.f32 %v6128_v17, %v5858_v48  ;;  %v10146_v48 = vld [vmem:[#allocation2 + $0x24] sm:$0xff] }
 0x4c3   : > { %v6832_v58 = vpop.f32.mrf.mxu1  ;;  %7330 = vmatmul.bf16.gmra.mxu2 %v7122_v53  ;;  %v7618_v51 = vsel %vm15534_vm5, %v7613_v8, %v7617_v0  ;;  %v7127_v8 = vshll.u32 %v10146_v48, 16  ;;  %v15134_v53 = vshll.u32 %v14112_v28, 16  ;;  %vm15538_vm5 = vmmov %vm15526_vm1 }
 0x4c4   : > { %v14097_v50 = vadd.f32 %v6832_v58, %v6685_v32  ;;  %v10879_v58 = vld [vmem:[#allocation2 + $0x54] sm:$0xff]  }
 0x4c6   : > { %7826 = vmatmul.bf16.gmra.mxu3 %v7618_v51  ;;  %v5860_v25 = vpop.f32.mrf.mxu2  ;;  %v7129_v51 = vrot.slane %v7127_v8, 1  ;;  %v14119_v36 = vpop.f32.mrf.mxu0 }
 0x4c7   : > { %v5861_v13 = vadd.f32 %v5860_v25, %v13790_v54  ;;  %v15133_v54 = vshrl.u32 %v14112_v28, 16 }
 0x4c9   : > { %v6131_v62 = vpop.f32.mrf.mxu3  ;;  %8085 = vmatmul.bf16.gmra.mxu0 %v7973_v45  ;;  %v8277_v45 = vrot.slane %v15134_v53, 2 }
 0x4ca   : > { %v14110_v60 = vadd.f32 %v6131_v62, %v5861_v13  ;;  %v8276_v13 = vrot.slane %v15133_v54, 1 }
 0x4cb   : > { %v6835_v17 = vpop.f32.mrf.mxu1 }
 0x4cc   : > { %v14114_v32 = vadd.f32 %v6835_v17, %v6686_v57  ;;  %v7125_v57 = vor.u32 %v7123_v11, %v7121_v33  ;;  %v15535_v17 = vshll.u32 %v13833_v55, 16  ;;  %v8278_v31 = vor.u32 %v8277_v45, %v8276_v13 }
 0x4cd   : > { %v7974_v11 = vrot.slane %v13833_v55, 1 }
 0x4ce   : > { %6874 = vmatmul.bf16.gmra.mxu1 %v10879_v58  ;;  %v5862_v3 = vpop.f32.mrf.mxu2  ;;  %v7625_v58 = vrot.slane %v15535_v17, 1  ;;  %v7130_v9 = vsel %vm15526_vm1, %v7125_v57, %v7129_v51  ;;  %v14136_v54 = vsel %vm15520_vm3, %v8274_v16, %v8278_v31  ;;  %v14142_v57 = vpop.f32.mrf.mxu0  ;;  %v14148_v17 = vld [vmem:[#allocation2 + $0x74] sm:$0xff] }
 0x4cf   : > { %v5863_v25 = vadd.f32 %v5862_v3, %v13808_v5  ;;  %v15536_v5 = vshrl.u32 %v13800_v2, 16  ;;  %15537 = vst [vmem:[#allocation97_spill] sm:$0xff] %v14136_v54  ;;  %v7975_v45 = vsel %vm15529_vm0, %v7972_v23, %v7974_v11  ;;  %v6688_v2 = vadd.f32 %v13745_v41, %v13756_v12 }
 0x4d0   : > { %v15135_v23 = vshrl.u32 %v14148_v17, 16 }
 0x4d1   : > { %v6133_v62 = vpop.f32.mrf.mxu3  ;;  %v7621_v3 = vor.u32 %v15536_v5, %v7617_v0 }
 0x4d2   : > { %v14128_v46 = vadd.f32 %v6133_v62, %v5863_v25  ;;  %v10147_v25 = vld [vmem:[#allocation2 + $0x2c] sm:$0xff]  ;;  %v8280_v12 = vrot.slane %v15135_v23, 1 }
 0x4d3   : > { %v14130_v8 = vpop.f32.mrf.mxu1  ;;  %7335 = vmatmul.bf16.gmra.mxu2 %v7130_v9  ;;  %v7626_v33 = vsel %vm15538_vm5, %v7621_v3, %v7625_v58  ;;  %v7135_v9 = vshll.u32 %v10147_v25, 16  ;;  %v10881_v3 = vld [vmem:[#allocation2 + $0x5c] sm:$0xff]   ;;  %vm15543_vm5 = vmmov %vm15526_vm1 }
 0x4d5   : > { %v7137_v53 = vrot.slane %v7135_v9, 1 }
 0x4d6   : > { %7831 = vmatmul.bf16.gmra.mxu3 %v7626_v33  ;;  %v5865_v44 = vpop.f32.mrf.mxu2 }
 0x4d7   : > { %v5866_v13 = vadd.f32 %v5865_v44, %v13830_v47  ;;  %v15136_v47 = vshll.u32 %v14148_v17, 16  ;;  %v7131_v44 = vshrl.u32 %v10146_v48, 16 }
 0x4d9   : > { %v6136_v62 = vpop.f32.mrf.mxu3  ;;  %8090 = vmatmul.bf16.gmra.mxu0 %v7975_v45 }
 0x4da   : > { %v14146_v0 = vadd.f32 %v6136_v62, %v5866_v13  ;;  %v8281_v13 = vrot.slane %v15136_v47, 2  ;;  %v7133_v62 = vor.u32 %v7131_v44, %v7129_v51  ;;  %v7976_v44 = vrot.slane %v13860_v21, 1 }
 0x4db   : > { %v6840_v16 = vpop.f32.mrf.mxu1  ;;  %v7139_v47 = vshrl.u32 %v10147_v25, 16 }
 0x4dc   : > { %15539 = vst [vmem:[#allocation98_spill] sm:$0xff] %v14146_v0  ;;  %v14150_v5 = vadd.f32 %v6840_v16, %v6688_v2  ;;  %v15540_v2 = vshll.u32 %v13860_v21, 16  ;;  %v8282_v0 = vor.u32 %v8281_v13, %v8280_v12  ;;  %v7138_v48 = vsel %vm15526_vm1, %v7133_v62, %v7137_v53  ;;  %v10148_v12 = vld [vmem:[#allocation2 + $0x34] sm:$0xff] }
 0x4de   : > { %6879 = vmatmul.bf16.gmra.mxu1 %v10881_v3  ;;  %v5867_v33 = vpop.f32.mrf.mxu2  ;;  %v7633_v16 = vrot.slane %v15540_v2, 1  ;;  %v14171_v23 = vsel %vm15520_vm3, %v8278_v31, %v8282_v0  ;;  %v7143_v2 = vshll.u32 %v10148_v12, 16 }
 0x4df   : > { %v5868_v41 = vadd.f32 %v5867_v33, %v13848_v63  ;;  %v15541_v63 = vshrl.u32 %v13833_v55, 16  ;;  %v14168_v33 = vpop.f32.mrf.mxu0  ;;  %15542 = vst [vmem:[#allocation99_spill] sm:$0xff] %v14171_v23  ;;  %v6690_v55 = vadd.f32 %v13792_v49, %v13804_v26 }
 0x4e0   : > { %v7145_v49 = vrot.slane %v7143_v2, 1 }
 0x4e1   : > { %v6138_v45 = vpop.f32.mrf.mxu3  ;;  %v7629_v9 = vor.u32 %v15541_v63, %v7625_v58 }
 0x4e2   : > { %v14161_v54 = vadd.f32 %v6138_v45, %v5868_v41  ;;  %v7977_v45 = vsel %vm15529_vm0, %v7974_v11, %v7976_v44 }
 0x4e3   : > { %v14163_v3 = vpop.f32.mrf.mxu1  ;;  %7340 = vmatmul.bf16.gmra.mxu2 %v7138_v48  ;;  %v7634_v51 = vsel %vm15543_vm5, %v7629_v9, %v7633_v16  ;;  %v14181_v48 = vld [vmem:[#allocation2 + $0x7c] sm:$0xff]  ;;  %v10883_v9 = vld [vmem:[#allocation2 + $0x64] sm:$0xff]   ;;  %vm15550_vm5 = vmmov %vm15526_vm1 }
 0x4e6   : > { %7836 = vmatmul.bf16.gmra.mxu3 %v7634_v51  ;;  %v5870_v41 = vpop.f32.mrf.mxu2  ;;  %v15138_v51 = vshll.u32 %v14181_v48, 16 }
 0x4e7   : > { %v5871_v13 = vadd.f32 %v5870_v41, %v13864_v20  ;;  %v15137_v20 = vshrl.u32 %v14181_v48, 16  ;;  %v14187_v41 = vpop.f32.mrf.mxu0 }
 0x4e8   : > { %15545 = vst [vmem:[#allocation101_spill] sm:$0xff] %v14187_v41 }
 0x4e9   : > { %v6141_v62 = vpop.f32.mrf.mxu3  ;;  %8095 = vmatmul.bf16.gmra.mxu0 %v7977_v45  ;;  %v8285_v45 = vrot.slane %v15138_v51, 2 }
 0x4ea   : > { %v14179_v58 = vadd.f32 %v6141_v62, %v5871_v13  ;;  %v8284_v13 = vrot.slane %v15137_v20, 1 }
 0x4eb   : > { %v6845_v31 = vpop.f32.mrf.mxu1 }
 0x4ec   : > { %15544 = vst [vmem:[#allocation100_spill] sm:$0xff] %v14179_v58  ;;  %v14183_v63 = vadd.f32 %v6845_v31, %v6690_v55  ;;  %v7141_v55 = vor.u32 %v7139_v47, %v7137_v53  ;;  %v15546_v31 = vshll.u32 %v13889_v40, 16  ;;  %v8286_v41 = vor.u32 %v8285_v45, %v8284_v13  ;;  %v10149_v13 = vld [vmem:[#allocation2 + $0x3c] sm:$0xff] }
 0x4ed   : > { %v7978_v47 = vrot.slane %v13889_v40, 1 }
 0x4ee   : > { %6884 = vmatmul.bf16.gmra.mxu1 %v10883_v9  ;;  %v5872_v11 = vpop.f32.mrf.mxu2  ;;  %v7641_v23 = vrot.slane %v15546_v31, 1  ;;  %v7146_v25 = vsel %vm15526_vm1, %v7141_v55, %v7145_v49  ;;  %v14204_v20 = vsel %vm15520_vm3, %v8282_v0, %v8286_v41  ;;  %v6692_v55 = vadd.f32 %v13827_v6, %v13835_v7 }
 0x4ef   : > { %v5873_v26 = vadd.f32 %v5872_v11, %v13883_v1  ;;  %v15548_v1 = vshrl.u32 %v13860_v21, 16  ;;  %v10203_v11 = vld [vmem:[#allocation8 + $0x208] sm:$0xff]  ;;  %15549 = vst [vmem:[#allocation103_spill] sm:$0xff] %v14204_v20  ;;  %v14208_v45 = vpop.f32.mrf.mxu0  ;;  %v7979_v21 = vsel %vm15529_vm0, %v7976_v44, %v7978_v47 }
 0x4f0   : > { %8385 = vmatpush.bf16.msra.mxu1 %v10203_v11  ;;  %v10885_v11 = vld [vmem:[#allocation2 + $0x6c] sm:$0xff]  }
 0x4f1   : > { %v6143_v62 = vpop.f32.mrf.mxu3  ;;  %v7637_v2 = vor.u32 %v15548_v1, %v7633_v16  ;;  %v14216_v1 = vld [vmem:[#allocation2 + $0x84] sm:$0xff] }
 0x4f2   : > { %v14196_v58 = vadd.f32 %v6143_v62, %v5873_v26 }
 0x4f3   : > { %v14198_v9 = vpop.f32.mrf.mxu1  ;;  %7345 = vmatmul.bf16.gmra.mxu2 %v7146_v25  ;;  %v7642_v53 = vsel %vm15550_vm5, %v7637_v2, %v7641_v23  ;;  %v7151_v25 = vshll.u32 %v10149_v13, 16  ;;  %vm15557_vm5 = vmmov %vm15526_vm1 }
 0x4f4   : > { %15547 = vst [vmem:[#allocation102_spill] sm:$0xff] %v14196_v58 }
 0x4f5   : > { %v7153_v51 = vrot.slane %v7151_v25, 1  ;;  %v15555_v25 = vshrl.u32 %v13889_v40, 16  ;;  %v15558_v40 = vld [vmem:[#allocation71_spill] sm:$0xff] }
 0x4f6   : > { %7841 = vmatmul.bf16.gmra.mxu3 %v7642_v53  ;;  %v5875_v26 = vpop.f32.mrf.mxu2  ;;  %v15140_v53 = vshll.u32 %v14216_v1, 16 }
 0x4f7   : > { %v5876_v62 = vadd.f32 %v5875_v26, %v13901_v14  ;;  %v15139_v14 = vshrl.u32 %v14216_v1, 16  ;;  %v7147_v26 = vshrl.u32 %v10148_v12, 16  ;;  %v14229_v20 = vpop.f32.mrf.mxu0 }
 0x4f8   : > { %15553 = vst [vmem:[#allocation105_spill] sm:$0xff] %v14229_v20 }
 0x4f9   : > { %v6146_v16 = vpop.f32.mrf.mxu3  ;;  %8100 = vmatmul.bf16.gmra.mxu0 %v7979_v21  ;;  %v8288_v6 = vrot.slane %v15139_v14, 1 }
 0x4fa   : > { %v14214_v0 = vadd.f32 %v6146_v16, %v5876_v62  ;;  %v8289_v62 = vrot.slane %v15140_v53, 2  ;;  %v7149_v16 = vor.u32 %v7147_v26, %v7145_v49  ;;  %v7980_v26 = vrot.slane %v13919_v35, 1  ;;  %v10887_v53 = vld [vmem:[#allocation2 + $0x74] sm:$0xff]  }
 0x4fb   : > { %v6850_v31 = vpop.f32.mrf.mxu1 }
 0x4fc   : > { %15551 = vst [vmem:[#allocation104_spill] sm:$0xff] %v14214_v0  ;;  %v14218_v2 = vadd.f32 %v6850_v31, %v6692_v55  ;;  %v15552_v55 = vshll.u32 %v13919_v35, 16 }
 0x4fe   : > { %6889 = vmatmul.bf16.gmra.mxu1 %v10885_v11  ;;  %v5877_v44 = vpop.f32.mrf.mxu2  ;;  %v7649_v31 = vrot.slane %v15552_v55, 1  ;;  %v8290_v11 = vor.u32 %v8289_v62, %v8288_v6  ;;  %v7981_v62 = vsel %vm15529_vm0, %v7978_v47, %v7980_v26 }
 0x4ff   : > { %v5878_v7 = vadd.f32 %v5877_v44, %v13917_v22  ;;  %v7154_v22 = vsel %vm15526_vm1, %v7149_v16, %v7153_v51  ;;  %v7645_v44 = vor.u32 %v15555_v25, %v7641_v23  ;;  %v6694_v23 = vadd.f32 %v15558_v40, %v13862_v34  ;;  %v14252_v25 = vld [vmem:[#allocation2 + $0x8c] sm:$0xff] }
 0x500   : > { %v14239_v14 = vsel %vm15520_vm3, %v8286_v41, %v8290_v11  ;;  %15560 = vst [vmem:[#allocation108_spill] sm:$0xff] %v14252_v25  ;;  %v15141_v47 = vshrl.u32 %v14252_v25, 16  ;;  %v7155_v34 = vshrl.u32 %v10149_v13, 16 }
 0x501   : > { %v6148_v21 = vpop.f32.mrf.mxu3  ;;  %15556 = vst [vmem:[#allocation107_spill] sm:$0xff] %v14239_v14  ;;  %v7650_v49 = vsel %vm15557_vm5, %v7645_v44, %v7649_v31  ;;  %v14254_v44 = vpop.f32.mrf.mxu0  ;;  %vm15566_vm5 = vmmov %vm15526_vm1 }
 0x502   : > { %v14231_v0 = vadd.f32 %v6148_v21, %v5878_v7  ;;  %v14243_v7 = vld [vmem:[#allocation2 + $0x44] sm:$0xff]  ;;  %15561 = vst [vmem:[#allocation109_spill] sm:$0xff] %v14254_v44 }
 0x503   : > { %v14233_v12 = vpop.f32.mrf.mxu1  ;;  %7350 = vmatmul.bf16.gmra.mxu2 %v7154_v22  ;;  %v7159_v22 = vshll.u32 %v14243_v7, 16 }
 0x504   : > { %15554 = vst [vmem:[#allocation106_spill] sm:$0xff] %v14231_v0 }
 0x506   : > { %7846 = vmatmul.bf16.gmra.mxu3 %v7650_v49  ;;  %v5880_v55 = vpop.f32.mrf.mxu2 }
 0x507   : > { %v5881_v6 = vadd.f32 %v5880_v55, %v13944_v30  ;;  %v15142_v30 = vshll.u32 %v14252_v25, 16  ;;  %v10889_v25 = vld [vmem:[#allocation2 + $0x7c] sm:$0xff]  }
 0x509   : > { %v6151_v21 = vpop.f32.mrf.mxu3  ;;  %8105 = vmatmul.bf16.gmra.mxu0 %v7981_v62  ;;  %v7161_v62 = vrot.slane %v7159_v22, 1  ;;  %v8293_v40 = vrot.slane %v15142_v30, 2 }
 0x50a   : > { %v14249_v16 = vadd.f32 %v6151_v21, %v5881_v6  ;;  %v8292_v21 = vrot.slane %v15141_v47, 1  ;;  %v14276_v47 = vld [vmem:[#allocation2 + $0x9c] sm:$0xff] }
 0x50b   : > { %v6855_v41 = vpop.f32.mrf.mxu1 }
 0x50c   : > { %15559 = vst [vmem:[#allocation71_spill] sm:$0xff] %v14249_v16  ;;  %v14256_v49 = vadd.f32 %v6855_v41, %v6694_v23  ;;  %v7157_v23 = vor.u32 %v7155_v34, %v7153_v51  ;;  %v15562_v41 = vshll.u32 %v13963_v61, 16  ;;  %v8294_v44 = vor.u32 %v8293_v40, %v8292_v21  ;;  %v10151_v40 = vld [vmem:[#allocation2 + $0x4c] sm:$0xff] }
 0x50e   : > { %6894 = vmatmul.bf16.gmra.mxu1 %v10887_v53  ;;  %v5882_v55 = vpop.f32.mrf.mxu2  ;;  %v7657_v16 = vrot.slane %v15562_v41, 1  ;;  %v7162_v13 = vsel %vm15526_vm1, %v7157_v23, %v7161_v62  ;;  %v14279_v51 = vsel %vm15520_vm3, %v8290_v11, %v8294_v44  ;;  %v10202_v23 = vld [vmem:[#allocation8 + $0x200] sm:$0xff]  ;;  %vm15576_vm1 = vmmov %vm15520_vm3 }
 0x50f   : > { %v5883_v6 = vadd.f32 %v5882_v55, %v13965_v38  ;;  %v15564_v38 = vshrl.u32 %v13919_v35, 16  ;;  %v14274_v55 = vld [vmem:[#allocation2 + $0x94] sm:$0xff]  ;;  %15565 = vst [vmem:[#allocation111_spill] sm:$0xff] %v14279_v51  ;;  %8386 = vmatpush.bf16.msra.mxu1 %v10202_v23  ;;  %v15570_v51 = vld [vmem:[#allocation77_spill] sm:$0xff]  ;;  %v7167_v35 = vshll.u32 %v10151_v40, 16  ;;  %vm15578_vm3 = vmmov %vm15576_vm1 }
 0x510   : > { %v15572_v41 = vshll.u32 %v14274_v55, 16 }
 0x511   : > { %v6153_v14 = vpop.f32.mrf.mxu3  ;;  %v7653_v22 = vor.u32 %v15564_v38, %v7649_v31  ;;  %v15145_v31 = vshrl.u32 %v14274_v55, 16 }
 0x512   : > { %v14267_v0 = vadd.f32 %v6153_v14, %v5883_v6  ;;  %v7982_v14 = vrot.slane %v13963_v61, 1  ;;  %v14283_v6 = vpop.f32.mrf.mxu0 }
 0x513   : > { %v14269_v53 = vpop.f32.mrf.mxu1  ;;  %7355 = vmatmul.bf16.gmra.mxu2 %v7162_v13  ;;  %v7658_v34 = vsel %vm15566_vm5, %v7653_v22, %v7657_v16  ;;  %15567 = vst [vmem:[#allocation112_spill] sm:$0xff] %v14283_v6  ;;  %v15568_v13 = vld [vmem:[#allocation89_spill] sm:$0xff]  ;;  %v15569_v22 = vld [vmem:[#allocation76_spill] sm:$0xff]  ;;  %v15146_v6 = vshrl.u32 %v14276_v47, 16  ;;  %v8296_v58 = vrot.slane %v15145_v31, 1  ;;  %v7169_v31 = vrot.slane %v7167_v35, 1 }
 0x514   : > { %15563 = vst [vmem:[#allocation110_spill] sm:$0xff] %v14267_v0  ;;  %v7983_v11 = vsel %vm15529_vm0, %v7980_v26, %v7982_v14  ;;  %v6696_v0 = vadd.f32 %v15570_v51, %v15569_v22  ;;  %v15573_v26 = vshll.u32 %v14276_v47, 16  ;;  %v7163_v22 = vshrl.u32 %v14243_v7, 16  ;;  %vm15583_vm0 = vmmov %vm15566_vm5 }
 0x515   : > { %v15582_v35 = vshrl.u32 %v13963_v61, 16 }
 0x516   : > { %7851 = vmatmul.bf16.gmra.mxu3 %v7658_v34  ;;  %v5885_v21 = vpop.f32.mrf.mxu2 }
 0x517   : > { %v5886_v38 = vadd.f32 %v5885_v21, %v15568_v13  ;;  %v8297_v21 = vrot.slane %v15572_v41, 2  ;;  %v8301_v13 = vrot.slane %v15573_v26, 2 }
 0x519   : > { %v6156_v30 = vpop.f32.mrf.mxu3  ;;  %8110 = vmatmul.bf16.gmra.mxu0 %v7983_v11  ;;  %v8298_v51 = vor.u32 %v8297_v21, %v8296_v58  ;;  %v7165_v58 = vor.u32 %v7163_v22, %v7161_v62  ;;  %v10152_v62 = vld [vmem:[#allocation2 + $0x54] sm:$0xff] }
 0x51a   : > { %v14292_v34 = vadd.f32 %v6156_v30, %v5886_v38  ;;  %v8300_v30 = vrot.slane %v15146_v6, 1  ;;  %v14311_v41 = vpop.f32.mrf.mxu0  ;;  %v15585_v6 = vld [vmem:[#allocation84_spill] sm:$0xff] }
 0x51b   : > { %v6860_v20 = vpop.f32.mrf.mxu1 }
 0x51c   : > { %15571 = vst [vmem:[#allocation89_spill] sm:$0xff] %v14292_v34  ;;  %v14301_v23 = vadd.f32 %v6860_v20, %v6696_v0  ;;  %v14305_v38 = vor.u32 %v8301_v13, %v8300_v30  ;;  %v14309_v34 = vsel %vm15576_vm1, %v8294_v44, %v8298_v51  ;;  %v7170_v44 = vsel %vm15566_vm5, %v7165_v58, %v7169_v31  ;;  %v15586_v58 = vld [vmem:[#allocation82_spill] sm:$0xff]  ;;  %vm15594_vm5 = vmmov %vm15583_vm0 }
 0x51d   : > { %15577 = vst [vmem:[#allocation113_spill] sm:$0xff] %v14309_v34  ;;  %v7661_v30 = vor.u32 %v15582_v35, %v7657_v16  ;;  %vm15584_vm1 = vcmask 1046528  }
 0x51e   : > { %15574 = vst [vmem:[#allocation76_spill] sm:$0xff] %v14301_v23  ;;  %6899 = vmatmul.bf16.gmra.mxu1 %v10889_v25  ;;  %v5887_v11 = vpop.f32.mrf.mxu2  ;;  %v14316_v0 = vsel %vm15578_vm3, %v8298_v51, %v14305_v38  ;;  %v15580_v25 = vshll.u32 %v14005_v10, 16  ;;  %v7984_v51 = vrot.slane %v14005_v10, 1  ;;  %vm15591_vm3 = vmmov %vm15583_vm0 }
 0x51f   : > { %15575 = vst [vmem:[#allocation77_spill] sm:$0xff] %v14305_v38  ;;  %v5888_v20 = vadd.f32 %v5887_v11, %v14018_v24  ;;  %v6698_v38 = vadd.f32 %v15586_v58, %v15585_v6  ;;  %v15589_v6 = vld [vmem:[#allocation86_spill] sm:$0xff] }
 0x520   : > { %15579 = vst [vmem:[#allocation114_spill] sm:$0xff] %v14316_v0  ;;  %v7665_v21 = vrot.slane %v15580_v25, 1  ;;  %v7171_v0 = vshrl.u32 %v10151_v40, 16 }
 0x521   : > { %v6158_v26 = vpop.f32.mrf.mxu3 }
 0x522   : > { %v14320_v13 = vadd.f32 %v6158_v26, %v5888_v20  ;;  %v7666_v24 = vsel %vm15583_vm0, %v7661_v30, %v7665_v21  ;;  %v7985_v20 = vsel %vm15584_vm1, %v7982_v14, %v7984_v51  ;;  %v14331_v25 = vpop.f32.mrf.mxu0  ;;  %v10891_v30 = vld [vmem:[#allocation2 + $0x84] sm:$0xff]   ;;  %v7173_v34 = vor.u32 %v7171_v0, %v7169_v31  ;;  %vm15595_vm0 = vmmov %vm15584_vm1 }
 0x523   : > { %v14322_v7 = vpop.f32.mrf.mxu1  ;;  %7360 = vmatmul.bf16.gmra.mxu2 %v7170_v44  ;;  %v7175_v44 = vshll.u32 %v10152_v62, 16  ;;  %v7986_v31 = vrot.slane %v14040_v27, 1  ;;  %vm15599_vm1 = vmmov %vm15591_vm3 }
 0x524   : > { %15581 = vst [vmem:[#allocation115_spill] sm:$0xff] %v14322_v7  ;;  %v15588_v7 = vshll.u32 %v14040_v27, 16 }
 0x526   : > { %7856 = vmatmul.bf16.gmra.mxu3 %v7666_v24  ;;  %v5890_v11 = vpop.f32.mrf.mxu2  ;;  %v7673_v23 = vrot.slane %v15588_v7, 1  ;;  %v10153_v7 = vld [vmem:[#allocation2 + $0x5c] sm:$0xff] }
 0x527   : > { %v5891_v22 = vadd.f32 %v5890_v11, %v14036_v18  ;;  %v7177_v18 = vrot.slane %v7175_v44, 1 }
 0x529   : > { %v6161_v26 = vpop.f32.mrf.mxu3  ;;  %8115 = vmatmul.bf16.gmra.mxu0 %v7985_v20  ;;  %v15590_v20 = vld [vmem:[#allocation85_spill] sm:$0xff] }
 0x52a   : > { %v14335_v61 = vadd.f32 %v6161_v26, %v5891_v22  ;;  %v6699_v22 = vadd.f32 %v15590_v20, %v15589_v6  ;;  %v14349_v40 = vpop.f32.mrf.mxu0  ;;  %v7183_v20 = vshll.u32 %v10153_v7, 16 }
 0x52b   : > { %v6865_v16 = vpop.f32.mrf.mxu1 }
 0x52c   : > { %v14337_v35 = vadd.f32 %v6865_v16, %v6698_v38  ;;  %v7178_v38 = vsel %vm15591_vm3, %v7173_v34, %v7177_v18  ;;  %v15592_v16 = vshrl.u32 %v14005_v10, 16  ;;  %v15596_v10 = vld [vmem:[#allocation88_spill] sm:$0xff]  ;;  %vm15604_vm3 = vmmov %vm15599_vm1 }
 0x52e   : > { %15587 = vst [vmem:[#allocation84_spill] sm:$0xff] %v14337_v35  ;;  %6904 = vmatmul.bf16.gmra.mxu1 %v10891_v30  ;;  %v5892_v24 = vpop.f32.mrf.mxu2  ;;  %v7669_v30 = vor.u32 %v15592_v16, %v7665_v21  ;;  %v6700_v21 = vadd.f32 %v15596_v10, %v14003_v19  ;;  %v15598_v19 = vshll.u32 %v14074_v52, 16 }
 0x52f   : > { %v5893_v14 = vadd.f32 %v5892_v24, %v14056_v59 }
 0x530   : > { %v7674_v59 = vsel %vm15594_vm5, %v7669_v30, %v7673_v23  ;;  %v7179_v30 = vshrl.u32 %v10152_v62, 16  ;;  %v15601_v62 = vld [vmem:[#allocation23_spill] sm:$0xff]  ;;  %vm15606_vm5 = vmmov %vm15595_vm0 }
 0x531   : > { %v6163_v11 = vpop.f32.mrf.mxu3 }
 0x532   : > { %v14344_v26 = vadd.f32 %v6163_v11, %v5893_v14  ;;  %v7987_v14 = vsel %vm15595_vm0, %v7984_v51, %v7986_v31  ;;  %vm15612_vm0 = vmmov %vm15599_vm1 }
 0x533   : > { %v6867_v58 = vpop.f32.mrf.mxu1  ;;  %7365 = vmatmul.bf16.gmra.mxu2 %v7178_v38  ;;  %v14363_v38 = vpop.f32.mrf.mxu0 }
 0x534   : > { %v14351_v44 = vadd.f32 %v6867_v58, %v6699_v22  ;;  %v10892_v58 = vld [vmem:[#allocation2 + $0x8c] sm:$0xff]  }
 0x536   : > { %15593 = vst [vmem:[#allocation82_spill] sm:$0xff] %v14351_v44  ;;  %7861 = vmatmul.bf16.gmra.mxu3 %v7674_v59  ;;  %v7326_v0 = vpop.f32.mrf.mxu2  ;;  %v7187_v44 = vshrl.u32 %v10153_v7, 16  ;;  %v15613_v7 = vshrl.u32 %v14074_v52, 16 }
 0x537   : > { %v7416_v24 = vadd.f32 %v7326_v0, %v14078_v29  ;;  %v7185_v29 = vrot.slane %v7183_v20, 1  ;;  %v7181_v0 = vor.u32 %v7179_v30, %v7177_v18  ;;  %v15602_v20 = vld [vmem:[#allocation56_spill] sm:$0xff]  ;;  %v15605_v30 = vld [vmem:[#allocation58_spill] sm:$0xff] }
 0x539   : > { %v7822_v34 = vpop.f32.mrf.mxu3  ;;  %8120 = vmatmul.bf16.gmra.mxu0 %v7987_v14  ;;  %v7681_v14 = vrot.slane %v15598_v19, 1  ;;  %v15607_v19 = vld [vmem:[#allocation93_spill] sm:$0xff] }
 0x53a   : > { %v14359_v11 = vadd.f32 %v7822_v34, %v7416_v24  ;;  %v6701_v24 = vadd.f32 %v14009_v39, %v14016_v56  ;;  %v14381_v56 = vld [vmem:[#allocation2 + $0x64] sm:$0xff] }
 0x53b   : > { %v6870_v6 = vpop.f32.mrf.mxu1 }
 0x53c   : > { %v14361_v22 = vadd.f32 %v6870_v6, %v6700_v21  ;;  %v7186_v21 = vsel %vm15599_vm1, %v7181_v0, %v7185_v29  ;;  %v15600_v6 = vshrl.u32 %v14040_v27, 16  ;;  %vm15616_vm1 = vmmov %vm15612_vm0 }
 0x53e   : > { %15597 = vst [vmem:[#allocation86_spill] sm:$0xff] %v14361_v22  ;;  %6909 = vmatmul.bf16.gmra.mxu1 %v10892_v58  ;;  %v7328_v16 = vpop.f32.mrf.mxu2  ;;  %v7677_v58 = vor.u32 %v15600_v6, %v7673_v23  ;;  %v5813_v22 = vadd.f32 %v15602_v20, %v15601_v62  ;;  %v7191_v20 = vshll.u32 %v14381_v56, 16 }
 0x53f   : > { %v7417_v51 = vadd.f32 %v7328_v16, %v14097_v50  ;;  %v7988_v16 = vrot.slane %v14074_v52, 1  ;;  %v15618_v52 = vmov 0  }
 0x540   : > { %v7682_v18 = vsel %vm15604_vm3, %v7677_v58, %v7681_v14  ;;  %8772 = vst [vmem:[%s14421_s18] sm:$0xf] %v15618_v52  ;;  %vm15619_vm3 = vmmov %vm15606_vm5 }
 0x541   : > { %v7824_v59 = vpop.f32.mrf.mxu3  ;;  %v7989_v23 = vsel %vm15606_vm5, %v7986_v31, %v7988_v16  ;;  %8773 = vst [vmem:[%s14421_s18 + $0x4] sm:$0xf] %v15618_v52  ;;  %vm15624_vm5 = vmmov %vm15612_vm0 }
 0x542   : > { %v14370_v34 = vadd.f32 %v7824_v59, %v7417_v51  ;;  %v6169_v51 = vadd.f32 %v15605_v30, %v5813_v22  ;;  %v14384_v59 = vpop.f32.mrf.mxu0  ;;  %8774 = vst [vmem:[%s14421_s18 + $0x8] sm:$0xf] %v15618_v52 }
 0x543   : > { %v6872_v10 = vpop.f32.mrf.mxu1  ;;  %7370 = vmatmul.bf16.gmra.mxu2 %v7186_v21  ;;  %v11010_v21 = vld [vmem:[#allocation2 + $0x90] sm:$0xff]  ;;  %8847 = vst [vmem:[%s14421_s18 + $0x9c] sm:$0xf] %v15618_v52 }
 0x544   : > { %v14377_v50 = vadd.f32 %v6872_v10, %v6701_v24  ;;  %v15608_v24 = vld [vmem:[#allocation92_spill] sm:$0xff]  ;;  %v10430_v6 = vunpack.c.h.b16 %v11010_v21  ;;  %v7189_v21 = vor.u32 %v7187_v44, %v7185_v29  ;;  %8848 = vst [vmem:[%s14421_s18 + $0xa0] sm:$0xf] %v15618_v52 }
 0x545   : > { %v6702_v10 = vadd.f32 %v15608_v24, %v15607_v19  ;;  %v7193_v19 = vrot.slane %v7191_v20, 1  ;;  %v15615_v20 = vld [vmem:[#allocation60_spill] sm:$0xff]  ;;  %8849 = vst [vmem:[%s14421_s18 + $0xa4] sm:$0xf] %v15618_v52 }
 0x546   : > { %15603 = vst [vmem:[#allocation85_spill] sm:$0xff] %v14377_v50  ;;  %7866 = vmatmul.bf16.gmra.mxu3 %v7682_v18  ;;  %v7331_v39 = vpop.f32.mrf.mxu2  ;;  %v15609_v18 = vld [vmem:[#allocation55_spill] sm:$0xff] }
 0x547   : > { %v7418_v27 = vadd.f32 %v7331_v39, %v14114_v32  ;;  %v6687_v22 = vadd.f32 %v15609_v18, %v6169_v51  ;;  %v15610_v50 = vld [vmem:[#allocation87_spill] sm:$0xff]  ;;  %v6703_v51 = vadd.f32 %v14052_v4, %v14054_v43 }
 0x548   : > { %v6754_v32 = vpack.c.b16 %v15610_v50, %v10430_v6  ;;  %v7685_v6 = vor.u32 %v15613_v7, %v7681_v14  ;;  %v14415_v43 = vld [vmem:[#allocation2 + $0x6c] sm:$0xff] }
 0x549   : > { %v7827_v0 = vpop.f32.mrf.mxu3  ;;  %8125 = vmatmul.bf16.gmra.mxu0 %v7989_v23  ;;  %v6923_v31 = vadd.f32 %v14130_v8, %v6687_v22  ;;  %v7194_v8 = vsel %vm15612_vm0, %v7189_v21, %v7193_v19  ;;  %v7990_v22 = vrot.slane %v14112_v28, 1 }
 0x54a   : > { %v14390_v58 = vadd.f32 %v7827_v0, %v7418_v27  ;;  %v15611_v27 = vshll.u32 %v14112_v28, 16  ;;  %v14400_v35 = vpop.f32.mrf.mxu0 }
 0x54b   : > { %v6875_v62 = vpop.f32.mrf.mxu1  ;;  %v7991_v14 = vsel %vm15619_vm3, %v7988_v16, %v7990_v22 }
 0x54c   : > { %v14394_v30 = vadd.f32 %v6875_v62, %v6702_v10  ;;  %v7689_v0 = vrot.slane %v15611_v27, 1  ;;  %v15614_v62 = vld [vmem:[#allocation25_spill] sm:$0xff] }
 0x54d   : > { %v5818_v44 = vadd.f32 %v15615_v20, %v15614_v62  ;;  %v7195_v20 = vshrl.u32 %v14381_v56, 16  ;;  %v15627_v56 = vld [vmem:[#allocation64_spill] sm:$0xff] }
 0x54e   : > { %6914 = vmatmul.bf16.gmra.mxu1 %v6754_v32  ;;  %v7333_v39 = vpop.f32.mrf.mxu2  ;;  %v7690_v18 = vsel %vm15616_vm1, %v7685_v6, %v7689_v0  ;;  %v15617_v32 = vld [vmem:[#allocation61_spill] sm:$0xff]  ;;  %v15622_v6 = vld [vmem:[#allocation62_spill] sm:$0xff]  ;;  %vm15629_vm1 = vmmov %vm15619_vm3 }
 0x54f   : > { %v7419_v23 = vadd.f32 %v7333_v39, %v6923_v31  ;;  %v6171_v31 = vadd.f32 %v15617_v32, %v5818_v44  ;;  %v7197_v32 = vor.u32 %v7195_v20, %v7193_v19  ;;  %vm15633_vm3 = vmmov %vm15612_vm0 }
 0x551   : > { %v7829_v24 = vpop.f32.mrf.mxu3 }
 0x552   : > { %v14404_v10 = vadd.f32 %v7829_v24, %v7419_v23  ;;  %v15620_v24 = vld [vmem:[#allocation95_spill] sm:$0xff]  ;;  %v14438_v7 = vpop.f32.mrf.mxu0 }
 0x553   : > { %v6877_v50 = vpop.f32.mrf.mxu1  ;;  %7375 = vmatmul.bf16.gmra.mxu2 %v7194_v8  ;;  %v6704_v21 = vadd.f32 %v15620_v24, %v14071_v15  ;;  %v15625_v24 = vshrl.u32 %v14112_v28, 16 }
 0x554   : > { %v14411_v29 = vadd.f32 %v6877_v50, %v6703_v51  ;;  %v7199_v51 = vshll.u32 %v14415_v43, 16  ;;  %v15621_v50 = vld [vmem:[#allocation59_spill] sm:$0xff] }
 0x555   : > { %v6689_v8 = vadd.f32 %v15621_v50, %v6171_v31  ;;  %v15623_v31 = vshll.u32 %v14148_v17, 16 }
 0x556   : > { %7871 = vmatmul.bf16.gmra.mxu3 %v7690_v18  ;;  %v7336_v4 = vpop.f32.mrf.mxu2  ;;  %v7201_v44 = vrot.slane %v7199_v51, 1 }
 0x557   : > { %v7420_v39 = vadd.f32 %v7336_v4, %v14150_v5  ;;  %v6925_v15 = vadd.f32 %v14163_v3, %v6689_v8  ;;  %v7992_v8 = vrot.slane %v14148_v17, 1 }
 0x558   : > { %v7202_v3 = vsel %vm15624_vm5, %v7197_v32, %v7201_v44  ;;  %vm15637_vm5 = vmmov %vm15612_vm0 }
 0x559   : > { %v7832_v23 = vpop.f32.mrf.mxu3  ;;  %8130 = vmatmul.bf16.gmra.mxu0 %v7991_v14  ;;  %v6705_v14 = vadd.f32 %v14104_v37, %v14092_v42  ;;  %v10156_v37 = vld [vmem:[#allocation2 + $0x74] sm:$0xff] }
 0x55a   : > { %v14430_v5 = vadd.f32 %v7832_v23, %v7420_v39  ;;  %v7697_v39 = vrot.slane %v15623_v31, 1  ;;  %v7207_v31 = vshll.u32 %v10156_v37, 16 }
 0x55b   : > { %v6880_v27 = vpop.f32.mrf.mxu1 }
 0x55c   : > { %v14440_v16 = vadd.f32 %v6880_v27, %v6704_v21  ;;  %v7693_v21 = vor.u32 %v15625_v24, %v7689_v0  ;;  %v15626_v27 = vld [vmem:[#allocation31_spill] sm:$0xff]  ;;  %v7993_v0 = vsel %vm15629_vm1, %v7990_v22, %v7992_v8  ;;  %v7203_v22 = vshrl.u32 %v14415_v43, 16 }
 0x55d   : > { %v5823_v51 = vadd.f32 %v15627_v56, %v15626_v27  ;;  %v7209_v27 = vrot.slane %v7207_v31, 1 }
 0x55e   : > { %8387 = vmatmul.bf16.vlgmr.msra.gmra.mxu1 %v15622_v6  ;;  %v7338_v62 = vpop.f32.mrf.mxu2  ;;  %v7698_v19 = vsel %vm15612_vm0, %v7693_v21, %v7697_v39  ;;  %v15628_v6 = vld [vmem:[#allocation65_spill] sm:$0xff]  ;;  %v15631_v21 = vld [vmem:[#allocation66_spill] sm:$0xff]  ;;  %vm15639_vm0 = vmmov %vm15629_vm1 }
 0x55f   : > { %v7421_v18 = vadd.f32 %v7338_v62, %v6925_v15  ;;  %v14464_v15 = vpop.f32.mrf.mxu0  ;;  %v6173_v62 = vadd.f32 %v15628_v6, %v5823_v51  ;;  %v7205_v51 = vor.u32 %v7203_v22, %v7201_v44  ;;  %v6707_v6 = vadd.f32 %v14142_v57, %v14128_v46  ;;  %v10157_v57 = vld [vmem:[#allocation2 + $0x7c] sm:$0xff]  ;;  %v15640_v22 = vld [vmem:[#allocation98_spill] sm:$0xff]  ;;  %vm15645_vm1 = vmmov %vm15633_vm3 }
 0x561   : > { %v7834_v4 = vpop.f32.mrf.mxu3 }
 0x562   : > { %v14453_v23 = vadd.f32 %v7834_v4, %v7421_v18  ;;  %v6706_v18 = vadd.f32 %v14119_v36, %v14110_v60 }
 0x563   : > { %v6882_v52 = vpop.f32.mrf.mxu1  ;;  %7380 = vmatmul.bf16.gmra.mxu2 %v7202_v3 }
 0x564   : > { %v14460_v50 = vadd.f32 %v6882_v52, %v6705_v14  ;;  %v15630_v14 = vld [vmem:[#allocation63_spill] sm:$0xff] }
 0x565   : > { %v6691_v52 = vadd.f32 %v15630_v14, %v6173_v62  ;;  %v7994_v14 = vrot.slane %v14181_v48, 1 }
 0x566   : > { %7876 = vmatmul.bf16.gmra.mxu3 %v7698_v19  ;;  %v7341_v42 = vpop.f32.mrf.mxu2  ;;  %v15632_v19 = vshll.u32 %v14181_v48, 16 }
 0x567   : > { %v7422_v28 = vadd.f32 %v7341_v42, %v14183_v63  ;;  %v6927_v24 = vadd.f32 %v14198_v9, %v6691_v52  ;;  %v14479_v56 = vpop.f32.mrf.mxu0  ;;  %v15638_v52 = vld [vmem:[#allocation69_spill] sm:$0xff] }
 0x568   : > { %v7705_v42 = vrot.slane %v15632_v19, 1  ;;  %v7215_v19 = vshll.u32 %v10157_v57, 16 }
 0x569   : > { %v7837_v20 = vpop.f32.mrf.mxu3  ;;  %8135 = vmatmul.bf16.gmra.mxu0 %v7993_v0  ;;  %v15634_v0 = vshrl.u32 %v14148_v17, 16  ;;  %v7995_v17 = vsel %vm15639_vm0, %v7992_v8, %v7994_v14 }
 0x56a   : > { %v14471_v4 = vadd.f32 %v7837_v20, %v7422_v28  ;;  %v7210_v28 = vsel %vm15633_vm3, %v7205_v51, %v7209_v27  ;;  %v15635_v20 = vld [vmem:[#allocation18_spill] sm:$0xff]  ;;  %vm15649_vm3 = vmmov %vm15645_vm1 }
 0x56b   : > { %v6885_v32 = vpop.f32.mrf.mxu1  ;;  %v7701_v43 = vor.u32 %v15634_v0, %v7697_v39 }
 0x56c   : > { %v14474_v3 = vadd.f32 %v6885_v32, %v6706_v18  ;;  %v15636_v18 = vld [vmem:[#allocation67_spill] sm:$0xff] }
 0x56d   : > { %v5828_v32 = vadd.f32 %v15636_v18, %v15635_v20  ;;  %v7706_v44 = vsel %vm15637_vm5, %v7701_v43, %v7705_v42  ;;  %v7211_v43 = vshrl.u32 %v10156_v37, 16  ;;  %v7217_v20 = vrot.slane %v7215_v19, 1  ;;  %v15648_v37 = vld [vmem:[#allocation72_spill] sm:$0xff]  ;;  %vm15651_vm5 = vmmov %vm15639_vm0 }
 0x56e   : > { %8392 = vmatmul.bf16.gmra.mxu1 %v15631_v21  ;;  %v7343_v63 = vpop.f32.mrf.mxu2  ;;  %vm15659_vm0 = vmmov %vm15645_vm1 }
 0x56f   : > { %v7423_v60 = vadd.f32 %v7343_v63, %v6927_v24  ;;  %v6175_v24 = vadd.f32 %v15638_v52, %v5828_v32  ;;  %v14499_v63 = vpop.f32.mrf.mxu0  ;;  %v15644_v52 = vld [vmem:[#allocation101_spill] sm:$0xff] }
 0x571   : > { %v7839_v36 = vpop.f32.mrf.mxu3 }
 0x572   : > { %v14485_v62 = vadd.f32 %v7839_v36, %v7423_v60  ;;  %v6708_v60 = vadd.f32 %v14168_v33, %v15640_v22  ;;  %v15643_v33 = vshll.u32 %v14216_v1, 16 }
 0x573   : > { %v6887_v9 = vpop.f32.mrf.mxu1  ;;  %7385 = vmatmul.bf16.gmra.mxu2 %v7210_v28 }
 0x574   : > { %v14492_v31 = vadd.f32 %v6887_v9, %v6707_v6  ;;  %v15641_v6 = vld [vmem:[#allocation68_spill] sm:$0xff] }
 0x575   : > { %v6693_v9 = vadd.f32 %v15641_v6, %v6175_v24 }
 0x576   : > { %7881 = vmatmul.bf16.gmra.mxu3 %v7706_v44  ;;  %v7346_v46 = vpop.f32.mrf.mxu2  ;;  %v7213_v44 = vor.u32 %v7211_v43, %v7209_v27 }
 0x577   : > { %v7424_v21 = vadd.f32 %v7346_v46, %v14218_v2  ;;  %v6929_v0 = vadd.f32 %v14233_v12, %v6693_v9  ;;  %v15642_v2 = vld [vmem:[#allocation70_spill] sm:$0xff]  ;;  %v7713_v46 = vrot.slane %v15643_v33, 1  ;;  %v15646_v12 = vshrl.u32 %v14181_v48, 16  ;;  %v14521_v19 = vpop.f32.mrf.mxu0 }
 0x579   : > { %v7842_v39 = vpop.f32.mrf.mxu3  ;;  %8140 = vmatmul.bf16.gmra.mxu0 %v7995_v17  ;;  %v7709_v22 = vor.u32 %v15646_v12, %v7705_v42 }
 0x57a   : > { %v14503_v36 = vadd.f32 %v7842_v39, %v7424_v21  ;;  %v6709_v21 = vadd.f32 %v15644_v52, %v14161_v54  ;;  %v7218_v39 = vsel %vm15645_vm1, %v7213_v44, %v7217_v20  ;;  %v7996_v54 = vrot.slane %v14216_v1, 1  ;;  %vm15661_vm1 = vmmov %vm15659_vm0 }
 0x57b   : > { %v6890_v51 = vpop.f32.mrf.mxu1  ;;  %v7714_v6 = vsel %vm15649_vm3, %v7709_v22, %v7713_v46  ;;  %vm15662_vm3 = vmmov %vm15651_vm5 }
 0x57c   : > { %v14506_v28 = vadd.f32 %v6890_v51, %v6708_v60  ;;  %v15647_v60 = vld [vmem:[#allocation28_spill] sm:$0xff]  ;;  %v7997_v42 = vsel %vm15651_vm5, %v7994_v14, %v7996_v54  ;;  %vm15669_vm5 = vmmov %vm15659_vm0 }
 0x57d   : > { %v5833_v51 = vadd.f32 %v15648_v37, %v15647_v60  ;;  %v7219_v60 = vshrl.u32 %v10157_v57, 16 }
 0x57e   : > { %8397 = vmatmul.bf16.gmra.mxu1 %v15642_v2  ;;  %v7348_v8 = vpop.f32.mrf.mxu2  ;;  %v15650_v2 = vld [vmem:[#allocation73_spill] sm:$0xff] }
 0x57f   : > { %v7425_v18 = vadd.f32 %v7348_v8, %v6929_v0  ;;  %v10158_v0 = vld [vmem:[#allocation2 + $0x84] sm:$0xff]  ;;  %v6177_v8 = vadd.f32 %v15650_v2, %v5833_v51  ;;  %v14538_v22 = vpop.f32.mrf.mxu0 }
 0x580   : > { %v7223_v52 = vshll.u32 %v10158_v0, 16 }
 0x581   : > { %v7844_v32 = vpop.f32.mrf.mxu3 }
 0x582   : > { %v14514_v17 = vadd.f32 %v7844_v32, %v7425_v18  ;;  %v15652_v18 = vld [vmem:[#allocation100_spill] sm:$0xff]  ;;  %v7225_v37 = vrot.slane %v7223_v52, 1  ;;  %v10159_v52 = vld [vmem:[#allocation2 + $0x8c] sm:$0xff] }
 0x583   : > { %v6892_v24 = vpop.f32.mrf.mxu1  ;;  %7390 = vmatmul.bf16.gmra.mxu2 %v7218_v39  ;;  %v6710_v32 = vadd.f32 %v14208_v45, %v15652_v18 }
 0x584   : > { %v14523_v27 = vadd.f32 %v6892_v24, %v6709_v21  ;;  %v15653_v21 = vld [vmem:[#allocation74_spill] sm:$0xff] }
 0x585   : > { %v6695_v24 = vadd.f32 %v15653_v21, %v6177_v8 }
 0x586   : > { %7886 = vmatmul.bf16.gmra.mxu3 %v7714_v6  ;;  %v7351_v9 = vpop.f32.mrf.mxu2  ;;  %v7221_v6 = vor.u32 %v7219_v60, %v7217_v20  ;;  %v15664_v60 = vld [vmem:[#allocation109_spill] sm:$0xff] }
 0x587   : > { %v7426_v48 = vadd.f32 %v7351_v9, %v14256_v49  ;;  %v6931_v12 = vadd.f32 %v14269_v53, %v6695_v24  ;;  %v15654_v49 = vld [vmem:[#allocation75_spill] sm:$0xff]  ;;  %v15655_v9 = vld [vmem:[#allocation108_spill] sm:$0xff] }
 0x588   : > { %v15656_v2 = vshll.u32 %v15655_v9, 16  ;;  %v7226_v53 = vsel %vm15659_vm0, %v7221_v6, %v7225_v37  ;;  %v7998_v20 = vrot.slane %v15655_v9, 1  ;;  %v15665_v6 = vld [vmem:[#allocation78_spill] sm:$0xff] }
 0x589   : > { %v7847_v43 = vpop.f32.mrf.mxu3  ;;  %8145 = vmatmul.bf16.gmra.mxu0 %v7997_v42  ;;  %v15657_v42 = vld [vmem:[#allocation102_spill] sm:$0xff] }
 0x58a   : > { %v14532_v44 = vadd.f32 %v7847_v43, %v7426_v48  ;;  %v7721_v48 = vrot.slane %v15656_v2, 1  ;;  %v15658_v43 = vld [vmem:[#allocation105_spill] sm:$0xff]  ;;  %v7227_v2 = vshrl.u32 %v10158_v0, 16 }
 0x58b   : > { %v6895_v33 = vpop.f32.mrf.mxu1  ;;  %v6711_v8 = vadd.f32 %v15658_v43, %v15657_v42 }
 0x58c   : > { %v14535_v39 = vadd.f32 %v6895_v33, %v6710_v32  ;;  %v15660_v33 = vshrl.u32 %v14216_v1, 16  ;;  %v7231_v1 = vshll.u32 %v10159_v52, 16  ;;  %v7229_v43 = vor.u32 %v7227_v2, %v7225_v37 }
 0x58d   : > { %v8000_v37 = vrot.slane %v14274_v55, 1 }
 0x58e   : > { %8402 = vmatmul.bf16.gmra.mxu1 %v15654_v49  ;;  %v7353_v14 = vpop.f32.mrf.mxu2  ;;  %v7717_v21 = vor.u32 %v15660_v33, %v7713_v46  ;;  %v7999_v49 = vsel %vm15662_vm3, %v7996_v54, %v7998_v20  ;;  %v7233_v42 = vrot.slane %v7231_v1, 1  ;;  %v15667_v33 = vld [vmem:[#allocation106_spill] sm:$0xff]  ;;  %v15668_v54 = vld [vmem:[#allocation112_spill] sm:$0xff] }
 0x58f   : > { %v7427_v51 = vadd.f32 %v7353_v14, %v6931_v12  ;;  %v14554_v12 = vpop.f32.mrf.mxu0  ;;  %v15663_v14 = vld [vmem:[#allocation104_spill] sm:$0xff] }
 0x590   : > { %v7722_v57 = vsel %vm15661_vm1, %v7717_v21, %v7721_v48  ;;  %v6713_v21 = vadd.f32 %v15668_v54, %v15667_v33  ;;  %vm15672_vm1 = vmmov %vm15662_vm3  ;;  %v7235_v54 = vshrl.u32 %v10159_v52, 16 }
 0x591   : > { %v7849_v45 = vpop.f32.mrf.mxu3  ;;  %v8001_v1 = vsel %vm15672_vm1, %v7998_v20, %v8000_v37  ;;  %vm15679_vm3 = vmmov %vm15659_vm0 }
 0x592   : > { %v14545_v18 = vadd.f32 %v7849_v45, %v7427_v51  ;;  %v6712_v51 = vadd.f32 %v15664_v60, %v15663_v14  ;;  %v15670_v14 = vshrl.u32 %v15655_v9, 16 }
 0x593   : > { %v6897_v32 = vpop.f32.mrf.mxu1  ;;  %7395 = vmatmul.bf16.gmra.mxu2 %v7226_v53 }
 0x594   : > { %v14550_v24 = vadd.f32 %v6897_v32, %v6711_v8  ;;  %v15666_v8 = vshll.u32 %v14274_v55, 16  ;;  %v7725_v60 = vor.u32 %v15670_v14, %v7721_v48  ;;  %v15675_v48 = vld [vmem:[#allocation83_spill] sm:$0xff]  ;;  %v7237_v14 = vor.u32 %v7235_v54, %v7233_v42 }
 0x596   : > { %7891 = vmatmul.bf16.gmra.mxu3 %v7722_v57  ;;  %v7729_v32 = vrot.slane %v15666_v8, 1 }
 0x597   : > { %v14564_v53 = vpop.f32.mrf.mxu0 }
 0x598   : > { %v7730_v0 = vsel %vm15659_vm0, %v7725_v60, %v7729_v32  ;;  %v15676_v60 = vshrl.u32 %v14274_v55, 16 }
 0x599   : > { %8150 = vmatmul.bf16.gmra.mxu0 %v7999_v49  ;;  %v7234_v49 = vsel %vm15669_vm5, %v7229_v43, %v7233_v42  ;;  %vm15680_vm5 = vmmov %vm15659_vm0  ;;  %v8002_v42 = vrot.slane %v14276_v47, 1 }
 0x59a   : > { %v7733_v20 = vor.u32 %v15676_v60, %v7729_v32  ;;  %vm15681_vm0 = vmmov %vm15672_vm1 }
 0x59b   : > { %v6900_v45 = vpop.f32.mrf.mxu1  ;;  %v8003_v54 = vsel %vm15681_vm0, %v8000_v37, %v8002_v42  ;;  %vm15685_vm1 = vmmov %vm15679_vm3 }
 0x59c   : > { %v14559_v46 = vadd.f32 %v6900_v45, %v6712_v51  ;;  %v10160_v45 = vld [vmem:[#allocation2 + $0x94] sm:$0xff] }
 0x59d   : > { %v7239_v43 = vshll.u32 %v10160_v45, 16 }
 0x59e   : > { %8407 = vmatmul.bf16.gmra.mxu1 %v15665_v6  ;;  %v15673_v6 = vld [vmem:[#allocation71_spill] sm:$0xff] }
 0x59f   : > { %v6714_v2 = vadd.f32 %v14311_v41, %v15673_v6  ;;  %v14578_v33 = vpop.f32.mrf.mxu0 }
 0x5a3   : > { %v6902_v57 = vpop.f32.mrf.mxu1  ;;  %7400 = vmatmul.bf16.gmra.mxu2 %v7234_v49  ;;  %v7488_v49 = vld [vmem:[#allocation2 + $0xa4] sm:$0x1] }
 0x5a4   : > { %v14571_v51 = vadd.f32 %v6902_v57, %v6713_v21  ;;  %v7241_v21 = vrot.slane %v7239_v43, 1  ;;  %v6992_v57 = vld [vmem:[#allocation2 + $0x9c] sm:$0x1] }
 0x5a6   : > { %15671 = vst [vmem:[#allocation88_spill] sm:$0xff] %v14571_v51  ;;  %7896 = vmatmul.bf16.gmra.mxu3 %v7730_v0  ;;  %v15677_v0 = vshll.u32 %v14276_v47, 16 }
 0x5a7   : > { %v14594_v55 = vpop.f32.mrf.mxu0 }
 0x5a8   : > { %v7737_v41 = vrot.slane %v15677_v0, 1  ;;  %v7243_v0 = vshrl.u32 %v10160_v45, 16 }
 0x5a9   : > { %8155 = vmatmul.bf16.gmra.mxu0 %v8001_v1  ;;  %v15678_v1 = vld [vmem:[#allocation110_spill] sm:$0xff] }
 0x5aa   : > { %v6715_v6 = vadd.f32 %v14331_v25, %v15678_v1  ;;  %v7738_v52 = vsel %vm15680_vm5, %v7733_v20, %v7737_v41  ;;  %v15682_v25 = vld [vmem:[#allocation89_spill] sm:$0xff]  ;;  %v15683_v20 = vld [vmem:[#allocation90_spill] sm:$0xff]  ;;  %v7245_v1 = vor.u32 %v7243_v0, %v7241_v21  ;;  %vm15687_vm5 = vmmov %vm15681_vm0 }
 0x5ab   : > { %v6905_v8 = vpop.f32.mrf.mxu1  ;;  %v6716_v60 = vadd.f32 %v14349_v40, %v15682_v25  ;;  %v6717_v40 = vadd.f32 %v14363_v38, %v14320_v13 }
 0x5ac   : > { %v14580_v9 = vadd.f32 %v6905_v8, %v6714_v2  ;;  %v7242_v2 = vsel %vm15679_vm3, %v7237_v14, %v7241_v21  ;;  %v7083_v8 = vunpack.c.l.b16 %v6992_v57  ;;  %vm15686_vm3 = vmmov %vm15685_vm1 }
 0x5ae   : > { %15674 = vst [vmem:[#allocation23_spill] sm:$0xff] %v14580_v9  ;;  %8412 = vmatmul.bf16.gmra.mxu1 %v15675_v48  ;;  %v7579_v9 = vunpack.c.l.b16 %v7488_v49  ;;  %v7102_v32 = vpack.c.b16 %v7083_v8, %v7083_v8 }
 0x5b0   : > { %v7598_v43 = vpack.c.b16 %v7579_v9, %v7579_v9  ;;  %v7247_v49 = vshll.u32 %v7102_v32, 16 }
 0x5b2   : > { %v8004_v25 = vrot.slane %v7598_v43, 1 }
 0x5b3   : > { %v6907_v51 = vpop.f32.mrf.mxu1  ;;  %7405 = vmatmul.bf16.gmra.mxu2 %v7242_v2  ;;  %v15684_v2 = vshrl.u32 %v14276_v47, 16 }
 0x5b4   : > { %v14590_v48 = vadd.f32 %v6907_v51, %v6715_v6  ;;  %v7743_v51 = vshll.u32 %v7598_v43, 16  ;;  %v7249_v6 = vrot.slane %v7247_v49, 1  ;;  %v8005_v47 = vsel %vm15687_vm5, %v8002_v42, %v8004_v25  ;;  %v10795_v25 = vld [vmem:[%s11339_s10 + $0x10] sm:$0xff]  }
 0x5b5   : > { %v7741_v8 = vor.u32 %v15684_v2, %v7737_v41  ;;  %v6718_v41 = vadd.f32 %v14384_v59, %v14335_v61  ;;  %v6719_v43 = vadd.f32 %v14400_v35, %v14344_v26  ;;  %v8171_v42 = vadd.f32 %v14438_v7, %v14359_v11  ;;  %v8514_v59 = vld [vmem:[%s11339_s10 + $0xc] sm:$0xf]  ;;  %v14635_v35 = vld [vmem:[%s15007_s6] ss:$0 sm:$0xff] }
 0x5b6   : > { %7901 = vmatmul.bf16.gmra.mxu3 %v7738_v52  ;;  %v7745_v9 = vrot.slane %v7743_v51, 1  ;;  %v14604_v52 = vpop.f32.mrf.mxu0  ;;  %v7250_v32 = vsel %vm15685_vm1, %v7245_v1, %v7249_v6  ;;  %v14629_v51 = vld [vmem:[%s15006_s5] ss:$0 sm:$0xff]  ;;  %v8550_v26 = vunpack.c.l.bf16 %v8514_v59  ;;  %v15689_v1 = vld [vmem:[#allocation94_spill] sm:$0xff]  ;;  %v8172_v6 = vadd.f32 %v14464_v15, %v14370_v34 }
 0x5b7   : > { %v10434_v15 = vunpack.c.h.bf16 %v10795_v25 }
 0x5b9   : > { %8160 = vmatmul.bf16.gmra.mxu0 %v8003_v54  ;;  %v7746_v54 = vsel %vm15686_vm3, %v7741_v8, %v7745_v9 }
 0x5bb   : > { %v6910_v57 = vpop.f32.mrf.mxu1 }
 0x5bc   : > { %v14599_v14 = vadd.f32 %v6910_v57, %v6716_v60  ;;  %v15688_v60 = vld [vmem:[#allocation91_spill] sm:$0xff] }
 0x5be   : > { %8417 = vmatmul.bf16.gmra.mxu1 %v15683_v20  ;;  %v14613_v21 = vpop.f32.mrf.mxu0 }
 0x5c3   : > { %v6912_v37 = vpop.f32.mrf.mxu1  ;;  %7410 = vmatmul.bf16.gmra.mxu2 %v7250_v32 }
 0x5c4   : > { %v14610_v45 = vadd.f32 %v6912_v37, %v6717_v40 }
 0x5c6   : > { %7906 = vmatmul.bf16.gmra.mxu3 %v7746_v54 }
 0x5c9   : > { %8165 = vmatmul.bf16.gmra.mxu0 %v8005_v47  ;;  %v10433_v47 = vunpack.c.l.bf16 %v10795_v25 }
 0x5cb   : > { %v6915_v13 = vpop.f32.mrf.mxu1 }
 0x5cc   : > { %v14617_v38 = vadd.f32 %v6915_v13, %v6718_v41  ;;  %v8173_v13 = vadd.f32 %v14479_v56, %v14390_v58  ;;  %v10797_v56 = vld [vmem:[%s11339_s10 + $0x20] sm:$0xff]  }
 0x5ce   : > { %8422 = vmatmul.bf16.gmra.mxu1 %v15688_v60 }
 0x5d3   : > { %v6917_v57 = vpop.f32.mrf.mxu1 }
 0x5d4   : > { %v14622_v49 = vadd.f32 %v6917_v57, %v6719_v43 }
 0x5db   : > { %v8388_v61 = vpop.f32.mrf.mxu1 }
 0x5dc   : > { %v8478_v0 = vadd.f32 %v8388_v61, %v8171_v42  ;;  %v15691_v42 = vld [vmem:[#allocation96_spill] sm:$0xff] }
 0x5de   : > { %v8589_v20 = vmul.f32 %v14629_v51, %v8478_v0  ;;  %8427 = vmatmul.bf16.gmra.mxu1 %v15689_v1 }
 0x5e0   : > { %v8628_v11 = vadd.f32 %v14635_v35, %v8589_v20  ;;  %v8174_v20 = vadd.f32 %v14499_v63, %v14404_v10 }
 0x5e2   : > { %v8664_v7 = vadd.f32 %v8628_v11, %v8550_v26 }
 0x5e3   : > { %v8390_v2 = vpop.f32.mrf.mxu1 }
 0x5e4   : > { %v8700_v9 = vsel %vm12263_vm10, %v8664_v7, 0.0  ;;  %v8479_v40 = vadd.f32 %v8390_v2, %v8172_v6 }
 0x5e5   : > { %v8736_v37 = vmax.f32 %v8700_v9, 0.0  ;;  %v10796_v9 = vld [vmem:[%s11339_s10 + $0x18] sm:$0xff]  }
 0x5e6   : > { %v8590_v32 = vmul.f32 %v14629_v51, %v8479_v40  ;;  %v10437_v40 = vunpack.c.l.bf16 %v10796_v9  ;;  %v10438_v25 = vunpack.c.h.bf16 %v10796_v9  ;;  %v10442_v9 = vunpack.c.h.bf16 %v10797_v56 }
 0x5e7   : > { %v8775_v54 = vpack.c.bf16 %v8736_v37, %v8736_v37 }
 0x5e8   : > { %v8629_v41 = vadd.f32 %v14635_v35, %v8590_v32  ;;  %v8175_v32 = vadd.f32 %v14521_v19, %v14430_v5  ;;  %v8176_v5 = vadd.f32 %v14538_v22, %v14453_v23  ;;  %v8177_v23 = vadd.f32 %v14554_v12, %v14471_v4 }
 0x5e9   : > { %8811 = vst [vmem:[%s14421_s18 + $0xc] sm:$0xf] %v8775_v54  ;;  %v8178_v12 = vadd.f32 %v14564_v53, %v14485_v62  ;;  %v8179_v62 = vadd.f32 %v14578_v33, %v14503_v36 }
 0x5ea   : > { %v8665_v34 = vadd.f32 %v10433_v47, %v8629_v41  ;;  %v15694_v41 = vld [vmem:[#allocation97_spill] sm:$0xff] }
 0x5eb   : > { %v8393_v60 = vpop.f32.mrf.mxu1 }
 0x5ec   : > { %v8480_v43 = vadd.f32 %v8393_v60, %v8173_v13  ;;  %v8701_v0 = vsel %vm12339_vm6, %v8665_v34, 0.0  ;;  %v14668_v60 = vpop.f32.mrf.mxu2 }
 0x5ed   : > { %v8737_v7 = vmax.f32 %v8701_v0, 0.0 }
 0x5ee   : > { %v8591_v57 = vmul.f32 %v14629_v51, %v8480_v43  ;;  %8432 = vmatmul.bf16.gmra.mxu1 %v15691_v42 }
 0x5f0   : > { %v8630_v61 = vadd.f32 %v14635_v35, %v8591_v57 }
 0x5f2   : > { %v8666_v26 = vadd.f32 %v10434_v15, %v8630_v61 }
 0x5f3   : > { %v8395_v58 = vpop.f32.mrf.mxu1 }
 0x5f4   : > { %v8702_v1 = vsel %vm12370_vm13, %v8666_v26, 0.0  ;;  %v8481_v11 = vadd.f32 %v8395_v58, %v8174_v20  ;;  %v14677_v20 = vpop.f32.mrf.mxu3  ;;  %v14686_v22 = vpop.f32.mrf.mxu2 }
 0x5f5   : > { %v8738_v6 = vmax.f32 %v8702_v1, 0.0  ;;  %v14681_v1 = vpop.f32.mrf.mxu0 }
 0x5f6   : > { %v8592_v2 = vmul.f32 %v14629_v51, %v8481_v11  ;;  %v10441_v11 = vunpack.c.l.bf16 %v10797_v56 }
 0x5f7   : > { %v10502_v8 = vpack.c.bf16 %v8738_v6, %v8737_v7 }
 0x5f8   : > { %v8631_v37 = vadd.f32 %v14635_v35, %v8592_v2 }
 0x5f9   : > { %10812 = vst [vmem:[%s14421_s18 + $0x10] sm:$0xff] %v10502_v8  }
 0x5fa   : > { %v8667_v63 = vadd.f32 %v10437_v40, %v8631_v37  ;;  %v15697_v37 = vld [vmem:[#allocation99_spill] sm:$0xff] }
 0x5fb   : > { %v8398_v54 = vpop.f32.mrf.mxu1 }
 0x5fc   : > { %v8482_v10 = vadd.f32 %v8398_v54, %v8175_v32  ;;  %v8703_v34 = vsel %vm12426_vm8, %v8667_v63, 0.0  ;;  %v14691_v54 = vpop.f32.mrf.mxu3 }
 0x5fd   : > { %v8739_v59 = vmax.f32 %v8703_v34, 0.0  ;;  %v14701_v34 = vpop.f32.mrf.mxu2 }
 0x5fe   : > { %v8593_v47 = vmul.f32 %v14629_v51, %v8482_v10  ;;  %8437 = vmatmul.bf16.gmra.mxu1 %v15694_v41 }
 0x600   : > { %v8632_v13 = vadd.f32 %v14635_v35, %v8593_v47  ;;  %v14697_v47 = vpop.f32.mrf.mxu0 }
 0x602   : > { %v8668_v15 = vadd.f32 %v10438_v25, %v8632_v13 }
 0x603   : > { %v8400_v19 = vpop.f32.mrf.mxu1 }
 0x604   : > { %v8704_v42 = vsel %vm12457_vm7, %v8668_v15, 0.0  ;;  %v8483_v61 = vadd.f32 %v8400_v19, %v8176_v5  ;;  %v14709_v53 = vpop.f32.mrf.mxu3 }
 0x605   : > { %v8740_v0 = vmax.f32 %v8704_v42, 0.0  ;;  %v10798_v42 = vld [vmem:[%s11339_s10 + $0x28] sm:$0xff]  }
 0x606   : > { %v8594_v26 = vmul.f32 %v14629_v51, %v8483_v61  ;;  %v10445_v61 = vunpack.c.l.bf16 %v10798_v42 }
 0x607   : > { %v10507_v58 = vpack.c.bf16 %v8740_v0, %v8739_v59 }
 0x608   : > { %v8633_v7 = vadd.f32 %v14635_v35, %v8594_v26 }
 0x609   : > { %10813 = vst [vmem:[%s14421_s18 + $0x18] sm:$0xff] %v10507_v58   ;;  %v14711_v58 = vpop.f32.mrf.mxu0 }
 0x60a   : > { %v8669_v8 = vadd.f32 %v10441_v11, %v8633_v7  ;;  %v10446_v11 = vunpack.c.h.bf16 %v10798_v42  ;;  %v15703_v42 = vld [vmem:[#allocation19_spill] sm:$0xff] }
 0x60b   : > { %v8403_v6 = vpop.f32.mrf.mxu1 }
 0x60c   : > { %v8484_v2 = vadd.f32 %v8403_v6, %v8177_v23  ;;  %v8705_v63 = vsel %vm12478_vm12, %v8669_v8, 0.0  ;;  %v15700_v23 = vld [vmem:[#allocation103_spill] sm:$0xff]  ;;  %v14715_v6 = vpop.f32.mrf.mxu2  ;;  %v15707_v8 = vld [vmem:[#allocation76_spill] sm:$0xff] }
 0x60d   : > { %v8741_v15 = vmax.f32 %v8705_v63, 0.0  ;;  %v14724_v63 = vpop.f32.mrf.mxu3 }
 0x60e   : > { %v8595_v40 = vmul.f32 %v14629_v51, %v8484_v2  ;;  %8442 = vmatmul.bf16.gmra.mxu1 %v15697_v37 }
 0x610   : > { %v8634_v32 = vadd.f32 %v14635_v35, %v8595_v40 }
 0x612   : > { %v8670_v4 = vadd.f32 %v10442_v9, %v8634_v32  ;;  %v8180_v9 = vadd.f32 %v14594_v55, %v14514_v17  ;;  %v8181_v55 = vadd.f32 %v14604_v52, %v14532_v44  ;;  %v7428_v44 = vadd.f32 %v14668_v60, %v15707_v8  ;;  %v15711_v60 = vld [vmem:[#allocation80_spill] sm:$0xff] }
 0x613   : > { %v8405_v25 = vpop.f32.mrf.mxu1 }
 0x614   : > { %v8706_v13 = vsel %vm12530_vm11, %v8670_v4, 0.0  ;;  %v8485_v43 = vadd.f32 %v8405_v25, %v8178_v12 }
 0x615   : > { %v8742_v5 = vmax.f32 %v8706_v13, 0.0  ;;  %v10799_v13 = vld [vmem:[%s11339_s10 + $0x30] sm:$0xff]  }
 0x616   : > { %v8596_v19 = vmul.f32 %v14629_v51, %v8485_v43  ;;  %v14728_v43 = vpop.f32.mrf.mxu0 }
 0x617   : > { %v10512_v57 = vpack.c.bf16 %v8742_v5, %v8741_v15  ;;  %v14730_v15 = vpop.f32.mrf.mxu2  ;;  %v10449_v5 = vunpack.c.l.bf16 %v10799_v13 }
 0x618   : > { %v8635_v59 = vadd.f32 %v14635_v35, %v8596_v19 }
 0x619   : > { %10814 = vst [vmem:[%s14421_s18 + $0x20] sm:$0xff] %v10512_v57  }
 0x61a   : > { %v8671_v56 = vadd.f32 %v10445_v61, %v8635_v59  ;;  %v15704_v61 = vld [vmem:[#allocation79_spill] sm:$0xff] }
 0x61b   : > { %v8408_v0 = vpop.f32.mrf.mxu1  ;;  %v5838_v59 = vadd.f32 %v15704_v61, %v15703_v42 }
 0x61c   : > { %v8486_v26 = vadd.f32 %v8408_v0, %v8179_v62  ;;  %v8707_v36 = vsel %vm12559_vm2, %v8671_v56, 0.0  ;;  %v10450_v0 = vunpack.c.h.bf16 %v10799_v13  ;;  %v15705_v56 = vld [vmem:[#allocation107_spill] sm:$0xff]  ;;  %vm15733_vm2 = vsmask.f32 6400 }
 0x61d   : > { %v8743_v4 = vmax.f32 %v8707_v36, 0.0  ;;  %v15714_v36 = vld [vmem:[#allocation84_spill] sm:$0xff] }
 0x61e   : > { %v8597_v7 = vmul.f32 %v14629_v51, %v8486_v26  ;;  %8447 = vmatmul.bf16.gmra.mxu1 %v15700_v23  ;;  %v15706_v23 = vld [vmem:[#allocation81_spill] sm:$0xff]  ;;  %v14746_v52 = vpop.f32.mrf.mxu0 }
 0x61f   : > { %v14752_v37 = vpop.f32.mrf.mxu2 }
 0x620   : > { %v8636_v2 = vadd.f32 %v14635_v35, %v8597_v7 }
 0x622   : > { %v8672_v33 = vadd.f32 %v10446_v11, %v8636_v2  ;;  %v14740_v11 = vpop.f32.mrf.mxu3  ;;  %v6179_v2 = vadd.f32 %v15706_v23, %v5838_v59 }
 0x623   : > { %v8410_v40 = vpop.f32.mrf.mxu1 }
 0x624   : > { %v8708_v32 = vsel %vm12627_vm14, %v8672_v33, 0.0  ;;  %v8487_v10 = vadd.f32 %v8410_v40, %v8180_v9  ;;  %v8182_v40 = vadd.f32 %v14613_v21, %v14545_v18  ;;  %v6697_v13 = vadd.f32 %v15711_v60, %v6179_v2 }
 0x625   : > { %v8744_v12 = vmax.f32 %v8708_v32, 0.0 }
 0x626   : > { %v8598_v25 = vmul.f32 %v14629_v51, %v8487_v10  ;;  %v15709_v10 = vld [vmem:[#allocation44_spill] sm:$0xff] }
 0x627   : > { %v10517_v41 = vpack.c.bf16 %v8744_v12, %v8743_v4  ;;  %vm15710_vm10 = vnez %v15709_v10 }
 0x628   : > { %v8637_v17 = vadd.f32 %v14635_v35, %v8598_v25 }
 0x629   : > { %10815 = vst [vmem:[%s14421_s18 + $0x28] sm:$0xff] %v10517_v41  }
 0x62a   : > { %v8673_v62 = vadd.f32 %v10449_v5, %v8637_v17  ;;  %v7924_v5 = vadd.f32 %v14677_v20, %v7428_v44  ;;  %v14761_v18 = vpop.f32.mrf.mxu3  ;;  %v15713_v44 = vld [vmem:[#allocation111_spill] sm:$0xff] }
 0x62b   : > { %v8413_v19 = vpop.f32.mrf.mxu1 }
 0x62c   : > { %v8488_v57 = vadd.f32 %v8413_v19, %v8181_v55  ;;  %v8709_v33 = vsel %vm12653_vm9, %v8673_v62, 0.0  ;;  %v10800_v19 = vld [vmem:[%s11339_s10 + $0x38] sm:$0xff]   ;;  %v8183_v62 = vadd.f32 %v14681_v1, %v7924_v5  ;;  %v7430_v1 = vadd.f32 %v14701_v34, %v15714_v36  ;;  %v15722_v36 = vld [vmem:[#allocation47_spill] sm:$0xff] }
 0x62d   : > { %v8745_v25 = vmax.f32 %v8709_v33, 0.0  ;;  %v10453_v61 = vunpack.c.l.bf16 %v10800_v19  ;;  %v10454_v2 = vunpack.c.h.bf16 %v10800_v19  ;;  %v15715_v33 = vld [vmem:[#allocation45_spill] sm:$0xff]  ;;  %v10801_v19 = vld [vmem:[%s11339_s10 + $0x40] sm:$0xff]   ;;  %vm15723_vm8 = vnez %v15722_v36 }
 0x62e   : > { %v8599_v26 = vmul.f32 %v14629_v51, %v8488_v57  ;;  %8452 = vmatmul.bf16.gmra.mxu1 %v15705_v56  ;;  %v15712_v57 = vld [vmem:[#allocation115_spill] sm:$0xff]  ;;  %v14769_v56 = vpop.f32.mrf.mxu2  ;;  %vm15716_vm6 = vnez %v15715_v33  ;;  %v15728_v36 = vld [vmem:[#allocation49_spill] sm:$0xff] }
 0x62f   : > { %v6933_v42 = vadd.f32 %v15712_v57, %v6697_v13  ;;  %v7926_v13 = vadd.f32 %v14709_v53, %v7430_v1  ;;  %vm15729_vm12 = vnez %v15728_v36 }
 0x630   : > { %v8638_v7 = vadd.f32 %v14635_v35, %v8599_v26  ;;  %v14767_v26 = vpop.f32.mrf.mxu0 }
 0x631   : > { %v7429_v21 = vadd.f32 %v14686_v22, %v6933_v42  ;;  %v10457_v42 = vunpack.c.l.bf16 %v10801_v19 }
 0x632   : > { %v8674_v9 = vadd.f32 %v10450_v0, %v8638_v7 }
 0x633   : > { %v8415_v32 = vpop.f32.mrf.mxu1  ;;  %v7925_v7 = vadd.f32 %v14691_v54, %v7429_v21  ;;  %v14780_v54 = vpop.f32.mrf.mxu3 }
 0x634   : > { %v8710_v4 = vsel %vm15710_vm10, %v8674_v9, 0.0  ;;  %v8489_v12 = vadd.f32 %v8415_v32, %v8182_v40 }
 0x635   : > { %v8746_v41 = vmax.f32 %v8710_v4, 0.0  ;;  %v8184_v32 = vadd.f32 %v14697_v47, %v7925_v7  ;;  %v15717_v4 = vld [vmem:[#allocation46_spill] sm:$0xff]  ;;  %v10458_v7 = vunpack.c.h.bf16 %v10801_v19 }
 0x636   : > { %v8600_v17 = vmul.f32 %v14629_v51, %v8489_v12  ;;  %vm15718_vm13 = vnez %v15717_v4  ;;  %v15719_v47 = vld [vmem:[#allocation82_spill] sm:$0xff] }
 0x637   : > { %v10522_v55 = vpack.c.bf16 %v8746_v41, %v8745_v25  ;;  %v7431_v57 = vadd.f32 %v14715_v6, %v15719_v47 }
 0x638   : > { %v8639_v59 = vadd.f32 %v14635_v35, %v8600_v17  ;;  %v14785_v5 = vpop.f32.mrf.mxu0  ;;  %v14788_v17 = vpop.f32.mrf.mxu2 }
 0x639   : > { %10816 = vst [vmem:[%s14421_s18 + $0x30] sm:$0xff] %v10522_v55  }
 0x63a   : > { %v8675_v23 = vadd.f32 %v10453_v61, %v8639_v59  ;;  %v8185_v61 = vadd.f32 %v14711_v58, %v7926_v13  ;;  %v15721_v58 = vld [vmem:[#allocation86_spill] sm:$0xff]  ;;  %v10802_v13 = vld [vmem:[%s11339_s10 + $0x48] sm:$0xff]  }
 0x63b   : > { %v8418_v0 = vpop.f32.mrf.mxu1  ;;  %v14796_v53 = vpop.f32.mrf.mxu3  ;;  %v10461_v47 = vunpack.c.l.bf16 %v10802_v13 }
 0x63c   : > { %v8490_v20 = vadd.f32 %v8418_v0, %v8183_v62  ;;  %v8711_v9 = vsel %vm15716_vm6, %v8675_v23, 0.0  ;;  %v7927_v0 = vadd.f32 %v14724_v63, %v7431_v57 }
 0x63d   : > { %v8747_v41 = vmax.f32 %v8711_v9, 0.0 }
 0x63e   : > { %v8601_v8 = vmul.f32 %v14629_v51, %v8490_v20  ;;  %8457 = vmatmul.bf16.gmra.mxu1 %v15713_v44  ;;  %v8186_v33 = vadd.f32 %v14728_v43, %v7927_v0  ;;  %v8207_v43 = vld [vmem:[#allocation2 + $0xa4] sm:$0x3] }
 0x640   : > { %v8640_v22 = vadd.f32 %v14635_v35, %v8601_v8  ;;  %v14801_v8 = vpop.f32.mrf.mxu0  ;;  %v14804_v44 = vpop.f32.mrf.mxu2 }
 0x642   : > { %v8676_v40 = vadd.f32 %v10454_v2, %v8640_v22  ;;  %v15720_v2 = vld [vmem:[#allocation113_spill] sm:$0xff]  ;;  %v7432_v22 = vadd.f32 %v14730_v15, %v15721_v58 }
 0x643   : > { %v8420_v10 = vpop.f32.mrf.mxu1 }
 0x644   : > { %v8712_v12 = vsel %vm15718_vm13, %v8676_v40, 0.0  ;;  %v8491_v25 = vadd.f32 %v8420_v10, %v8184_v32  ;;  %v15724_v40 = vld [vmem:[#allocation48_spill] sm:$0xff] }
 0x645   : > { %v8748_v60 = vmax.f32 %v8712_v12, 0.0  ;;  %vm15725_vm7 = vnez %v15724_v40 }
 0x646   : > { %v8602_v34 = vmul.f32 %v14629_v51, %v8491_v25  ;;  %v7928_v25 = vadd.f32 %v14740_v11, %v7432_v22 }
 0x647   : > { %v10527_v55 = vpack.c.bf16 %v8748_v60, %v8747_v41  ;;  %v14815_v60 = vpop.f32.mrf.mxu3 }
 0x648   : > { %v8641_v21 = vadd.f32 %v14635_v35, %v8602_v34  ;;  %v15726_v34 = vld [vmem:[#allocation85_spill] sm:$0xff]  ;;  %v14821_v19 = vpop.f32.mrf.mxu0  ;;  %v14825_v11 = vpop.f32.mrf.mxu2 }
 0x649   : > { %10817 = vst [vmem:[%s14421_s18 + $0x38] sm:$0xff] %v10527_v55   ;;  %v7433_v55 = vadd.f32 %v14752_v37, %v15726_v34  ;;  %v10803_v34 = vld [vmem:[%s11339_s10 + $0x50] sm:$0xff]  }
 0x64a   : > { %v8677_v20 = vadd.f32 %v10457_v42, %v8641_v21  ;;  %v8187_v42 = vadd.f32 %v14746_v52, %v7928_v25  ;;  %v8226_v21 = vunpack.c.l.b16 %v8207_v43  ;;  %v7434_v52 = vadd.f32 %v14769_v56, %v14394_v30 }
 0x64b   : > { %v8423_v59 = vpop.f32.mrf.mxu1  ;;  %v7929_v0 = vadd.f32 %v14761_v18, %v7433_v55  ;;  %v10465_v43 = vunpack.c.l.bf16 %v10803_v34 }
 0x64c   : > { %v8492_v62 = vadd.f32 %v8423_v59, %v8185_v61  ;;  %v8713_v63 = vsel %vm15723_vm8, %v8677_v20, 0.0  ;;  %v7930_v30 = vadd.f32 %v14780_v54, %v7434_v52  ;;  %v15736_v52 = vld [vmem:[#allocation52_spill] sm:$0xff] }
 0x64d   : > { %v8749_v4 = vmax.f32 %v8713_v63, 0.0  ;;  %v8188_v18 = vadd.f32 %v14767_v26, %v7929_v0  ;;  %v7435_v26 = vadd.f32 %v14788_v17, %v14411_v29  ;;  %vm15737_vm9 = vnez %v15736_v52 }
 0x64e   : > { %v8603_v23 = vmul.f32 %v14629_v51, %v8492_v62  ;;  %8462 = vmatmul.bf16.gmra.mxu1 %v15720_v2  ;;  %v8227_v62 = vpack.c.b16 %v8226_v21, %v8226_v21 }
 0x64f   : > { %v7874_v22 = vpop.f32.mrf.mxu3 }
 0x650   : > { %v8642_v6 = vadd.f32 %v14635_v35, %v8603_v23  ;;  %v15727_v23 = vld [vmem:[#allocation114_spill] sm:$0xff]  ;;  %v8305_v2 = vshrl.u32 %v8227_v62, 16  ;;  %v7381_v25 = vpop.f32.mrf.mxu2 }
 0x652   : > { %v8678_v1 = vadd.f32 %v10458_v7, %v8642_v6  ;;  %v10462_v7 = vunpack.c.h.bf16 %v10802_v13  ;;  %v8308_v6 = vshll.u32 %v8227_v62, 16  ;;  %v7931_v62 = vadd.f32 %v14796_v53, %v7435_v26 }
 0x653   : > { %v8425_v9 = vpop.f32.mrf.mxu1 }
 0x654   : > { %v8714_v32 = vsel %vm15725_vm7, %v8678_v1, 0.0  ;;  %v8493_v10 = vadd.f32 %v8425_v9, %v8186_v33  ;;  %v8307_v9 = vrot.slane %v8305_v2, 1  ;;  %v8310_v40 = vrot.slane %v8308_v6, 2 }
 0x655   : > { %v8750_v12 = vmax.f32 %v8714_v32, 0.0  ;;  %v8133_v32 = vpop.f32.mrf.mxu0  ;;  %v8190_v53 = vadd.f32 %v14801_v8, %v7931_v62  ;;  %v7437_v8 = vadd.f32 %v14825_v11, %v14460_v50  ;;  %v15738_v11 = vld [vmem:[#allocation22_spill] sm:$0xff] }
 0x656   : > { %v8604_v41 = vmul.f32 %v14629_v51, %v8493_v10  ;;  %v15730_v10 = vld [vmem:[#allocation50_spill] sm:$0xff]  ;;  %v8311_v55 = vor.u32 %v8310_v40, %v8307_v9  ;;  %vm15739_vm0 = vnez %v15738_v11 }
 0x657   : > { %v10532_v15 = vpack.c.bf16 %v8750_v12, %v8749_v4  ;;  %vm15731_vm11 = vnez %v15730_v10 }
 0x658   : > { %v8643_v57 = vadd.f32 %v14635_v35, %v8604_v41  ;;  %v7383_v29 = vpop.f32.mrf.mxu2 }
 0x659   : > { %10818 = vst [vmem:[%s14421_s18 + $0x40] sm:$0xff] %v10532_v15  }
 0x65a   : > { %v8679_v20 = vadd.f32 %v10461_v47, %v8643_v57  ;;  %v8189_v57 = vadd.f32 %v14785_v5, %v7930_v30  ;;  %v7436_v5 = vadd.f32 %v14804_v44, %v14440_v16  ;;  %v10804_v44 = vld [vmem:[%s11339_s10 + $0x58] sm:$0xff]  }
 0x65b   : > { %v8428_v61 = vpop.f32.mrf.mxu1 }
 0x65c   : > { %v8494_v59 = vadd.f32 %v8428_v61, %v8187_v42  ;;  %v8715_v63 = vsel %vm15729_vm12, %v8679_v20, 0.0  ;;  %v7877_v42 = vpop.f32.mrf.mxu3  ;;  %v15732_v61 = vld [vmem:[#allocation77_spill] sm:$0xff]  ;;  %v7932_v9 = vadd.f32 %v14815_v60, %v7436_v5  ;;  %v10470_v60 = vunpack.c.h.bf16 %v10804_v44 }
 0x65d   : > { %v8751_v41 = vmax.f32 %v8715_v63, 0.0  ;;  %v8136_v0 = vpop.f32.mrf.mxu0 }
 0x65e   : > { %v8605_v37 = vmul.f32 %v14629_v51, %v8494_v59  ;;  %8467 = vmatmul.bf16.gmra.mxu1 %v15727_v23  ;;  %v8312_v59 = vsel %vm15733_vm2, %v15732_v61, %v8311_v55  ;;  %v15734_v23 = vld [vmem:[#allocation51_spill] sm:$0xff] }
 0x65f   : > { %vm15735_vm14 = vnez %v15734_v23  ;;  %v7439_v23 = vadd.f32 %v7383_v29, %v14492_v31 }
 0x660   : > { %v8644_v58 = vadd.f32 %v14635_v35, %v8605_v37 }
 0x662   : > { %v8680_v1 = vadd.f32 %v10462_v7, %v8644_v58  ;;  %v10466_v7 = vunpack.c.h.bf16 %v10803_v34 }
 0x663   : > { %v8430_v33 = vpop.f32.mrf.mxu1 }
 0x664   : > { %v8716_v4 = vsel %vm15731_vm11, %v8680_v1, 0.0  ;;  %v8495_v12 = vadd.f32 %v8430_v33, %v8188_v18  ;;  %v7879_v1 = vpop.f32.mrf.mxu3 }
 0x665   : > { %v8752_v15 = vmax.f32 %v8716_v4, 0.0  ;;  %v8138_v10 = vpop.f32.mrf.mxu0  ;;  %v7386_v4 = vpop.f32.mrf.mxu2 }
 0x666   : > { %v8606_v56 = vmul.f32 %v14629_v51, %v8495_v12  ;;  %v10469_v12 = vunpack.c.l.bf16 %v10804_v44 }
 0x667   : > { %v10537_v13 = vpack.c.bf16 %v8752_v15, %v8751_v41  ;;  %v8191_v15 = vadd.f32 %v14821_v19, %v7932_v9 }
 0x668   : > { %v8645_v47 = vadd.f32 %v14635_v35, %v8606_v56 }
 0x669   : > { %10819 = vst [vmem:[%s14421_s18 + $0x48] sm:$0xff] %v10537_v13   ;;  %v7933_v13 = vadd.f32 %v7874_v22, %v7437_v8  ;;  %v15740_v22 = vld [vmem:[#allocation17_spill] sm:$0xff] }
 0x66a   : > { %v8681_v20 = vadd.f32 %v10465_v43, %v8645_v47  ;;  %v7438_v47 = vadd.f32 %v7381_v25, %v14474_v3  ;;  %vm15741_vm1 = vnez %v15740_v22  ;;  %v10805_v3 = vld [vmem:[%s11339_s10 + $0x60] sm:$0xff]  }
 0x66b   : > { %v8433_v21 = vpop.f32.mrf.mxu1  ;;  %v8192_v19 = vadd.f32 %v8133_v32, %v7933_v13 }
 0x66c   : > { %v8496_v54 = vadd.f32 %v8433_v21, %v8189_v57  ;;  %v8717_v2 = vsel %vm15735_vm14, %v8681_v20, 0.0  ;;  %v7882_v26 = vpop.f32.mrf.mxu3 }
 0x66d   : > { %v8753_v18 = vmax.f32 %v8717_v2, 0.0  ;;  %v8141_v50 = vpop.f32.mrf.mxu0  ;;  %v7388_v61 = vpop.f32.mrf.mxu2  ;;  %v10473_v2 = vunpack.c.l.bf16 %v10805_v3 }
 0x66e   : > { %v8607_v37 = vmul.f32 %v14629_v51, %v8496_v54  ;;  %8472 = vmatmul.bf16.gmra.mxu1 %v8312_v59 }
 0x670   : > { %v8646_v17 = vadd.f32 %v14635_v35, %v8607_v37  ;;  %v7934_v37 = vadd.f32 %v7877_v42, %v7438_v47 }
 0x672   : > { %v8682_v6 = vadd.f32 %v10466_v7, %v8646_v17 }
 0x673   : > { %v8435_v58 = vpop.f32.mrf.mxu1 }
 0x674   : > { %v8718_v36 = vsel %vm15737_vm9, %v8682_v6, 0.0  ;;  %v8497_v63 = vadd.f32 %v8435_v58, %v8190_v53  ;;  %v7884_v25 = vpop.f32.mrf.mxu3  ;;  %v8193_v6 = vadd.f32 %v8136_v0, %v7934_v37 }
 0x675   : > { %v8754_v33 = vmax.f32 %v8718_v36, 0.0  ;;  %v8143_v58 = vpop.f32.mrf.mxu0  ;;  %v7391_v36 = vpop.f32.mrf.mxu2 }
 0x676   : > { %v8608_v40 = vmul.f32 %v14629_v51, %v8497_v63  ;;  %v7935_v63 = vadd.f32 %v7879_v1, %v7439_v23 }
 0x677   : > { %v10542_v16 = vpack.c.bf16 %v8754_v33, %v8753_v18  ;;  %v10474_v33 = vunpack.c.h.bf16 %v10805_v3 }
 0x678   : > { %v8647_v41 = vadd.f32 %v14635_v35, %v8608_v40  ;;  %v7440_v40 = vadd.f32 %v7386_v4, %v14506_v28  ;;  %v8194_v0 = vadd.f32 %v8138_v10, %v7935_v63  ;;  %v10806_v4 = vld [vmem:[%s11339_s10 + $0x68] sm:$0xff]   ;;  %v10807_v63 = vld [vmem:[%s11339_s10 + $0x70] sm:$0xff]  }
 0x679   : > { %10820 = vst [vmem:[%s14421_s18 + $0x50] sm:$0xff] %v10542_v16   ;;  %v15742_v16 = vld [vmem:[#allocation30_spill] sm:$0xff]  ;;  %v10478_v22 = vunpack.c.h.bf16 %v10806_v4 }
 0x67a   : > { %v8683_v34 = vadd.f32 %v10469_v12, %v8647_v41  ;;  %vm15743_vm3 = vnez %v15742_v16  ;;  %v15744_v12 = vld [vmem:[#allocation27_spill] sm:$0xff] }
 0x67b   : > { %v8438_v30 = vpop.f32.mrf.mxu1  ;;  %vm15745_vm5 = vnez %v15744_v12  ;;  %v15750_v12 = vld [vmem:[#allocation16_spill] sm:$0xff] }
 0x67c   : > { %v8498_v56 = vadd.f32 %v8438_v30, %v8191_v15  ;;  %v8719_v57 = vsel %vm15739_vm0, %v8683_v34, 0.0  ;;  %v7887_v44 = vpop.f32.mrf.mxu3  ;;  %vm15751_vm13 = vnez %v15750_v12 }
 0x67d   : > { %v8755_v20 = vmax.f32 %v8719_v57, 0.0  ;;  %v8146_v13 = vpop.f32.mrf.mxu0 }
 0x67e   : > { %v8609_v55 = vmul.f32 %v14629_v51, %v8498_v56  ;;  %v7936_v56 = vadd.f32 %v7882_v26, %v7440_v40 }
 0x680   : > { %v8648_v43 = vadd.f32 %v14635_v35, %v8609_v55  ;;  %v7441_v55 = vadd.f32 %v7388_v61, %v14523_v27  ;;  %v8195_v47 = vadd.f32 %v8141_v50, %v7936_v56  ;;  %v7442_v27 = vadd.f32 %v7391_v36, %v14535_v39  ;;  %v15746_v61 = vld [vmem:[#allocation15_spill] sm:$0xff] }
 0x681   : > { %vm15747_vm10 = vnez %v15746_v61 }
 0x682   : > { %v8684_v21 = vadd.f32 %v10470_v60, %v8648_v43  ;;  %v7393_v60 = vpop.f32.mrf.mxu2  ;;  %v10477_v43 = vunpack.c.l.bf16 %v10806_v4 }
 0x683   : > { %v8440_v59 = vpop.f32.mrf.mxu1  ;;  %v7443_v39 = vadd.f32 %v7393_v60, %v14550_v24 }
 0x684   : > { %v8720_v54 = vsel %vm15741_vm1, %v8684_v21, 0.0  ;;  %v8499_v62 = vadd.f32 %v8440_v59, %v8192_v19  ;;  %v7889_v21 = vpop.f32.mrf.mxu3  ;;  %v7937_v19 = vadd.f32 %v7884_v25, %v7441_v55 }
 0x685   : > { %v8756_v7 = vmax.f32 %v8720_v54, 0.0  ;;  %v8148_v54 = vpop.f32.mrf.mxu0  ;;  %v7939_v16 = vadd.f32 %v7889_v21, %v7443_v39 }
 0x686   : > { %v8610_v17 = vmul.f32 %v14629_v51, %v8499_v62  ;;  %v8196_v37 = vadd.f32 %v8143_v58, %v7937_v19 }
 0x687   : > { %v10547_v5 = vpack.c.bf16 %v8756_v7, %v8755_v20 }
 0x688   : > { %v8649_v32 = vadd.f32 %v14635_v35, %v8610_v17 }
 0x689   : > { %10821 = vst [vmem:[%s14421_s18 + $0x58] sm:$0xff] %v10547_v5   ;;  %v15748_v5 = vld [vmem:[#allocation14_spill] sm:$0xff] }
 0x68a   : > { %v8685_v18 = vadd.f32 %v10473_v2, %v8649_v32  ;;  %v7396_v20 = vpop.f32.mrf.mxu2  ;;  %vm15749_vm6 = vnez %v15748_v5  ;;  %v7938_v32 = vadd.f32 %v7887_v44, %v7442_v27 }
 0x68b   : > { %v8443_v53 = vpop.f32.mrf.mxu1  ;;  %v7444_v24 = vadd.f32 %v7396_v20, %v14559_v46  ;;  %v15754_v46 = vld [vmem:[#allocation88_spill] sm:$0xff] }
 0x68c   : > { %v8500_v52 = vadd.f32 %v8443_v53, %v8193_v6  ;;  %v8721_v31 = vsel %vm15743_vm3, %v8685_v18, 0.0  ;;  %v7892_v53 = vpop.f32.mrf.mxu3  ;;  %v10481_v18 = vunpack.c.l.bf16 %v10807_v63 }
 0x68d   : > { %v8757_v15 = vmax.f32 %v8721_v31, 0.0  ;;  %v8151_v36 = vpop.f32.mrf.mxu0 }
 0x68e   : > { %v8611_v42 = vmul.f32 %v14629_v51, %v8500_v52 }
 0x690   : > { %v8650_v9 = vadd.f32 %v14635_v35, %v8611_v42 }
 0x692   : > { %v8686_v29 = vadd.f32 %v10474_v33, %v8650_v9  ;;  %v8197_v33 = vadd.f32 %v8146_v13, %v7938_v32  ;;  %v7398_v42 = vpop.f32.mrf.mxu2  ;;  %v15752_v13 = vld [vmem:[#allocation24_spill] sm:$0xff] }
 0x693   : > { %v8445_v8 = vpop.f32.mrf.mxu1  ;;  %vm15753_vm8 = vnez %v15752_v13 }
 0x694   : > { %v8722_v1 = vsel %vm15745_vm5, %v8686_v29, 0.0  ;;  %v8501_v41 = vadd.f32 %v8445_v8, %v8194_v0  ;;  %v10482_v29 = vunpack.c.h.bf16 %v10807_v63  ;;  %v7894_v8 = vpop.f32.mrf.mxu3 }
 0x695   : > { %v8758_v30 = vmax.f32 %v8722_v1, 0.0  ;;  %v8153_v56 = vpop.f32.mrf.mxu0 }
 0x696   : > { %v8612_v34 = vmul.f32 %v14629_v51, %v8501_v41 }
 0x697   : > { %v10552_v28 = vpack.c.bf16 %v8758_v30, %v8757_v15  ;;  %v8198_v15 = vadd.f32 %v8148_v54, %v7939_v16 }
 0x698   : > { %v8651_v10 = vadd.f32 %v14635_v35, %v8612_v34 }
 0x699   : > { %10822 = vst [vmem:[%s14421_s18 + $0x60] sm:$0xff] %v10552_v28  }
 0x69a   : > { %v8687_v59 = vadd.f32 %v10477_v43, %v8651_v10  ;;  %v7401_v28 = vpop.f32.mrf.mxu2  ;;  %v7940_v43 = vadd.f32 %v7892_v53, %v7444_v24 }
 0x69b   : > { %v8448_v11 = vpop.f32.mrf.mxu1 }
 0x69c   : > { %v8502_v57 = vadd.f32 %v8448_v11, %v8195_v47  ;;  %v8723_v7 = vsel %vm15747_vm10, %v8687_v59, 0.0  ;;  %v10808_v11 = vld [vmem:[%s11339_s10 + $0x78] sm:$0xff]   ;;  %v8199_v59 = vadd.f32 %v8151_v36, %v7940_v43  ;;  %v15762_v43 = vld [vmem:[#allocation32_spill] sm:$0xff] }
 0x69d   : > { %v8759_v23 = vmax.f32 %v8723_v7, 0.0  ;;  %v10485_v21 = vunpack.c.l.bf16 %v10808_v11  ;;  %v8156_v20 = vpop.f32.mrf.mxu0  ;;  %v10486_v61 = vunpack.c.h.bf16 %v10808_v11  ;;  %vm15763_vm2 = vnez %v15762_v43 }
 0x69e   : > { %v8613_v26 = vmul.f32 %v14629_v51, %v8502_v57  ;;  %v7445_v57 = vadd.f32 %v7398_v42, %v15754_v46  ;;  %v10809_v42 = vld [vmem:[%s11339_s10 + $0x80] sm:$0xff]  }
 0x6a0   : > { %v8652_v62 = vadd.f32 %v14635_v35, %v8613_v26 }
 0x6a2   : > { %v8688_v50 = vadd.f32 %v10478_v22, %v8652_v62  ;;  %v7897_v22 = vpop.f32.mrf.mxu3  ;;  %v7941_v62 = vadd.f32 %v7894_v8, %v7445_v57 }
 0x6a3   : > { %v8450_v17 = vpop.f32.mrf.mxu1 }
 0x6a4   : > { %v8724_v3 = vsel %vm15749_vm6, %v8688_v50, 0.0  ;;  %v8503_v25 = vadd.f32 %v8450_v17, %v8196_v37  ;;  %v7403_v50 = vpop.f32.mrf.mxu2  ;;  %v15755_v17 = vld [vmem:[#allocation23_spill] sm:$0xff] }
 0x6a5   : > { %v8760_v2 = vmax.f32 %v8724_v3, 0.0  ;;  %v7446_v5 = vadd.f32 %v7401_v28, %v15755_v17  ;;  %v15756_v3 = vld [vmem:[#allocation26_spill] sm:$0xff]  ;;  %v7447_v16 = vadd.f32 %v7403_v50, %v14590_v48  ;;  %v15760_v48 = vld [vmem:[#allocation33_spill] sm:$0xff] }
 0x6a6   : > { %v8614_v6 = vmul.f32 %v14629_v51, %v8503_v25  ;;  %vm15757_vm7 = vnez %v15756_v3  ;;  %vm15761_vm11 = vnez %v15760_v48 }
 0x6a7   : > { %v10557_v52 = vpack.c.bf16 %v8760_v2, %v8759_v23  ;;  %v8200_v2 = vadd.f32 %v8153_v56, %v7941_v62 }
 0x6a8   : > { %v8653_v58 = vadd.f32 %v14635_v35, %v8614_v6  ;;  %v15758_v6 = vld [vmem:[#allocation29_spill] sm:$0xff] }
 0x6a9   : > { %10823 = vst [vmem:[%s14421_s18 + $0x68] sm:$0xff] %v10557_v52   ;;  %vm15759_vm12 = vnez %v15758_v6 }
 0x6aa   : > { %v8689_v31 = vadd.f32 %v10481_v18, %v8653_v58  ;;  %v7899_v63 = vpop.f32.mrf.mxu3  ;;  %v7942_v18 = vadd.f32 %v7897_v22, %v7446_v5 }
 0x6ab   : > { %v8453_v9 = vpop.f32.mrf.mxu1  ;;  %v7943_v24 = vadd.f32 %v7899_v63, %v7447_v16  ;;  %v10811_v16 = vld [vmem:[%s11339_s10 + $0x90] sm:$0xff]  }
 0x6ac   : > { %v8504_v40 = vadd.f32 %v8453_v9, %v8197_v33  ;;  %v8725_v1 = vsel %vm15751_vm13, %v8689_v31, 0.0  ;;  %v8158_v9 = vpop.f32.mrf.mxu0  ;;  %v10489_v31 = vunpack.c.l.bf16 %v10809_v42 }
 0x6ad   : > { %v8761_v4 = vmax.f32 %v8725_v1, 0.0  ;;  %v10490_v1 = vunpack.c.h.bf16 %v10809_v42  ;;  %v8202_v28 = vadd.f32 %v8158_v9, %v7943_v24 }
 0x6ae   : > { %v8615_v0 = vmul.f32 %v14629_v51, %v8504_v40  ;;  %v7406_v40 = vpop.f32.mrf.mxu2 }
 0x6af   : > { %v7448_v13 = vadd.f32 %v7406_v40, %v14599_v14 }
 0x6b0   : > { %v8654_v44 = vadd.f32 %v14635_v35, %v8615_v0  ;;  %v8201_v0 = vadd.f32 %v8156_v20, %v7942_v18 }
 0x6b2   : > { %v8690_v41 = vadd.f32 %v10482_v29, %v8654_v44 }
 0x6b3   : > { %v8455_v30 = vpop.f32.mrf.mxu1 }
 0x6b4   : > { %v8726_v34 = vsel %vm15753_vm8, %v8690_v41, 0.0  ;;  %v8505_v60 = vadd.f32 %v8455_v30, %v8198_v15  ;;  %v7902_v15 = vpop.f32.mrf.mxu3  ;;  %v8161_v56 = vpop.f32.mrf.mxu0 }
 0x6b5   : > { %v8762_v55 = vmax.f32 %v8726_v34, 0.0  ;;  %v7944_v57 = vadd.f32 %v7902_v15, %v7448_v13 }
 0x6b6   : > { %v8616_v10 = vmul.f32 %v14629_v51, %v8505_v60 }
 0x6b7   : > { %v10562_v47 = vpack.c.bf16 %v8762_v55, %v8761_v4  ;;  %v7408_v4 = vpop.f32.mrf.mxu2  ;;  %v8203_v62 = vadd.f32 %v8161_v56, %v7944_v57  ;;  %v11012_v57 = vld [vmem:[%s15007_s6] ss:$0 sm:$0xff] }
 0x6b8   : > { %v8655_v19 = vadd.f32 %v14635_v35, %v8616_v10  ;;  %v7449_v14 = vadd.f32 %v7408_v4, %v14610_v45 }
 0x6b9   : > { %10824 = vst [vmem:[%s14421_s18 + $0x70] sm:$0xff] %v10562_v47  }
 0x6ba   : > { %v8691_v27 = vadd.f32 %v10485_v21, %v8655_v19 }
 0x6bb   : > { %v8458_v26 = vpop.f32.mrf.mxu1 }
 0x6bc   : > { %v8506_v54 = vadd.f32 %v8458_v26, %v8199_v59  ;;  %v8727_v25 = vsel %vm15757_vm7, %v8691_v27, 0.0  ;;  %v10810_v59 = vld [vmem:[%s11339_s10 + $0x88] sm:$0xff]   ;;  %v7904_v22 = vpop.f32.mrf.mxu3 }
 0x6bd   : > { %v8763_v39 = vmax.f32 %v8727_v25, 0.0  ;;  %v10493_v26 = vunpack.c.l.bf16 %v10810_v59  ;;  %v7945_v50 = vadd.f32 %v7904_v22, %v7449_v14  ;;  %v10494_v17 = vunpack.c.h.bf16 %v10810_v59  ;;  %v15770_v59 = vld [vmem:[#allocation57_spill] sm:$0xff] }
 0x6be   : > { %v8617_v7 = vmul.f32 %v14629_v51, %v8506_v54 }
 0x6c0   : > { %v8656_v37 = vadd.f32 %v14635_v35, %v8617_v7  ;;  %v7411_v7 = vpop.f32.mrf.mxu2 }
 0x6c1   : > { %v7450_v45 = vadd.f32 %v7411_v7, %v14617_v38 }
 0x6c2   : > { %v8692_v23 = vadd.f32 %v10486_v61, %v8656_v37  ;;  %v8163_v61 = vpop.f32.mrf.mxu0 }
 0x6c3   : > { %v8460_v32 = vpop.f32.mrf.mxu1  ;;  %v8204_v6 = vadd.f32 %v8163_v61, %v7945_v50 }
 0x6c4   : > { %v8728_v53 = vsel %vm15759_vm12, %v8692_v23, 0.0  ;;  %v8507_v52 = vadd.f32 %v8460_v32, %v8200_v2  ;;  %v7907_v25 = vpop.f32.mrf.mxu3  ;;  %v15764_v23 = vld [vmem:[#allocation21_spill] sm:$0xff] }
 0x6c5   : > { %v8764_v36 = vmax.f32 %v8728_v53, 0.0  ;;  %vm15765_vm14 = vnez %v15764_v23 }
 0x6c6   : > { %v8618_v58 = vmul.f32 %v14629_v51, %v8507_v52  ;;  %v15766_v52 = vld [vmem:[#allocation20_spill] sm:$0xff] }
 0x6c7   : > { %v10567_v33 = vpack.c.bf16 %v8764_v36, %v8763_v39  ;;  %vm15767_vm9 = vnez %v15766_v52 }
 0x6c8   : > { %v8657_v29 = vadd.f32 %v14635_v35, %v8618_v58  ;;  %v7413_v9 = vpop.f32.mrf.mxu2 }
 0x6c9   : > { %10825 = vst [vmem:[%s14421_s18 + $0x78] sm:$0xff] %v10567_v33   ;;  %v7946_v33 = vadd.f32 %v7907_v25, %v7450_v45 }
 0x6ca   : > { %v8693_v12 = vadd.f32 %v10489_v31, %v8657_v29  ;;  %v8166_v36 = vpop.f32.mrf.mxu0  ;;  %v7451_v31 = vadd.f32 %v7413_v9, %v14622_v49  ;;  %v10497_v29 = vunpack.c.l.bf16 %v10811_v16 }
 0x6cb   : > { %v8463_v44 = vpop.f32.mrf.mxu1  ;;  %v8205_v38 = vadd.f32 %v8166_v36, %v7946_v33 }
 0x6cc   : > { %v8508_v8 = vadd.f32 %v8463_v44, %v8201_v0  ;;  %v8729_v34 = vsel %vm15761_vm11, %v8693_v12, 0.0  ;;  %v7909_v44 = vpop.f32.mrf.mxu3 }
 0x6cd   : > { %v8765_v11 = vmax.f32 %v8729_v34, 0.0  ;;  %v7947_v12 = vadd.f32 %v7909_v44, %v7451_v31 }
 0x6ce   : > { %v8619_v41 = vmul.f32 %v14629_v51, %v8508_v8 }
 0x6d0   : > { %v8658_v30 = vadd.f32 %v14635_v35, %v8619_v41  ;;  %v10498_v41 = vunpack.c.h.bf16 %v10811_v16 }
 0x6d2   : > { %v8694_v60 = vadd.f32 %v10490_v1, %v8658_v30  ;;  %v8168_v30 = vpop.f32.mrf.mxu0 }
 0x6d3   : > { %v8465_v55 = vpop.f32.mrf.mxu1  ;;  %v8206_v13 = vadd.f32 %v8168_v30, %v7947_v12 }
 0x6d4   : > { %v8730_v10 = vsel %vm15763_vm2, %v8694_v60, 0.0  ;;  %v8509_v47 = vadd.f32 %v8465_v55, %v8202_v28  ;;  %v8549_v28 = vld [vmem:[%s11339_s10 + $0x98] sm:$0xf] }
 0x6d5   : > { %v8766_v46 = vmax.f32 %v8730_v10, 0.0 }
 0x6d6   : > { %v8620_v21 = vmul.f32 %v14629_v51, %v8509_v47 }
 0x6d7   : > { %v10572_v19 = vpack.c.bf16 %v8766_v46, %v8765_v11 }
 0x6d8   : > { %v8659_v54 = vadd.f32 %v14635_v35, %v8620_v21 }
 0x6d9   : > { %10826 = vst [vmem:[%s14421_s18 + $0x80] sm:$0xff] %v10572_v19  }
 0x6da   : > { %v8695_v37 = vadd.f32 %v10493_v26, %v8659_v54 }
 0x6db   : > { %v8468_v20 = vpop.f32.mrf.mxu1 }
 0x6dc   : > { %v8510_v27 = vadd.f32 %v8468_v20, %v8203_v62  ;;  %v8731_v2 = vsel %vm15765_vm14, %v8695_v37, 0.0 }
 0x6dd   : > { %v8767_v18 = vmax.f32 %v8731_v2, 0.0 }
 0x6de   : > { %v8621_v5 = vmul.f32 %v14629_v51, %v8510_v27 }
 0x6e0   : > { %v8660_v3 = vadd.f32 %v14635_v35, %v8621_v5 }
 0x6e2   : > { %v8696_v32 = vadd.f32 %v10494_v17, %v8660_v3 }
 0x6e3   : > { %v8470_v53 = vpop.f32.mrf.mxu1 }
 0x6e4   : > { %v8732_v63 = vsel %vm15767_vm9, %v8696_v32, 0.0  ;;  %v8511_v39 = vadd.f32 %v8470_v53, %v8204_v6 }
 0x6e5   : > { %v8768_v58 = vmax.f32 %v8732_v63, 0.0 }
 0x6e6   : > { %v8622_v42 = vmul.f32 %v14629_v51, %v8511_v39 }
 0x6e7   : > { %v10577_v40 = vpack.c.bf16 %v8768_v58, %v8767_v18 }
 0x6e8   : > { %v8661_v0 = vadd.f32 %v14635_v35, %v8622_v42 }
 0x6e9   : > { %10827 = vst [vmem:[%s14421_s18 + $0x88] sm:$0xff] %v10577_v40  }
 0x6ea   : > { %v8697_v1 = vadd.f32 %v10497_v29, %v8661_v0 }
 0x6eb   : > { %v8473_v8 = vpop.f32.mrf.mxu1 }
 0x6ec   : > { %v8512_v24 = vadd.f32 %v8473_v8, %v8205_v38  ;;  %v8733_v49 = vsel %vm13654_vm4, %v8697_v1, 0.0 }
 0x6ed   : > { %v8769_v10 = vmax.f32 %v8733_v49, 0.0 }
 0x6ee   : > { %v8623_v15 = vmul.f32 %v14629_v51, %v8512_v24  ;;  %v8585_v51 = vunpack.c.l.bf16 %v8549_v28 }
 0x6f0   : > { %v8662_v56 = vadd.f32 %v14635_v35, %v8623_v15  ;;  %v11011_v35 = vld [vmem:[%s15006_s5] ss:$0 sm:$0xff] }
 0x6f2   : > { %v8698_v34 = vadd.f32 %v10498_v41, %v8662_v56 }
 0x6f3   : > { %v8475_v60 = vpop.f32.mrf.mxu1 }
 0x6f4   : > { %v8734_v55 = vsel %vm13707_vm15, %v8698_v34, 0.0  ;;  %v8513_v43 = vadd.f32 %v8475_v60, %v8206_v13  ;;  %vm15771_vm15 = vnez %v15770_v59 }
 0x6f5   : > { %v8770_v47 = vmax.f32 %v8734_v55, 0.0 }
 0x6f6   : > { %v8624_v11 = vmul.f32 %v11011_v35, %v8513_v43 }
 0x6f7   : > { %v10582_v46 = vpack.c.bf16 %v8770_v47, %v8769_v10 }
 0x6f8   : > { %v8663_v21 = vadd.f32 %v11012_v57, %v8624_v11 }
 0x6f9   : > { %10828 = vst [vmem:[%s14421_s18 + $0x90] sm:$0xff] %v10582_v46  }
 0x6fa   : > { %v8699_v19 = vadd.f32 %v8663_v21, %v8585_v51 }
 0x6fc   : > { %v8735_v22 = vsel %vm15771_vm15, %v8699_v19, 0.0 }
 0x6fd   : > { %v8771_v14 = vmax.f32 %v8735_v22, 0.0 }
 0x6ff   : > { %v8810_v26 = vpack.c.bf16 %v8771_v14, %v8771_v14 }
 0x701   : > { %8846 = vst [vmem:[%s14421_s18 + $0x98] sm:$0xf] %v8810_v26 }
 0x702   : > { %11133 = shalt.err (!%p11130_p10)
}
 0x703   : > { %s11186_s4 = smov 64   ;;  %s11187_s18 = smov 4  }
 0x704   : > { %10923 = dma.vmem_to_hbm [thread:$0]  (%p11300_p3), %s8864_s13, 2688, %s8866_s19, %s8851_s30, %s11186_s4, %s11186_s4, %s11187_s18  }
 0x705 PF: > { %s8880_s16 = sand.u32 1, %s11167_s24   ;;  %p15772_p12 = scmp.ge.s32.totalorder %s11179_s27, 2 }
 0x706   : > { %s8881_s17 = scalar_lea.sflag [#allocation5], %s8880_s16 }
 0x707   : > { %p10937_p13 = pnand %p15772_p12, %p11263_p6 }
 0x709   : > { %p10938_p0 = pneg %p10937_p13 }
 0x70b   : > { %11159 = dma.done.wait (%p10938_p0), %s8881_s17, 2688  }
 0x70c   : > { %11161 = vsyncadd (%p10938_p0), %s8881_s17, 4294964608  ;;  %s15773_s14 = sld [smem:[#allocation13_spill]]  ;;  %p21_p5 = scmp.ge.s32.totalorder %s11290_s22, 4  }
 0x70d   : > { %s15774_s24 = smov %s11171_s25  ;;  %s15775_s25 = smov %s11175_s26 }
 0x70e   : > { %s15777_s27 = smov %s11290_s22  ;;  %23 = sbr.rel (!%p21_p5) target bundleno = 9 (0x9), region = 117 }
 0x712   : > { %s15776_s26 = smov %s15773_s14 }
 0x713   :  { %8887 = vsyncpa [#allocation4], 1 }
 0x714   :  { %8889 = vsyncpa [#allocation4 + $0x1], 1 }
 0x715   :  { %8890 = vsyncpa [#allocation7], 1 }
 0x716   :  { %8891 = vsyncpa [#allocation5], 1 }
 0x717   :  { %8893 = vsyncpa [#allocation5 + $0x1], 1 }

</bundles_post_ra>
